<compile_context>
chip_gen: v7x
topology: tpu7x:2x2x1
jax: 0.10.0
libtpu: 0.0.40
codegen_flags: <defaults>
</compile_context>

<pallas_src>
import jax
import jax.numpy as jnp
from jax.experimental import pallas as pl
from jax.experimental.pallas import tpu as pltpu


# ----------------------------------------------------------------------------
# Fused kernel: FastNormalizedFusion + DepthwiseSeparableConv(3x3,pad=1) + BN + ReLU
# ----------------------------------------------------------------------------
def _make_fused_conv_kernel(K, stride, H, W, C, Ho, Wo):
    LP = 8  # left column pad inside the scratch -> interior store stays sublane aligned

    def kernel(*refs):
        w_ref = refs[0]                       # SMEM (K+1,): [relu(w_k)..., 1/(sum+eps)]
        x_refs = refs[1:1 + K]                # K x (1, H, W, C) VMEM tiles
        dw_ref, pw_ref, sc_ref, sh_ref, o_ref, pad_ref = refs[1 + K:]

        # ---- FastNormalizedFusion entirely on-chip (never written to HBM) ----
        fused = x_refs[0][0] * w_ref[0]
        for k in range(1, K):
            fused = fused + x_refs[k][0] * w_ref[k]
        fused = fused * w_ref[K]              # * 1 / (sum(relu(w)) + eps)

        # ---- in-kernel zero halo (padding=1); data stored at aligned col LP ----
        pad_ref[...] = jnp.zeros_like(pad_ref)
        pad_ref[1:H + 1, LP:LP + W, :] = fused

        # ---- depthwise 3x3 (VPU); stride folded into the tap reads ----
        dw = dw_ref[...]                      # (3, 3, C)
        acc = jnp.zeros((Ho, Wo, C), jnp.float32)
        for ky in range(3):
            for kx in range(3):
                c0 = LP - 1 + kx
                if stride == 1:
                    tap = pad_ref[ky:ky + Ho, c0:c0 + Wo, :]
                else:
                    tap = pad_ref[pl.ds(ky, Ho, stride), pl.ds(c0, Wo, stride), :]
                acc = acc + tap * dw[ky, kx, :]

        # ---- pointwise 1x1 on the MXU + folded BatchNorm + ReLU ----
        pw = pw_ref[...]                      # (Cin, Cout)
        sc = sc_ref[...]                      # (1, C)
        sh = sh_ref[...]                      # (1, C)
        if Wo % 8 == 0:
            # (Ho*Wo, C) flattening is a layout no-op when Wo is sublane aligned.
            y = jnp.dot(acc.reshape(Ho * Wo, C), pw,
                        preferred_element_type=jnp.float32)
            y = jnp.maximum(y * sc + sh, 0.0)
            o_ref[...] = y.reshape(1, Ho, Wo, C)
        else:
            # Tiny top-of-pyramid levels (Wo < 8): per-row MXU dots avoid a
            # sub-sublane reshape; Ho is tiny here so the unroll is cheap.
            for h in range(Ho):
                y = jnp.dot(acc[h], pw, preferred_element_type=jnp.float32)
                y = jnp.maximum(y * sc + sh, 0.0)
                o_ref[0, h, :, :] = y

    return kernel, LP


def conv3x3_bn_relu(xs, fusion_weight, p, stride=1, eps=1e-4):
    """Fused FastNormalizedFusion(len(xs) nodes) + Conv3x3BnReLU(stride).

    xs            : list of NHWC float32 tensors with identical shapes.
    fusion_weight : (K,) raw fusion weights, or None for a single un-fused input.
    p             : dict with 'dw' (3,3,C), 'pw' (Cin,Cout), 'scale'/'shift' (1,C).
    """
    K = len(xs)
    N, H, W, C = xs[0].shape
    Ho = (H - 1) // stride + 1
    Wo = (W - 1) // stride + 1

    if fusion_weight is None:
        scal = jnp.ones((K + 1,), jnp.float32)        # identity "fusion"
    else:
        w = jax.nn.relu(fusion_weight.astype(jnp.float32))
        scal = jnp.concatenate([w, (1.0 / (jnp.sum(w) + eps))[None]])

    kernel, LP = _make_fused_conv_kernel(K, stride, H, W, C, Ho, Wo)

    # TODO(synk): for production-size feature maps add a row-block grid axis
    # (in-kernel halo rows) plus bf16 storage so blocks fit v7x's 64 MiB VMEM
    # and the pipeline gets >=8 steps; at these test sizes a full (H, W, C)
    # tile per batch element fits comfortably and N is the only useful axis.
    in_specs = [pl.BlockSpec(memory_space=pltpu.MemorySpace.SMEM)]
    in_specs += [pl.BlockSpec((1, H, W, C), lambda n: (n, 0, 0, 0))
                 for _ in range(K)]
    in_specs += [
        pl.BlockSpec((3, 3, C), lambda n: (0, 0, 0)),
        pl.BlockSpec((C, C), lambda n: (0, 0)),
        pl.BlockSpec((1, C), lambda n: (0, 0)),
        pl.BlockSpec((1, C), lambda n: (0, 0)),
    ]

    return pl.pallas_call(
        kernel,
        out_shape=jax.ShapeDtypeStruct((N, Ho, Wo, C), jnp.float32),
        grid=(N,),
        in_specs=in_specs,
        out_specs=pl.BlockSpec((1, Ho, Wo, C), lambda n: (n, 0, 0, 0)),
        scratch_shapes=[pltpu.VMEM((H + 2, W + LP + 1, C), jnp.float32)],
        compiler_params=pltpu.CompilerParams(dimension_semantics=("parallel",)),
    )(scal, *xs, p["dw"], p["pw"], p["scale"], p["shift"])


# ----------------------------------------------------------------------------
# Glue
# ----------------------------------------------------------------------------
def upsample2x(x):
    # nn.Upsample(scale_factor=2, mode='bilinear') (align_corners=False) matches
    # jax.image.resize 'bilinear' (half-pixel centers).
    # TODO(synk): the 4-tap bilinear 2x interpolation could be fused into the
    # conv kernel to avoid materializing the 4x-larger tensor in HBM.
    N, H, W, C = x.shape
    return jax.image.resize(x, (N, 2 * H, 2 * W, C), method="bilinear")


def bifpn_forward(params, p2, p3, p4, p5):
    """Inputs/outputs NHWC float32. Mirrors BiFPN.forward exactly."""
    conv = conv3x3_bn_relu
    p4_tr = conv([p4, upsample2x(p5)], params["fuse_p4_tr"], params["p4_tr"])
    p3_tr = conv([p3, upsample2x(p4_tr)], params["fuse_p3_tr"], params["p3_tr"])
    p2_out = conv([p2, upsample2x(p3_tr)], params["fuse_p2_out"], params["p2_out"])
    d2 = conv([p2_out], None, params["down_p2"], stride=2)
    p3_out = conv([p3, p3_tr, d2], params["fuse_p3_out"], params["p3_out"])
    d3 = conv([p3_out], None, params["down_p3"], stride=2)
    p4_out = conv([p4, p4_tr, d3], params["fuse_p4_out"], params["p4_out"])
    d4 = conv([p4_out], None, params["down_p4"], stride=2)
    p5_out = conv([p5, d4], params["fuse_p5_out"], params["p5_out"])
    return p2_out, p3_out, p4_out, p5_out


# ----------------------------------------------------------------------------
# Deterministic parameter initialization (synthetic; shapes from __init__)
# ----------------------------------------------------------------------------
def init_conv_block(key, C):
    k = jax.random.split(key, 6)
    dw = 0.2 * jax.random.normal(k[0], (3, 3, C), jnp.float32)     # depthwise (C,1,3,3) -> (3,3,C)
    pw = 0.2 * jax.random.normal(k[1], (C, C), jnp.float32)        # pointwise (Cout,Cin,1,1) -> (Cin,Cout)
    gamma = 1.0 + 0.1 * jax.random.normal(k[2], (C,), jnp.float32)
    beta = 0.1 * jax.random.normal(k[3], (C,), jnp.float32)
    mean = 0.05 * jax.random.normal(k[4], (C,), jnp.float32)
    var = jnp.abs(1.0 + 0.1 * jax.random.normal(k[5], (C,), jnp.float32))
    # TODO(synk): BatchNorm reproduced in eval mode (running stats folded into
    # scale/shift); training-mode batch statistics are not computed.
    scale = gamma / jnp.sqrt(var + 1e-5)
    shift = beta - mean * scale
    return dict(dw=dw, pw=pw, scale=scale.reshape(1, C), shift=shift.reshape(1, C))


def init_bifpn_params(key, C):
    names = ["p4_tr", "p3_tr", "down_p2", "down_p3", "down_p4",
             "p5_out", "p4_out", "p3_out", "p2_out"]
    keys = jax.random.split(key, len(names))
    params = {n: init_conv_block(k, C) for n, k in zip(names, keys)}
    # FastNormalizedFusion weights are initialized to ones, as in the module.
    params["fuse_p4_tr"] = jnp.ones((2,), jnp.float32)
    params["fuse_p3_tr"] = jnp.ones((2,), jnp.float32)
    params["fuse_p5_out"] = jnp.ones((2,), jnp.float32)
    params["fuse_p4_out"] = jnp.ones((3,), jnp.float32)
    params["fuse_p3_out"] = jnp.ones((3,), jnp.float32)
    params["fuse_p2_out"] = jnp.ones((2,), jnp.float32)
    return params


if __name__ == "__main__":
    key = jax.random.PRNGKey(0)
    N, C = 2, 4
    kp, k2, k3, k4, k5 = jax.random.split(key, 5)

    # FPN pyramid levels in PyTorch NCHW convention.
    p2_nchw = jax.random.normal(k2, (N, C, 16, 16), jnp.float32)
    p3_nchw = jax.random.normal(k3, (N, C, 8, 8), jnp.float32)
    p4_nchw = jax.random.normal(k4, (N, C, 4, 4), jnp.float32)
    p5_nchw = jax.random.normal(k5, (N, C, 2, 2), jnp.float32)

    to_nhwc = lambda t: jnp.transpose(t, (0, 2, 3, 1))
    to_nchw = lambda t: jnp.transpose(t, (0, 3, 1, 2))

    params = init_bifpn_params(kp, C)

    fwd = jax.jit(bifpn_forward)
    outs_nhwc = fwd(params, to_nhwc(p2_nchw), to_nhwc(p3_nchw),
                    to_nhwc(p4_nchw), to_nhwc(p5_nchw))
    outs = tuple(to_nchw(o) for o in outs_nhwc)
    jax.block_until_ready(outs)

    assert outs[0].shape == (N, C, 16, 16)
    assert outs[1].shape == (N, C, 8, 8)
    assert outs[2].shape == (N, C, 4, 4)
    assert outs[3].shape == (N, C, 2, 2)
    assert all(bool(jnp.all(jnp.isfinite(o))) for o in outs)
    print("KERNEL_OK")
</pallas_src>

<mosaic_0001>
module attributes {stable_mosaic.version = 11 : i64} {
  func.func @kernel(%arg0: i32, %arg1: memref<3xf32, #tpu.memory_space<smem>>, %arg2: memref<1x4x4x4xf32, #tpu.memory_space<vmem>>, %arg3: memref<1x4x4x4xf32, #tpu.memory_space<vmem>>, %arg4: memref<3x3x4xf32, #tpu.memory_space<vmem>>, %arg5: memref<4x4xf32, #tpu.memory_space<vmem>>, %arg6: memref<1x4xf32, #tpu.memory_space<vmem>>, %arg7: memref<1x4xf32, #tpu.memory_space<vmem>>, %arg8: memref<1x4x4x4xf32, #tpu.memory_space<vmem>>, %arg9: memref<6x13x4xf32, #tpu.memory_space<vmem>>) attributes {dimension_semantics = [#tpu.dimension_semantics<parallel>], iteration_bounds = array<i64: 2>, scalar_prefetch = 0 : i64, scratch_operands = 1 : i64, tpu.core_type = #tpu.core_type<tc>, window_params = [{transform_indices = @transform_0, window_bounds = array<i64: 3>}, {transform_indices = @transform_1, window_bounds = array<i64: 1, 4, 4, 4>}, {transform_indices = @transform_2, window_bounds = array<i64: 1, 4, 4, 4>}, {pipeline_mode = #tpu.pipeline_mode<synchronous>, transform_indices = @transform_3, window_bounds = array<i64: 3, 3, 4>}, {pipeline_mode = #tpu.pipeline_mode<synchronous>, transform_indices = @transform_4, window_bounds = array<i64: 4, 4>}, {pipeline_mode = #tpu.pipeline_mode<synchronous>, transform_indices = @transform_5, window_bounds = array<i64: 1, 4>}, {pipeline_mode = #tpu.pipeline_mode<synchronous>, transform_indices = @transform_6, window_bounds = array<i64: 1, 4>}, {transform_indices = @transform_7, window_bounds = array<i64: 1, 4, 4, 4>}]} {
    %c0 = arith.constant 0 : index
    %c0_0 = arith.constant 0 : index
    %c0_1 = arith.constant 0 : index
    %c0_2 = arith.constant 0 : index
    %0 = vector.load %arg2[%c0, %c0_0, %c0_1, %c0_2] : memref<1x4x4x4xf32, #tpu.memory_space<vmem>>, vector<1x4x4x4xf32>
    %1 = vector.shape_cast %0 : vector<1x4x4x4xf32> to vector<4x4x4xf32>
    %c0_3 = arith.constant 0 : index
    %2 = memref.load %arg1[%c0_3] : memref<3xf32, #tpu.memory_space<smem>>
    %3 = vector.broadcast %2 : f32 to vector<4x4x4xf32>
    %4 = arith.mulf %1, %3 : vector<4x4x4xf32>
    %c0_4 = arith.constant 0 : index
    %c0_5 = arith.constant 0 : index
    %c0_6 = arith.constant 0 : index
    %c0_7 = arith.constant 0 : index
    %5 = vector.load %arg3[%c0_4, %c0_5, %c0_6, %c0_7] : memref<1x4x4x4xf32, #tpu.memory_space<vmem>>, vector<1x4x4x4xf32>
    %6 = vector.shape_cast %5 : vector<1x4x4x4xf32> to vector<4x4x4xf32>
    %c1 = arith.constant 1 : index
    %7 = memref.load %arg1[%c1] : memref<3xf32, #tpu.memory_space<smem>>
    %8 = vector.broadcast %7 : f32 to vector<4x4x4xf32>
    %9 = arith.mulf %6, %8 : vector<4x4x4xf32>
    %10 = arith.addf %4, %9 : vector<4x4x4xf32>
    %c2 = arith.constant 2 : index
    %11 = memref.load %arg1[%c2] : memref<3xf32, #tpu.memory_space<smem>>
    %12 = vector.broadcast %11 : f32 to vector<4x4x4xf32>
    %13 = arith.mulf %10, %12 : vector<4x4x4xf32>
    %cst = arith.constant 0.000000e+00 : f32
    %14 = vector.broadcast %cst : f32 to vector<6x13x4xf32>
    %c0_8 = arith.constant 0 : index
    %c0_9 = arith.constant 0 : index
    %c0_10 = arith.constant 0 : index
    %15 = vector.load %arg9[%c0_8, %c0_9, %c0_10] : memref<6x13x4xf32, #tpu.memory_space<vmem>>, vector<6x13x4xf32>
    tpu.vector_store %arg9[%c0_8, %c0_9, %c0_10], %14 {strides = array<i32>} : memref<6x13x4xf32, #tpu.memory_space<vmem>>, vector<6x13x4xf32>,
    %c1_11 = arith.constant 1 : index
    %c8 = arith.constant 8 : index
    %c0_12 = arith.constant 0 : index
    %16 = vector.load %arg9[%c1_11, %c8, %c0_12] : memref<6x13x4xf32, #tpu.memory_space<vmem>>, vector<4x4x4xf32>
    tpu.vector_store %arg9[%c1_11, %c8, %c0_12], %13 {strides = array<i32>} : memref<6x13x4xf32, #tpu.memory_space<vmem>>, vector<4x4x4xf32>,
    %c0_13 = arith.constant 0 : index
    %c0_14 = arith.constant 0 : index
    %c0_15 = arith.constant 0 : index
    %17 = vector.load %arg4[%c0_13, %c0_14, %c0_15] : memref<3x3x4xf32, #tpu.memory_space<vmem>>, vector<3x3x4xf32>
    %cst_16 = arith.constant 0.000000e+00 : f32
    %18 = vector.broadcast %cst_16 : f32 to vector<4x4x4xf32>
    %c0_17 = arith.constant 0 : index
    %c7 = arith.constant 7 : index
    %c0_18 = arith.constant 0 : index
    %19 = vector.load %arg9[%c0_17, %c7, %c0_18] : memref<6x13x4xf32, #tpu.memory_space<vmem>>, vector<4x4x4xf32>
    %20 = vector.extract_strided_slice %17 {offsets = [0, 0, 0], sizes = [1, 1, 4], strides = [1, 1, 1]} : vector<3x3x4xf32> to vector<1x1x4xf32>
    %21 = vector.shape_cast %20 : vector<1x1x4xf32> to vector<4xf32>
    %22 = vector.shape_cast %21 : vector<4xf32> to vector<1x1x4xf32>
    %23 = vector.broadcast %22 : vector<1x1x4xf32> to vector<4x4x4xf32>
    %24 = arith.mulf %19, %23 : vector<4x4x4xf32>
    %25 = arith.addf %18, %24 : vector<4x4x4xf32>
    %c0_19 = arith.constant 0 : index
    %c8_20 = arith.constant 8 : index
    %c0_21 = arith.constant 0 : index
    %26 = vector.load %arg9[%c0_19, %c8_20, %c0_21] : memref<6x13x4xf32, #tpu.memory_space<vmem>>, vector<4x4x4xf32>
    %27 = vector.extract_strided_slice %17 {offsets = [0, 1, 0], sizes = [1, 1, 4], strides = [1, 1, 1]} : vector<3x3x4xf32> to vector<1x1x4xf32>
    %28 = vector.shape_cast %27 : vector<1x1x4xf32> to vector<4xf32>
    %29 = vector.shape_cast %28 : vector<4xf32> to vector<1x1x4xf32>
    %30 = vector.broadcast %29 : vector<1x1x4xf32> to vector<4x4x4xf32>
    %31 = arith.mulf %26, %30 : vector<4x4x4xf32>
    %32 = arith.addf %25, %31 : vector<4x4x4xf32>
    %c0_22 = arith.constant 0 : index
    %c9 = arith.constant 9 : index
    %c0_23 = arith.constant 0 : index
    %33 = vector.load %arg9[%c0_22, %c9, %c0_23] : memref<6x13x4xf32, #tpu.memory_space<vmem>>, vector<4x4x4xf32>
    %34 = vector.extract_strided_slice %17 {offsets = [0, 2, 0], sizes = [1, 1, 4], strides = [1, 1, 1]} : vector<3x3x4xf32> to vector<1x1x4xf32>
    %35 = vector.shape_cast %34 : vector<1x1x4xf32> to vector<4xf32>
    %36 = vector.shape_cast %35 : vector<4xf32> to vector<1x1x4xf32>
    %37 = vector.broadcast %36 : vector<1x1x4xf32> to vector<4x4x4xf32>
    %38 = arith.mulf %33, %37 : vector<4x4x4xf32>
    %39 = arith.addf %32, %38 : vector<4x4x4xf32>
    %c1_24 = arith.constant 1 : index
    %c7_25 = arith.constant 7 : index
    %c0_26 = arith.constant 0 : index
    %40 = vector.load %arg9[%c1_24, %c7_25, %c0_26] : memref<6x13x4xf32, #tpu.memory_space<vmem>>, vector<4x4x4xf32>
    %41 = vector.extract_strided_slice %17 {offsets = [1, 0, 0], sizes = [1, 1, 4], strides = [1, 1, 1]} : vector<3x3x4xf32> to vector<1x1x4xf32>
    %42 = vector.shape_cast %41 : vector<1x1x4xf32> to vector<4xf32>
    %43 = vector.shape_cast %42 : vector<4xf32> to vector<1x1x4xf32>
    %44 = vector.broadcast %43 : vector<1x1x4xf32> to vector<4x4x4xf32>
    %45 = arith.mulf %40, %44 : vector<4x4x4xf32>
    %46 = arith.addf %39, %45 : vector<4x4x4xf32>
    %c1_27 = arith.constant 1 : index
    %c8_28 = arith.constant 8 : index
    %c0_29 = arith.constant 0 : index
    %47 = vector.load %arg9[%c1_27, %c8_28, %c0_29] : memref<6x13x4xf32, #tpu.memory_space<vmem>>, vector<4x4x4xf32>
    %48 = vector.extract_strided_slice %17 {offsets = [1, 1, 0], sizes = [1, 1, 4], strides = [1, 1, 1]} : vector<3x3x4xf32> to vector<1x1x4xf32>
    %49 = vector.shape_cast %48 : vector<1x1x4xf32> to vector<4xf32>
    %50 = vector.shape_cast %49 : vector<4xf32> to vector<1x1x4xf32>
    %51 = vector.broadcast %50 : vector<1x1x4xf32> to vector<4x4x4xf32>
    %52 = arith.mulf %47, %51 : vector<4x4x4xf32>
    %53 = arith.addf %46, %52 : vector<4x4x4xf32>
    %c1_30 = arith.constant 1 : index
    %c9_31 = arith.constant 9 : index
    %c0_32 = arith.constant 0 : index
    %54 = vector.load %arg9[%c1_30, %c9_31, %c0_32] : memref<6x13x4xf32, #tpu.memory_space<vmem>>, vector<4x4x4xf32>
    %55 = vector.extract_strided_slice %17 {offsets = [1, 2, 0], sizes = [1, 1, 4], strides = [1, 1, 1]} : vector<3x3x4xf32> to vector<1x1x4xf32>
    %56 = vector.shape_cast %55 : vector<1x1x4xf32> to vector<4xf32>
    %57 = vector.shape_cast %56 : vector<4xf32> to vector<1x1x4xf32>
    %58 = vector.broadcast %57 : vector<1x1x4xf32> to vector<4x4x4xf32>
    %59 = arith.mulf %54, %58 : vector<4x4x4xf32>
    %60 = arith.addf %53, %59 : vector<4x4x4xf32>
    %c2_33 = arith.constant 2 : index
    %c7_34 = arith.constant 7 : index
    %c0_35 = arith.constant 0 : index
    %61 = vector.load %arg9[%c2_33, %c7_34, %c0_35] : memref<6x13x4xf32, #tpu.memory_space<vmem>>, vector<4x4x4xf32>
    %62 = vector.extract_strided_slice %17 {offsets = [2, 0, 0], sizes = [1, 1, 4], strides = [1, 1, 1]} : vector<3x3x4xf32> to vector<1x1x4xf32>
    %63 = vector.shape_cast %62 : vector<1x1x4xf32> to vector<4xf32>
    %64 = vector.shape_cast %63 : vector<4xf32> to vector<1x1x4xf32>
    %65 = vector.broadcast %64 : vector<1x1x4xf32> to vector<4x4x4xf32>
    %66 = arith.mulf %61, %65 : vector<4x4x4xf32>
    %67 = arith.addf %60, %66 : vector<4x4x4xf32>
    %c2_36 = arith.constant 2 : index
    %c8_37 = arith.constant 8 : index
    %c0_38 = arith.constant 0 : index
    %68 = vector.load %arg9[%c2_36, %c8_37, %c0_38] : memref<6x13x4xf32, #tpu.memory_space<vmem>>, vector<4x4x4xf32>
    %69 = vector.extract_strided_slice %17 {offsets = [2, 1, 0], sizes = [1, 1, 4], strides = [1, 1, 1]} : vector<3x3x4xf32> to vector<1x1x4xf32>
    %70 = vector.shape_cast %69 : vector<1x1x4xf32> to vector<4xf32>
    %71 = vector.shape_cast %70 : vector<4xf32> to vector<1x1x4xf32>
    %72 = vector.broadcast %71 : vector<1x1x4xf32> to vector<4x4x4xf32>
    %73 = arith.mulf %68, %72 : vector<4x4x4xf32>
    %74 = arith.addf %67, %73 : vector<4x4x4xf32>
    %c2_39 = arith.constant 2 : index
    %c9_40 = arith.constant 9 : index
    %c0_41 = arith.constant 0 : index
    %75 = vector.load %arg9[%c2_39, %c9_40, %c0_41] : memref<6x13x4xf32, #tpu.memory_space<vmem>>, vector<4x4x4xf32>
    %76 = vector.extract_strided_slice %17 {offsets = [2, 2, 0], sizes = [1, 1, 4], strides = [1, 1, 1]} : vector<3x3x4xf32> to vector<1x1x4xf32>
    %77 = vector.shape_cast %76 : vector<1x1x4xf32> to vector<4xf32>
    %78 = vector.shape_cast %77 : vector<4xf32> to vector<1x1x4xf32>
    %79 = vector.broadcast %78 : vector<1x1x4xf32> to vector<4x4x4xf32>
    %80 = arith.mulf %75, %79 : vector<4x4x4xf32>
    %81 = arith.addf %74, %80 : vector<4x4x4xf32>
    %c0_42 = arith.constant 0 : index
    %c0_43 = arith.constant 0 : index
    %82 = vector.load %arg5[%c0_42, %c0_43] : memref<4x4xf32, #tpu.memory_space<vmem>>, vector<4x4xf32>
    %c0_44 = arith.constant 0 : index
    %c0_45 = arith.constant 0 : index
    %83 = vector.load %arg6[%c0_44, %c0_45] : memref<1x4xf32, #tpu.memory_space<vmem>>, vector<1x4xf32>
    %c0_46 = arith.constant 0 : index
    %c0_47 = arith.constant 0 : index
    %84 = vector.load %arg7[%c0_46, %c0_47] : memref<1x4xf32, #tpu.memory_space<vmem>>, vector<1x4xf32>
    %85 = vector.extract_strided_slice %81 {offsets = [0, 0, 0], sizes = [1, 4, 4], strides = [1, 1, 1]} : vector<4x4x4xf32> to vector<1x4x4xf32>
    %86 = vector.shape_cast %85 : vector<1x4x4xf32> to vector<4x4xf32>
    %cst_48 = arith.constant dense<0.000000e+00> : vector<4x4xf32>
    %87 = tpu.matmul %86, %82, %cst_48 {dimension_numbers = #tpu.dot_dimension_numbers<[1], [0], [0], [1], [0, 0, 1, 1], [], []>} : vector<4x4xf32>, vector<4x4xf32>, vector<4x4xf32> -> vector<4x4xf32>
    %88 = vector.broadcast %83 : vector<1x4xf32> to vector<4x4xf32>
    %89 = arith.mulf %87, %88 : vector<4x4xf32>
    %90 = vector.broadcast %84 : vector<1x4xf32> to vector<4x4xf32>
    %91 = arith.addf %89, %90 : vector<4x4xf32>
    %cst_49 = arith.constant 0.000000e+00 : f32
    %92 = vector.broadcast %cst_49 : f32 to vector<4x4xf32>
    %93 = arith.maximumf %91, %92 : vector<4x4xf32>
    %c0_50 = arith.constant 0 : index
    %c0_51 = arith.constant 0 : index
    %c0_52 = arith.constant 0 : index
    %c0_53 = arith.constant 0 : index
    %94 = vector.load %arg8[%c0_50, %c0_51, %c0_52, %c0_53] : memref<1x4x4x4xf32, #tpu.memory_space<vmem>>, vector<1x1x4x4xf32>
    %95 = vector.shape_cast %94 : vector<1x1x4x4xf32> to vector<4x4xf32>
    %96 = vector.shape_cast %93 : vector<4x4xf32> to vector<1x1x4x4xf32>
    tpu.vector_store %arg8[%c0_50, %c0_51, %c0_52, %c0_53], %96 {strides = array<i32>} : memref<1x4x4x4xf32, #tpu.memory_space<vmem>>, vector<1x1x4x4xf32>,
    %97 = vector.extract_strided_slice %81 {offsets = [1, 0, 0], sizes = [1, 4, 4], strides = [1, 1, 1]} : vector<4x4x4xf32> to vector<1x4x4xf32>
    %98 = vector.shape_cast %97 : vector<1x4x4xf32> to vector<4x4xf32>
    %cst_54 = arith.constant dense<0.000000e+00> : vector<4x4xf32>
    %99 = tpu.matmul %98, %82, %cst_54 {dimension_numbers = #tpu.dot_dimension_numbers<[1], [0], [0], [1], [0, 0, 1, 1], [], []>} : vector<4x4xf32>, vector<4x4xf32>, vector<4x4xf32> -> vector<4x4xf32>
    %100 = vector.broadcast %83 : vector<1x4xf32> to vector<4x4xf32>
    %101 = arith.mulf %99, %100 : vector<4x4xf32>
    %102 = vector.broadcast %84 : vector<1x4xf32> to vector<4x4xf32>
    %103 = arith.addf %101, %102 : vector<4x4xf32>
    %cst_55 = arith.constant 0.000000e+00 : f32
    %104 = vector.broadcast %cst_55 : f32 to vector<4x4xf32>
    %105 = arith.maximumf %103, %104 : vector<4x4xf32>
    %c0_56 = arith.constant 0 : index
    %c1_57 = arith.constant 1 : index
    %c0_58 = arith.constant 0 : index
    %c0_59 = arith.constant 0 : index
    %106 = vector.load %arg8[%c0_56, %c1_57, %c0_58, %c0_59] : memref<1x4x4x4xf32, #tpu.memory_space<vmem>>, vector<1x1x4x4xf32>
    %107 = vector.shape_cast %106 : vector<1x1x4x4xf32> to vector<4x4xf32>
    %108 = vector.shape_cast %105 : vector<4x4xf32> to vector<1x1x4x4xf32>
    tpu.vector_store %arg8[%c0_56, %c1_57, %c0_58, %c0_59], %108 {strides = array<i32>} : memref<1x4x4x4xf32, #tpu.memory_space<vmem>>, vector<1x1x4x4xf32>,
    %109 = vector.extract_strided_slice %81 {offsets = [2, 0, 0], sizes = [1, 4, 4], strides = [1, 1, 1]} : vector<4x4x4xf32> to vector<1x4x4xf32>
    %110 = vector.shape_cast %109 : vector<1x4x4xf32> to vector<4x4xf32>
    %cst_60 = arith.constant dense<0.000000e+00> : vector<4x4xf32>
    %111 = tpu.matmul %110, %82, %cst_60 {dimension_numbers = #tpu.dot_dimension_numbers<[1], [0], [0], [1], [0, 0, 1, 1], [], []>} : vector<4x4xf32>, vector<4x4xf32>, vector<4x4xf32> -> vector<4x4xf32>
    %112 = vector.broadcast %83 : vector<1x4xf32> to vector<4x4xf32>
    %113 = arith.mulf %111, %112 : vector<4x4xf32>
    %114 = vector.broadcast %84 : vector<1x4xf32> to vector<4x4xf32>
    %115 = arith.addf %113, %114 : vector<4x4xf32>
    %cst_61 = arith.constant 0.000000e+00 : f32
    %116 = vector.broadcast %cst_61 : f32 to vector<4x4xf32>
    %117 = arith.maximumf %115, %116 : vector<4x4xf32>
    %c0_62 = arith.constant 0 : index
    %c2_63 = arith.constant 2 : index
    %c0_64 = arith.constant 0 : index
    %c0_65 = arith.constant 0 : index
    %118 = vector.load %arg8[%c0_62, %c2_63, %c0_64, %c0_65] : memref<1x4x4x4xf32, #tpu.memory_space<vmem>>, vector<1x1x4x4xf32>
    %119 = vector.shape_cast %118 : vector<1x1x4x4xf32> to vector<4x4xf32>
    %120 = vector.shape_cast %117 : vector<4x4xf32> to vector<1x1x4x4xf32>
    tpu.vector_store %arg8[%c0_62, %c2_63, %c0_64, %c0_65], %120 {strides = array<i32>} : memref<1x4x4x4xf32, #tpu.memory_space<vmem>>, vector<1x1x4x4xf32>,
    %121 = vector.extract_strided_slice %81 {offsets = [3, 0, 0], sizes = [1, 4, 4], strides = [1, 1, 1]} : vector<4x4x4xf32> to vector<1x4x4xf32>
    %122 = vector.shape_cast %121 : vector<1x4x4xf32> to vector<4x4xf32>
    %cst_66 = arith.constant dense<0.000000e+00> : vector<4x4xf32>
    %123 = tpu.matmul %122, %82, %cst_66 {dimension_numbers = #tpu.dot_dimension_numbers<[1], [0], [0], [1], [0, 0, 1, 1], [], []>} : vector<4x4xf32>, vector<4x4xf32>, vector<4x4xf32> -> vector<4x4xf32>
    %124 = vector.broadcast %83 : vector<1x4xf32> to vector<4x4xf32>
    %125 = arith.mulf %123, %124 : vector<4x4xf32>
    %126 = vector.broadcast %84 : vector<1x4xf32> to vector<4x4xf32>
    %127 = arith.addf %125, %126 : vector<4x4xf32>
    %cst_67 = arith.constant 0.000000e+00 : f32
    %128 = vector.broadcast %cst_67 : f32 to vector<4x4xf32>
    %129 = arith.maximumf %127, %128 : vector<4x4xf32>
    %c0_68 = arith.constant 0 : index
    %c3 = arith.constant 3 : index
    %c0_69 = arith.constant 0 : index
    %c0_70 = arith.constant 0 : index
    %130 = vector.load %arg8[%c0_68, %c3, %c0_69, %c0_70] : memref<1x4x4x4xf32, #tpu.memory_space<vmem>>, vector<1x1x4x4xf32>
    %131 = vector.shape_cast %130 : vector<1x1x4x4xf32> to vector<4x4xf32>
    %132 = vector.shape_cast %129 : vector<4x4xf32> to vector<1x1x4x4xf32>
    tpu.vector_store %arg8[%c0_68, %c3, %c0_69, %c0_70], %132 {strides = array<i32>} : memref<1x4x4x4xf32, #tpu.memory_space<vmem>>, vector<1x1x4x4xf32>,
    return
  }
  func.func @transform_0(%arg0: i32) -> i32 {
    %c0_i32 = arith.constant 0 : i32
    %c0_i32_0 = arith.constant 0 : i32
    return %c0_i32 : i32
  }
  func.func @transform_1(%arg0: i32) -> (i32, i32, i32, i32) {
    %c0_i32 = arith.constant 0 : i32
    %c0_i32_0 = arith.constant 0 : i32
    %c0_i32_1 = arith.constant 0 : i32
    %c0_i32_2 = arith.constant 0 : i32
    return %arg0, %c0_i32, %c0_i32_0, %c0_i32_1 : i32, i32, i32, i32
  }
  func.func @transform_2(%arg0: i32) -> (i32, i32, i32, i32) {
    %c0_i32 = arith.constant 0 : i32
    %c0_i32_0 = arith.constant 0 : i32
    %c0_i32_1 = arith.constant 0 : i32
    %c0_i32_2 = arith.constant 0 : i32
    return %arg0, %c0_i32, %c0_i32_0, %c0_i32_1 : i32, i32, i32, i32
  }
  func.func @transform_3(%arg0: i32) -> (i32, i32, i32) {
    %c0_i32 = arith.constant 0 : i32
    %c0_i32_0 = arith.constant 0 : i32
    %c0_i32_1 = arith.constant 0 : i32
    %c0_i32_2 = arith.constant 0 : i32
    return %c0_i32, %c0_i32_0, %c0_i32_1 : i32, i32, i32
  }
  func.func @transform_4(%arg0: i32) -> (i32, i32) {
    %c0_i32 = arith.constant 0 : i32
    %c0_i32_0 = arith.constant 0 : i32
    %c0_i32_1 = arith.constant 0 : i32
    return %c0_i32, %c0_i32_0 : i32, i32
  }
  func.func @transform_5(%arg0: i32) -> (i32, i32) {
    %c0_i32 = arith.constant 0 : i32
    %c0_i32_0 = arith.constant 0 : i32
    %c0_i32_1 = arith.constant 0 : i32
    return %c0_i32, %c0_i32_0 : i32, i32
  }
  func.func @transform_6(%arg0: i32) -> (i32, i32) {
    %c0_i32 = arith.constant 0 : i32
    %c0_i32_0 = arith.constant 0 : i32
    %c0_i32_1 = arith.constant 0 : i32
    return %c0_i32, %c0_i32_0 : i32, i32
  }
  func.func @transform_7(%arg0: i32) -> (i32, i32, i32, i32) {
    %c0_i32 = arith.constant 0 : i32
    %c0_i32_0 = arith.constant 0 : i32
    %c0_i32_1 = arith.constant 0 : i32
    %c0_i32_2 = arith.constant 0 : i32
    return %arg0, %c0_i32, %c0_i32_0, %c0_i32_1 : i32, i32, i32, i32
  }
}

module attributes {stable_mosaic.version = 11 : i64} {
  func.func @kernel(%arg0: i32, %arg1: memref<3xf32, #tpu.memory_space<smem>>, %arg2: memref<1x8x8x4xf32, #tpu.memory_space<vmem>>, %arg3: memref<1x8x8x4xf32, #tpu.memory_space<vmem>>, %arg4: memref<3x3x4xf32, #tpu.memory_space<vmem>>, %arg5: memref<4x4xf32, #tpu.memory_space<vmem>>, %arg6: memref<1x4xf32, #tpu.memory_space<vmem>>, %arg7: memref<1x4xf32, #tpu.memory_space<vmem>>, %arg8: memref<1x8x8x4xf32, #tpu.memory_space<vmem>>, %arg9: memref<10x17x4xf32, #tpu.memory_space<vmem>>) attributes {dimension_semantics = [#tpu.dimension_semantics<parallel>], iteration_bounds = array<i64: 2>, scalar_prefetch = 0 : i64, scratch_operands = 1 : i64, tpu.core_type = #tpu.core_type<tc>, window_params = [{transform_indices = @transform_0, window_bounds = array<i64: 3>}, {transform_indices = @transform_1, window_bounds = array<i64: 1, 8, 8, 4>}, {transform_indices = @transform_2, window_bounds = array<i64: 1, 8, 8, 4>}, {pipeline_mode = #tpu.pipeline_mode<synchronous>, transform_indices = @transform_3, window_bounds = array<i64: 3, 3, 4>}, {pipeline_mode = #tpu.pipeline_mode<synchronous>, transform_indices = @transform_4, window_bounds = array<i64: 4, 4>}, {pipeline_mode = #tpu.pipeline_mode<synchronous>, transform_indices = @transform_5, window_bounds = array<i64: 1, 4>}, {pipeline_mode = #tpu.pipeline_mode<synchronous>, transform_indices = @transform_6, window_bounds = array<i64: 1, 4>}, {transform_indices = @transform_7, window_bounds = array<i64: 1, 8, 8, 4>}]} {
    %c0 = arith.constant 0 : index
    %c0_0 = arith.constant 0 : index
    %c0_1 = arith.constant 0 : index
    %c0_2 = arith.constant 0 : index
    %0 = vector.load %arg2[%c0, %c0_0, %c0_1, %c0_2] : memref<1x8x8x4xf32, #tpu.memory_space<vmem>>, vector<1x8x8x4xf32>
    %1 = vector.shape_cast %0 : vector<1x8x8x4xf32> to vector<8x8x4xf32>
    %c0_3 = arith.constant 0 : index
    %2 = memref.load %arg1[%c0_3] : memref<3xf32, #tpu.memory_space<smem>>
    %3 = vector.broadcast %2 : f32 to vector<8x8x4xf32>
    %4 = arith.mulf %1, %3 : vector<8x8x4xf32>
    %c0_4 = arith.constant 0 : index
    %c0_5 = arith.constant 0 : index
    %c0_6 = arith.constant 0 : index
    %c0_7 = arith.constant 0 : index
    %5 = vector.load %arg3[%c0_4, %c0_5, %c0_6, %c0_7] : memref<1x8x8x4xf32, #tpu.memory_space<vmem>>, vector<1x8x8x4xf32>
    %6 = vector.shape_cast %5 : vector<1x8x8x4xf32> to vector<8x8x4xf32>
    %c1 = arith.constant 1 : index
    %7 = memref.load %arg1[%c1] : memref<3xf32, #tpu.memory_space<smem>>
    %8 = vector.broadcast %7 : f32 to vector<8x8x4xf32>
    %9 = arith.mulf %6, %8 : vector<8x8x4xf32>
    %10 = arith.addf %4, %9 : vector<8x8x4xf32>
    %c2 = arith.constant 2 : index
    %11 = memref.load %arg1[%c2] : memref<3xf32, #tpu.memory_space<smem>>
    %12 = vector.broadcast %11 : f32 to vector<8x8x4xf32>
    %13 = arith.mulf %10, %12 : vector<8x8x4xf32>
    %cst = arith.constant 0.000000e+00 : f32
    %14 = vector.broadcast %cst : f32 to vector<10x17x4xf32>
    %c0_8 = arith.constant 0 : index
    %c0_9 = arith.constant 0 : index
    %c0_10 = arith.constant 0 : index
    %15 = vector.load %arg9[%c0_8, %c0_9, %c0_10] : memref<10x17x4xf32, #tpu.memory_space<vmem>>, vector<10x17x4xf32>
    tpu.vector_store %arg9[%c0_8, %c0_9, %c0_10], %14 {strides = array<i32>} : memref<10x17x4xf32, #tpu.memory_space<vmem>>, vector<10x17x4xf32>,
    %c1_11 = arith.constant 1 : index
    %c8 = arith.constant 8 : index
    %c0_12 = arith.constant 0 : index
    %16 = vector.load %arg9[%c1_11, %c8, %c0_12] : memref<10x17x4xf32, #tpu.memory_space<vmem>>, vector<8x8x4xf32>
    tpu.vector_store %arg9[%c1_11, %c8, %c0_12], %13 {strides = array<i32>} : memref<10x17x4xf32, #tpu.memory_space<vmem>>, vector<8x8x4xf32>,
    %c0_13 = arith.constant 0 : index
    %c0_14 = arith.constant 0 : index
    %c0_15 = arith.constant 0 : index
    %17 = vector.load %arg4[%c0_13, %c0_14, %c0_15] : memref<3x3x4xf32, #tpu.memory_space<vmem>>, vector<3x3x4xf32>
    %cst_16 = arith.constant 0.000000e+00 : f32
    %18 = vector.broadcast %cst_16 : f32 to vector<8x8x4xf32>
    %c0_17 = arith.constant 0 : index
    %c7 = arith.constant 7 : index
    %c0_18 = arith.constant 0 : index
    %19 = vector.load %arg9[%c0_17, %c7, %c0_18] : memref<10x17x4xf32, #tpu.memory_space<vmem>>, vector<8x8x4xf32>
    %20 = vector.extract_strided_slice %17 {offsets = [0, 0, 0], sizes = [1, 1, 4], strides = [1, 1, 1]} : vector<3x3x4xf32> to vector<1x1x4xf32>
    %21 = vector.shape_cast %20 : vector<1x1x4xf32> to vector<4xf32>
    %22 = vector.shape_cast %21 : vector<4xf32> to vector<1x1x4xf32>
    %23 = vector.broadcast %22 : vector<1x1x4xf32> to vector<8x8x4xf32>
    %24 = arith.mulf %19, %23 : vector<8x8x4xf32>
    %25 = arith.addf %18, %24 : vector<8x8x4xf32>
    %c0_19 = arith.constant 0 : index
    %c8_20 = arith.constant 8 : index
    %c0_21 = arith.constant 0 : index
    %26 = vector.load %arg9[%c0_19, %c8_20, %c0_21] : memref<10x17x4xf32, #tpu.memory_space<vmem>>, vector<8x8x4xf32>
    %27 = vector.extract_strided_slice %17 {offsets = [0, 1, 0], sizes = [1, 1, 4], strides = [1, 1, 1]} : vector<3x3x4xf32> to vector<1x1x4xf32>
    %28 = vector.shape_cast %27 : vector<1x1x4xf32> to vector<4xf32>
    %29 = vector.shape_cast %28 : vector<4xf32> to vector<1x1x4xf32>
    %30 = vector.broadcast %29 : vector<1x1x4xf32> to vector<8x8x4xf32>
    %31 = arith.mulf %26, %30 : vector<8x8x4xf32>
    %32 = arith.addf %25, %31 : vector<8x8x4xf32>
    %c0_22 = arith.constant 0 : index
    %c9 = arith.constant 9 : index
    %c0_23 = arith.constant 0 : index
    %33 = vector.load %arg9[%c0_22, %c9, %c0_23] : memref<10x17x4xf32, #tpu.memory_space<vmem>>, vector<8x8x4xf32>
    %34 = vector.extract_strided_slice %17 {offsets = [0, 2, 0], sizes = [1, 1, 4], strides = [1, 1, 1]} : vector<3x3x4xf32> to vector<1x1x4xf32>
    %35 = vector.shape_cast %34 : vector<1x1x4xf32> to vector<4xf32>
    %36 = vector.shape_cast %35 : vector<4xf32> to vector<1x1x4xf32>
    %37 = vector.broadcast %36 : vector<1x1x4xf32> to vector<8x8x4xf32>
    %38 = arith.mulf %33, %37 : vector<8x8x4xf32>
    %39 = arith.addf %32, %38 : vector<8x8x4xf32>
    %c1_24 = arith.constant 1 : index
    %c7_25 = arith.constant 7 : index
    %c0_26 = arith.constant 0 : index
    %40 = vector.load %arg9[%c1_24, %c7_25, %c0_26] : memref<10x17x4xf32, #tpu.memory_space<vmem>>, vector<8x8x4xf32>
    %41 = vector.extract_strided_slice %17 {offsets = [1, 0, 0], sizes = [1, 1, 4], strides = [1, 1, 1]} : vector<3x3x4xf32> to vector<1x1x4xf32>
    %42 = vector.shape_cast %41 : vector<1x1x4xf32> to vector<4xf32>
    %43 = vector.shape_cast %42 : vector<4xf32> to vector<1x1x4xf32>
    %44 = vector.broadcast %43 : vector<1x1x4xf32> to vector<8x8x4xf32>
    %45 = arith.mulf %40, %44 : vector<8x8x4xf32>
    %46 = arith.addf %39, %45 : vector<8x8x4xf32>
    %c1_27 = arith.constant 1 : index
    %c8_28 = arith.constant 8 : index
    %c0_29 = arith.constant 0 : index
    %47 = vector.load %arg9[%c1_27, %c8_28, %c0_29] : memref<10x17x4xf32, #tpu.memory_space<vmem>>, vector<8x8x4xf32>
    %48 = vector.extract_strided_slice %17 {offsets = [1, 1, 0], sizes = [1, 1, 4], strides = [1, 1, 1]} : vector<3x3x4xf32> to vector<1x1x4xf32>
    %49 = vector.shape_cast %48 : vector<1x1x4xf32> to vector<4xf32>
    %50 = vector.shape_cast %49 : vector<4xf32> to vector<1x1x4xf32>
    %51 = vector.broadcast %50 : vector<1x1x4xf32> to vector<8x8x4xf32>
    %52 = arith.mulf %47, %51 : vector<8x8x4xf32>
    %53 = arith.addf %46, %52 : vector<8x8x4xf32>
    %c1_30 = arith.constant 1 : index
    %c9_31 = arith.constant 9 : index
    %c0_32 = arith.constant 0 : index
    %54 = vector.load %arg9[%c1_30, %c9_31, %c0_32] : memref<10x17x4xf32, #tpu.memory_space<vmem>>, vector<8x8x4xf32>
    %55 = vector.extract_strided_slice %17 {offsets = [1, 2, 0], sizes = [1, 1, 4], strides = [1, 1, 1]} : vector<3x3x4xf32> to vector<1x1x4xf32>
    %56 = vector.shape_cast %55 : vector<1x1x4xf32> to vector<4xf32>
    %57 = vector.shape_cast %56 : vector<4xf32> to vector<1x1x4xf32>
    %58 = vector.broadcast %57 : vector<1x1x4xf32> to vector<8x8x4xf32>
    %59 = arith.mulf %54, %58 : vector<8x8x4xf32>
    %60 = arith.addf %53, %59 : vector<8x8x4xf32>
    %c2_33 = arith.constant 2 : index
    %c7_34 = arith.constant 7 : index
    %c0_35 = arith.constant 0 : index
    %61 = vector.load %arg9[%c2_33, %c7_34, %c0_35] : memref<10x17x4xf32, #tpu.memory_space<vmem>>, vector<8x8x4xf32>
    %62 = vector.extract_strided_slice %17 {offsets = [2, 0, 0], sizes = [1, 1, 4], strides = [1, 1, 1]} : vector<3x3x4xf32> to vector<1x1x4xf32>
    %63 = vector.shape_cast %62 : vector<1x1x4xf32> to vector<4xf32>
    %64 = vector.shape_cast %63 : vector<4xf32> to vector<1x1x4xf32>
    %65 = vector.broadcast %64 : vector<1x1x4xf32> to vector<8x8x4xf32>
    %66 = arith.mulf %61, %65 : vector<8x8x4xf32>
    %67 = arith.addf %60, %66 : vector<8x8x4xf32>
    %c2_36 = arith.constant 2 : index
    %c8_37 = arith.constant 8 : index
    %c0_38 = arith.constant 0 : index
    %68 = vector.load %arg9[%c2_36, %c8_37, %c0_38] : memref<10x17x4xf32, #tpu.memory_space<vmem>>, vector<8x8x4xf32>
    %69 = vector.extract_strided_slice %17 {offsets = [2, 1, 0], sizes = [1, 1, 4], strides = [1, 1, 1]} : vector<3x3x4xf32> to vector<1x1x4xf32>
    %70 = vector.shape_cast %69 : vector<1x1x4xf32> to vector<4xf32>
    %71 = vector.shape_cast %70 : vector<4xf32> to vector<1x1x4xf32>
    %72 = vector.broadcast %71 : vector<1x1x4xf32> to vector<8x8x4xf32>
    %73 = arith.mulf %68, %72 : vector<8x8x4xf32>
    %74 = arith.addf %67, %73 : vector<8x8x4xf32>
    %c2_39 = arith.constant 2 : index
    %c9_40 = arith.constant 9 : index
    %c0_41 = arith.constant 0 : index
    %75 = vector.load %arg9[%c2_39, %c9_40, %c0_41] : memref<10x17x4xf32, #tpu.memory_space<vmem>>, vector<8x8x4xf32>
    %76 = vector.extract_strided_slice %17 {offsets = [2, 2, 0], sizes = [1, 1, 4], strides = [1, 1, 1]} : vector<3x3x4xf32> to vector<1x1x4xf32>
    %77 = vector.shape_cast %76 : vector<1x1x4xf32> to vector<4xf32>
    %78 = vector.shape_cast %77 : vector<4xf32> to vector<1x1x4xf32>
    %79 = vector.broadcast %78 : vector<1x1x4xf32> to vector<8x8x4xf32>
    %80 = arith.mulf %75, %79 : vector<8x8x4xf32>
    %81 = arith.addf %74, %80 : vector<8x8x4xf32>
    %c0_42 = arith.constant 0 : index
    %c0_43 = arith.constant 0 : index
    %82 = vector.load %arg5[%c0_42, %c0_43] : memref<4x4xf32, #tpu.memory_space<vmem>>, vector<4x4xf32>
    %c0_44 = arith.constant 0 : index
    %c0_45 = arith.constant 0 : index
    %83 = vector.load %arg6[%c0_44, %c0_45] : memref<1x4xf32, #tpu.memory_space<vmem>>, vector<1x4xf32>
    %c0_46 = arith.constant 0 : index
    %c0_47 = arith.constant 0 : index
    %84 = vector.load %arg7[%c0_46, %c0_47] : memref<1x4xf32, #tpu.memory_space<vmem>>, vector<1x4xf32>
    %85 = vector.shape_cast %81 : vector<8x8x4xf32> to vector<64x4xf32>
    %cst_48 = arith.constant dense<0.000000e+00> : vector<64x4xf32>
    %86 = tpu.matmul %85, %82, %cst_48 {dimension_numbers = #tpu.dot_dimension_numbers<[1], [0], [0], [1], [0, 0, 1, 1], [], []>} : vector<64x4xf32>, vector<4x4xf32>, vector<64x4xf32> -> vector<64x4xf32>
    %87 = vector.broadcast %83 : vector<1x4xf32> to vector<64x4xf32>
    %88 = arith.mulf %86, %87 : vector<64x4xf32>
    %89 = vector.broadcast %84 : vector<1x4xf32> to vector<64x4xf32>
    %90 = arith.addf %88, %89 : vector<64x4xf32>
    %cst_49 = arith.constant 0.000000e+00 : f32
    %91 = vector.broadcast %cst_49 : f32 to vector<64x4xf32>
    %92 = arith.maximumf %90, %91 : vector<64x4xf32>
    %93 = vector.shape_cast %92 : vector<64x4xf32> to vector<1x8x8x4xf32>
    %c0_50 = arith.constant 0 : index
    %c0_51 = arith.constant 0 : index
    %c0_52 = arith.constant 0 : index
    %c0_53 = arith.constant 0 : index
    %94 = vector.load %arg8[%c0_50, %c0_51, %c0_52, %c0_53] : memref<1x8x8x4xf32, #tpu.memory_space<vmem>>, vector<1x8x8x4xf32>
    tpu.vector_store %arg8[%c0_50, %c0_51, %c0_52, %c0_53], %93 {strides = array<i32>} : memref<1x8x8x4xf32, #tpu.memory_space<vmem>>, vector<1x8x8x4xf32>,
    return
  }
  func.func @transform_0(%arg0: i32) -> i32 {
    %c0_i32 = arith.constant 0 : i32
    %c0_i32_0 = arith.constant 0 : i32
    return %c0_i32 : i32
  }
  func.func @transform_1(%arg0: i32) -> (i32, i32, i32, i32) {
    %c0_i32 = arith.constant 0 : i32
    %c0_i32_0 = arith.constant 0 : i32
    %c0_i32_1 = arith.constant 0 : i32
    %c0_i32_2 = arith.constant 0 : i32
    return %arg0, %c0_i32, %c0_i32_0, %c0_i32_1 : i32, i32, i32, i32
  }
  func.func @transform_2(%arg0: i32) -> (i32, i32, i32, i32) {
    %c0_i32 = arith.constant 0 : i32
    %c0_i32_0 = arith.constant 0 : i32
    %c0_i32_1 = arith.constant 0 : i32
    %c0_i32_2 = arith.constant 0 : i32
    return %arg0, %c0_i32, %c0_i32_0, %c0_i32_1 : i32, i32, i32, i32
  }
  func.func @transform_3(%arg0: i32) -> (i32, i32, i32) {
    %c0_i32 = arith.constant 0 : i32
    %c0_i32_0 = arith.constant 0 : i32
    %c0_i32_1 = arith.constant 0 : i32
    %c0_i32_2 = arith.constant 0 : i32
    return %c0_i32, %c0_i32_0, %c0_i32_1 : i32, i32, i32
  }
  func.func @transform_4(%arg0: i32) -> (i32, i32) {
    %c0_i32 = arith.constant 0 : i32
    %c0_i32_0 = arith.constant 0 : i32
    %c0_i32_1 = arith.constant 0 : i32
    return %c0_i32, %c0_i32_0 : i32, i32
  }
  func.func @transform_5(%arg0: i32) -> (i32, i32) {
    %c0_i32 = arith.constant 0 : i32
    %c0_i32_0 = arith.constant 0 : i32
    %c0_i32_1 = arith.constant 0 : i32
    return %c0_i32, %c0_i32_0 : i32, i32
  }
  func.func @transform_6(%arg0: i32) -> (i32, i32) {
    %c0_i32 = arith.constant 0 : i32
    %c0_i32_0 = arith.constant 0 : i32
    %c0_i32_1 = arith.constant 0 : i32
    return %c0_i32, %c0_i32_0 : i32, i32
  }
  func.func @transform_7(%arg0: i32) -> (i32, i32, i32, i32) {
    %c0_i32 = arith.constant 0 : i32
    %c0_i32_0 = arith.constant 0 : i32
    %c0_i32_1 = arith.constant 0 : i32
    %c0_i32_2 = arith.constant 0 : i32
    return %arg0, %c0_i32, %c0_i32_0, %c0_i32_1 : i32, i32, i32, i32
  }
}

module attributes {stable_mosaic.version = 11 : i64} {
  func.func @kernel(%arg0: i32, %arg1: memref<3xf32, #tpu.memory_space<smem>>, %arg2: memref<1x16x16x4xf32, #tpu.memory_space<vmem>>, %arg3: memref<1x16x16x4xf32, #tpu.memory_space<vmem>>, %arg4: memref<3x3x4xf32, #tpu.memory_space<vmem>>, %arg5: memref<4x4xf32, #tpu.memory_space<vmem>>, %arg6: memref<1x4xf32, #tpu.memory_space<vmem>>, %arg7: memref<1x4xf32, #tpu.memory_space<vmem>>, %arg8: memref<1x16x16x4xf32, #tpu.memory_space<vmem>>, %arg9: memref<18x25x4xf32, #tpu.memory_space<vmem>>) attributes {dimension_semantics = [#tpu.dimension_semantics<parallel>], iteration_bounds = array<i64: 2>, scalar_prefetch = 0 : i64, scratch_operands = 1 : i64, tpu.core_type = #tpu.core_type<tc>, window_params = [{transform_indices = @transform_0, window_bounds = array<i64: 3>}, {transform_indices = @transform_1, window_bounds = array<i64: 1, 16, 16, 4>}, {transform_indices = @transform_2, window_bounds = array<i64: 1, 16, 16, 4>}, {pipeline_mode = #tpu.pipeline_mode<synchronous>, transform_indices = @transform_3, window_bounds = array<i64: 3, 3, 4>}, {pipeline_mode = #tpu.pipeline_mode<synchronous>, transform_indices = @transform_4, window_bounds = array<i64: 4, 4>}, {pipeline_mode = #tpu.pipeline_mode<synchronous>, transform_indices = @transform_5, window_bounds = array<i64: 1, 4>}, {pipeline_mode = #tpu.pipeline_mode<synchronous>, transform_indices = @transform_6, window_bounds = array<i64: 1, 4>}, {transform_indices = @transform_7, window_bounds = array<i64: 1, 16, 16, 4>}]} {
    %c0 = arith.constant 0 : index
    %c0_0 = arith.constant 0 : index
    %c0_1 = arith.constant 0 : index
    %c0_2 = arith.constant 0 : index
    %0 = vector.load %arg2[%c0, %c0_0, %c0_1, %c0_2] : memref<1x16x16x4xf32, #tpu.memory_space<vmem>>, vector<1x16x16x4xf32>
    %1 = vector.shape_cast %0 : vector<1x16x16x4xf32> to vector<16x16x4xf32>
    %c0_3 = arith.constant 0 : index
    %2 = memref.load %arg1[%c0_3] : memref<3xf32, #tpu.memory_space<smem>>
    %3 = vector.broadcast %2 : f32 to vector<16x16x4xf32>
    %4 = arith.mulf %1, %3 : vector<16x16x4xf32>
    %c0_4 = arith.constant 0 : index
    %c0_5 = arith.constant 0 : index
    %c0_6 = arith.constant 0 : index
    %c0_7 = arith.constant 0 : index
    %5 = vector.load %arg3[%c0_4, %c0_5, %c0_6, %c0_7] : memref<1x16x16x4xf32, #tpu.memory_space<vmem>>, vector<1x16x16x4xf32>
    %6 = vector.shape_cast %5 : vector<1x16x16x4xf32> to vector<16x16x4xf32>
    %c1 = arith.constant 1 : index
    %7 = memref.load %arg1[%c1] : memref<3xf32, #tpu.memory_space<smem>>
    %8 = vector.broadcast %7 : f32 to vector<16x16x4xf32>
    %9 = arith.mulf %6, %8 : vector<16x16x4xf32>
    %10 = arith.addf %4, %9 : vector<16x16x4xf32>
    %c2 = arith.constant 2 : index
    %11 = memref.load %arg1[%c2] : memref<3xf32, #tpu.memory_space<smem>>
    %12 = vector.broadcast %11 : f32 to vector<16x16x4xf32>
    %13 = arith.mulf %10, %12 : vector<16x16x4xf32>
    %cst = arith.constant 0.000000e+00 : f32
    %14 = vector.broadcast %cst : f32 to vector<18x25x4xf32>
    %c0_8 = arith.constant 0 : index
    %c0_9 = arith.constant 0 : index
    %c0_10 = arith.constant 0 : index
    %15 = vector.load %arg9[%c0_8, %c0_9, %c0_10] : memref<18x25x4xf32, #tpu.memory_space<vmem>>, vector<18x25x4xf32>
    tpu.vector_store %arg9[%c0_8, %c0_9, %c0_10], %14 {strides = array<i32>} : memref<18x25x4xf32, #tpu.memory_space<vmem>>, vector<18x25x4xf32>,
    %c1_11 = arith.constant 1 : index
    %c8 = arith.constant 8 : index
    %c0_12 = arith.constant 0 : index
    %16 = vector.load %arg9[%c1_11, %c8, %c0_12] : memref<18x25x4xf32, #tpu.memory_space<vmem>>, vector<16x16x4xf32>
    tpu.vector_store %arg9[%c1_11, %c8, %c0_12], %13 {strides = array<i32>} : memref<18x25x4xf32, #tpu.memory_space<vmem>>, vector<16x16x4xf32>,
    %c0_13 = arith.constant 0 : index
    %c0_14 = arith.constant 0 : index
    %c0_15 = arith.constant 0 : index
    %17 = vector.load %arg4[%c0_13, %c0_14, %c0_15] : memref<3x3x4xf32, #tpu.memory_space<vmem>>, vector<3x3x4xf32>
    %cst_16 = arith.constant 0.000000e+00 : f32
    %18 = vector.broadcast %cst_16 : f32 to vector<16x16x4xf32>
    %c0_17 = arith.constant 0 : index
    %c7 = arith.constant 7 : index
    %c0_18 = arith.constant 0 : index
    %19 = vector.load %arg9[%c0_17, %c7, %c0_18] : memref<18x25x4xf32, #tpu.memory_space<vmem>>, vector<16x16x4xf32>
    %20 = vector.extract_strided_slice %17 {offsets = [0, 0, 0], sizes = [1, 1, 4], strides = [1, 1, 1]} : vector<3x3x4xf32> to vector<1x1x4xf32>
    %21 = vector.shape_cast %20 : vector<1x1x4xf32> to vector<4xf32>
    %22 = vector.shape_cast %21 : vector<4xf32> to vector<1x1x4xf32>
    %23 = vector.broadcast %22 : vector<1x1x4xf32> to vector<16x16x4xf32>
    %24 = arith.mulf %19, %23 : vector<16x16x4xf32>
    %25 = arith.addf %18, %24 : vector<16x16x4xf32>
    %c0_19 = arith.constant 0 : index
    %c8_20 = arith.constant 8 : index
    %c0_21 = arith.constant 0 : index
    %26 = vector.load %arg9[%c0_19, %c8_20, %c0_21] : memref<18x25x4xf32, #tpu.memory_space<vmem>>, vector<16x16x4xf32>
    %27 = vector.extract_strided_slice %17 {offsets = [0, 1, 0], sizes = [1, 1, 4], strides = [1, 1, 1]} : vector<3x3x4xf32> to vector<1x1x4xf32>
    %28 = vector.shape_cast %27 : vector<1x1x4xf32> to vector<4xf32>
    %29 = vector.shape_cast %28 : vector<4xf32> to vector<1x1x4xf32>
    %30 = vector.broadcast %29 : vector<1x1x4xf32> to vector<16x16x4xf32>
    %31 = arith.mulf %26, %30 : vector<16x16x4xf32>
    %32 = arith.addf %25, %31 : vector<16x16x4xf32>
    %c0_22 = arith.constant 0 : index
    %c9 = arith.constant 9 : index
    %c0_23 = arith.constant 0 : index
    %33 = vector.load %arg9[%c0_22, %c9, %c0_23] : memref<18x25x4xf32, #tpu.memory_space<vmem>>, vector<16x16x4xf32>
    %34 = vector.extract_strided_slice %17 {offsets = [0, 2, 0], sizes = [1, 1, 4], strides = [1, 1, 1]} : vector<3x3x4xf32> to vector<1x1x4xf32>
    %35 = vector.shape_cast %34 : vector<1x1x4xf32> to vector<4xf32>
    %36 = vector.shape_cast %35 : vector<4xf32> to vector<1x1x4xf32>
    %37 = vector.broadcast %36 : vector<1x1x4xf32> to vector<16x16x4xf32>
    %38 = arith.mulf %33, %37 : vector<16x16x4xf32>
    %39 = arith.addf %32, %38 : vector<16x16x4xf32>
    %c1_24 = arith.constant 1 : index
    %c7_25 = arith.constant 7 : index
    %c0_26 = arith.constant 0 : index
    %40 = vector.load %arg9[%c1_24, %c7_25, %c0_26] : memref<18x25x4xf32, #tpu.memory_space<vmem>>, vector<16x16x4xf32>
    %41 = vector.extract_strided_slice %17 {offsets = [1, 0, 0], sizes = [1, 1, 4], strides = [1, 1, 1]} : vector<3x3x4xf32> to vector<1x1x4xf32>
    %42 = vector.shape_cast %41 : vector<1x1x4xf32> to vector<4xf32>
    %43 = vector.shape_cast %42 : vector<4xf32> to vector<1x1x4xf32>
    %44 = vector.broadcast %43 : vector<1x1x4xf32> to vector<16x16x4xf32>
    %45 = arith.mulf %40, %44 : vector<16x16x4xf32>
    %46 = arith.addf %39, %45 : vector<16x16x4xf32>
    %c1_27 = arith.constant 1 : index
    %c8_28 = arith.constant 8 : index
    %c0_29 = arith.constant 0 : index
    %47 = vector.load %arg9[%c1_27, %c8_28, %c0_29] : memref<18x25x4xf32, #tpu.memory_space<vmem>>, vector<16x16x4xf32>
    %48 = vector.extract_strided_slice %17 {offsets = [1, 1, 0], sizes = [1, 1, 4], strides = [1, 1, 1]} : vector<3x3x4xf32> to vector<1x1x4xf32>
    %49 = vector.shape_cast %48 : vector<1x1x4xf32> to vector<4xf32>
    %50 = vector.shape_cast %49 : vector<4xf32> to vector<1x1x4xf32>
    %51 = vector.broadcast %50 : vector<1x1x4xf32> to vector<16x16x4xf32>
    %52 = arith.mulf %47, %51 : vector<16x16x4xf32>
    %53 = arith.addf %46, %52 : vector<16x16x4xf32>
    %c1_30 = arith.constant 1 : index
    %c9_31 = arith.constant 9 : index
    %c0_32 = arith.constant 0 : index
    %54 = vector.load %arg9[%c1_30, %c9_31, %c0_32] : memref<18x25x4xf32, #tpu.memory_space<vmem>>, vector<16x16x4xf32>
    %55 = vector.extract_strided_slice %17 {offsets = [1, 2, 0], sizes = [1, 1, 4], strides = [1, 1, 1]} : vector<3x3x4xf32> to vector<1x1x4xf32>
    %56 = vector.shape_cast %55 : vector<1x1x4xf32> to vector<4xf32>
    %57 = vector.shape_cast %56 : vector<4xf32> to vector<1x1x4xf32>
    %58 = vector.broadcast %57 : vector<1x1x4xf32> to vector<16x16x4xf32>
    %59 = arith.mulf %54, %58 : vector<16x16x4xf32>
    %60 = arith.addf %53, %59 : vector<16x16x4xf32>
    %c2_33 = arith.constant 2 : index
    %c7_34 = arith.constant 7 : index
    %c0_35 = arith.constant 0 : index
    %61 = vector.load %arg9[%c2_33, %c7_34, %c0_35] : memref<18x25x4xf32, #tpu.memory_space<vmem>>, vector<16x16x4xf32>
    %62 = vector.extract_strided_slice %17 {offsets = [2, 0, 0], sizes = [1, 1, 4], strides = [1, 1, 1]} : vector<3x3x4xf32> to vector<1x1x4xf32>
    %63 = vector.shape_cast %62 : vector<1x1x4xf32> to vector<4xf32>
    %64 = vector.shape_cast %63 : vector<4xf32> to vector<1x1x4xf32>
    %65 = vector.broadcast %64 : vector<1x1x4xf32> to vector<16x16x4xf32>
    %66 = arith.mulf %61, %65 : vector<16x16x4xf32>
    %67 = arith.addf %60, %66 : vector<16x16x4xf32>
    %c2_36 = arith.constant 2 : index
    %c8_37 = arith.constant 8 : index
    %c0_38 = arith.constant 0 : index
    %68 = vector.load %arg9[%c2_36, %c8_37, %c0_38] : memref<18x25x4xf32, #tpu.memory_space<vmem>>, vector<16x16x4xf32>
    %69 = vector.extract_strided_slice %17 {offsets = [2, 1, 0], sizes = [1, 1, 4], strides = [1, 1, 1]} : vector<3x3x4xf32> to vector<1x1x4xf32>
    %70 = vector.shape_cast %69 : vector<1x1x4xf32> to vector<4xf32>
    %71 = vector.shape_cast %70 : vector<4xf32> to vector<1x1x4xf32>
    %72 = vector.broadcast %71 : vector<1x1x4xf32> to vector<16x16x4xf32>
    %73 = arith.mulf %68, %72 : vector<16x16x4xf32>
    %74 = arith.addf %67, %73 : vector<16x16x4xf32>
    %c2_39 = arith.constant 2 : index
    %c9_40 = arith.constant 9 : index
    %c0_41 = arith.constant 0 : index
    %75 = vector.load %arg9[%c2_39, %c9_40, %c0_41] : memref<18x25x4xf32, #tpu.memory_space<vmem>>, vector<16x16x4xf32>
    %76 = vector.extract_strided_slice %17 {offsets = [2, 2, 0], sizes = [1, 1, 4], strides = [1, 1, 1]} : vector<3x3x4xf32> to vector<1x1x4xf32>
    %77 = vector.shape_cast %76 : vector<1x1x4xf32> to vector<4xf32>
    %78 = vector.shape_cast %77 : vector<4xf32> to vector<1x1x4xf32>
    %79 = vector.broadcast %78 : vector<1x1x4xf32> to vector<16x16x4xf32>
    %80 = arith.mulf %75, %79 : vector<16x16x4xf32>
    %81 = arith.addf %74, %80 : vector<16x16x4xf32>
    %c0_42 = arith.constant 0 : index
    %c0_43 = arith.constant 0 : index
    %82 = vector.load %arg5[%c0_42, %c0_43] : memref<4x4xf32, #tpu.memory_space<vmem>>, vector<4x4xf32>
    %c0_44 = arith.constant 0 : index
    %c0_45 = arith.constant 0 : index
    %83 = vector.load %arg6[%c0_44, %c0_45] : memref<1x4xf32, #tpu.memory_space<vmem>>, vector<1x4xf32>
    %c0_46 = arith.constant 0 : index
    %c0_47 = arith.constant 0 : index
    %84 = vector.load %arg7[%c0_46, %c0_47] : memref<1x4xf32, #tpu.memory_space<vmem>>, vector<1x4xf32>
    %85 = vector.shape_cast %81 : vector<16x16x4xf32> to vector<256x4xf32>
    %cst_48 = arith.constant dense<0.000000e+00> : vector<256x4xf32>
    %86 = tpu.matmul %85, %82, %cst_48 {dimension_numbers = #tpu.dot_dimension_numbers<[1], [0], [0], [1], [0, 0, 1, 1], [], []>} : vector<256x4xf32>, vector<4x4xf32>, vector<256x4xf32> -> vector<256x4xf32>
    %87 = vector.broadcast %83 : vector<1x4xf32> to vector<256x4xf32>
    %88 = arith.mulf %86, %87 : vector<256x4xf32>
    %89 = vector.broadcast %84 : vector<1x4xf32> to vector<256x4xf32>
    %90 = arith.addf %88, %89 : vector<256x4xf32>
    %cst_49 = arith.constant 0.000000e+00 : f32
    %91 = vector.broadcast %cst_49 : f32 to vector<256x4xf32>
    %92 = arith.maximumf %90, %91 : vector<256x4xf32>
    %93 = vector.shape_cast %92 : vector<256x4xf32> to vector<1x16x16x4xf32>
    %c0_50 = arith.constant 0 : index
    %c0_51 = arith.constant 0 : index
    %c0_52 = arith.constant 0 : index
    %c0_53 = arith.constant 0 : index
    %94 = vector.load %arg8[%c0_50, %c0_51, %c0_52, %c0_53] : memref<1x16x16x4xf32, #tpu.memory_space<vmem>>, vector<1x16x16x4xf32>
    tpu.vector_store %arg8[%c0_50, %c0_51, %c0_52, %c0_53], %93 {strides = array<i32>} : memref<1x16x16x4xf32, #tpu.memory_space<vmem>>, vector<1x16x16x4xf32>,
    return
  }
  func.func @transform_0(%arg0: i32) -> i32 {
    %c0_i32 = arith.constant 0 : i32
    %c0_i32_0 = arith.constant 0 : i32
    return %c0_i32 : i32
  }
  func.func @transform_1(%arg0: i32) -> (i32, i32, i32, i32) {
    %c0_i32 = arith.constant 0 : i32
    %c0_i32_0 = arith.constant 0 : i32
    %c0_i32_1 = arith.constant 0 : i32
    %c0_i32_2 = arith.constant 0 : i32
    return %arg0, %c0_i32, %c0_i32_0, %c0_i32_1 : i32, i32, i32, i32
  }
  func.func @transform_2(%arg0: i32) -> (i32, i32, i32, i32) {
    %c0_i32 = arith.constant 0 : i32
    %c0_i32_0 = arith.constant 0 : i32
    %c0_i32_1 = arith.constant 0 : i32
    %c0_i32_2 = arith.constant 0 : i32
    return %arg0, %c0_i32, %c0_i32_0, %c0_i32_1 : i32, i32, i32, i32
  }
  func.func @transform_3(%arg0: i32) -> (i32, i32, i32) {
    %c0_i32 = arith.constant 0 : i32
    %c0_i32_0 = arith.constant 0 : i32
    %c0_i32_1 = arith.constant 0 : i32
    %c0_i32_2 = arith.constant 0 : i32
    return %c0_i32, %c0_i32_0, %c0_i32_1 : i32, i32, i32
  }
  func.func @transform_4(%arg0: i32) -> (i32, i32) {
    %c0_i32 = arith.constant 0 : i32
    %c0_i32_0 = arith.constant 0 : i32
    %c0_i32_1 = arith.constant 0 : i32
    return %c0_i32, %c0_i32_0 : i32, i32
  }
  func.func @transform_5(%arg0: i32) -> (i32, i32) {
    %c0_i32 = arith.constant 0 : i32
    %c0_i32_0 = arith.constant 0 : i32
    %c0_i32_1 = arith.constant 0 : i32
    return %c0_i32, %c0_i32_0 : i32, i32
  }
  func.func @transform_6(%arg0: i32) -> (i32, i32) {
    %c0_i32 = arith.constant 0 : i32
    %c0_i32_0 = arith.constant 0 : i32
    %c0_i32_1 = arith.constant 0 : i32
    return %c0_i32, %c0_i32_0 : i32, i32
  }
  func.func @transform_7(%arg0: i32) -> (i32, i32, i32, i32) {
    %c0_i32 = arith.constant 0 : i32
    %c0_i32_0 = arith.constant 0 : i32
    %c0_i32_1 = arith.constant 0 : i32
    %c0_i32_2 = arith.constant 0 : i32
    return %arg0, %c0_i32, %c0_i32_0, %c0_i32_1 : i32, i32, i32, i32
  }
}

module attributes {stable_mosaic.version = 11 : i64} {
  func.func @kernel(%arg0: i32, %arg1: memref<4xf32, #tpu.memory_space<smem>>, %arg2: memref<1x8x8x4xf32, #tpu.memory_space<vmem>>, %arg3: memref<1x8x8x4xf32, #tpu.memory_space<vmem>>, %arg4: memref<1x8x8x4xf32, #tpu.memory_space<vmem>>, %arg5: memref<3x3x4xf32, #tpu.memory_space<vmem>>, %arg6: memref<4x4xf32, #tpu.memory_space<vmem>>, %arg7: memref<1x4xf32, #tpu.memory_space<vmem>>, %arg8: memref<1x4xf32, #tpu.memory_space<vmem>>, %arg9: memref<1x8x8x4xf32, #tpu.memory_space<vmem>>, %arg10: memref<10x17x4xf32, #tpu.memory_space<vmem>>) attributes {dimension_semantics = [#tpu.dimension_semantics<parallel>], iteration_bounds = array<i64: 2>, scalar_prefetch = 0 : i64, scratch_operands = 1 : i64, tpu.core_type = #tpu.core_type<tc>, window_params = [{transform_indices = @transform_0, window_bounds = array<i64: 4>}, {transform_indices = @transform_1, window_bounds = array<i64: 1, 8, 8, 4>}, {transform_indices = @transform_2, window_bounds = array<i64: 1, 8, 8, 4>}, {transform_indices = @transform_3, window_bounds = array<i64: 1, 8, 8, 4>}, {pipeline_mode = #tpu.pipeline_mode<synchronous>, transform_indices = @transform_4, window_bounds = array<i64: 3, 3, 4>}, {pipeline_mode = #tpu.pipeline_mode<synchronous>, transform_indices = @transform_5, window_bounds = array<i64: 4, 4>}, {pipeline_mode = #tpu.pipeline_mode<synchronous>, transform_indices = @transform_6, window_bounds = array<i64: 1, 4>}, {pipeline_mode = #tpu.pipeline_mode<synchronous>, transform_indices = @transform_7, window_bounds = array<i64: 1, 4>}, {transform_indices = @transform_8, window_bounds = array<i64: 1, 8, 8, 4>}]} {
    %c0 = arith.constant 0 : index
    %c0_0 = arith.constant 0 : index
    %c0_1 = arith.constant 0 : index
    %c0_2 = arith.constant 0 : index
    %0 = vector.load %arg2[%c0, %c0_0, %c0_1, %c0_2] : memref<1x8x8x4xf32, #tpu.memory_space<vmem>>, vector<1x8x8x4xf32>
    %1 = vector.shape_cast %0 : vector<1x8x8x4xf32> to vector<8x8x4xf32>
    %c0_3 = arith.constant 0 : index
    %2 = memref.load %arg1[%c0_3] : memref<4xf32, #tpu.memory_space<smem>>
    %3 = vector.broadcast %2 : f32 to vector<8x8x4xf32>
    %4 = arith.mulf %1, %3 : vector<8x8x4xf32>
    %c0_4 = arith.constant 0 : index
    %c0_5 = arith.constant 0 : index
    %c0_6 = arith.constant 0 : index
    %c0_7 = arith.constant 0 : index
    %5 = vector.load %arg3[%c0_4, %c0_5, %c0_6, %c0_7] : memref<1x8x8x4xf32, #tpu.memory_space<vmem>>, vector<1x8x8x4xf32>
    %6 = vector.shape_cast %5 : vector<1x8x8x4xf32> to vector<8x8x4xf32>
    %c1 = arith.constant 1 : index
    %7 = memref.load %arg1[%c1] : memref<4xf32, #tpu.memory_space<smem>>
    %8 = vector.broadcast %7 : f32 to vector<8x8x4xf32>
    %9 = arith.mulf %6, %8 : vector<8x8x4xf32>
    %10 = arith.addf %4, %9 : vector<8x8x4xf32>
    %c0_8 = arith.constant 0 : index
    %c0_9 = arith.constant 0 : index
    %c0_10 = arith.constant 0 : index
    %c0_11 = arith.constant 0 : index
    %11 = vector.load %arg4[%c0_8, %c0_9, %c0_10, %c0_11] : memref<1x8x8x4xf32, #tpu.memory_space<vmem>>, vector<1x8x8x4xf32>
    %12 = vector.shape_cast %11 : vector<1x8x8x4xf32> to vector<8x8x4xf32>
    %c2 = arith.constant 2 : index
    %13 = memref.load %arg1[%c2] : memref<4xf32, #tpu.memory_space<smem>>
    %14 = vector.broadcast %13 : f32 to vector<8x8x4xf32>
    %15 = arith.mulf %12, %14 : vector<8x8x4xf32>
    %16 = arith.addf %10, %15 : vector<8x8x4xf32>
    %c3 = arith.constant 3 : index
    %17 = memref.load %arg1[%c3] : memref<4xf32, #tpu.memory_space<smem>>
    %18 = vector.broadcast %17 : f32 to vector<8x8x4xf32>
    %19 = arith.mulf %16, %18 : vector<8x8x4xf32>
    %cst = arith.constant 0.000000e+00 : f32
    %20 = vector.broadcast %cst : f32 to vector<10x17x4xf32>
    %c0_12 = arith.constant 0 : index
    %c0_13 = arith.constant 0 : index
    %c0_14 = arith.constant 0 : index
    %21 = vector.load %arg10[%c0_12, %c0_13, %c0_14] : memref<10x17x4xf32, #tpu.memory_space<vmem>>, vector<10x17x4xf32>
    tpu.vector_store %arg10[%c0_12, %c0_13, %c0_14], %20 {strides = array<i32>} : memref<10x17x4xf32, #tpu.memory_space<vmem>>, vector<10x17x4xf32>,
    %c1_15 = arith.constant 1 : index
    %c8 = arith.constant 8 : index
    %c0_16 = arith.constant 0 : index
    %22 = vector.load %arg10[%c1_15, %c8, %c0_16] : memref<10x17x4xf32, #tpu.memory_space<vmem>>, vector<8x8x4xf32>
    tpu.vector_store %arg10[%c1_15, %c8, %c0_16], %19 {strides = array<i32>} : memref<10x17x4xf32, #tpu.memory_space<vmem>>, vector<8x8x4xf32>,
    %c0_17 = arith.constant 0 : index
    %c0_18 = arith.constant 0 : index
    %c0_19 = arith.constant 0 : index
    %23 = vector.load %arg5[%c0_17, %c0_18, %c0_19] : memref<3x3x4xf32, #tpu.memory_space<vmem>>, vector<3x3x4xf32>
    %cst_20 = arith.constant 0.000000e+00 : f32
    %24 = vector.broadcast %cst_20 : f32 to vector<8x8x4xf32>
    %c0_21 = arith.constant 0 : index
    %c7 = arith.constant 7 : index
    %c0_22 = arith.constant 0 : index
    %25 = vector.load %arg10[%c0_21, %c7, %c0_22] : memref<10x17x4xf32, #tpu.memory_space<vmem>>, vector<8x8x4xf32>
    %26 = vector.extract_strided_slice %23 {offsets = [0, 0, 0], sizes = [1, 1, 4], strides = [1, 1, 1]} : vector<3x3x4xf32> to vector<1x1x4xf32>
    %27 = vector.shape_cast %26 : vector<1x1x4xf32> to vector<4xf32>
    %28 = vector.shape_cast %27 : vector<4xf32> to vector<1x1x4xf32>
    %29 = vector.broadcast %28 : vector<1x1x4xf32> to vector<8x8x4xf32>
    %30 = arith.mulf %25, %29 : vector<8x8x4xf32>
    %31 = arith.addf %24, %30 : vector<8x8x4xf32>
    %c0_23 = arith.constant 0 : index
    %c8_24 = arith.constant 8 : index
    %c0_25 = arith.constant 0 : index
    %32 = vector.load %arg10[%c0_23, %c8_24, %c0_25] : memref<10x17x4xf32, #tpu.memory_space<vmem>>, vector<8x8x4xf32>
    %33 = vector.extract_strided_slice %23 {offsets = [0, 1, 0], sizes = [1, 1, 4], strides = [1, 1, 1]} : vector<3x3x4xf32> to vector<1x1x4xf32>
    %34 = vector.shape_cast %33 : vector<1x1x4xf32> to vector<4xf32>
    %35 = vector.shape_cast %34 : vector<4xf32> to vector<1x1x4xf32>
    %36 = vector.broadcast %35 : vector<1x1x4xf32> to vector<8x8x4xf32>
    %37 = arith.mulf %32, %36 : vector<8x8x4xf32>
    %38 = arith.addf %31, %37 : vector<8x8x4xf32>
    %c0_26 = arith.constant 0 : index
    %c9 = arith.constant 9 : index
    %c0_27 = arith.constant 0 : index
    %39 = vector.load %arg10[%c0_26, %c9, %c0_27] : memref<10x17x4xf32, #tpu.memory_space<vmem>>, vector<8x8x4xf32>
    %40 = vector.extract_strided_slice %23 {offsets = [0, 2, 0], sizes = [1, 1, 4], strides = [1, 1, 1]} : vector<3x3x4xf32> to vector<1x1x4xf32>
    %41 = vector.shape_cast %40 : vector<1x1x4xf32> to vector<4xf32>
    %42 = vector.shape_cast %41 : vector<4xf32> to vector<1x1x4xf32>
    %43 = vector.broadcast %42 : vector<1x1x4xf32> to vector<8x8x4xf32>
    %44 = arith.mulf %39, %43 : vector<8x8x4xf32>
    %45 = arith.addf %38, %44 : vector<8x8x4xf32>
    %c1_28 = arith.constant 1 : index
    %c7_29 = arith.constant 7 : index
    %c0_30 = arith.constant 0 : index
    %46 = vector.load %arg10[%c1_28, %c7_29, %c0_30] : memref<10x17x4xf32, #tpu.memory_space<vmem>>, vector<8x8x4xf32>
    %47 = vector.extract_strided_slice %23 {offsets = [1, 0, 0], sizes = [1, 1, 4], strides = [1, 1, 1]} : vector<3x3x4xf32> to vector<1x1x4xf32>
    %48 = vector.shape_cast %47 : vector<1x1x4xf32> to vector<4xf32>
    %49 = vector.shape_cast %48 : vector<4xf32> to vector<1x1x4xf32>
    %50 = vector.broadcast %49 : vector<1x1x4xf32> to vector<8x8x4xf32>
    %51 = arith.mulf %46, %50 : vector<8x8x4xf32>
    %52 = arith.addf %45, %51 : vector<8x8x4xf32>
    %c1_31 = arith.constant 1 : index
    %c8_32 = arith.constant 8 : index
    %c0_33 = arith.constant 0 : index
    %53 = vector.load %arg10[%c1_31, %c8_32, %c0_33] : memref<10x17x4xf32, #tpu.memory_space<vmem>>, vector<8x8x4xf32>
    %54 = vector.extract_strided_slice %23 {offsets = [1, 1, 0], sizes = [1, 1, 4], strides = [1, 1, 1]} : vector<3x3x4xf32> to vector<1x1x4xf32>
    %55 = vector.shape_cast %54 : vector<1x1x4xf32> to vector<4xf32>
    %56 = vector.shape_cast %55 : vector<4xf32> to vector<1x1x4xf32>
    %57 = vector.broadcast %56 : vector<1x1x4xf32> to vector<8x8x4xf32>
    %58 = arith.mulf %53, %57 : vector<8x8x4xf32>
    %59 = arith.addf %52, %58 : vector<8x8x4xf32>
    %c1_34 = arith.constant 1 : index
    %c9_35 = arith.constant 9 : index
    %c0_36 = arith.constant 0 : index
    %60 = vector.load %arg10[%c1_34, %c9_35, %c0_36] : memref<10x17x4xf32, #tpu.memory_space<vmem>>, vector<8x8x4xf32>
    %61 = vector.extract_strided_slice %23 {offsets = [1, 2, 0], sizes = [1, 1, 4], strides = [1, 1, 1]} : vector<3x3x4xf32> to vector<1x1x4xf32>
    %62 = vector.shape_cast %61 : vector<1x1x4xf32> to vector<4xf32>
    %63 = vector.shape_cast %62 : vector<4xf32> to vector<1x1x4xf32>
    %64 = vector.broadcast %63 : vector<1x1x4xf32> to vector<8x8x4xf32>
    %65 = arith.mulf %60, %64 : vector<8x8x4xf32>
    %66 = arith.addf %59, %65 : vector<8x8x4xf32>
    %c2_37 = arith.constant 2 : index
    %c7_38 = arith.constant 7 : index
    %c0_39 = arith.constant 0 : index
    %67 = vector.load %arg10[%c2_37, %c7_38, %c0_39] : memref<10x17x4xf32, #tpu.memory_space<vmem>>, vector<8x8x4xf32>
    %68 = vector.extract_strided_slice %23 {offsets = [2, 0, 0], sizes = [1, 1, 4], strides = [1, 1, 1]} : vector<3x3x4xf32> to vector<1x1x4xf32>
    %69 = vector.shape_cast %68 : vector<1x1x4xf32> to vector<4xf32>
    %70 = vector.shape_cast %69 : vector<4xf32> to vector<1x1x4xf32>
    %71 = vector.broadcast %70 : vector<1x1x4xf32> to vector<8x8x4xf32>
    %72 = arith.mulf %67, %71 : vector<8x8x4xf32>
    %73 = arith.addf %66, %72 : vector<8x8x4xf32>
    %c2_40 = arith.constant 2 : index
    %c8_41 = arith.constant 8 : index
    %c0_42 = arith.constant 0 : index
    %74 = vector.load %arg10[%c2_40, %c8_41, %c0_42] : memref<10x17x4xf32, #tpu.memory_space<vmem>>, vector<8x8x4xf32>
    %75 = vector.extract_strided_slice %23 {offsets = [2, 1, 0], sizes = [1, 1, 4], strides = [1, 1, 1]} : vector<3x3x4xf32> to vector<1x1x4xf32>
    %76 = vector.shape_cast %75 : vector<1x1x4xf32> to vector<4xf32>
    %77 = vector.shape_cast %76 : vector<4xf32> to vector<1x1x4xf32>
    %78 = vector.broadcast %77 : vector<1x1x4xf32> to vector<8x8x4xf32>
    %79 = arith.mulf %74, %78 : vector<8x8x4xf32>
    %80 = arith.addf %73, %79 : vector<8x8x4xf32>
    %c2_43 = arith.constant 2 : index
    %c9_44 = arith.constant 9 : index
    %c0_45 = arith.constant 0 : index
    %81 = vector.load %arg10[%c2_43, %c9_44, %c0_45] : memref<10x17x4xf32, #tpu.memory_space<vmem>>, vector<8x8x4xf32>
    %82 = vector.extract_strided_slice %23 {offsets = [2, 2, 0], sizes = [1, 1, 4], strides = [1, 1, 1]} : vector<3x3x4xf32> to vector<1x1x4xf32>
    %83 = vector.shape_cast %82 : vector<1x1x4xf32> to vector<4xf32>
    %84 = vector.shape_cast %83 : vector<4xf32> to vector<1x1x4xf32>
    %85 = vector.broadcast %84 : vector<1x1x4xf32> to vector<8x8x4xf32>
    %86 = arith.mulf %81, %85 : vector<8x8x4xf32>
    %87 = arith.addf %80, %86 : vector<8x8x4xf32>
    %c0_46 = arith.constant 0 : index
    %c0_47 = arith.constant 0 : index
    %88 = vector.load %arg6[%c0_46, %c0_47] : memref<4x4xf32, #tpu.memory_space<vmem>>, vector<4x4xf32>
    %c0_48 = arith.constant 0 : index
    %c0_49 = arith.constant 0 : index
    %89 = vector.load %arg7[%c0_48, %c0_49] : memref<1x4xf32, #tpu.memory_space<vmem>>, vector<1x4xf32>
    %c0_50 = arith.constant 0 : index
    %c0_51 = arith.constant 0 : index
    %90 = vector.load %arg8[%c0_50, %c0_51] : memref<1x4xf32, #tpu.memory_space<vmem>>, vector<1x4xf32>
    %91 = vector.shape_cast %87 : vector<8x8x4xf32> to vector<64x4xf32>
    %cst_52 = arith.constant dense<0.000000e+00> : vector<64x4xf32>
    %92 = tpu.matmul %91, %88, %cst_52 {dimension_numbers = #tpu.dot_dimension_numbers<[1], [0], [0], [1], [0, 0, 1, 1], [], []>} : vector<64x4xf32>, vector<4x4xf32>, vector<64x4xf32> -> vector<64x4xf32>
    %93 = vector.broadcast %89 : vector<1x4xf32> to vector<64x4xf32>
    %94 = arith.mulf %92, %93 : vector<64x4xf32>
    %95 = vector.broadcast %90 : vector<1x4xf32> to vector<64x4xf32>
    %96 = arith.addf %94, %95 : vector<64x4xf32>
    %cst_53 = arith.constant 0.000000e+00 : f32
    %97 = vector.broadcast %cst_53 : f32 to vector<64x4xf32>
    %98 = arith.maximumf %96, %97 : vector<64x4xf32>
    %99 = vector.shape_cast %98 : vector<64x4xf32> to vector<1x8x8x4xf32>
    %c0_54 = arith.constant 0 : index
    %c0_55 = arith.constant 0 : index
    %c0_56 = arith.constant 0 : index
    %c0_57 = arith.constant 0 : index
    %100 = vector.load %arg9[%c0_54, %c0_55, %c0_56, %c0_57] : memref<1x8x8x4xf32, #tpu.memory_space<vmem>>, vector<1x8x8x4xf32>
    tpu.vector_store %arg9[%c0_54, %c0_55, %c0_56, %c0_57], %99 {strides = array<i32>} : memref<1x8x8x4xf32, #tpu.memory_space<vmem>>, vector<1x8x8x4xf32>,
    return
  }
  func.func @transform_0(%arg0: i32) -> i32 {
    %c0_i32 = arith.constant 0 : i32
    %c0_i32_0 = arith.constant 0 : i32
    return %c0_i32 : i32
  }
  func.func @transform_1(%arg0: i32) -> (i32, i32, i32, i32) {
    %c0_i32 = arith.constant 0 : i32
    %c0_i32_0 = arith.constant 0 : i32
    %c0_i32_1 = arith.constant 0 : i32
    %c0_i32_2 = arith.constant 0 : i32
    return %arg0, %c0_i32, %c0_i32_0, %c0_i32_1 : i32, i32, i32, i32
  }
  func.func @transform_2(%arg0: i32) -> (i32, i32, i32, i32) {
    %c0_i32 = arith.constant 0 : i32
    %c0_i32_0 = arith.constant 0 : i32
    %c0_i32_1 = arith.constant 0 : i32
    %c0_i32_2 = arith.constant 0 : i32
    return %arg0, %c0_i32, %c0_i32_0, %c0_i32_1 : i32, i32, i32, i32
  }
  func.func @transform_3(%arg0: i32) -> (i32, i32, i32, i32) {
    %c0_i32 = arith.constant 0 : i32
    %c0_i32_0 = arith.constant 0 : i32
    %c0_i32_1 = arith.constant 0 : i32
    %c0_i32_2 = arith.constant 0 : i32
    return %arg0, %c0_i32, %c0_i32_0, %c0_i32_1 : i32, i32, i32, i32
  }
  func.func @transform_4(%arg0: i32) -> (i32, i32, i32) {
    %c0_i32 = arith.constant 0 : i32
    %c0_i32_0 = arith.constant 0 : i32
    %c0_i32_1 = arith.constant 0 : i32
    %c0_i32_2 = arith.constant 0 : i32
    return %c0_i32, %c0_i32_0, %c0_i32_1 : i32, i32, i32
  }
  func.func @transform_5(%arg0: i32) -> (i32, i32) {
    %c0_i32 = arith.constant 0 : i32
    %c0_i32_0 = arith.constant 0 : i32
    %c0_i32_1 = arith.constant 0 : i32
    return %c0_i32, %c0_i32_0 : i32, i32
  }
  func.func @transform_6(%arg0: i32) -> (i32, i32) {
    %c0_i32 = arith.constant 0 : i32
    %c0_i32_0 = arith.constant 0 : i32
    %c0_i32_1 = arith.constant 0 : i32
    return %c0_i32, %c0_i32_0 : i32, i32
  }
  func.func @transform_7(%arg0: i32) -> (i32, i32) {
    %c0_i32 = arith.constant 0 : i32
    %c0_i32_0 = arith.constant 0 : i32
    %c0_i32_1 = arith.constant 0 : i32
    return %c0_i32, %c0_i32_0 : i32, i32
  }
  func.func @transform_8(%arg0: i32) -> (i32, i32, i32, i32) {
    %c0_i32 = arith.constant 0 : i32
    %c0_i32_0 = arith.constant 0 : i32
    %c0_i32_1 = arith.constant 0 : i32
    %c0_i32_2 = arith.constant 0 : i32
    return %arg0, %c0_i32, %c0_i32_0, %c0_i32_1 : i32, i32, i32, i32
  }
}

module attributes {stable_mosaic.version = 11 : i64} {
  func.func @kernel(%arg0: i32, %arg1: memref<2xf32, #tpu.memory_space<smem>>, %arg2: memref<1x16x16x4xf32, #tpu.memory_space<vmem>>, %arg3: memref<3x3x4xf32, #tpu.memory_space<vmem>>, %arg4: memref<4x4xf32, #tpu.memory_space<vmem>>, %arg5: memref<1x4xf32, #tpu.memory_space<vmem>>, %arg6: memref<1x4xf32, #tpu.memory_space<vmem>>, %arg7: memref<1x8x8x4xf32, #tpu.memory_space<vmem>>, %arg8: memref<18x25x4xf32, #tpu.memory_space<vmem>>) attributes {dimension_semantics = [#tpu.dimension_semantics<parallel>], iteration_bounds = array<i64: 2>, scalar_prefetch = 0 : i64, scratch_operands = 1 : i64, tpu.core_type = #tpu.core_type<tc>, window_params = [{transform_indices = @transform_0, window_bounds = array<i64: 2>}, {transform_indices = @transform_1, window_bounds = array<i64: 1, 16, 16, 4>}, {pipeline_mode = #tpu.pipeline_mode<synchronous>, transform_indices = @transform_2, window_bounds = array<i64: 3, 3, 4>}, {pipeline_mode = #tpu.pipeline_mode<synchronous>, transform_indices = @transform_3, window_bounds = array<i64: 4, 4>}, {pipeline_mode = #tpu.pipeline_mode<synchronous>, transform_indices = @transform_4, window_bounds = array<i64: 1, 4>}, {pipeline_mode = #tpu.pipeline_mode<synchronous>, transform_indices = @transform_5, window_bounds = array<i64: 1, 4>}, {transform_indices = @transform_6, window_bounds = array<i64: 1, 8, 8, 4>}]} {
    %c0 = arith.constant 0 : index
    %c0_0 = arith.constant 0 : index
    %c0_1 = arith.constant 0 : index
    %c0_2 = arith.constant 0 : index
    %0 = vector.load %arg2[%c0, %c0_0, %c0_1, %c0_2] : memref<1x16x16x4xf32, #tpu.memory_space<vmem>>, vector<1x16x16x4xf32>
    %1 = vector.shape_cast %0 : vector<1x16x16x4xf32> to vector<16x16x4xf32>
    %c0_3 = arith.constant 0 : index
    %2 = memref.load %arg1[%c0_3] : memref<2xf32, #tpu.memory_space<smem>>
    %3 = vector.broadcast %2 : f32 to vector<16x16x4xf32>
    %4 = arith.mulf %1, %3 : vector<16x16x4xf32>
    %c1 = arith.constant 1 : index
    %5 = memref.load %arg1[%c1] : memref<2xf32, #tpu.memory_space<smem>>
    %6 = vector.broadcast %5 : f32 to vector<16x16x4xf32>
    %7 = arith.mulf %4, %6 : vector<16x16x4xf32>
    %cst = arith.constant 0.000000e+00 : f32
    %8 = vector.broadcast %cst : f32 to vector<18x25x4xf32>
    %c0_4 = arith.constant 0 : index
    %c0_5 = arith.constant 0 : index
    %c0_6 = arith.constant 0 : index
    %9 = vector.load %arg8[%c0_4, %c0_5, %c0_6] : memref<18x25x4xf32, #tpu.memory_space<vmem>>, vector<18x25x4xf32>
    tpu.vector_store %arg8[%c0_4, %c0_5, %c0_6], %8 {strides = array<i32>} : memref<18x25x4xf32, #tpu.memory_space<vmem>>, vector<18x25x4xf32>,
    %c1_7 = arith.constant 1 : index
    %c8 = arith.constant 8 : index
    %c0_8 = arith.constant 0 : index
    %10 = vector.load %arg8[%c1_7, %c8, %c0_8] : memref<18x25x4xf32, #tpu.memory_space<vmem>>, vector<16x16x4xf32>
    tpu.vector_store %arg8[%c1_7, %c8, %c0_8], %7 {strides = array<i32>} : memref<18x25x4xf32, #tpu.memory_space<vmem>>, vector<16x16x4xf32>,
    %c0_9 = arith.constant 0 : index
    %c0_10 = arith.constant 0 : index
    %c0_11 = arith.constant 0 : index
    %11 = vector.load %arg3[%c0_9, %c0_10, %c0_11] : memref<3x3x4xf32, #tpu.memory_space<vmem>>, vector<3x3x4xf32>
    %cst_12 = arith.constant 0.000000e+00 : f32
    %12 = vector.broadcast %cst_12 : f32 to vector<8x8x4xf32>
    %c0_13 = arith.constant 0 : index
    %c7 = arith.constant 7 : index
    %c0_14 = arith.constant 0 : index
    %13 = tpu.strided_load %arg8[%c0_13, %c7, %c0_14] {strides = array<i32: 2, 2, 1>} : memref<18x25x4xf32, #tpu.memory_space<vmem>>, vector<8x8x4xf32>
    %14 = vector.extract_strided_slice %11 {offsets = [0, 0, 0], sizes = [1, 1, 4], strides = [1, 1, 1]} : vector<3x3x4xf32> to vector<1x1x4xf32>
    %15 = vector.shape_cast %14 : vector<1x1x4xf32> to vector<4xf32>
    %16 = vector.shape_cast %15 : vector<4xf32> to vector<1x1x4xf32>
    %17 = vector.broadcast %16 : vector<1x1x4xf32> to vector<8x8x4xf32>
    %18 = arith.mulf %13, %17 : vector<8x8x4xf32>
    %19 = arith.addf %12, %18 : vector<8x8x4xf32>
    %c0_15 = arith.constant 0 : index
    %c8_16 = arith.constant 8 : index
    %c0_17 = arith.constant 0 : index
    %20 = tpu.strided_load %arg8[%c0_15, %c8_16, %c0_17] {strides = array<i32: 2, 2, 1>} : memref<18x25x4xf32, #tpu.memory_space<vmem>>, vector<8x8x4xf32>
    %21 = vector.extract_strided_slice %11 {offsets = [0, 1, 0], sizes = [1, 1, 4], strides = [1, 1, 1]} : vector<3x3x4xf32> to vector<1x1x4xf32>
    %22 = vector.shape_cast %21 : vector<1x1x4xf32> to vector<4xf32>
    %23 = vector.shape_cast %22 : vector<4xf32> to vector<1x1x4xf32>
    %24 = vector.broadcast %23 : vector<1x1x4xf32> to vector<8x8x4xf32>
    %25 = arith.mulf %20, %24 : vector<8x8x4xf32>
    %26 = arith.addf %19, %25 : vector<8x8x4xf32>
    %c0_18 = arith.constant 0 : index
    %c9 = arith.constant 9 : index
    %c0_19 = arith.constant 0 : index
    %27 = tpu.strided_load %arg8[%c0_18, %c9, %c0_19] {strides = array<i32: 2, 2, 1>} : memref<18x25x4xf32, #tpu.memory_space<vmem>>, vector<8x8x4xf32>
    %28 = vector.extract_strided_slice %11 {offsets = [0, 2, 0], sizes = [1, 1, 4], strides = [1, 1, 1]} : vector<3x3x4xf32> to vector<1x1x4xf32>
    %29 = vector.shape_cast %28 : vector<1x1x4xf32> to vector<4xf32>
    %30 = vector.shape_cast %29 : vector<4xf32> to vector<1x1x4xf32>
    %31 = vector.broadcast %30 : vector<1x1x4xf32> to vector<8x8x4xf32>
    %32 = arith.mulf %27, %31 : vector<8x8x4xf32>
    %33 = arith.addf %26, %32 : vector<8x8x4xf32>
    %c1_20 = arith.constant 1 : index
    %c7_21 = arith.constant 7 : index
    %c0_22 = arith.constant 0 : index
    %34 = tpu.strided_load %arg8[%c1_20, %c7_21, %c0_22] {strides = array<i32: 2, 2, 1>} : memref<18x25x4xf32, #tpu.memory_space<vmem>>, vector<8x8x4xf32>
    %35 = vector.extract_strided_slice %11 {offsets = [1, 0, 0], sizes = [1, 1, 4], strides = [1, 1, 1]} : vector<3x3x4xf32> to vector<1x1x4xf32>
    %36 = vector.shape_cast %35 : vector<1x1x4xf32> to vector<4xf32>
    %37 = vector.shape_cast %36 : vector<4xf32> to vector<1x1x4xf32>
    %38 = vector.broadcast %37 : vector<1x1x4xf32> to vector<8x8x4xf32>
    %39 = arith.mulf %34, %38 : vector<8x8x4xf32>
    %40 = arith.addf %33, %39 : vector<8x8x4xf32>
    %c1_23 = arith.constant 1 : index
    %c8_24 = arith.constant 8 : index
    %c0_25 = arith.constant 0 : index
    %41 = tpu.strided_load %arg8[%c1_23, %c8_24, %c0_25] {strides = array<i32: 2, 2, 1>} : memref<18x25x4xf32, #tpu.memory_space<vmem>>, vector<8x8x4xf32>
    %42 = vector.extract_strided_slice %11 {offsets = [1, 1, 0], sizes = [1, 1, 4], strides = [1, 1, 1]} : vector<3x3x4xf32> to vector<1x1x4xf32>
    %43 = vector.shape_cast %42 : vector<1x1x4xf32> to vector<4xf32>
    %44 = vector.shape_cast %43 : vector<4xf32> to vector<1x1x4xf32>
    %45 = vector.broadcast %44 : vector<1x1x4xf32> to vector<8x8x4xf32>
    %46 = arith.mulf %41, %45 : vector<8x8x4xf32>
    %47 = arith.addf %40, %46 : vector<8x8x4xf32>
    %c1_26 = arith.constant 1 : index
    %c9_27 = arith.constant 9 : index
    %c0_28 = arith.constant 0 : index
    %48 = tpu.strided_load %arg8[%c1_26, %c9_27, %c0_28] {strides = array<i32: 2, 2, 1>} : memref<18x25x4xf32, #tpu.memory_space<vmem>>, vector<8x8x4xf32>
    %49 = vector.extract_strided_slice %11 {offsets = [1, 2, 0], sizes = [1, 1, 4], strides = [1, 1, 1]} : vector<3x3x4xf32> to vector<1x1x4xf32>
    %50 = vector.shape_cast %49 : vector<1x1x4xf32> to vector<4xf32>
    %51 = vector.shape_cast %50 : vector<4xf32> to vector<1x1x4xf32>
    %52 = vector.broadcast %51 : vector<1x1x4xf32> to vector<8x8x4xf32>
    %53 = arith.mulf %48, %52 : vector<8x8x4xf32>
    %54 = arith.addf %47, %53 : vector<8x8x4xf32>
    %c2 = arith.constant 2 : index
    %c7_29 = arith.constant 7 : index
    %c0_30 = arith.constant 0 : index
    %55 = tpu.strided_load %arg8[%c2, %c7_29, %c0_30] {strides = array<i32: 2, 2, 1>} : memref<18x25x4xf32, #tpu.memory_space<vmem>>, vector<8x8x4xf32>
    %56 = vector.extract_strided_slice %11 {offsets = [2, 0, 0], sizes = [1, 1, 4], strides = [1, 1, 1]} : vector<3x3x4xf32> to vector<1x1x4xf32>
    %57 = vector.shape_cast %56 : vector<1x1x4xf32> to vector<4xf32>
    %58 = vector.shape_cast %57 : vector<4xf32> to vector<1x1x4xf32>
    %59 = vector.broadcast %58 : vector<1x1x4xf32> to vector<8x8x4xf32>
    %60 = arith.mulf %55, %59 : vector<8x8x4xf32>
    %61 = arith.addf %54, %60 : vector<8x8x4xf32>
    %c2_31 = arith.constant 2 : index
    %c8_32 = arith.constant 8 : index
    %c0_33 = arith.constant 0 : index
    %62 = tpu.strided_load %arg8[%c2_31, %c8_32, %c0_33] {strides = array<i32: 2, 2, 1>} : memref<18x25x4xf32, #tpu.memory_space<vmem>>, vector<8x8x4xf32>
    %63 = vector.extract_strided_slice %11 {offsets = [2, 1, 0], sizes = [1, 1, 4], strides = [1, 1, 1]} : vector<3x3x4xf32> to vector<1x1x4xf32>
    %64 = vector.shape_cast %63 : vector<1x1x4xf32> to vector<4xf32>
    %65 = vector.shape_cast %64 : vector<4xf32> to vector<1x1x4xf32>
    %66 = vector.broadcast %65 : vector<1x1x4xf32> to vector<8x8x4xf32>
    %67 = arith.mulf %62, %66 : vector<8x8x4xf32>
    %68 = arith.addf %61, %67 : vector<8x8x4xf32>
    %c2_34 = arith.constant 2 : index
    %c9_35 = arith.constant 9 : index
    %c0_36 = arith.constant 0 : index
    %69 = tpu.strided_load %arg8[%c2_34, %c9_35, %c0_36] {strides = array<i32: 2, 2, 1>} : memref<18x25x4xf32, #tpu.memory_space<vmem>>, vector<8x8x4xf32>
    %70 = vector.extract_strided_slice %11 {offsets = [2, 2, 0], sizes = [1, 1, 4], strides = [1, 1, 1]} : vector<3x3x4xf32> to vector<1x1x4xf32>
    %71 = vector.shape_cast %70 : vector<1x1x4xf32> to vector<4xf32>
    %72 = vector.shape_cast %71 : vector<4xf32> to vector<1x1x4xf32>
    %73 = vector.broadcast %72 : vector<1x1x4xf32> to vector<8x8x4xf32>
    %74 = arith.mulf %69, %73 : vector<8x8x4xf32>
    %75 = arith.addf %68, %74 : vector<8x8x4xf32>
    %c0_37 = arith.constant 0 : index
    %c0_38 = arith.constant 0 : index
    %76 = vector.load %arg4[%c0_37, %c0_38] : memref<4x4xf32, #tpu.memory_space<vmem>>, vector<4x4xf32>
    %c0_39 = arith.constant 0 : index
    %c0_40 = arith.constant 0 : index
    %77 = vector.load %arg5[%c0_39, %c0_40] : memref<1x4xf32, #tpu.memory_space<vmem>>, vector<1x4xf32>
    %c0_41 = arith.constant 0 : index
    %c0_42 = arith.constant 0 : index
    %78 = vector.load %arg6[%c0_41, %c0_42] : memref<1x4xf32, #tpu.memory_space<vmem>>, vector<1x4xf32>
    %79 = vector.shape_cast %75 : vector<8x8x4xf32> to vector<64x4xf32>
    %cst_43 = arith.constant dense<0.000000e+00> : vector<64x4xf32>
    %80 = tpu.matmul %79, %76, %cst_43 {dimension_numbers = #tpu.dot_dimension_numbers<[1], [0], [0], [1], [0, 0, 1, 1], [], []>} : vector<64x4xf32>, vector<4x4xf32>, vector<64x4xf32> -> vector<64x4xf32>
    %81 = vector.broadcast %77 : vector<1x4xf32> to vector<64x4xf32>
    %82 = arith.mulf %80, %81 : vector<64x4xf32>
    %83 = vector.broadcast %78 : vector<1x4xf32> to vector<64x4xf32>
    %84 = arith.addf %82, %83 : vector<64x4xf32>
    %cst_44 = arith.constant 0.000000e+00 : f32
    %85 = vector.broadcast %cst_44 : f32 to vector<64x4xf32>
    %86 = arith.maximumf %84, %85 : vector<64x4xf32>
    %87 = vector.shape_cast %86 : vector<64x4xf32> to vector<1x8x8x4xf32>
    %c0_45 = arith.constant 0 : index
    %c0_46 = arith.constant 0 : index
    %c0_47 = arith.constant 0 : index
    %c0_48 = arith.constant 0 : index
    %88 = vector.load %arg7[%c0_45, %c0_46, %c0_47, %c0_48] : memref<1x8x8x4xf32, #tpu.memory_space<vmem>>, vector<1x8x8x4xf32>
    tpu.vector_store %arg7[%c0_45, %c0_46, %c0_47, %c0_48], %87 {strides = array<i32>} : memref<1x8x8x4xf32, #tpu.memory_space<vmem>>, vector<1x8x8x4xf32>,
    return
  }
  func.func @transform_0(%arg0: i32) -> i32 {
    %c0_i32 = arith.constant 0 : i32
    %c0_i32_0 = arith.constant 0 : i32
    return %c0_i32 : i32
  }
  func.func @transform_1(%arg0: i32) -> (i32, i32, i32, i32) {
    %c0_i32 = arith.constant 0 : i32
    %c0_i32_0 = arith.constant 0 : i32
    %c0_i32_1 = arith.constant 0 : i32
    %c0_i32_2 = arith.constant 0 : i32
    return %arg0, %c0_i32, %c0_i32_0, %c0_i32_1 : i32, i32, i32, i32
  }
  func.func @transform_2(%arg0: i32) -> (i32, i32, i32) {
    %c0_i32 = arith.constant 0 : i32
    %c0_i32_0 = arith.constant 0 : i32
    %c0_i32_1 = arith.constant 0 : i32
    %c0_i32_2 = arith.constant 0 : i32
    return %c0_i32, %c0_i32_0, %c0_i32_1 : i32, i32, i32
  }
  func.func @transform_3(%arg0: i32) -> (i32, i32) {
    %c0_i32 = arith.constant 0 : i32
    %c0_i32_0 = arith.constant 0 : i32
    %c0_i32_1 = arith.constant 0 : i32
    return %c0_i32, %c0_i32_0 : i32, i32
  }
  func.func @transform_4(%arg0: i32) -> (i32, i32) {
    %c0_i32 = arith.constant 0 : i32
    %c0_i32_0 = arith.constant 0 : i32
    %c0_i32_1 = arith.constant 0 : i32
    return %c0_i32, %c0_i32_0 : i32, i32
  }
  func.func @transform_5(%arg0: i32) -> (i32, i32) {
    %c0_i32 = arith.constant 0 : i32
    %c0_i32_0 = arith.constant 0 : i32
    %c0_i32_1 = arith.constant 0 : i32
    return %c0_i32, %c0_i32_0 : i32, i32
  }
  func.func @transform_6(%arg0: i32) -> (i32, i32, i32, i32) {
    %c0_i32 = arith.constant 0 : i32
    %c0_i32_0 = arith.constant 0 : i32
    %c0_i32_1 = arith.constant 0 : i32
    %c0_i32_2 = arith.constant 0 : i32
    return %arg0, %c0_i32, %c0_i32_0, %c0_i32_1 : i32, i32, i32, i32
  }
}

module attributes {stable_mosaic.version = 11 : i64} {
  func.func @kernel(%arg0: i32, %arg1: memref<2xf32, #tpu.memory_space<smem>>, %arg2: memref<1x8x8x4xf32, #tpu.memory_space<vmem>>, %arg3: memref<3x3x4xf32, #tpu.memory_space<vmem>>, %arg4: memref<4x4xf32, #tpu.memory_space<vmem>>, %arg5: memref<1x4xf32, #tpu.memory_space<vmem>>, %arg6: memref<1x4xf32, #tpu.memory_space<vmem>>, %arg7: memref<1x4x4x4xf32, #tpu.memory_space<vmem>>, %arg8: memref<10x17x4xf32, #tpu.memory_space<vmem>>) attributes {dimension_semantics = [#tpu.dimension_semantics<parallel>], iteration_bounds = array<i64: 2>, scalar_prefetch = 0 : i64, scratch_operands = 1 : i64, tpu.core_type = #tpu.core_type<tc>, window_params = [{transform_indices = @transform_0, window_bounds = array<i64: 2>}, {transform_indices = @transform_1, window_bounds = array<i64: 1, 8, 8, 4>}, {pipeline_mode = #tpu.pipeline_mode<synchronous>, transform_indices = @transform_2, window_bounds = array<i64: 3, 3, 4>}, {pipeline_mode = #tpu.pipeline_mode<synchronous>, transform_indices = @transform_3, window_bounds = array<i64: 4, 4>}, {pipeline_mode = #tpu.pipeline_mode<synchronous>, transform_indices = @transform_4, window_bounds = array<i64: 1, 4>}, {pipeline_mode = #tpu.pipeline_mode<synchronous>, transform_indices = @transform_5, window_bounds = array<i64: 1, 4>}, {transform_indices = @transform_6, window_bounds = array<i64: 1, 4, 4, 4>}]} {
    %c0 = arith.constant 0 : index
    %c0_0 = arith.constant 0 : index
    %c0_1 = arith.constant 0 : index
    %c0_2 = arith.constant 0 : index
    %0 = vector.load %arg2[%c0, %c0_0, %c0_1, %c0_2] : memref<1x8x8x4xf32, #tpu.memory_space<vmem>>, vector<1x8x8x4xf32>
    %1 = vector.shape_cast %0 : vector<1x8x8x4xf32> to vector<8x8x4xf32>
    %c0_3 = arith.constant 0 : index
    %2 = memref.load %arg1[%c0_3] : memref<2xf32, #tpu.memory_space<smem>>
    %3 = vector.broadcast %2 : f32 to vector<8x8x4xf32>
    %4 = arith.mulf %1, %3 : vector<8x8x4xf32>
    %c1 = arith.constant 1 : index
    %5 = memref.load %arg1[%c1] : memref<2xf32, #tpu.memory_space<smem>>
    %6 = vector.broadcast %5 : f32 to vector<8x8x4xf32>
    %7 = arith.mulf %4, %6 : vector<8x8x4xf32>
    %cst = arith.constant 0.000000e+00 : f32
    %8 = vector.broadcast %cst : f32 to vector<10x17x4xf32>
    %c0_4 = arith.constant 0 : index
    %c0_5 = arith.constant 0 : index
    %c0_6 = arith.constant 0 : index
    %9 = vector.load %arg8[%c0_4, %c0_5, %c0_6] : memref<10x17x4xf32, #tpu.memory_space<vmem>>, vector<10x17x4xf32>
    tpu.vector_store %arg8[%c0_4, %c0_5, %c0_6], %8 {strides = array<i32>} : memref<10x17x4xf32, #tpu.memory_space<vmem>>, vector<10x17x4xf32>,
    %c1_7 = arith.constant 1 : index
    %c8 = arith.constant 8 : index
    %c0_8 = arith.constant 0 : index
    %10 = vector.load %arg8[%c1_7, %c8, %c0_8] : memref<10x17x4xf32, #tpu.memory_space<vmem>>, vector<8x8x4xf32>
    tpu.vector_store %arg8[%c1_7, %c8, %c0_8], %7 {strides = array<i32>} : memref<10x17x4xf32, #tpu.memory_space<vmem>>, vector<8x8x4xf32>,
    %c0_9 = arith.constant 0 : index
    %c0_10 = arith.constant 0 : index
    %c0_11 = arith.constant 0 : index
    %11 = vector.load %arg3[%c0_9, %c0_10, %c0_11] : memref<3x3x4xf32, #tpu.memory_space<vmem>>, vector<3x3x4xf32>
    %cst_12 = arith.constant 0.000000e+00 : f32
    %12 = vector.broadcast %cst_12 : f32 to vector<4x4x4xf32>
    %c0_13 = arith.constant 0 : index
    %c7 = arith.constant 7 : index
    %c0_14 = arith.constant 0 : index
    %13 = tpu.strided_load %arg8[%c0_13, %c7, %c0_14] {strides = array<i32: 2, 2, 1>} : memref<10x17x4xf32, #tpu.memory_space<vmem>>, vector<4x4x4xf32>
    %14 = vector.extract_strided_slice %11 {offsets = [0, 0, 0], sizes = [1, 1, 4], strides = [1, 1, 1]} : vector<3x3x4xf32> to vector<1x1x4xf32>
    %15 = vector.shape_cast %14 : vector<1x1x4xf32> to vector<4xf32>
    %16 = vector.shape_cast %15 : vector<4xf32> to vector<1x1x4xf32>
    %17 = vector.broadcast %16 : vector<1x1x4xf32> to vector<4x4x4xf32>
    %18 = arith.mulf %13, %17 : vector<4x4x4xf32>
    %19 = arith.addf %12, %18 : vector<4x4x4xf32>
    %c0_15 = arith.constant 0 : index
    %c8_16 = arith.constant 8 : index
    %c0_17 = arith.constant 0 : index
    %20 = tpu.strided_load %arg8[%c0_15, %c8_16, %c0_17] {strides = array<i32: 2, 2, 1>} : memref<10x17x4xf32, #tpu.memory_space<vmem>>, vector<4x4x4xf32>
    %21 = vector.extract_strided_slice %11 {offsets = [0, 1, 0], sizes = [1, 1, 4], strides = [1, 1, 1]} : vector<3x3x4xf32> to vector<1x1x4xf32>
    %22 = vector.shape_cast %21 : vector<1x1x4xf32> to vector<4xf32>
    %23 = vector.shape_cast %22 : vector<4xf32> to vector<1x1x4xf32>
    %24 = vector.broadcast %23 : vector<1x1x4xf32> to vector<4x4x4xf32>
    %25 = arith.mulf %20, %24 : vector<4x4x4xf32>
    %26 = arith.addf %19, %25 : vector<4x4x4xf32>
    %c0_18 = arith.constant 0 : index
    %c9 = arith.constant 9 : index
    %c0_19 = arith.constant 0 : index
    %27 = tpu.strided_load %arg8[%c0_18, %c9, %c0_19] {strides = array<i32: 2, 2, 1>} : memref<10x17x4xf32, #tpu.memory_space<vmem>>, vector<4x4x4xf32>
    %28 = vector.extract_strided_slice %11 {offsets = [0, 2, 0], sizes = [1, 1, 4], strides = [1, 1, 1]} : vector<3x3x4xf32> to vector<1x1x4xf32>
    %29 = vector.shape_cast %28 : vector<1x1x4xf32> to vector<4xf32>
    %30 = vector.shape_cast %29 : vector<4xf32> to vector<1x1x4xf32>
    %31 = vector.broadcast %30 : vector<1x1x4xf32> to vector<4x4x4xf32>
    %32 = arith.mulf %27, %31 : vector<4x4x4xf32>
    %33 = arith.addf %26, %32 : vector<4x4x4xf32>
    %c1_20 = arith.constant 1 : index
    %c7_21 = arith.constant 7 : index
    %c0_22 = arith.constant 0 : index
    %34 = tpu.strided_load %arg8[%c1_20, %c7_21, %c0_22] {strides = array<i32: 2, 2, 1>} : memref<10x17x4xf32, #tpu.memory_space<vmem>>, vector<4x4x4xf32>
    %35 = vector.extract_strided_slice %11 {offsets = [1, 0, 0], sizes = [1, 1, 4], strides = [1, 1, 1]} : vector<3x3x4xf32> to vector<1x1x4xf32>
    %36 = vector.shape_cast %35 : vector<1x1x4xf32> to vector<4xf32>
    %37 = vector.shape_cast %36 : vector<4xf32> to vector<1x1x4xf32>
    %38 = vector.broadcast %37 : vector<1x1x4xf32> to vector<4x4x4xf32>
    %39 = arith.mulf %34, %38 : vector<4x4x4xf32>
    %40 = arith.addf %33, %39 : vector<4x4x4xf32>
    %c1_23 = arith.constant 1 : index
    %c8_24 = arith.constant 8 : index
    %c0_25 = arith.constant 0 : index
    %41 = tpu.strided_load %arg8[%c1_23, %c8_24, %c0_25] {strides = array<i32: 2, 2, 1>} : memref<10x17x4xf32, #tpu.memory_space<vmem>>, vector<4x4x4xf32>
    %42 = vector.extract_strided_slice %11 {offsets = [1, 1, 0], sizes = [1, 1, 4], strides = [1, 1, 1]} : vector<3x3x4xf32> to vector<1x1x4xf32>
    %43 = vector.shape_cast %42 : vector<1x1x4xf32> to vector<4xf32>
    %44 = vector.shape_cast %43 : vector<4xf32> to vector<1x1x4xf32>
    %45 = vector.broadcast %44 : vector<1x1x4xf32> to vector<4x4x4xf32>
    %46 = arith.mulf %41, %45 : vector<4x4x4xf32>
    %47 = arith.addf %40, %46 : vector<4x4x4xf32>
    %c1_26 = arith.constant 1 : index
    %c9_27 = arith.constant 9 : index
    %c0_28 = arith.constant 0 : index
    %48 = tpu.strided_load %arg8[%c1_26, %c9_27, %c0_28] {strides = array<i32: 2, 2, 1>} : memref<10x17x4xf32, #tpu.memory_space<vmem>>, vector<4x4x4xf32>
    %49 = vector.extract_strided_slice %11 {offsets = [1, 2, 0], sizes = [1, 1, 4], strides = [1, 1, 1]} : vector<3x3x4xf32> to vector<1x1x4xf32>
    %50 = vector.shape_cast %49 : vector<1x1x4xf32> to vector<4xf32>
    %51 = vector.shape_cast %50 : vector<4xf32> to vector<1x1x4xf32>
    %52 = vector.broadcast %51 : vector<1x1x4xf32> to vector<4x4x4xf32>
    %53 = arith.mulf %48, %52 : vector<4x4x4xf32>
    %54 = arith.addf %47, %53 : vector<4x4x4xf32>
    %c2 = arith.constant 2 : index
    %c7_29 = arith.constant 7 : index
    %c0_30 = arith.constant 0 : index
    %55 = tpu.strided_load %arg8[%c2, %c7_29, %c0_30] {strides = array<i32: 2, 2, 1>} : memref<10x17x4xf32, #tpu.memory_space<vmem>>, vector<4x4x4xf32>
    %56 = vector.extract_strided_slice %11 {offsets = [2, 0, 0], sizes = [1, 1, 4], strides = [1, 1, 1]} : vector<3x3x4xf32> to vector<1x1x4xf32>
    %57 = vector.shape_cast %56 : vector<1x1x4xf32> to vector<4xf32>
    %58 = vector.shape_cast %57 : vector<4xf32> to vector<1x1x4xf32>
    %59 = vector.broadcast %58 : vector<1x1x4xf32> to vector<4x4x4xf32>
    %60 = arith.mulf %55, %59 : vector<4x4x4xf32>
    %61 = arith.addf %54, %60 : vector<4x4x4xf32>
    %c2_31 = arith.constant 2 : index
    %c8_32 = arith.constant 8 : index
    %c0_33 = arith.constant 0 : index
    %62 = tpu.strided_load %arg8[%c2_31, %c8_32, %c0_33] {strides = array<i32: 2, 2, 1>} : memref<10x17x4xf32, #tpu.memory_space<vmem>>, vector<4x4x4xf32>
    %63 = vector.extract_strided_slice %11 {offsets = [2, 1, 0], sizes = [1, 1, 4], strides = [1, 1, 1]} : vector<3x3x4xf32> to vector<1x1x4xf32>
    %64 = vector.shape_cast %63 : vector<1x1x4xf32> to vector<4xf32>
    %65 = vector.shape_cast %64 : vector<4xf32> to vector<1x1x4xf32>
    %66 = vector.broadcast %65 : vector<1x1x4xf32> to vector<4x4x4xf32>
    %67 = arith.mulf %62, %66 : vector<4x4x4xf32>
    %68 = arith.addf %61, %67 : vector<4x4x4xf32>
    %c2_34 = arith.constant 2 : index
    %c9_35 = arith.constant 9 : index
    %c0_36 = arith.constant 0 : index
    %69 = tpu.strided_load %arg8[%c2_34, %c9_35, %c0_36] {strides = array<i32: 2, 2, 1>} : memref<10x17x4xf32, #tpu.memory_space<vmem>>, vector<4x4x4xf32>
    %70 = vector.extract_strided_slice %11 {offsets = [2, 2, 0], sizes = [1, 1, 4], strides = [1, 1, 1]} : vector<3x3x4xf32> to vector<1x1x4xf32>
    %71 = vector.shape_cast %70 : vector<1x1x4xf32> to vector<4xf32>
    %72 = vector.shape_cast %71 : vector<4xf32> to vector<1x1x4xf32>
    %73 = vector.broadcast %72 : vector<1x1x4xf32> to vector<4x4x4xf32>
    %74 = arith.mulf %69, %73 : vector<4x4x4xf32>
    %75 = arith.addf %68, %74 : vector<4x4x4xf32>
    %c0_37 = arith.constant 0 : index
    %c0_38 = arith.constant 0 : index
    %76 = vector.load %arg4[%c0_37, %c0_38] : memref<4x4xf32, #tpu.memory_space<vmem>>, vector<4x4xf32>
    %c0_39 = arith.constant 0 : index
    %c0_40 = arith.constant 0 : index
    %77 = vector.load %arg5[%c0_39, %c0_40] : memref<1x4xf32, #tpu.memory_space<vmem>>, vector<1x4xf32>
    %c0_41 = arith.constant 0 : index
    %c0_42 = arith.constant 0 : index
    %78 = vector.load %arg6[%c0_41, %c0_42] : memref<1x4xf32, #tpu.memory_space<vmem>>, vector<1x4xf32>
    %79 = vector.extract_strided_slice %75 {offsets = [0, 0, 0], sizes = [1, 4, 4], strides = [1, 1, 1]} : vector<4x4x4xf32> to vector<1x4x4xf32>
    %80 = vector.shape_cast %79 : vector<1x4x4xf32> to vector<4x4xf32>
    %cst_43 = arith.constant dense<0.000000e+00> : vector<4x4xf32>
    %81 = tpu.matmul %80, %76, %cst_43 {dimension_numbers = #tpu.dot_dimension_numbers<[1], [0], [0], [1], [0, 0, 1, 1], [], []>} : vector<4x4xf32>, vector<4x4xf32>, vector<4x4xf32> -> vector<4x4xf32>
    %82 = vector.broadcast %77 : vector<1x4xf32> to vector<4x4xf32>
    %83 = arith.mulf %81, %82 : vector<4x4xf32>
    %84 = vector.broadcast %78 : vector<1x4xf32> to vector<4x4xf32>
    %85 = arith.addf %83, %84 : vector<4x4xf32>
    %cst_44 = arith.constant 0.000000e+00 : f32
    %86 = vector.broadcast %cst_44 : f32 to vector<4x4xf32>
    %87 = arith.maximumf %85, %86 : vector<4x4xf32>
    %c0_45 = arith.constant 0 : index
    %c0_46 = arith.constant 0 : index
    %c0_47 = arith.constant 0 : index
    %c0_48 = arith.constant 0 : index
    %88 = vector.load %arg7[%c0_45, %c0_46, %c0_47, %c0_48] : memref<1x4x4x4xf32, #tpu.memory_space<vmem>>, vector<1x1x4x4xf32>
    %89 = vector.shape_cast %88 : vector<1x1x4x4xf32> to vector<4x4xf32>
    %90 = vector.shape_cast %87 : vector<4x4xf32> to vector<1x1x4x4xf32>
    tpu.vector_store %arg7[%c0_45, %c0_46, %c0_47, %c0_48], %90 {strides = array<i32>} : memref<1x4x4x4xf32, #tpu.memory_space<vmem>>, vector<1x1x4x4xf32>,
    %91 = vector.extract_strided_slice %75 {offsets = [1, 0, 0], sizes = [1, 4, 4], strides = [1, 1, 1]} : vector<4x4x4xf32> to vector<1x4x4xf32>
    %92 = vector.shape_cast %91 : vector<1x4x4xf32> to vector<4x4xf32>
    %cst_49 = arith.constant dense<0.000000e+00> : vector<4x4xf32>
    %93 = tpu.matmul %92, %76, %cst_49 {dimension_numbers = #tpu.dot_dimension_numbers<[1], [0], [0], [1], [0, 0, 1, 1], [], []>} : vector<4x4xf32>, vector<4x4xf32>, vector<4x4xf32> -> vector<4x4xf32>
    %94 = vector.broadcast %77 : vector<1x4xf32> to vector<4x4xf32>
    %95 = arith.mulf %93, %94 : vector<4x4xf32>
    %96 = vector.broadcast %78 : vector<1x4xf32> to vector<4x4xf32>
    %97 = arith.addf %95, %96 : vector<4x4xf32>
    %cst_50 = arith.constant 0.000000e+00 : f32
    %98 = vector.broadcast %cst_50 : f32 to vector<4x4xf32>
    %99 = arith.maximumf %97, %98 : vector<4x4xf32>
    %c0_51 = arith.constant 0 : index
    %c1_52 = arith.constant 1 : index
    %c0_53 = arith.constant 0 : index
    %c0_54 = arith.constant 0 : index
    %100 = vector.load %arg7[%c0_51, %c1_52, %c0_53, %c0_54] : memref<1x4x4x4xf32, #tpu.memory_space<vmem>>, vector<1x1x4x4xf32>
    %101 = vector.shape_cast %100 : vector<1x1x4x4xf32> to vector<4x4xf32>
    %102 = vector.shape_cast %99 : vector<4x4xf32> to vector<1x1x4x4xf32>
    tpu.vector_store %arg7[%c0_51, %c1_52, %c0_53, %c0_54], %102 {strides = array<i32>} : memref<1x4x4x4xf32, #tpu.memory_space<vmem>>, vector<1x1x4x4xf32>,
    %103 = vector.extract_strided_slice %75 {offsets = [2, 0, 0], sizes = [1, 4, 4], strides = [1, 1, 1]} : vector<4x4x4xf32> to vector<1x4x4xf32>
    %104 = vector.shape_cast %103 : vector<1x4x4xf32> to vector<4x4xf32>
    %cst_55 = arith.constant dense<0.000000e+00> : vector<4x4xf32>
    %105 = tpu.matmul %104, %76, %cst_55 {dimension_numbers = #tpu.dot_dimension_numbers<[1], [0], [0], [1], [0, 0, 1, 1], [], []>} : vector<4x4xf32>, vector<4x4xf32>, vector<4x4xf32> -> vector<4x4xf32>
    %106 = vector.broadcast %77 : vector<1x4xf32> to vector<4x4xf32>
    %107 = arith.mulf %105, %106 : vector<4x4xf32>
    %108 = vector.broadcast %78 : vector<1x4xf32> to vector<4x4xf32>
    %109 = arith.addf %107, %108 : vector<4x4xf32>
    %cst_56 = arith.constant 0.000000e+00 : f32
    %110 = vector.broadcast %cst_56 : f32 to vector<4x4xf32>
    %111 = arith.maximumf %109, %110 : vector<4x4xf32>
    %c0_57 = arith.constant 0 : index
    %c2_58 = arith.constant 2 : index
    %c0_59 = arith.constant 0 : index
    %c0_60 = arith.constant 0 : index
    %112 = vector.load %arg7[%c0_57, %c2_58, %c0_59, %c0_60] : memref<1x4x4x4xf32, #tpu.memory_space<vmem>>, vector<1x1x4x4xf32>
    %113 = vector.shape_cast %112 : vector<1x1x4x4xf32> to vector<4x4xf32>
    %114 = vector.shape_cast %111 : vector<4x4xf32> to vector<1x1x4x4xf32>
    tpu.vector_store %arg7[%c0_57, %c2_58, %c0_59, %c0_60], %114 {strides = array<i32>} : memref<1x4x4x4xf32, #tpu.memory_space<vmem>>, vector<1x1x4x4xf32>,
    %115 = vector.extract_strided_slice %75 {offsets = [3, 0, 0], sizes = [1, 4, 4], strides = [1, 1, 1]} : vector<4x4x4xf32> to vector<1x4x4xf32>
    %116 = vector.shape_cast %115 : vector<1x4x4xf32> to vector<4x4xf32>
    %cst_61 = arith.constant dense<0.000000e+00> : vector<4x4xf32>
    %117 = tpu.matmul %116, %76, %cst_61 {dimension_numbers = #tpu.dot_dimension_numbers<[1], [0], [0], [1], [0, 0, 1, 1], [], []>} : vector<4x4xf32>, vector<4x4xf32>, vector<4x4xf32> -> vector<4x4xf32>
    %118 = vector.broadcast %77 : vector<1x4xf32> to vector<4x4xf32>
    %119 = arith.mulf %117, %118 : vector<4x4xf32>
    %120 = vector.broadcast %78 : vector<1x4xf32> to vector<4x4xf32>
    %121 = arith.addf %119, %120 : vector<4x4xf32>
    %cst_62 = arith.constant 0.000000e+00 : f32
    %122 = vector.broadcast %cst_62 : f32 to vector<4x4xf32>
    %123 = arith.maximumf %121, %122 : vector<4x4xf32>
    %c0_63 = arith.constant 0 : index
    %c3 = arith.constant 3 : index
    %c0_64 = arith.constant 0 : index
    %c0_65 = arith.constant 0 : index
    %124 = vector.load %arg7[%c0_63, %c3, %c0_64, %c0_65] : memref<1x4x4x4xf32, #tpu.memory_space<vmem>>, vector<1x1x4x4xf32>
    %125 = vector.shape_cast %124 : vector<1x1x4x4xf32> to vector<4x4xf32>
    %126 = vector.shape_cast %123 : vector<4x4xf32> to vector<1x1x4x4xf32>
    tpu.vector_store %arg7[%c0_63, %c3, %c0_64, %c0_65], %126 {strides = array<i32>} : memref<1x4x4x4xf32, #tpu.memory_space<vmem>>, vector<1x1x4x4xf32>,
    return
  }
  func.func @transform_0(%arg0: i32) -> i32 {
    %c0_i32 = arith.constant 0 : i32
    %c0_i32_0 = arith.constant 0 : i32
    return %c0_i32 : i32
  }
  func.func @transform_1(%arg0: i32) -> (i32, i32, i32, i32) {
    %c0_i32 = arith.constant 0 : i32
    %c0_i32_0 = arith.constant 0 : i32
    %c0_i32_1 = arith.constant 0 : i32
    %c0_i32_2 = arith.constant 0 : i32
    return %arg0, %c0_i32, %c0_i32_0, %c0_i32_1 : i32, i32, i32, i32
  }
  func.func @transform_2(%arg0: i32) -> (i32, i32, i32) {
    %c0_i32 = arith.constant 0 : i32
    %c0_i32_0 = arith.constant 0 : i32
    %c0_i32_1 = arith.constant 0 : i32
    %c0_i32_2 = arith.constant 0 : i32
    return %c0_i32, %c0_i32_0, %c0_i32_1 : i32, i32, i32
  }
  func.func @transform_3(%arg0: i32) -> (i32, i32) {
    %c0_i32 = arith.constant 0 : i32
    %c0_i32_0 = arith.constant 0 : i32
    %c0_i32_1 = arith.constant 0 : i32
    return %c0_i32, %c0_i32_0 : i32, i32
  }
  func.func @transform_4(%arg0: i32) -> (i32, i32) {
    %c0_i32 = arith.constant 0 : i32
    %c0_i32_0 = arith.constant 0 : i32
    %c0_i32_1 = arith.constant 0 : i32
    return %c0_i32, %c0_i32_0 : i32, i32
  }
  func.func @transform_5(%arg0: i32) -> (i32, i32) {
    %c0_i32 = arith.constant 0 : i32
    %c0_i32_0 = arith.constant 0 : i32
    %c0_i32_1 = arith.constant 0 : i32
    return %c0_i32, %c0_i32_0 : i32, i32
  }
  func.func @transform_6(%arg0: i32) -> (i32, i32, i32, i32) {
    %c0_i32 = arith.constant 0 : i32
    %c0_i32_0 = arith.constant 0 : i32
    %c0_i32_1 = arith.constant 0 : i32
    %c0_i32_2 = arith.constant 0 : i32
    return %arg0, %c0_i32, %c0_i32_0, %c0_i32_1 : i32, i32, i32, i32
  }
}

module attributes {stable_mosaic.version = 11 : i64} {
  func.func @kernel(%arg0: i32, %arg1: memref<4xf32, #tpu.memory_space<smem>>, %arg2: memref<1x4x4x4xf32, #tpu.memory_space<vmem>>, %arg3: memref<1x4x4x4xf32, #tpu.memory_space<vmem>>, %arg4: memref<1x4x4x4xf32, #tpu.memory_space<vmem>>, %arg5: memref<3x3x4xf32, #tpu.memory_space<vmem>>, %arg6: memref<4x4xf32, #tpu.memory_space<vmem>>, %arg7: memref<1x4xf32, #tpu.memory_space<vmem>>, %arg8: memref<1x4xf32, #tpu.memory_space<vmem>>, %arg9: memref<1x4x4x4xf32, #tpu.memory_space<vmem>>, %arg10: memref<6x13x4xf32, #tpu.memory_space<vmem>>) attributes {dimension_semantics = [#tpu.dimension_semantics<parallel>], iteration_bounds = array<i64: 2>, scalar_prefetch = 0 : i64, scratch_operands = 1 : i64, tpu.core_type = #tpu.core_type<tc>, window_params = [{transform_indices = @transform_0, window_bounds = array<i64: 4>}, {transform_indices = @transform_1, window_bounds = array<i64: 1, 4, 4, 4>}, {transform_indices = @transform_2, window_bounds = array<i64: 1, 4, 4, 4>}, {transform_indices = @transform_3, window_bounds = array<i64: 1, 4, 4, 4>}, {pipeline_mode = #tpu.pipeline_mode<synchronous>, transform_indices = @transform_4, window_bounds = array<i64: 3, 3, 4>}, {pipeline_mode = #tpu.pipeline_mode<synchronous>, transform_indices = @transform_5, window_bounds = array<i64: 4, 4>}, {pipeline_mode = #tpu.pipeline_mode<synchronous>, transform_indices = @transform_6, window_bounds = array<i64: 1, 4>}, {pipeline_mode = #tpu.pipeline_mode<synchronous>, transform_indices = @transform_7, window_bounds = array<i64: 1, 4>}, {transform_indices = @transform_8, window_bounds = array<i64: 1, 4, 4, 4>}]} {
    %c0 = arith.constant 0 : index
    %c0_0 = arith.constant 0 : index
    %c0_1 = arith.constant 0 : index
    %c0_2 = arith.constant 0 : index
    %0 = vector.load %arg2[%c0, %c0_0, %c0_1, %c0_2] : memref<1x4x4x4xf32, #tpu.memory_space<vmem>>, vector<1x4x4x4xf32>
    %1 = vector.shape_cast %0 : vector<1x4x4x4xf32> to vector<4x4x4xf32>
    %c0_3 = arith.constant 0 : index
    %2 = memref.load %arg1[%c0_3] : memref<4xf32, #tpu.memory_space<smem>>
    %3 = vector.broadcast %2 : f32 to vector<4x4x4xf32>
    %4 = arith.mulf %1, %3 : vector<4x4x4xf32>
    %c0_4 = arith.constant 0 : index
    %c0_5 = arith.constant 0 : index
    %c0_6 = arith.constant 0 : index
    %c0_7 = arith.constant 0 : index
    %5 = vector.load %arg3[%c0_4, %c0_5, %c0_6, %c0_7] : memref<1x4x4x4xf32, #tpu.memory_space<vmem>>, vector<1x4x4x4xf32>
    %6 = vector.shape_cast %5 : vector<1x4x4x4xf32> to vector<4x4x4xf32>
    %c1 = arith.constant 1 : index
    %7 = memref.load %arg1[%c1] : memref<4xf32, #tpu.memory_space<smem>>
    %8 = vector.broadcast %7 : f32 to vector<4x4x4xf32>
    %9 = arith.mulf %6, %8 : vector<4x4x4xf32>
    %10 = arith.addf %4, %9 : vector<4x4x4xf32>
    %c0_8 = arith.constant 0 : index
    %c0_9 = arith.constant 0 : index
    %c0_10 = arith.constant 0 : index
    %c0_11 = arith.constant 0 : index
    %11 = vector.load %arg4[%c0_8, %c0_9, %c0_10, %c0_11] : memref<1x4x4x4xf32, #tpu.memory_space<vmem>>, vector<1x4x4x4xf32>
    %12 = vector.shape_cast %11 : vector<1x4x4x4xf32> to vector<4x4x4xf32>
    %c2 = arith.constant 2 : index
    %13 = memref.load %arg1[%c2] : memref<4xf32, #tpu.memory_space<smem>>
    %14 = vector.broadcast %13 : f32 to vector<4x4x4xf32>
    %15 = arith.mulf %12, %14 : vector<4x4x4xf32>
    %16 = arith.addf %10, %15 : vector<4x4x4xf32>
    %c3 = arith.constant 3 : index
    %17 = memref.load %arg1[%c3] : memref<4xf32, #tpu.memory_space<smem>>
    %18 = vector.broadcast %17 : f32 to vector<4x4x4xf32>
    %19 = arith.mulf %16, %18 : vector<4x4x4xf32>
    %cst = arith.constant 0.000000e+00 : f32
    %20 = vector.broadcast %cst : f32 to vector<6x13x4xf32>
    %c0_12 = arith.constant 0 : index
    %c0_13 = arith.constant 0 : index
    %c0_14 = arith.constant 0 : index
    %21 = vector.load %arg10[%c0_12, %c0_13, %c0_14] : memref<6x13x4xf32, #tpu.memory_space<vmem>>, vector<6x13x4xf32>
    tpu.vector_store %arg10[%c0_12, %c0_13, %c0_14], %20 {strides = array<i32>} : memref<6x13x4xf32, #tpu.memory_space<vmem>>, vector<6x13x4xf32>,
    %c1_15 = arith.constant 1 : index
    %c8 = arith.constant 8 : index
    %c0_16 = arith.constant 0 : index
    %22 = vector.load %arg10[%c1_15, %c8, %c0_16] : memref<6x13x4xf32, #tpu.memory_space<vmem>>, vector<4x4x4xf32>
    tpu.vector_store %arg10[%c1_15, %c8, %c0_16], %19 {strides = array<i32>} : memref<6x13x4xf32, #tpu.memory_space<vmem>>, vector<4x4x4xf32>,
    %c0_17 = arith.constant 0 : index
    %c0_18 = arith.constant 0 : index
    %c0_19 = arith.constant 0 : index
    %23 = vector.load %arg5[%c0_17, %c0_18, %c0_19] : memref<3x3x4xf32, #tpu.memory_space<vmem>>, vector<3x3x4xf32>
    %cst_20 = arith.constant 0.000000e+00 : f32
    %24 = vector.broadcast %cst_20 : f32 to vector<4x4x4xf32>
    %c0_21 = arith.constant 0 : index
    %c7 = arith.constant 7 : index
    %c0_22 = arith.constant 0 : index
    %25 = vector.load %arg10[%c0_21, %c7, %c0_22] : memref<6x13x4xf32, #tpu.memory_space<vmem>>, vector<4x4x4xf32>
    %26 = vector.extract_strided_slice %23 {offsets = [0, 0, 0], sizes = [1, 1, 4], strides = [1, 1, 1]} : vector<3x3x4xf32> to vector<1x1x4xf32>
    %27 = vector.shape_cast %26 : vector<1x1x4xf32> to vector<4xf32>
    %28 = vector.shape_cast %27 : vector<4xf32> to vector<1x1x4xf32>
    %29 = vector.broadcast %28 : vector<1x1x4xf32> to vector<4x4x4xf32>
    %30 = arith.mulf %25, %29 : vector<4x4x4xf32>
    %31 = arith.addf %24, %30 : vector<4x4x4xf32>
    %c0_23 = arith.constant 0 : index
    %c8_24 = arith.constant 8 : index
    %c0_25 = arith.constant 0 : index
    %32 = vector.load %arg10[%c0_23, %c8_24, %c0_25] : memref<6x13x4xf32, #tpu.memory_space<vmem>>, vector<4x4x4xf32>
    %33 = vector.extract_strided_slice %23 {offsets = [0, 1, 0], sizes = [1, 1, 4], strides = [1, 1, 1]} : vector<3x3x4xf32> to vector<1x1x4xf32>
    %34 = vector.shape_cast %33 : vector<1x1x4xf32> to vector<4xf32>
    %35 = vector.shape_cast %34 : vector<4xf32> to vector<1x1x4xf32>
    %36 = vector.broadcast %35 : vector<1x1x4xf32> to vector<4x4x4xf32>
    %37 = arith.mulf %32, %36 : vector<4x4x4xf32>
    %38 = arith.addf %31, %37 : vector<4x4x4xf32>
    %c0_26 = arith.constant 0 : index
    %c9 = arith.constant 9 : index
    %c0_27 = arith.constant 0 : index
    %39 = vector.load %arg10[%c0_26, %c9, %c0_27] : memref<6x13x4xf32, #tpu.memory_space<vmem>>, vector<4x4x4xf32>
    %40 = vector.extract_strided_slice %23 {offsets = [0, 2, 0], sizes = [1, 1, 4], strides = [1, 1, 1]} : vector<3x3x4xf32> to vector<1x1x4xf32>
    %41 = vector.shape_cast %40 : vector<1x1x4xf32> to vector<4xf32>
    %42 = vector.shape_cast %41 : vector<4xf32> to vector<1x1x4xf32>
    %43 = vector.broadcast %42 : vector<1x1x4xf32> to vector<4x4x4xf32>
    %44 = arith.mulf %39, %43 : vector<4x4x4xf32>
    %45 = arith.addf %38, %44 : vector<4x4x4xf32>
    %c1_28 = arith.constant 1 : index
    %c7_29 = arith.constant 7 : index
    %c0_30 = arith.constant 0 : index
    %46 = vector.load %arg10[%c1_28, %c7_29, %c0_30] : memref<6x13x4xf32, #tpu.memory_space<vmem>>, vector<4x4x4xf32>
    %47 = vector.extract_strided_slice %23 {offsets = [1, 0, 0], sizes = [1, 1, 4], strides = [1, 1, 1]} : vector<3x3x4xf32> to vector<1x1x4xf32>
    %48 = vector.shape_cast %47 : vector<1x1x4xf32> to vector<4xf32>
    %49 = vector.shape_cast %48 : vector<4xf32> to vector<1x1x4xf32>
    %50 = vector.broadcast %49 : vector<1x1x4xf32> to vector<4x4x4xf32>
    %51 = arith.mulf %46, %50 : vector<4x4x4xf32>
    %52 = arith.addf %45, %51 : vector<4x4x4xf32>
    %c1_31 = arith.constant 1 : index
    %c8_32 = arith.constant 8 : index
    %c0_33 = arith.constant 0 : index
    %53 = vector.load %arg10[%c1_31, %c8_32, %c0_33] : memref<6x13x4xf32, #tpu.memory_space<vmem>>, vector<4x4x4xf32>
    %54 = vector.extract_strided_slice %23 {offsets = [1, 1, 0], sizes = [1, 1, 4], strides = [1, 1, 1]} : vector<3x3x4xf32> to vector<1x1x4xf32>
    %55 = vector.shape_cast %54 : vector<1x1x4xf32> to vector<4xf32>
    %56 = vector.shape_cast %55 : vector<4xf32> to vector<1x1x4xf32>
    %57 = vector.broadcast %56 : vector<1x1x4xf32> to vector<4x4x4xf32>
    %58 = arith.mulf %53, %57 : vector<4x4x4xf32>
    %59 = arith.addf %52, %58 : vector<4x4x4xf32>
    %c1_34 = arith.constant 1 : index
    %c9_35 = arith.constant 9 : index
    %c0_36 = arith.constant 0 : index
    %60 = vector.load %arg10[%c1_34, %c9_35, %c0_36] : memref<6x13x4xf32, #tpu.memory_space<vmem>>, vector<4x4x4xf32>
    %61 = vector.extract_strided_slice %23 {offsets = [1, 2, 0], sizes = [1, 1, 4], strides = [1, 1, 1]} : vector<3x3x4xf32> to vector<1x1x4xf32>
    %62 = vector.shape_cast %61 : vector<1x1x4xf32> to vector<4xf32>
    %63 = vector.shape_cast %62 : vector<4xf32> to vector<1x1x4xf32>
    %64 = vector.broadcast %63 : vector<1x1x4xf32> to vector<4x4x4xf32>
    %65 = arith.mulf %60, %64 : vector<4x4x4xf32>
    %66 = arith.addf %59, %65 : vector<4x4x4xf32>
    %c2_37 = arith.constant 2 : index
    %c7_38 = arith.constant 7 : index
    %c0_39 = arith.constant 0 : index
    %67 = vector.load %arg10[%c2_37, %c7_38, %c0_39] : memref<6x13x4xf32, #tpu.memory_space<vmem>>, vector<4x4x4xf32>
    %68 = vector.extract_strided_slice %23 {offsets = [2, 0, 0], sizes = [1, 1, 4], strides = [1, 1, 1]} : vector<3x3x4xf32> to vector<1x1x4xf32>
    %69 = vector.shape_cast %68 : vector<1x1x4xf32> to vector<4xf32>
    %70 = vector.shape_cast %69 : vector<4xf32> to vector<1x1x4xf32>
    %71 = vector.broadcast %70 : vector<1x1x4xf32> to vector<4x4x4xf32>
    %72 = arith.mulf %67, %71 : vector<4x4x4xf32>
    %73 = arith.addf %66, %72 : vector<4x4x4xf32>
    %c2_40 = arith.constant 2 : index
    %c8_41 = arith.constant 8 : index
    %c0_42 = arith.constant 0 : index
    %74 = vector.load %arg10[%c2_40, %c8_41, %c0_42] : memref<6x13x4xf32, #tpu.memory_space<vmem>>, vector<4x4x4xf32>
    %75 = vector.extract_strided_slice %23 {offsets = [2, 1, 0], sizes = [1, 1, 4], strides = [1, 1, 1]} : vector<3x3x4xf32> to vector<1x1x4xf32>
    %76 = vector.shape_cast %75 : vector<1x1x4xf32> to vector<4xf32>
    %77 = vector.shape_cast %76 : vector<4xf32> to vector<1x1x4xf32>
    %78 = vector.broadcast %77 : vector<1x1x4xf32> to vector<4x4x4xf32>
    %79 = arith.mulf %74, %78 : vector<4x4x4xf32>
    %80 = arith.addf %73, %79 : vector<4x4x4xf32>
    %c2_43 = arith.constant 2 : index
    %c9_44 = arith.constant 9 : index
    %c0_45 = arith.constant 0 : index
    %81 = vector.load %arg10[%c2_43, %c9_44, %c0_45] : memref<6x13x4xf32, #tpu.memory_space<vmem>>, vector<4x4x4xf32>
    %82 = vector.extract_strided_slice %23 {offsets = [2, 2, 0], sizes = [1, 1, 4], strides = [1, 1, 1]} : vector<3x3x4xf32> to vector<1x1x4xf32>
    %83 = vector.shape_cast %82 : vector<1x1x4xf32> to vector<4xf32>
    %84 = vector.shape_cast %83 : vector<4xf32> to vector<1x1x4xf32>
    %85 = vector.broadcast %84 : vector<1x1x4xf32> to vector<4x4x4xf32>
    %86 = arith.mulf %81, %85 : vector<4x4x4xf32>
    %87 = arith.addf %80, %86 : vector<4x4x4xf32>
    %c0_46 = arith.constant 0 : index
    %c0_47 = arith.constant 0 : index
    %88 = vector.load %arg6[%c0_46, %c0_47] : memref<4x4xf32, #tpu.memory_space<vmem>>, vector<4x4xf32>
    %c0_48 = arith.constant 0 : index
    %c0_49 = arith.constant 0 : index
    %89 = vector.load %arg7[%c0_48, %c0_49] : memref<1x4xf32, #tpu.memory_space<vmem>>, vector<1x4xf32>
    %c0_50 = arith.constant 0 : index
    %c0_51 = arith.constant 0 : index
    %90 = vector.load %arg8[%c0_50, %c0_51] : memref<1x4xf32, #tpu.memory_space<vmem>>, vector<1x4xf32>
    %91 = vector.extract_strided_slice %87 {offsets = [0, 0, 0], sizes = [1, 4, 4], strides = [1, 1, 1]} : vector<4x4x4xf32> to vector<1x4x4xf32>
    %92 = vector.shape_cast %91 : vector<1x4x4xf32> to vector<4x4xf32>
    %cst_52 = arith.constant dense<0.000000e+00> : vector<4x4xf32>
    %93 = tpu.matmul %92, %88, %cst_52 {dimension_numbers = #tpu.dot_dimension_numbers<[1], [0], [0], [1], [0, 0, 1, 1], [], []>} : vector<4x4xf32>, vector<4x4xf32>, vector<4x4xf32> -> vector<4x4xf32>
    %94 = vector.broadcast %89 : vector<1x4xf32> to vector<4x4xf32>
    %95 = arith.mulf %93, %94 : vector<4x4xf32>
    %96 = vector.broadcast %90 : vector<1x4xf32> to vector<4x4xf32>
    %97 = arith.addf %95, %96 : vector<4x4xf32>
    %cst_53 = arith.constant 0.000000e+00 : f32
    %98 = vector.broadcast %cst_53 : f32 to vector<4x4xf32>
    %99 = arith.maximumf %97, %98 : vector<4x4xf32>
    %c0_54 = arith.constant 0 : index
    %c0_55 = arith.constant 0 : index
    %c0_56 = arith.constant 0 : index
    %c0_57 = arith.constant 0 : index
    %100 = vector.load %arg9[%c0_54, %c0_55, %c0_56, %c0_57] : memref<1x4x4x4xf32, #tpu.memory_space<vmem>>, vector<1x1x4x4xf32>
    %101 = vector.shape_cast %100 : vector<1x1x4x4xf32> to vector<4x4xf32>
    %102 = vector.shape_cast %99 : vector<4x4xf32> to vector<1x1x4x4xf32>
    tpu.vector_store %arg9[%c0_54, %c0_55, %c0_56, %c0_57], %102 {strides = array<i32>} : memref<1x4x4x4xf32, #tpu.memory_space<vmem>>, vector<1x1x4x4xf32>,
    %103 = vector.extract_strided_slice %87 {offsets = [1, 0, 0], sizes = [1, 4, 4], strides = [1, 1, 1]} : vector<4x4x4xf32> to vector<1x4x4xf32>
    %104 = vector.shape_cast %103 : vector<1x4x4xf32> to vector<4x4xf32>
    %cst_58 = arith.constant dense<0.000000e+00> : vector<4x4xf32>
    %105 = tpu.matmul %104, %88, %cst_58 {dimension_numbers = #tpu.dot_dimension_numbers<[1], [0], [0], [1], [0, 0, 1, 1], [], []>} : vector<4x4xf32>, vector<4x4xf32>, vector<4x4xf32> -> vector<4x4xf32>
    %106 = vector.broadcast %89 : vector<1x4xf32> to vector<4x4xf32>
    %107 = arith.mulf %105, %106 : vector<4x4xf32>
    %108 = vector.broadcast %90 : vector<1x4xf32> to vector<4x4xf32>
    %109 = arith.addf %107, %108 : vector<4x4xf32>
    %cst_59 = arith.constant 0.000000e+00 : f32
    %110 = vector.broadcast %cst_59 : f32 to vector<4x4xf32>
    %111 = arith.maximumf %109, %110 : vector<4x4xf32>
    %c0_60 = arith.constant 0 : index
    %c1_61 = arith.constant 1 : index
    %c0_62 = arith.constant 0 : index
    %c0_63 = arith.constant 0 : index
    %112 = vector.load %arg9[%c0_60, %c1_61, %c0_62, %c0_63] : memref<1x4x4x4xf32, #tpu.memory_space<vmem>>, vector<1x1x4x4xf32>
    %113 = vector.shape_cast %112 : vector<1x1x4x4xf32> to vector<4x4xf32>
    %114 = vector.shape_cast %111 : vector<4x4xf32> to vector<1x1x4x4xf32>
    tpu.vector_store %arg9[%c0_60, %c1_61, %c0_62, %c0_63], %114 {strides = array<i32>} : memref<1x4x4x4xf32, #tpu.memory_space<vmem>>, vector<1x1x4x4xf32>,
    %115 = vector.extract_strided_slice %87 {offsets = [2, 0, 0], sizes = [1, 4, 4], strides = [1, 1, 1]} : vector<4x4x4xf32> to vector<1x4x4xf32>
    %116 = vector.shape_cast %115 : vector<1x4x4xf32> to vector<4x4xf32>
    %cst_64 = arith.constant dense<0.000000e+00> : vector<4x4xf32>
    %117 = tpu.matmul %116, %88, %cst_64 {dimension_numbers = #tpu.dot_dimension_numbers<[1], [0], [0], [1], [0, 0, 1, 1], [], []>} : vector<4x4xf32>, vector<4x4xf32>, vector<4x4xf32> -> vector<4x4xf32>
    %118 = vector.broadcast %89 : vector<1x4xf32> to vector<4x4xf32>
    %119 = arith.mulf %117, %118 : vector<4x4xf32>
    %120 = vector.broadcast %90 : vector<1x4xf32> to vector<4x4xf32>
    %121 = arith.addf %119, %120 : vector<4x4xf32>
    %cst_65 = arith.constant 0.000000e+00 : f32
    %122 = vector.broadcast %cst_65 : f32 to vector<4x4xf32>
    %123 = arith.maximumf %121, %122 : vector<4x4xf32>
    %c0_66 = arith.constant 0 : index
    %c2_67 = arith.constant 2 : index
    %c0_68 = arith.constant 0 : index
    %c0_69 = arith.constant 0 : index
    %124 = vector.load %arg9[%c0_66, %c2_67, %c0_68, %c0_69] : memref<1x4x4x4xf32, #tpu.memory_space<vmem>>, vector<1x1x4x4xf32>
    %125 = vector.shape_cast %124 : vector<1x1x4x4xf32> to vector<4x4xf32>
    %126 = vector.shape_cast %123 : vector<4x4xf32> to vector<1x1x4x4xf32>
    tpu.vector_store %arg9[%c0_66, %c2_67, %c0_68, %c0_69], %126 {strides = array<i32>} : memref<1x4x4x4xf32, #tpu.memory_space<vmem>>, vector<1x1x4x4xf32>,
    %127 = vector.extract_strided_slice %87 {offsets = [3, 0, 0], sizes = [1, 4, 4], strides = [1, 1, 1]} : vector<4x4x4xf32> to vector<1x4x4xf32>
    %128 = vector.shape_cast %127 : vector<1x4x4xf32> to vector<4x4xf32>
    %cst_70 = arith.constant dense<0.000000e+00> : vector<4x4xf32>
    %129 = tpu.matmul %128, %88, %cst_70 {dimension_numbers = #tpu.dot_dimension_numbers<[1], [0], [0], [1], [0, 0, 1, 1], [], []>} : vector<4x4xf32>, vector<4x4xf32>, vector<4x4xf32> -> vector<4x4xf32>
    %130 = vector.broadcast %89 : vector<1x4xf32> to vector<4x4xf32>
    %131 = arith.mulf %129, %130 : vector<4x4xf32>
    %132 = vector.broadcast %90 : vector<1x4xf32> to vector<4x4xf32>
    %133 = arith.addf %131, %132 : vector<4x4xf32>
    %cst_71 = arith.constant 0.000000e+00 : f32
    %134 = vector.broadcast %cst_71 : f32 to vector<4x4xf32>
    %135 = arith.maximumf %133, %134 : vector<4x4xf32>
    %c0_72 = arith.constant 0 : index
    %c3_73 = arith.constant 3 : index
    %c0_74 = arith.constant 0 : index
    %c0_75 = arith.constant 0 : index
    %136 = vector.load %arg9[%c0_72, %c3_73, %c0_74, %c0_75] : memref<1x4x4x4xf32, #tpu.memory_space<vmem>>, vector<1x1x4x4xf32>
    %137 = vector.shape_cast %136 : vector<1x1x4x4xf32> to vector<4x4xf32>
    %138 = vector.shape_cast %135 : vector<4x4xf32> to vector<1x1x4x4xf32>
    tpu.vector_store %arg9[%c0_72, %c3_73, %c0_74, %c0_75], %138 {strides = array<i32>} : memref<1x4x4x4xf32, #tpu.memory_space<vmem>>, vector<1x1x4x4xf32>,
    return
  }
  func.func @transform_0(%arg0: i32) -> i32 {
    %c0_i32 = arith.constant 0 : i32
    %c0_i32_0 = arith.constant 0 : i32
    return %c0_i32 : i32
  }
  func.func @transform_1(%arg0: i32) -> (i32, i32, i32, i32) {
    %c0_i32 = arith.constant 0 : i32
    %c0_i32_0 = arith.constant 0 : i32
    %c0_i32_1 = arith.constant 0 : i32
    %c0_i32_2 = arith.constant 0 : i32
    return %arg0, %c0_i32, %c0_i32_0, %c0_i32_1 : i32, i32, i32, i32
  }
  func.func @transform_2(%arg0: i32) -> (i32, i32, i32, i32) {
    %c0_i32 = arith.constant 0 : i32
    %c0_i32_0 = arith.constant 0 : i32
    %c0_i32_1 = arith.constant 0 : i32
    %c0_i32_2 = arith.constant 0 : i32
    return %arg0, %c0_i32, %c0_i32_0, %c0_i32_1 : i32, i32, i32, i32
  }
  func.func @transform_3(%arg0: i32) -> (i32, i32, i32, i32) {
    %c0_i32 = arith.constant 0 : i32
    %c0_i32_0 = arith.constant 0 : i32
    %c0_i32_1 = arith.constant 0 : i32
    %c0_i32_2 = arith.constant 0 : i32
    return %arg0, %c0_i32, %c0_i32_0, %c0_i32_1 : i32, i32, i32, i32
  }
  func.func @transform_4(%arg0: i32) -> (i32, i32, i32) {
    %c0_i32 = arith.constant 0 : i32
    %c0_i32_0 = arith.constant 0 : i32
    %c0_i32_1 = arith.constant 0 : i32
    %c0_i32_2 = arith.constant 0 : i32
    return %c0_i32, %c0_i32_0, %c0_i32_1 : i32, i32, i32
  }
  func.func @transform_5(%arg0: i32) -> (i32, i32) {
    %c0_i32 = arith.constant 0 : i32
    %c0_i32_0 = arith.constant 0 : i32
    %c0_i32_1 = arith.constant 0 : i32
    return %c0_i32, %c0_i32_0 : i32, i32
  }
  func.func @transform_6(%arg0: i32) -> (i32, i32) {
    %c0_i32 = arith.constant 0 : i32
    %c0_i32_0 = arith.constant 0 : i32
    %c0_i32_1 = arith.constant 0 : i32
    return %c0_i32, %c0_i32_0 : i32, i32
  }
  func.func @transform_7(%arg0: i32) -> (i32, i32) {
    %c0_i32 = arith.constant 0 : i32
    %c0_i32_0 = arith.constant 0 : i32
    %c0_i32_1 = arith.constant 0 : i32
    return %c0_i32, %c0_i32_0 : i32, i32
  }
  func.func @transform_8(%arg0: i32) -> (i32, i32, i32, i32) {
    %c0_i32 = arith.constant 0 : i32
    %c0_i32_0 = arith.constant 0 : i32
    %c0_i32_1 = arith.constant 0 : i32
    %c0_i32_2 = arith.constant 0 : i32
    return %arg0, %c0_i32, %c0_i32_0, %c0_i32_1 : i32, i32, i32, i32
  }
}

module attributes {stable_mosaic.version = 11 : i64} {
  func.func @kernel(%arg0: i32, %arg1: memref<2xf32, #tpu.memory_space<smem>>, %arg2: memref<1x4x4x4xf32, #tpu.memory_space<vmem>>, %arg3: memref<3x3x4xf32, #tpu.memory_space<vmem>>, %arg4: memref<4x4xf32, #tpu.memory_space<vmem>>, %arg5: memref<1x4xf32, #tpu.memory_space<vmem>>, %arg6: memref<1x4xf32, #tpu.memory_space<vmem>>, %arg7: memref<1x2x2x4xf32, #tpu.memory_space<vmem>>, %arg8: memref<6x13x4xf32, #tpu.memory_space<vmem>>) attributes {dimension_semantics = [#tpu.dimension_semantics<parallel>], iteration_bounds = array<i64: 2>, scalar_prefetch = 0 : i64, scratch_operands = 1 : i64, tpu.core_type = #tpu.core_type<tc>, window_params = [{transform_indices = @transform_0, window_bounds = array<i64: 2>}, {transform_indices = @transform_1, window_bounds = array<i64: 1, 4, 4, 4>}, {pipeline_mode = #tpu.pipeline_mode<synchronous>, transform_indices = @transform_2, window_bounds = array<i64: 3, 3, 4>}, {pipeline_mode = #tpu.pipeline_mode<synchronous>, transform_indices = @transform_3, window_bounds = array<i64: 4, 4>}, {pipeline_mode = #tpu.pipeline_mode<synchronous>, transform_indices = @transform_4, window_bounds = array<i64: 1, 4>}, {pipeline_mode = #tpu.pipeline_mode<synchronous>, transform_indices = @transform_5, window_bounds = array<i64: 1, 4>}, {transform_indices = @transform_6, window_bounds = array<i64: 1, 2, 2, 4>}]} {
    %c0 = arith.constant 0 : index
    %c0_0 = arith.constant 0 : index
    %c0_1 = arith.constant 0 : index
    %c0_2 = arith.constant 0 : index
    %0 = vector.load %arg2[%c0, %c0_0, %c0_1, %c0_2] : memref<1x4x4x4xf32, #tpu.memory_space<vmem>>, vector<1x4x4x4xf32>
    %1 = vector.shape_cast %0 : vector<1x4x4x4xf32> to vector<4x4x4xf32>
    %c0_3 = arith.constant 0 : index
    %2 = memref.load %arg1[%c0_3] : memref<2xf32, #tpu.memory_space<smem>>
    %3 = vector.broadcast %2 : f32 to vector<4x4x4xf32>
    %4 = arith.mulf %1, %3 : vector<4x4x4xf32>
    %c1 = arith.constant 1 : index
    %5 = memref.load %arg1[%c1] : memref<2xf32, #tpu.memory_space<smem>>
    %6 = vector.broadcast %5 : f32 to vector<4x4x4xf32>
    %7 = arith.mulf %4, %6 : vector<4x4x4xf32>
    %cst = arith.constant 0.000000e+00 : f32
    %8 = vector.broadcast %cst : f32 to vector<6x13x4xf32>
    %c0_4 = arith.constant 0 : index
    %c0_5 = arith.constant 0 : index
    %c0_6 = arith.constant 0 : index
    %9 = vector.load %arg8[%c0_4, %c0_5, %c0_6] : memref<6x13x4xf32, #tpu.memory_space<vmem>>, vector<6x13x4xf32>
    tpu.vector_store %arg8[%c0_4, %c0_5, %c0_6], %8 {strides = array<i32>} : memref<6x13x4xf32, #tpu.memory_space<vmem>>, vector<6x13x4xf32>,
    %c1_7 = arith.constant 1 : index
    %c8 = arith.constant 8 : index
    %c0_8 = arith.constant 0 : index
    %10 = vector.load %arg8[%c1_7, %c8, %c0_8] : memref<6x13x4xf32, #tpu.memory_space<vmem>>, vector<4x4x4xf32>
    tpu.vector_store %arg8[%c1_7, %c8, %c0_8], %7 {strides = array<i32>} : memref<6x13x4xf32, #tpu.memory_space<vmem>>, vector<4x4x4xf32>,
    %c0_9 = arith.constant 0 : index
    %c0_10 = arith.constant 0 : index
    %c0_11 = arith.constant 0 : index
    %11 = vector.load %arg3[%c0_9, %c0_10, %c0_11] : memref<3x3x4xf32, #tpu.memory_space<vmem>>, vector<3x3x4xf32>
    %cst_12 = arith.constant 0.000000e+00 : f32
    %12 = vector.broadcast %cst_12 : f32 to vector<2x2x4xf32>
    %c0_13 = arith.constant 0 : index
    %c7 = arith.constant 7 : index
    %c0_14 = arith.constant 0 : index
    %13 = tpu.strided_load %arg8[%c0_13, %c7, %c0_14] {strides = array<i32: 2, 2, 1>} : memref<6x13x4xf32, #tpu.memory_space<vmem>>, vector<2x2x4xf32>
    %14 = vector.extract_strided_slice %11 {offsets = [0, 0, 0], sizes = [1, 1, 4], strides = [1, 1, 1]} : vector<3x3x4xf32> to vector<1x1x4xf32>
    %15 = vector.shape_cast %14 : vector<1x1x4xf32> to vector<4xf32>
    %16 = vector.shape_cast %15 : vector<4xf32> to vector<1x1x4xf32>
    %17 = vector.broadcast %16 : vector<1x1x4xf32> to vector<2x2x4xf32>
    %18 = arith.mulf %13, %17 : vector<2x2x4xf32>
    %19 = arith.addf %12, %18 : vector<2x2x4xf32>
    %c0_15 = arith.constant 0 : index
    %c8_16 = arith.constant 8 : index
    %c0_17 = arith.constant 0 : index
    %20 = tpu.strided_load %arg8[%c0_15, %c8_16, %c0_17] {strides = array<i32: 2, 2, 1>} : memref<6x13x4xf32, #tpu.memory_space<vmem>>, vector<2x2x4xf32>
    %21 = vector.extract_strided_slice %11 {offsets = [0, 1, 0], sizes = [1, 1, 4], strides = [1, 1, 1]} : vector<3x3x4xf32> to vector<1x1x4xf32>
    %22 = vector.shape_cast %21 : vector<1x1x4xf32> to vector<4xf32>
    %23 = vector.shape_cast %22 : vector<4xf32> to vector<1x1x4xf32>
    %24 = vector.broadcast %23 : vector<1x1x4xf32> to vector<2x2x4xf32>
    %25 = arith.mulf %20, %24 : vector<2x2x4xf32>
    %26 = arith.addf %19, %25 : vector<2x2x4xf32>
    %c0_18 = arith.constant 0 : index
    %c9 = arith.constant 9 : index
    %c0_19 = arith.constant 0 : index
    %27 = tpu.strided_load %arg8[%c0_18, %c9, %c0_19] {strides = array<i32: 2, 2, 1>} : memref<6x13x4xf32, #tpu.memory_space<vmem>>, vector<2x2x4xf32>
    %28 = vector.extract_strided_slice %11 {offsets = [0, 2, 0], sizes = [1, 1, 4], strides = [1, 1, 1]} : vector<3x3x4xf32> to vector<1x1x4xf32>
    %29 = vector.shape_cast %28 : vector<1x1x4xf32> to vector<4xf32>
    %30 = vector.shape_cast %29 : vector<4xf32> to vector<1x1x4xf32>
    %31 = vector.broadcast %30 : vector<1x1x4xf32> to vector<2x2x4xf32>
    %32 = arith.mulf %27, %31 : vector<2x2x4xf32>
    %33 = arith.addf %26, %32 : vector<2x2x4xf32>
    %c1_20 = arith.constant 1 : index
    %c7_21 = arith.constant 7 : index
    %c0_22 = arith.constant 0 : index
    %34 = tpu.strided_load %arg8[%c1_20, %c7_21, %c0_22] {strides = array<i32: 2, 2, 1>} : memref<6x13x4xf32, #tpu.memory_space<vmem>>, vector<2x2x4xf32>
    %35 = vector.extract_strided_slice %11 {offsets = [1, 0, 0], sizes = [1, 1, 4], strides = [1, 1, 1]} : vector<3x3x4xf32> to vector<1x1x4xf32>
    %36 = vector.shape_cast %35 : vector<1x1x4xf32> to vector<4xf32>
    %37 = vector.shape_cast %36 : vector<4xf32> to vector<1x1x4xf32>
    %38 = vector.broadcast %37 : vector<1x1x4xf32> to vector<2x2x4xf32>
    %39 = arith.mulf %34, %38 : vector<2x2x4xf32>
    %40 = arith.addf %33, %39 : vector<2x2x4xf32>
    %c1_23 = arith.constant 1 : index
    %c8_24 = arith.constant 8 : index
    %c0_25 = arith.constant 0 : index
    %41 = tpu.strided_load %arg8[%c1_23, %c8_24, %c0_25] {strides = array<i32: 2, 2, 1>} : memref<6x13x4xf32, #tpu.memory_space<vmem>>, vector<2x2x4xf32>
    %42 = vector.extract_strided_slice %11 {offsets = [1, 1, 0], sizes = [1, 1, 4], strides = [1, 1, 1]} : vector<3x3x4xf32> to vector<1x1x4xf32>
    %43 = vector.shape_cast %42 : vector<1x1x4xf32> to vector<4xf32>
    %44 = vector.shape_cast %43 : vector<4xf32> to vector<1x1x4xf32>
    %45 = vector.broadcast %44 : vector<1x1x4xf32> to vector<2x2x4xf32>
    %46 = arith.mulf %41, %45 : vector<2x2x4xf32>
    %47 = arith.addf %40, %46 : vector<2x2x4xf32>
    %c1_26 = arith.constant 1 : index
    %c9_27 = arith.constant 9 : index
    %c0_28 = arith.constant 0 : index
    %48 = tpu.strided_load %arg8[%c1_26, %c9_27, %c0_28] {strides = array<i32: 2, 2, 1>} : memref<6x13x4xf32, #tpu.memory_space<vmem>>, vector<2x2x4xf32>
    %49 = vector.extract_strided_slice %11 {offsets = [1, 2, 0], sizes = [1, 1, 4], strides = [1, 1, 1]} : vector<3x3x4xf32> to vector<1x1x4xf32>
    %50 = vector.shape_cast %49 : vector<1x1x4xf32> to vector<4xf32>
    %51 = vector.shape_cast %50 : vector<4xf32> to vector<1x1x4xf32>
    %52 = vector.broadcast %51 : vector<1x1x4xf32> to vector<2x2x4xf32>
    %53 = arith.mulf %48, %52 : vector<2x2x4xf32>
    %54 = arith.addf %47, %53 : vector<2x2x4xf32>
    %c2 = arith.constant 2 : index
    %c7_29 = arith.constant 7 : index
    %c0_30 = arith.constant 0 : index
    %55 = tpu.strided_load %arg8[%c2, %c7_29, %c0_30] {strides = array<i32: 2, 2, 1>} : memref<6x13x4xf32, #tpu.memory_space<vmem>>, vector<2x2x4xf32>
    %56 = vector.extract_strided_slice %11 {offsets = [2, 0, 0], sizes = [1, 1, 4], strides = [1, 1, 1]} : vector<3x3x4xf32> to vector<1x1x4xf32>
    %57 = vector.shape_cast %56 : vector<1x1x4xf32> to vector<4xf32>
    %58 = vector.shape_cast %57 : vector<4xf32> to vector<1x1x4xf32>
    %59 = vector.broadcast %58 : vector<1x1x4xf32> to vector<2x2x4xf32>
    %60 = arith.mulf %55, %59 : vector<2x2x4xf32>
    %61 = arith.addf %54, %60 : vector<2x2x4xf32>
    %c2_31 = arith.constant 2 : index
    %c8_32 = arith.constant 8 : index
    %c0_33 = arith.constant 0 : index
    %62 = tpu.strided_load %arg8[%c2_31, %c8_32, %c0_33] {strides = array<i32: 2, 2, 1>} : memref<6x13x4xf32, #tpu.memory_space<vmem>>, vector<2x2x4xf32>
    %63 = vector.extract_strided_slice %11 {offsets = [2, 1, 0], sizes = [1, 1, 4], strides = [1, 1, 1]} : vector<3x3x4xf32> to vector<1x1x4xf32>
    %64 = vector.shape_cast %63 : vector<1x1x4xf32> to vector<4xf32>
    %65 = vector.shape_cast %64 : vector<4xf32> to vector<1x1x4xf32>
    %66 = vector.broadcast %65 : vector<1x1x4xf32> to vector<2x2x4xf32>
    %67 = arith.mulf %62, %66 : vector<2x2x4xf32>
    %68 = arith.addf %61, %67 : vector<2x2x4xf32>
    %c2_34 = arith.constant 2 : index
    %c9_35 = arith.constant 9 : index
    %c0_36 = arith.constant 0 : index
    %69 = tpu.strided_load %arg8[%c2_34, %c9_35, %c0_36] {strides = array<i32: 2, 2, 1>} : memref<6x13x4xf32, #tpu.memory_space<vmem>>, vector<2x2x4xf32>
    %70 = vector.extract_strided_slice %11 {offsets = [2, 2, 0], sizes = [1, 1, 4], strides = [1, 1, 1]} : vector<3x3x4xf32> to vector<1x1x4xf32>
    %71 = vector.shape_cast %70 : vector<1x1x4xf32> to vector<4xf32>
    %72 = vector.shape_cast %71 : vector<4xf32> to vector<1x1x4xf32>
    %73 = vector.broadcast %72 : vector<1x1x4xf32> to vector<2x2x4xf32>
    %74 = arith.mulf %69, %73 : vector<2x2x4xf32>
    %75 = arith.addf %68, %74 : vector<2x2x4xf32>
    %c0_37 = arith.constant 0 : index
    %c0_38 = arith.constant 0 : index
    %76 = vector.load %arg4[%c0_37, %c0_38] : memref<4x4xf32, #tpu.memory_space<vmem>>, vector<4x4xf32>
    %c0_39 = arith.constant 0 : index
    %c0_40 = arith.constant 0 : index
    %77 = vector.load %arg5[%c0_39, %c0_40] : memref<1x4xf32, #tpu.memory_space<vmem>>, vector<1x4xf32>
    %c0_41 = arith.constant 0 : index
    %c0_42 = arith.constant 0 : index
    %78 = vector.load %arg6[%c0_41, %c0_42] : memref<1x4xf32, #tpu.memory_space<vmem>>, vector<1x4xf32>
    %79 = vector.extract_strided_slice %75 {offsets = [0, 0, 0], sizes = [1, 2, 4], strides = [1, 1, 1]} : vector<2x2x4xf32> to vector<1x2x4xf32>
    %80 = vector.shape_cast %79 : vector<1x2x4xf32> to vector<2x4xf32>
    %cst_43 = arith.constant dense<0.000000e+00> : vector<2x4xf32>
    %81 = tpu.matmul %80, %76, %cst_43 {dimension_numbers = #tpu.dot_dimension_numbers<[1], [0], [0], [1], [0, 0, 1, 1], [], []>} : vector<2x4xf32>, vector<4x4xf32>, vector<2x4xf32> -> vector<2x4xf32>
    %82 = vector.broadcast %77 : vector<1x4xf32> to vector<2x4xf32>
    %83 = arith.mulf %81, %82 : vector<2x4xf32>
    %84 = vector.broadcast %78 : vector<1x4xf32> to vector<2x4xf32>
    %85 = arith.addf %83, %84 : vector<2x4xf32>
    %cst_44 = arith.constant 0.000000e+00 : f32
    %86 = vector.broadcast %cst_44 : f32 to vector<2x4xf32>
    %87 = arith.maximumf %85, %86 : vector<2x4xf32>
    %c0_45 = arith.constant 0 : index
    %c0_46 = arith.constant 0 : index
    %c0_47 = arith.constant 0 : index
    %c0_48 = arith.constant 0 : index
    %88 = vector.load %arg7[%c0_45, %c0_46, %c0_47, %c0_48] : memref<1x2x2x4xf32, #tpu.memory_space<vmem>>, vector<1x1x2x4xf32>
    %89 = vector.shape_cast %88 : vector<1x1x2x4xf32> to vector<2x4xf32>
    %90 = vector.shape_cast %87 : vector<2x4xf32> to vector<1x1x2x4xf32>
    tpu.vector_store %arg7[%c0_45, %c0_46, %c0_47, %c0_48], %90 {strides = array<i32>} : memref<1x2x2x4xf32, #tpu.memory_space<vmem>>, vector<1x1x2x4xf32>,
    %91 = vector.extract_strided_slice %75 {offsets = [1, 0, 0], sizes = [1, 2, 4], strides = [1, 1, 1]} : vector<2x2x4xf32> to vector<1x2x4xf32>
    %92 = vector.shape_cast %91 : vector<1x2x4xf32> to vector<2x4xf32>
    %cst_49 = arith.constant dense<0.000000e+00> : vector<2x4xf32>
    %93 = tpu.matmul %92, %76, %cst_49 {dimension_numbers = #tpu.dot_dimension_numbers<[1], [0], [0], [1], [0, 0, 1, 1], [], []>} : vector<2x4xf32>, vector<4x4xf32>, vector<2x4xf32> -> vector<2x4xf32>
    %94 = vector.broadcast %77 : vector<1x4xf32> to vector<2x4xf32>
    %95 = arith.mulf %93, %94 : vector<2x4xf32>
    %96 = vector.broadcast %78 : vector<1x4xf32> to vector<2x4xf32>
    %97 = arith.addf %95, %96 : vector<2x4xf32>
    %cst_50 = arith.constant 0.000000e+00 : f32
    %98 = vector.broadcast %cst_50 : f32 to vector<2x4xf32>
    %99 = arith.maximumf %97, %98 : vector<2x4xf32>
    %c0_51 = arith.constant 0 : index
    %c1_52 = arith.constant 1 : index
    %c0_53 = arith.constant 0 : index
    %c0_54 = arith.constant 0 : index
    %100 = vector.load %arg7[%c0_51, %c1_52, %c0_53, %c0_54] : memref<1x2x2x4xf32, #tpu.memory_space<vmem>>, vector<1x1x2x4xf32>
    %101 = vector.shape_cast %100 : vector<1x1x2x4xf32> to vector<2x4xf32>
    %102 = vector.shape_cast %99 : vector<2x4xf32> to vector<1x1x2x4xf32>
    tpu.vector_store %arg7[%c0_51, %c1_52, %c0_53, %c0_54], %102 {strides = array<i32>} : memref<1x2x2x4xf32, #tpu.memory_space<vmem>>, vector<1x1x2x4xf32>,
    return
  }
  func.func @transform_0(%arg0: i32) -> i32 {
    %c0_i32 = arith.constant 0 : i32
    %c0_i32_0 = arith.constant 0 : i32
    return %c0_i32 : i32
  }
  func.func @transform_1(%arg0: i32) -> (i32, i32, i32, i32) {
    %c0_i32 = arith.constant 0 : i32
    %c0_i32_0 = arith.constant 0 : i32
    %c0_i32_1 = arith.constant 0 : i32
    %c0_i32_2 = arith.constant 0 : i32
    return %arg0, %c0_i32, %c0_i32_0, %c0_i32_1 : i32, i32, i32, i32
  }
  func.func @transform_2(%arg0: i32) -> (i32, i32, i32) {
    %c0_i32 = arith.constant 0 : i32
    %c0_i32_0 = arith.constant 0 : i32
    %c0_i32_1 = arith.constant 0 : i32
    %c0_i32_2 = arith.constant 0 : i32
    return %c0_i32, %c0_i32_0, %c0_i32_1 : i32, i32, i32
  }
  func.func @transform_3(%arg0: i32) -> (i32, i32) {
    %c0_i32 = arith.constant 0 : i32
    %c0_i32_0 = arith.constant 0 : i32
    %c0_i32_1 = arith.constant 0 : i32
    return %c0_i32, %c0_i32_0 : i32, i32
  }
  func.func @transform_4(%arg0: i32) -> (i32, i32) {
    %c0_i32 = arith.constant 0 : i32
    %c0_i32_0 = arith.constant 0 : i32
    %c0_i32_1 = arith.constant 0 : i32
    return %c0_i32, %c0_i32_0 : i32, i32
  }
  func.func @transform_5(%arg0: i32) -> (i32, i32) {
    %c0_i32 = arith.constant 0 : i32
    %c0_i32_0 = arith.constant 0 : i32
    %c0_i32_1 = arith.constant 0 : i32
    return %c0_i32, %c0_i32_0 : i32, i32
  }
  func.func @transform_6(%arg0: i32) -> (i32, i32, i32, i32) {
    %c0_i32 = arith.constant 0 : i32
    %c0_i32_0 = arith.constant 0 : i32
    %c0_i32_1 = arith.constant 0 : i32
    %c0_i32_2 = arith.constant 0 : i32
    return %arg0, %c0_i32, %c0_i32_0, %c0_i32_1 : i32, i32, i32, i32
  }
}

module attributes {stable_mosaic.version = 11 : i64} {
  func.func @kernel(%arg0: i32, %arg1: memref<3xf32, #tpu.memory_space<smem>>, %arg2: memref<1x2x2x4xf32, #tpu.memory_space<vmem>>, %arg3: memref<1x2x2x4xf32, #tpu.memory_space<vmem>>, %arg4: memref<3x3x4xf32, #tpu.memory_space<vmem>>, %arg5: memref<4x4xf32, #tpu.memory_space<vmem>>, %arg6: memref<1x4xf32, #tpu.memory_space<vmem>>, %arg7: memref<1x4xf32, #tpu.memory_space<vmem>>, %arg8: memref<1x2x2x4xf32, #tpu.memory_space<vmem>>, %arg9: memref<4x11x4xf32, #tpu.memory_space<vmem>>) attributes {dimension_semantics = [#tpu.dimension_semantics<parallel>], iteration_bounds = array<i64: 2>, scalar_prefetch = 0 : i64, scratch_operands = 1 : i64, tpu.core_type = #tpu.core_type<tc>, window_params = [{transform_indices = @transform_0, window_bounds = array<i64: 3>}, {transform_indices = @transform_1, window_bounds = array<i64: 1, 2, 2, 4>}, {transform_indices = @transform_2, window_bounds = array<i64: 1, 2, 2, 4>}, {pipeline_mode = #tpu.pipeline_mode<synchronous>, transform_indices = @transform_3, window_bounds = array<i64: 3, 3, 4>}, {pipeline_mode = #tpu.pipeline_mode<synchronous>, transform_indices = @transform_4, window_bounds = array<i64: 4, 4>}, {pipeline_mode = #tpu.pipeline_mode<synchronous>, transform_indices = @transform_5, window_bounds = array<i64: 1, 4>}, {pipeline_mode = #tpu.pipeline_mode<synchronous>, transform_indices = @transform_6, window_bounds = array<i64: 1, 4>}, {transform_indices = @transform_7, window_bounds = array<i64: 1, 2, 2, 4>}]} {
    %c0 = arith.constant 0 : index
    %c0_0 = arith.constant 0 : index
    %c0_1 = arith.constant 0 : index
    %c0_2 = arith.constant 0 : index
    %0 = vector.load %arg2[%c0, %c0_0, %c0_1, %c0_2] : memref<1x2x2x4xf32, #tpu.memory_space<vmem>>, vector<1x2x2x4xf32>
    %1 = vector.shape_cast %0 : vector<1x2x2x4xf32> to vector<2x2x4xf32>
    %c0_3 = arith.constant 0 : index
    %2 = memref.load %arg1[%c0_3] : memref<3xf32, #tpu.memory_space<smem>>
    %3 = vector.broadcast %2 : f32 to vector<2x2x4xf32>
    %4 = arith.mulf %1, %3 : vector<2x2x4xf32>
    %c0_4 = arith.constant 0 : index
    %c0_5 = arith.constant 0 : index
    %c0_6 = arith.constant 0 : index
    %c0_7 = arith.constant 0 : index
    %5 = vector.load %arg3[%c0_4, %c0_5, %c0_6, %c0_7] : memref<1x2x2x4xf32, #tpu.memory_space<vmem>>, vector<1x2x2x4xf32>
    %6 = vector.shape_cast %5 : vector<1x2x2x4xf32> to vector<2x2x4xf32>
    %c1 = arith.constant 1 : index
    %7 = memref.load %arg1[%c1] : memref<3xf32, #tpu.memory_space<smem>>
    %8 = vector.broadcast %7 : f32 to vector<2x2x4xf32>
    %9 = arith.mulf %6, %8 : vector<2x2x4xf32>
    %10 = arith.addf %4, %9 : vector<2x2x4xf32>
    %c2 = arith.constant 2 : index
    %11 = memref.load %arg1[%c2] : memref<3xf32, #tpu.memory_space<smem>>
    %12 = vector.broadcast %11 : f32 to vector<2x2x4xf32>
    %13 = arith.mulf %10, %12 : vector<2x2x4xf32>
    %cst = arith.constant 0.000000e+00 : f32
    %14 = vector.broadcast %cst : f32 to vector<4x11x4xf32>
    %c0_8 = arith.constant 0 : index
    %c0_9 = arith.constant 0 : index
    %c0_10 = arith.constant 0 : index
    %15 = vector.load %arg9[%c0_8, %c0_9, %c0_10] : memref<4x11x4xf32, #tpu.memory_space<vmem>>, vector<4x11x4xf32>
    tpu.vector_store %arg9[%c0_8, %c0_9, %c0_10], %14 {strides = array<i32>} : memref<4x11x4xf32, #tpu.memory_space<vmem>>, vector<4x11x4xf32>,
    %c1_11 = arith.constant 1 : index
    %c8 = arith.constant 8 : index
    %c0_12 = arith.constant 0 : index
    %16 = vector.load %arg9[%c1_11, %c8, %c0_12] : memref<4x11x4xf32, #tpu.memory_space<vmem>>, vector<2x2x4xf32>
    tpu.vector_store %arg9[%c1_11, %c8, %c0_12], %13 {strides = array<i32>} : memref<4x11x4xf32, #tpu.memory_space<vmem>>, vector<2x2x4xf32>,
    %c0_13 = arith.constant 0 : index
    %c0_14 = arith.constant 0 : index
    %c0_15 = arith.constant 0 : index
    %17 = vector.load %arg4[%c0_13, %c0_14, %c0_15] : memref<3x3x4xf32, #tpu.memory_space<vmem>>, vector<3x3x4xf32>
    %cst_16 = arith.constant 0.000000e+00 : f32
    %18 = vector.broadcast %cst_16 : f32 to vector<2x2x4xf32>
    %c0_17 = arith.constant 0 : index
    %c7 = arith.constant 7 : index
    %c0_18 = arith.constant 0 : index
    %19 = vector.load %arg9[%c0_17, %c7, %c0_18] : memref<4x11x4xf32, #tpu.memory_space<vmem>>, vector<2x2x4xf32>
    %20 = vector.extract_strided_slice %17 {offsets = [0, 0, 0], sizes = [1, 1, 4], strides = [1, 1, 1]} : vector<3x3x4xf32> to vector<1x1x4xf32>
    %21 = vector.shape_cast %20 : vector<1x1x4xf32> to vector<4xf32>
    %22 = vector.shape_cast %21 : vector<4xf32> to vector<1x1x4xf32>
    %23 = vector.broadcast %22 : vector<1x1x4xf32> to vector<2x2x4xf32>
    %24 = arith.mulf %19, %23 : vector<2x2x4xf32>
    %25 = arith.addf %18, %24 : vector<2x2x4xf32>
    %c0_19 = arith.constant 0 : index
    %c8_20 = arith.constant 8 : index
    %c0_21 = arith.constant 0 : index
    %26 = vector.load %arg9[%c0_19, %c8_20, %c0_21] : memref<4x11x4xf32, #tpu.memory_space<vmem>>, vector<2x2x4xf32>
    %27 = vector.extract_strided_slice %17 {offsets = [0, 1, 0], sizes = [1, 1, 4], strides = [1, 1, 1]} : vector<3x3x4xf32> to vector<1x1x4xf32>
    %28 = vector.shape_cast %27 : vector<1x1x4xf32> to vector<4xf32>
    %29 = vector.shape_cast %28 : vector<4xf32> to vector<1x1x4xf32>
    %30 = vector.broadcast %29 : vector<1x1x4xf32> to vector<2x2x4xf32>
    %31 = arith.mulf %26, %30 : vector<2x2x4xf32>
    %32 = arith.addf %25, %31 : vector<2x2x4xf32>
    %c0_22 = arith.constant 0 : index
    %c9 = arith.constant 9 : index
    %c0_23 = arith.constant 0 : index
    %33 = vector.load %arg9[%c0_22, %c9, %c0_23] : memref<4x11x4xf32, #tpu.memory_space<vmem>>, vector<2x2x4xf32>
    %34 = vector.extract_strided_slice %17 {offsets = [0, 2, 0], sizes = [1, 1, 4], strides = [1, 1, 1]} : vector<3x3x4xf32> to vector<1x1x4xf32>
    %35 = vector.shape_cast %34 : vector<1x1x4xf32> to vector<4xf32>
    %36 = vector.shape_cast %35 : vector<4xf32> to vector<1x1x4xf32>
    %37 = vector.broadcast %36 : vector<1x1x4xf32> to vector<2x2x4xf32>
    %38 = arith.mulf %33, %37 : vector<2x2x4xf32>
    %39 = arith.addf %32, %38 : vector<2x2x4xf32>
    %c1_24 = arith.constant 1 : index
    %c7_25 = arith.constant 7 : index
    %c0_26 = arith.constant 0 : index
    %40 = vector.load %arg9[%c1_24, %c7_25, %c0_26] : memref<4x11x4xf32, #tpu.memory_space<vmem>>, vector<2x2x4xf32>
    %41 = vector.extract_strided_slice %17 {offsets = [1, 0, 0], sizes = [1, 1, 4], strides = [1, 1, 1]} : vector<3x3x4xf32> to vector<1x1x4xf32>
    %42 = vector.shape_cast %41 : vector<1x1x4xf32> to vector<4xf32>
    %43 = vector.shape_cast %42 : vector<4xf32> to vector<1x1x4xf32>
    %44 = vector.broadcast %43 : vector<1x1x4xf32> to vector<2x2x4xf32>
    %45 = arith.mulf %40, %44 : vector<2x2x4xf32>
    %46 = arith.addf %39, %45 : vector<2x2x4xf32>
    %c1_27 = arith.constant 1 : index
    %c8_28 = arith.constant 8 : index
    %c0_29 = arith.constant 0 : index
    %47 = vector.load %arg9[%c1_27, %c8_28, %c0_29] : memref<4x11x4xf32, #tpu.memory_space<vmem>>, vector<2x2x4xf32>
    %48 = vector.extract_strided_slice %17 {offsets = [1, 1, 0], sizes = [1, 1, 4], strides = [1, 1, 1]} : vector<3x3x4xf32> to vector<1x1x4xf32>
    %49 = vector.shape_cast %48 : vector<1x1x4xf32> to vector<4xf32>
    %50 = vector.shape_cast %49 : vector<4xf32> to vector<1x1x4xf32>
    %51 = vector.broadcast %50 : vector<1x1x4xf32> to vector<2x2x4xf32>
    %52 = arith.mulf %47, %51 : vector<2x2x4xf32>
    %53 = arith.addf %46, %52 : vector<2x2x4xf32>
    %c1_30 = arith.constant 1 : index
    %c9_31 = arith.constant 9 : index
    %c0_32 = arith.constant 0 : index
    %54 = vector.load %arg9[%c1_30, %c9_31, %c0_32] : memref<4x11x4xf32, #tpu.memory_space<vmem>>, vector<2x2x4xf32>
    %55 = vector.extract_strided_slice %17 {offsets = [1, 2, 0], sizes = [1, 1, 4], strides = [1, 1, 1]} : vector<3x3x4xf32> to vector<1x1x4xf32>
    %56 = vector.shape_cast %55 : vector<1x1x4xf32> to vector<4xf32>
    %57 = vector.shape_cast %56 : vector<4xf32> to vector<1x1x4xf32>
    %58 = vector.broadcast %57 : vector<1x1x4xf32> to vector<2x2x4xf32>
    %59 = arith.mulf %54, %58 : vector<2x2x4xf32>
    %60 = arith.addf %53, %59 : vector<2x2x4xf32>
    %c2_33 = arith.constant 2 : index
    %c7_34 = arith.constant 7 : index
    %c0_35 = arith.constant 0 : index
    %61 = vector.load %arg9[%c2_33, %c7_34, %c0_35] : memref<4x11x4xf32, #tpu.memory_space<vmem>>, vector<2x2x4xf32>
    %62 = vector.extract_strided_slice %17 {offsets = [2, 0, 0], sizes = [1, 1, 4], strides = [1, 1, 1]} : vector<3x3x4xf32> to vector<1x1x4xf32>
    %63 = vector.shape_cast %62 : vector<1x1x4xf32> to vector<4xf32>
    %64 = vector.shape_cast %63 : vector<4xf32> to vector<1x1x4xf32>
    %65 = vector.broadcast %64 : vector<1x1x4xf32> to vector<2x2x4xf32>
    %66 = arith.mulf %61, %65 : vector<2x2x4xf32>
    %67 = arith.addf %60, %66 : vector<2x2x4xf32>
    %c2_36 = arith.constant 2 : index
    %c8_37 = arith.constant 8 : index
    %c0_38 = arith.constant 0 : index
    %68 = vector.load %arg9[%c2_36, %c8_37, %c0_38] : memref<4x11x4xf32, #tpu.memory_space<vmem>>, vector<2x2x4xf32>
    %69 = vector.extract_strided_slice %17 {offsets = [2, 1, 0], sizes = [1, 1, 4], strides = [1, 1, 1]} : vector<3x3x4xf32> to vector<1x1x4xf32>
    %70 = vector.shape_cast %69 : vector<1x1x4xf32> to vector<4xf32>
    %71 = vector.shape_cast %70 : vector<4xf32> to vector<1x1x4xf32>
    %72 = vector.broadcast %71 : vector<1x1x4xf32> to vector<2x2x4xf32>
    %73 = arith.mulf %68, %72 : vector<2x2x4xf32>
    %74 = arith.addf %67, %73 : vector<2x2x4xf32>
    %c2_39 = arith.constant 2 : index
    %c9_40 = arith.constant 9 : index
    %c0_41 = arith.constant 0 : index
    %75 = vector.load %arg9[%c2_39, %c9_40, %c0_41] : memref<4x11x4xf32, #tpu.memory_space<vmem>>, vector<2x2x4xf32>
    %76 = vector.extract_strided_slice %17 {offsets = [2, 2, 0], sizes = [1, 1, 4], strides = [1, 1, 1]} : vector<3x3x4xf32> to vector<1x1x4xf32>
    %77 = vector.shape_cast %76 : vector<1x1x4xf32> to vector<4xf32>
    %78 = vector.shape_cast %77 : vector<4xf32> to vector<1x1x4xf32>
    %79 = vector.broadcast %78 : vector<1x1x4xf32> to vector<2x2x4xf32>
    %80 = arith.mulf %75, %79 : vector<2x2x4xf32>
    %81 = arith.addf %74, %80 : vector<2x2x4xf32>
    %c0_42 = arith.constant 0 : index
    %c0_43 = arith.constant 0 : index
    %82 = vector.load %arg5[%c0_42, %c0_43] : memref<4x4xf32, #tpu.memory_space<vmem>>, vector<4x4xf32>
    %c0_44 = arith.constant 0 : index
    %c0_45 = arith.constant 0 : index
    %83 = vector.load %arg6[%c0_44, %c0_45] : memref<1x4xf32, #tpu.memory_space<vmem>>, vector<1x4xf32>
    %c0_46 = arith.constant 0 : index
    %c0_47 = arith.constant 0 : index
    %84 = vector.load %arg7[%c0_46, %c0_47] : memref<1x4xf32, #tpu.memory_space<vmem>>, vector<1x4xf32>
    %85 = vector.extract_strided_slice %81 {offsets = [0, 0, 0], sizes = [1, 2, 4], strides = [1, 1, 1]} : vector<2x2x4xf32> to vector<1x2x4xf32>
    %86 = vector.shape_cast %85 : vector<1x2x4xf32> to vector<2x4xf32>
    %cst_48 = arith.constant dense<0.000000e+00> : vector<2x4xf32>
    %87 = tpu.matmul %86, %82, %cst_48 {dimension_numbers = #tpu.dot_dimension_numbers<[1], [0], [0], [1], [0, 0, 1, 1], [], []>} : vector<2x4xf32>, vector<4x4xf32>, vector<2x4xf32> -> vector<2x4xf32>
    %88 = vector.broadcast %83 : vector<1x4xf32> to vector<2x4xf32>
    %89 = arith.mulf %87, %88 : vector<2x4xf32>
    %90 = vector.broadcast %84 : vector<1x4xf32> to vector<2x4xf32>
    %91 = arith.addf %89, %90 : vector<2x4xf32>
    %cst_49 = arith.constant 0.000000e+00 : f32
    %92 = vector.broadcast %cst_49 : f32 to vector<2x4xf32>
    %93 = arith.maximumf %91, %92 : vector<2x4xf32>
    %c0_50 = arith.constant 0 : index
    %c0_51 = arith.constant 0 : index
    %c0_52 = arith.constant 0 : index
    %c0_53 = arith.constant 0 : index
    %94 = vector.load %arg8[%c0_50, %c0_51, %c0_52, %c0_53] : memref<1x2x2x4xf32, #tpu.memory_space<vmem>>, vector<1x1x2x4xf32>
    %95 = vector.shape_cast %94 : vector<1x1x2x4xf32> to vector<2x4xf32>
    %96 = vector.shape_cast %93 : vector<2x4xf32> to vector<1x1x2x4xf32>
    tpu.vector_store %arg8[%c0_50, %c0_51, %c0_52, %c0_53], %96 {strides = array<i32>} : memref<1x2x2x4xf32, #tpu.memory_space<vmem>>, vector<1x1x2x4xf32>,
    %97 = vector.extract_strided_slice %81 {offsets = [1, 0, 0], sizes = [1, 2, 4], strides = [1, 1, 1]} : vector<2x2x4xf32> to vector<1x2x4xf32>
    %98 = vector.shape_cast %97 : vector<1x2x4xf32> to vector<2x4xf32>
    %cst_54 = arith.constant dense<0.000000e+00> : vector<2x4xf32>
    %99 = tpu.matmul %98, %82, %cst_54 {dimension_numbers = #tpu.dot_dimension_numbers<[1], [0], [0], [1], [0, 0, 1, 1], [], []>} : vector<2x4xf32>, vector<4x4xf32>, vector<2x4xf32> -> vector<2x4xf32>
    %100 = vector.broadcast %83 : vector<1x4xf32> to vector<2x4xf32>
    %101 = arith.mulf %99, %100 : vector<2x4xf32>
    %102 = vector.broadcast %84 : vector<1x4xf32> to vector<2x4xf32>
    %103 = arith.addf %101, %102 : vector<2x4xf32>
    %cst_55 = arith.constant 0.000000e+00 : f32
    %104 = vector.broadcast %cst_55 : f32 to vector<2x4xf32>
    %105 = arith.maximumf %103, %104 : vector<2x4xf32>
    %c0_56 = arith.constant 0 : index
    %c1_57 = arith.constant 1 : index
    %c0_58 = arith.constant 0 : index
    %c0_59 = arith.constant 0 : index
    %106 = vector.load %arg8[%c0_56, %c1_57, %c0_58, %c0_59] : memref<1x2x2x4xf32, #tpu.memory_space<vmem>>, vector<1x1x2x4xf32>
    %107 = vector.shape_cast %106 : vector<1x1x2x4xf32> to vector<2x4xf32>
    %108 = vector.shape_cast %105 : vector<2x4xf32> to vector<1x1x2x4xf32>
    tpu.vector_store %arg8[%c0_56, %c1_57, %c0_58, %c0_59], %108 {strides = array<i32>} : memref<1x2x2x4xf32, #tpu.memory_space<vmem>>, vector<1x1x2x4xf32>,
    return
  }
  func.func @transform_0(%arg0: i32) -> i32 {
    %c0_i32 = arith.constant 0 : i32
    %c0_i32_0 = arith.constant 0 : i32
    return %c0_i32 : i32
  }
  func.func @transform_1(%arg0: i32) -> (i32, i32, i32, i32) {
    %c0_i32 = arith.constant 0 : i32
    %c0_i32_0 = arith.constant 0 : i32
    %c0_i32_1 = arith.constant 0 : i32
    %c0_i32_2 = arith.constant 0 : i32
    return %arg0, %c0_i32, %c0_i32_0, %c0_i32_1 : i32, i32, i32, i32
  }
  func.func @transform_2(%arg0: i32) -> (i32, i32, i32, i32) {
    %c0_i32 = arith.constant 0 : i32
    %c0_i32_0 = arith.constant 0 : i32
    %c0_i32_1 = arith.constant 0 : i32
    %c0_i32_2 = arith.constant 0 : i32
    return %arg0, %c0_i32, %c0_i32_0, %c0_i32_1 : i32, i32, i32, i32
  }
  func.func @transform_3(%arg0: i32) -> (i32, i32, i32) {
    %c0_i32 = arith.constant 0 : i32
    %c0_i32_0 = arith.constant 0 : i32
    %c0_i32_1 = arith.constant 0 : i32
    %c0_i32_2 = arith.constant 0 : i32
    return %c0_i32, %c0_i32_0, %c0_i32_1 : i32, i32, i32
  }
  func.func @transform_4(%arg0: i32) -> (i32, i32) {
    %c0_i32 = arith.constant 0 : i32
    %c0_i32_0 = arith.constant 0 : i32
    %c0_i32_1 = arith.constant 0 : i32
    return %c0_i32, %c0_i32_0 : i32, i32
  }
  func.func @transform_5(%arg0: i32) -> (i32, i32) {
    %c0_i32 = arith.constant 0 : i32
    %c0_i32_0 = arith.constant 0 : i32
    %c0_i32_1 = arith.constant 0 : i32
    return %c0_i32, %c0_i32_0 : i32, i32
  }
  func.func @transform_6(%arg0: i32) -> (i32, i32) {
    %c0_i32 = arith.constant 0 : i32
    %c0_i32_0 = arith.constant 0 : i32
    %c0_i32_1 = arith.constant 0 : i32
    return %c0_i32, %c0_i32_0 : i32, i32
  }
  func.func @transform_7(%arg0: i32) -> (i32, i32, i32, i32) {
    %c0_i32 = arith.constant 0 : i32
    %c0_i32_0 = arith.constant 0 : i32
    %c0_i32_1 = arith.constant 0 : i32
    %c0_i32_2 = arith.constant 0 : i32
    return %arg0, %c0_i32, %c0_i32_0, %c0_i32_1 : i32, i32, i32, i32
  }
}

</mosaic_0001>

<bundles_post_ra>
// kernel: bifpn_forward.9
= control target key start
LH: loop header
LB: loop body
LE: loop exit
PB: predicated region body
PF: predicated region fallthrough
CT: control target
= control target key end

     0   :  { %12 = vsyncpa [#allocation4], 0  ;;  %s1072_s24 = smov 0   ;;  %s1260_s0 = inlined_call_operand.vmem [shape: f32[3], index: 0, kind: input, shape index: {}]   ;;  %s1261_s1 = inlined_call_operand.vmem [shape: f32[2,4,4,4], index: 1, kind: input, shape index: {}]   ;;  %s1262_s2 = inlined_call_operand.vmem [shape: f32[2,4,4,4], index: 2, kind: input, shape index: {}]   ;;  %s1263_s3 = inlined_call_operand.vmem [shape: f32[3,3,4], index: 3, kind: input, shape index: {}]   ;;  %s1264_s4 = inlined_call_operand.vmem [shape: f32[4,4], index: 4, kind: input, shape index: {}]   ;;  %s1265_s5 = inlined_call_operand.vmem [shape: f32[1,4], index: 5, kind: input, shape index: {}]   ;;  %s1266_s6 = inlined_call_operand.vmem [shape: f32[1,4], index: 6, kind: input, shape index: {}]   ;;  %s1267_s7 = inlined_call_operand.vmem [shape: f32[2,4,4,4], index: 7, kind: output, shape index: {}]  }
   0x1 LB: > { %s1078_s25 = sadd.s32 4294967295, %s1027_s24   ;;  %p922_p0 = scmp.ge.s32.totalorder %s1027_s24, 1  ;;  %s1027_s24 = sphi %s1072_s24, %s18_s24  }
   0x2   : > { %p206_p1 = scmp.lt.s32.totalorder %s1027_s24, 3  ;;  %s219_s28 = sshll.u32 %s1260_s0, 4  ;;  %s220_s28 = int_to_ptr.vmem [resolvable:$true] %s219_s28 }
   0x3   : > { %p989_p3 = scmp.eq.s32.totalorder %s1078_s25, 0  ;;  %s1002_s30 = scalar_lea.vmem %s220_s28, 16 }
   0x4   : > { %p1085_p2 = pnand %p922_p0, %p206_p1  ;;  %p1003_p6 = scmp.ne.s32.totalorder %s220_s28, %s1002_s30 }
   0x5   : > { %p1010_p10 = scmp.lt.s32.totalorder %s220_s28, %s220_s28  ;;  %p1011_p11 = scmp.lt.s32.totalorder %s1002_s30, %s1002_s30 }
   0x6   : > { %p985_p4 = pneg %p1085_p2 }
   0x7   : > { %p1012_p12 = por %p1011_p11, %p1010_p10 }
   0x8   : > { %p986_p5 = pnand %p989_p3, %p985_p4 }
   0xa   : > { %p1004_p7 = pneg %p986_p5 }
   0xc   : > { %p1005_p8 = pnand %p1004_p7, %p1003_p6 }
   0xe   : > { %p1006_p9 = pneg %p1005_p8 }
  0x10   : > { %p1013_p13 = pnand %p1012_p12, %p1006_p9 }
  0x12   : > { %1016 = shalt.err (!%p1013_p13)
}
  0x13   : > { %s1029_s8 = smov [#allocation3]   ;;  %260 = sbr.rel (%p1085_p2) target bundleno = 299 (0x12b), region = 48 }
  0x14   : > { %988 = dma.vmem_to_smem (!%p986_p5), %s220_s28, 16, %s1029_s8, [#allocation4]  }
  0x1a   : > { %1022 = dma.done.wait (%p989_p3), [#allocation4], 16  }
  0x1b   : > { %1024 = vsyncadd (%p989_p3), [#allocation4], 4294967280 }
  0x1c   : > { %266 = sfence }
  0x1d   : > { %v1103_v0 = vld [vmem:[%s1264_s4] sm:$0xf]  ;;  %vm517_vm0 = vcmask 1043456   ;;  %p298_p0 = scmp.lt.s32.totalorder %s1078_s25, 1  ;;  %v370_v1 = vlaneseq  ;;  %v1030_v2 = vmov 0.0   ;;  %s1108_s11 = sld [smem:[#allocation3]] }
  0x1e   : > { %961 = vmatprep.subr.mxu0 %v1030_v2  ;;  %966 = vmatprep.subr.mxu1 %v1030_v2  ;;  %s1110_s12 = sld [smem:[#allocation3 + $0x1]]  ;;  %vm343_vm1 = vcmask 31744   ;;  %vm345_vm2 = vcmask 28672   ;;  %vm1031_vm3 = vmmov 0   ;;  %s934_s13 = sld [smem:[#allocation3 + $0x2]]  ;;  %vm358_vm4 = vcmask 27648  }
  0x1f   : > { %962 = vmatpush3.msk.msra.mxu0 %vm517_vm0, %v1103_v0  ;;  %963 = vmatprep.mubr.msk.f32.mxu0 %vm1031_vm3, %v1030_v2  ;;  %s1270_s25 = smov (!%p298_p0, %s1078_s25), 1  ;;  %344 = vst.msk [vmem:[#allocation2] sm:$0xff] %vm343_vm1, %v1030_v2  ;;  %347 = vst.msk [vmem:[#allocation2 + $0x10] sm:$0xff] %vm343_vm1, %v1030_v2  ;;  %v371_v3 = vshrl.u32 %v370_v1, 7  ;;  %v363_v4 = vld [vmem:[%s1263_s3] sm:$0x7] }
  0x20   : > { %346 = vst.msk [vmem:[#allocation2 + $0x8] sm:$0x1f] %vm345_vm2, %v1030_v2  ;;  %348 = vst.msk [vmem:[#allocation2 + $0x18] sm:$0x1f] %vm345_vm2, %v1030_v2  ;;  %967 = vmatpush3.msk.msra.mxu1 %vm517_vm0, %v1103_v0  ;;  %968 = vmatprep.mubr.msk.f32.mxu1 %vm1031_vm3, %v1030_v2  ;;  %s1145_s14 = sshll.u32 %s1270_s25, 4 }
  0x21   : > { %349 = vst.msk [vmem:[#allocation2 + $0x20] sm:$0xff] %vm343_vm1, %v1030_v2  ;;  %353 = vst.msk [vmem:[#allocation2 + $0x40] sm:$0xff] %vm343_vm1, %v1030_v2  ;;  %971 = vmatprep.subr.mxu0 %v1030_v2  ;;  %976 = vmatprep.subr.mxu1 %v1030_v2  ;;  %s302_s19 = scalar_lea.vmem %s1261_s1, %s1145_s14  ;;  %s307_s22 = scalar_lea.vmem %s1262_s2, %s1145_s14  ;;  %v372_v5 = vsub.s32 0, %v371_v3  ;;  %v388_v6 = vsub.s32 1, %v371_v3  ;;  %v1160_v7 = vsub.s32 2, %v371_v3 }
  0x22   : > { %350 = vst.msk [vmem:[#allocation2 + $0x28] sm:$0x1f] %vm345_vm2, %v1030_v2  ;;  %352 = vst.msk [vmem:[#allocation2 + $0x38] sm:$0x1f] %vm345_vm2, %v1030_v2  ;;  %v313_v8 = vld [vmem:[%s302_s19] sm:$0xf] }
  0x23   : > { %355 = vst.msk [vmem:[#allocation2 + $0x50] sm:$0xff] %vm343_vm1, %v1030_v2  ;;  %351 = vst.msk [vmem:[#allocation2 + $0x30] sm:$0xff] %vm343_vm1, %v1030_v2  ;;  %v314_v9 = vld [vmem:[%s302_s19 + $0x4] sm:$0xf]  ;;  %v323_v10 = vld [vmem:[%s307_s22] sm:$0xf]  ;;  %v318_v11 = vstv %s1108_s11  ;;  %v1164_v14 = vrot.slane %v363_v4, %v372_v5  ;;  %v1166_v15 = vrot.slane %v363_v4, %v388_v6  ;;  %v1169_v29 = vrot.slane %v363_v4, %v1160_v7  ;;  %s312_s11 = scalar_lea.vmem %s1267_s7, %s1145_s14 }
  0x24   : > { %354 = vst.msk [vmem:[#allocation2 + $0x48] sm:$0x1f] %vm345_vm2, %v1030_v2  ;;  %356 = vst.msk [vmem:[#allocation2 + $0x58] sm:$0x1f] %vm345_vm2, %v1030_v2  ;;  %v324_v12 = vld [vmem:[%s307_s22 + $0x4] sm:$0xf]  ;;  %v328_v13 = vstv %s1110_s12  ;;  %v319_v16 = vmul.f32 %v318_v11, %v313_v8  ;;  %v320_v17 = vmul.f32 %v318_v11, %v314_v9  ;;  %v338_v20 = vstv %s934_s13 }
  0x25   : > { %v329_v18 = vmul.f32 %v328_v13, %v323_v10  ;;  %v330_v19 = vmul.f32 %v328_v13, %v324_v12  ;;  %v315_v23 = vld [vmem:[%s302_s19 + $0x8] sm:$0xf]  ;;  %v316_v27 = vld [vmem:[%s302_s19 + $0xc] sm:$0xf]  ;;  %v364_v39 = vld [vmem:[%s1263_s3 + $0x4] sm:$0x7] }
  0x26   : > { %v325_v26 = vld [vmem:[%s307_s22 + $0x8] sm:$0xf]  ;;  %v326_v28 = vld [vmem:[%s307_s22 + $0xc] sm:$0xf]  ;;  %v321_v35 = vmul.f32 %v318_v11, %v315_v23  ;;  %v322_v37 = vmul.f32 %v318_v11, %v316_v27  ;;  %v1182_v47 = vrot.slane %v364_v39, %v372_v5  ;;  %v1184_v48 = vrot.slane %v364_v39, %v388_v6 }
  0x27   : > { %v366_v21 = vld [vmem:[#allocation2 + $0x7] sm:$0xf]  ;;  %v333_v24 = vadd.f32 %v329_v18, %v319_v16  ;;  %v334_v25 = vadd.f32 %v330_v19, %v320_v17  ;;  %v331_v36 = vmul.f32 %v328_v13, %v325_v26  ;;  %v332_v38 = vmul.f32 %v328_v13, %v326_v28 }
  0x28   : > { %v382_v22 = vld [vmem:[#allocation2 + $0x8] sm:$0xf]  ;;  %v374_v32 = vmul.f32 %v1164_v14, %v366_v21  ;;  %v1187_v49 = vrot.slane %v364_v39, %v1160_v7 }
  0x29   : > { %v339_v30 = vmul.f32 %v338_v20, %v333_v24  ;;  %v340_v31 = vmul.f32 %v338_v20, %v334_v25  ;;  %v390_v33 = vmul.f32 %v1166_v15, %v382_v22  ;;  %v398_v34 = vld [vmem:[#allocation2 + $0x9] sm:$0xf]  ;;  %v335_v40 = vadd.f32 %v331_v36, %v321_v35 }
  0x2a   : > { %v336_v41 = vadd.f32 %v332_v38, %v322_v37  ;;  %v406_v43 = vmul.f32 %v1169_v29, %v398_v34  ;;  %v365_v46 = vld [vmem:[%s1263_s3 + $0x8] sm:$0x7] }
  0x2b   : > { %359 = vst.msk [vmem:[#allocation2 + $0x18] sm:$0xf] %vm358_vm4, %v339_v30  ;;  %360 = vst.msk [vmem:[#allocation2 + $0x28] sm:$0xf] %vm358_vm4, %v340_v31  ;;  %v394_v42 = vadd.f32 %v390_v33, %v374_v32  ;;  %v341_v44 = vmul.f32 %v338_v20, %v335_v40  ;;  %v1191_v54 = vrot.slane %v365_v46, %v372_v5 }
  0x2c   : > { %v342_v45 = vmul.f32 %v338_v20, %v336_v41  ;;  %v1196_v59 = vrot.slane %v365_v46, %v388_v6  ;;  %v1203_v11 = vrot.slane %v365_v46, %v1160_v7 }
  0x2d   : > { %361 = vst.msk [vmem:[#allocation2 + $0x38] sm:$0xf] %vm358_vm4, %v341_v44  ;;  %v410_v50 = vadd.f32 %v406_v43, %v394_v42 }
  0x2e   : > { %362 = vst.msk [vmem:[#allocation2 + $0x48] sm:$0xf] %vm358_vm4, %v342_v45 }
  0x32   : > { %v414_v51 = vld [vmem:[#allocation2 + $0x17] sm:$0xf]  ;;  %v463_v57 = vld [vmem:[#allocation2 + $0x27] sm:$0xf] }
  0x33   : > { %v430_v52 = vld [vmem:[#allocation2 + $0x18] sm:$0xf]  ;;  %v422_v55 = vmul.f32 %v1182_v47, %v414_v51  ;;  %v479_v1 = vld [vmem:[#allocation2 + $0x28] sm:$0xf]  ;;  %v471_v10 = vmul.f32 %v1191_v54, %v463_v57 }
  0x34   : > { %v446_v53 = vld [vmem:[#allocation2 + $0x19] sm:$0xf]  ;;  %v438_v56 = vmul.f32 %v1184_v48, %v430_v52  ;;  %v415_v8 = vld [vmem:[#allocation2 + $0x27] sm:$0xf]  ;;  %v487_v23 = vmul.f32 %v1196_v59, %v479_v1 }
  0x35   : > { %v454_v58 = vmul.f32 %v1187_v49, %v446_v53  ;;  %v367_v60 = vld [vmem:[#allocation2 + $0x17] sm:$0xf]  ;;  %v426_v63 = vadd.f32 %v422_v55, %v410_v50  ;;  %v431_v9 = vld [vmem:[#allocation2 + $0x28] sm:$0xf]  ;;  %v423_v6 = vmul.f32 %v1182_v47, %v415_v8 }
  0x36   : > { %v383_v61 = vld [vmem:[#allocation2 + $0x18] sm:$0xf]  ;;  %v375_v3 = vmul.f32 %v1164_v14, %v367_v60  ;;  %v368_v12 = vld [vmem:[#allocation2 + $0x27] sm:$0xf]  ;;  %v439_v24 = vmul.f32 %v1184_v48, %v431_v9 }
  0x37   : > { %v399_v62 = vld [vmem:[#allocation2 + $0x19] sm:$0xf]  ;;  %v391_v4 = vmul.f32 %v1166_v15, %v383_v61  ;;  %v384_v13 = vld [vmem:[#allocation2 + $0x28] sm:$0xf]  ;;  %v442_v17 = vadd.f32 %v438_v56, %v426_v63  ;;  %v376_v21 = vmul.f32 %v1164_v14, %v368_v12 }
  0x38   : > { %v407_v5 = vmul.f32 %v1169_v29, %v399_v62  ;;  %v400_v16 = vld [vmem:[#allocation2 + $0x29] sm:$0xf]  ;;  %v392_v22 = vmul.f32 %v1166_v15, %v384_v13  ;;  %v416_v25 = vld [vmem:[#allocation2 + $0x37] sm:$0xf] }
  0x39   : > { %v495_v18 = vld [vmem:[#allocation2 + $0x29] sm:$0xf]  ;;  %v395_v19 = vadd.f32 %v391_v4, %v375_v3  ;;  %v408_v7 = vmul.f32 %v1169_v29, %v400_v16  ;;  %v432_v26 = vld [vmem:[#allocation2 + $0x38] sm:$0xf]  ;;  %v458_v27 = vadd.f32 %v454_v58, %v442_v17  ;;  %v424_v32 = vmul.f32 %v1182_v47, %v416_v25 }
  0x3a   : > { %v447_v20 = vld [vmem:[#allocation2 + $0x29] sm:$0xf]  ;;  %v464_v30 = vld [vmem:[#allocation2 + $0x37] sm:$0xf]  ;;  %v396_v31 = vadd.f32 %v392_v22, %v376_v21  ;;  %v503_v34 = vmul.f32 %v1203_v11, %v495_v18  ;;  %v440_v43 = vmul.f32 %v1184_v48, %v432_v26 }
  0x3b   : > { %v411_v28 = vadd.f32 %v407_v5, %v395_v19  ;;  %v448_v33 = vld [vmem:[#allocation2 + $0x39] sm:$0xf]  ;;  %v455_v35 = vmul.f32 %v1187_v49, %v447_v20  ;;  %v475_v39 = vadd.f32 %v471_v10, %v458_v27  ;;  %v417_v44 = vld [vmem:[#allocation2 + $0x47] sm:$0xf]  ;;  %v472_v45 = vmul.f32 %v1191_v54, %v464_v30 }
  0x3c   : > { %v369_v36 = vld [vmem:[#allocation2 + $0x37] sm:$0xf]  ;;  %v412_v42 = vadd.f32 %v408_v7, %v396_v31  ;;  %v465_v46 = vld [vmem:[#allocation2 + $0x47] sm:$0xf]  ;;  %v456_v57 = vmul.f32 %v1187_v49, %v448_v33  ;;  %v425_v1 = vmul.f32 %v1182_v47, %v417_v44 }
  0x3d   : > { %v385_v37 = vld [vmem:[#allocation2 + $0x38] sm:$0xf]  ;;  %v427_v40 = vadd.f32 %v423_v6, %v411_v28  ;;  %v377_v50 = vmul.f32 %v1164_v14, %v369_v36  ;;  %v491_v53 = vadd.f32 %v487_v23, %v475_v39  ;;  %v433_v58 = vld [vmem:[#allocation2 + $0x48] sm:$0xf] }
  0x3e   : > { %v401_v38 = vld [vmem:[#allocation2 + $0x39] sm:$0xf]  ;;  %v393_v51 = vmul.f32 %v1166_v15, %v385_v37  ;;  %v428_v56 = vadd.f32 %v424_v32, %v412_v42  ;;  %v481_v62 = vld [vmem:[#allocation2 + $0x48] sm:$0xf]  ;;  %v473_v15 = vmul.f32 %v1191_v54, %v465_v46  ;;  %v441_v9 = vmul.f32 %v1184_v48, %v433_v58 }
  0x3f   : > { %v480_v41 = vld [vmem:[#allocation2 + $0x38] sm:$0xf]  ;;  %v409_v52 = vmul.f32 %v1169_v29, %v401_v38  ;;  %v443_v55 = vadd.f32 %v439_v24, %v427_v40  ;;  %v507_v3 = vadd.f32 %v503_v34, %v491_v53  ;;  %v449_v5 = vld [vmem:[#allocation2 + $0x49] sm:$0xf]  ;;  %v489_v13 = vmul.f32 %v1196_v59, %v481_v62 }
  0x40   : > { %v488_v60 = vmul.f32 %v1196_v59, %v480_v41  ;;  %v496_v61 = vld [vmem:[#allocation2 + $0x39] sm:$0xf]  ;;  %v397_v63 = vadd.f32 %v393_v51, %v377_v50  ;;  %v444_v14 = vadd.f32 %v440_v43, %v428_v56  ;;  %v497_v29 = vld [vmem:[#allocation2 + $0x49] sm:$0xf]  ;;  %v457_v17 = vmul.f32 %v1187_v49, %v449_v5 }
  0x41   : > { %v459_v4 = vadd.f32 %v455_v35, %v443_v55  ;;  %964 = vmatmul.mubr.msk.f32.vlgmr.msra.gmra.mrb[0].mxu0 %vm343_vm1, %v507_v3  ;;  %v504_v6 = vmul.f32 %v1203_v11, %v496_v61  ;;  %v466_v16 = vld [vmem:[#allocation2 + $0x57] sm:$0xf]  ;;  %v505_v19 = vmul.f32 %v1203_v11, %v497_v29 }
  0x42   : > { %v413_v8 = vadd.f32 %v409_v52, %v397_v63  ;;  %v460_v12 = vadd.f32 %v456_v57, %v444_v14  ;;  %972 = vmatpush3.msk.msra.mxu0 %vm517_vm0, %v1103_v0  ;;  %973 = vmatprep.mubr.msk.f32.mxu0 %vm1031_vm3, %v1030_v2  ;;  %v482_v20 = vld [vmem:[#allocation2 + $0x58] sm:$0xf]  ;;  %v474_v22 = vmul.f32 %v1191_v54, %v466_v16 }
  0x43   : > { %v476_v10 = vadd.f32 %v472_v45, %v459_v4  ;;  %v498_v7 = vld [vmem:[#allocation2 + $0x59] sm:$0xf]  ;;  %v490_v26 = vmul.f32 %v1196_v59, %v482_v20  ;;  %v937_v59 = vld [vmem:[%s1265_s5] ss:$0 sm:$0xff] }
  0x44   : > { %v429_v47 = vadd.f32 %v425_v1, %v413_v8  ;;  %v477_v48 = vadd.f32 %v473_v15, %v460_v12  ;;  %v506_v28 = vmul.f32 %v1203_v11, %v498_v7 }
  0x45   : > { %v492_v18 = vadd.f32 %v488_v60, %v476_v10 }
  0x46   : > { %v445_v21 = vadd.f32 %v441_v9, %v429_v47  ;;  %v493_v24 = vadd.f32 %v489_v13, %v477_v48 }
  0x47   : > { %v508_v23 = vadd.f32 %v504_v6, %v492_v18 }
  0x48   : > { %v461_v25 = vadd.f32 %v457_v17, %v445_v21  ;;  %v509_v27 = vadd.f32 %v505_v19, %v493_v24 }
  0x49   : > { %969 = vmatmul.mubr.msk.f32.vlgmr.msra.gmra.mrb[0].mxu1 %vm343_vm1, %v508_v23 }
  0x4a   : > { %977 = vmatpush3.msk.msra.mxu1 %vm517_vm0, %v1103_v0  ;;  %978 = vmatprep.mubr.msk.f32.mxu1 %vm1031_vm3, %v1030_v2  ;;  %v478_v49 = vadd.f32 %v474_v22, %v461_v25  ;;  %v938_v0 = vld [vmem:[%s1266_s6] ss:$0 sm:$0xff] }
  0x4b   : > { %974 = vmatmul.mubr.msk.f32.vlgmr.msra.gmra.mrb[2].mxu0 %vm343_vm1, %v509_v27 }
  0x4c   : > { %v494_v54 = vadd.f32 %v490_v26, %v478_v49 }
  0x4e   : > { %v510_v30 = vadd.f32 %v506_v28, %v494_v54 }
  0x50   : > { %979 = vmatmul.mubr.msk.f32.vlgmr.msra.gmra.mrb[2].mxu1 %vm343_vm1, %v510_v30 }
 0x114   : > { %v587_v31 = vpop.f32.mrb[0].mxu0 }
 0x115   : > { %v597_v32 = vmul.f32 %v937_v59, %v587_v31  ;;  %v965_v2 = vpop.f32.mrb[1].mxu0 }
 0x117   : > { %v604_v33 = vadd.f32 %v938_v0, %v597_v32 }
 0x119   : > { %v605_v11 = vmax.f32 %v604_v33, 0.0 }
 0x11b   : > { %606 = vst.msk [vmem:[%s312_s11] sm:$0xf] %vm358_vm4, %v605_v11 }
 0x11c   : > { %v676_v34 = vpop.f32.mrb[0].mxu1 }
 0x11d   : > { %v680_v35 = vmul.f32 %v937_v59, %v676_v34  ;;  %v970_v36 = vpop.f32.mrb[1].mxu1 }
 0x11e   : > { %v754_v37 = vpop.f32.mrb[2].mxu0 }
 0x11f   : > { %v681_v38 = vadd.f32 %v938_v0, %v680_v35  ;;  %v758_v39 = vmul.f32 %v937_v59, %v754_v37  ;;  %v975_v40 = vpop.f32.mrb[3].mxu0 }
 0x121   : > { %v682_v41 = vmax.f32 %v681_v38, 0.0  ;;  %v759_v42 = vadd.f32 %v938_v0, %v758_v39 }
 0x123   : > { %941 = vst.msk [vmem:[%s312_s11 + $0x4] sm:$0xf] %vm358_vm4, %v682_v41  ;;  %v760_v43 = vmax.f32 %v759_v42, 0.0  ;;  %v832_v44 = vpop.f32.mrb[2].mxu1 }
 0x124   : > { %v836_v45 = vmul.f32 %v937_v59, %v832_v44  ;;  %v980_v46 = vpop.f32.mrb[3].mxu1 }
 0x125   : > { %944 = vst.msk [vmem:[%s312_s11 + $0x8] sm:$0xf] %vm358_vm4, %v760_v43 }
 0x126   : > { %v837_v50 = vadd.f32 %v938_v0, %v836_v45 }
 0x128   : > { %v838_v51 = vmax.f32 %v837_v50, 0.0 }
 0x12a   : > { %947 = vst.msk [vmem:[%s312_s11 + $0xc] sm:$0xf] %vm358_vm4, %v838_v51 }
 0x12b PF: > { %s18_s24 = sadd.s32 1, %s1027_s24  }
 0x12c   : > { %p15_p1 = scmp.ge.s32.totalorder %s18_s24, 4  }
 0x12e   :  { %17 = sbr.rel (!%p15_p1) target bundleno = 1 (0x1), region = 91 }
 0x135   :  { %862 = vsyncpa [#allocation4], 1 }
 0x136   :  { %864 = vsyncpa [#allocation4 + $0x1], 1 }

// kernel: bifpn_forward.10
= control target key start
LH: loop header
LB: loop body
LE: loop exit
PB: predicated region body
PF: predicated region fallthrough
CT: control target
= control target key end

     0   :  { %12 = vsyncpa [#allocation4], 0  ;;  %s1068_s24 = smov 0   ;;  %s1368_s0 = inlined_call_operand.vmem [shape: f32[3], index: 0, kind: input, shape index: {}]   ;;  %s1369_s1 = inlined_call_operand.vmem [shape: f32[2,8,8,4], index: 1, kind: input, shape index: {}]   ;;  %s1370_s2 = inlined_call_operand.vmem [shape: f32[2,8,8,4], index: 2, kind: input, shape index: {}]   ;;  %s1371_s3 = inlined_call_operand.vmem [shape: f32[3,3,4], index: 3, kind: input, shape index: {}]   ;;  %s1372_s4 = inlined_call_operand.vmem [shape: f32[4,4], index: 4, kind: input, shape index: {}]   ;;  %s1373_s5 = inlined_call_operand.vmem [shape: f32[1,4], index: 5, kind: input, shape index: {}]   ;;  %s1374_s6 = inlined_call_operand.vmem [shape: f32[1,4], index: 6, kind: input, shape index: {}]   ;;  %s1375_s7 = inlined_call_operand.vmem [shape: f32[2,8,8,4], index: 7, kind: output, shape index: {}]  }
   0x1 LB: > { %s1074_s25 = sadd.s32 4294967295, %s1024_s24   ;;  %p925_p0 = scmp.ge.s32.totalorder %s1024_s24, 1  ;;  %s1024_s24 = sphi %s1068_s24, %s18_s24  }
   0x2   : > { %p206_p1 = scmp.lt.s32.totalorder %s1024_s24, 3  ;;  %s219_s28 = sshll.u32 %s1368_s0, 4  ;;  %s220_s28 = int_to_ptr.vmem [resolvable:$true] %s219_s28 }
   0x3   : > { %p987_p3 = scmp.eq.s32.totalorder %s1074_s25, 0  ;;  %s999_s30 = scalar_lea.vmem %s220_s28, 16 }
   0x4   : > { %p1081_p2 = pnand %p925_p0, %p206_p1  ;;  %p1000_p6 = scmp.ne.s32.totalorder %s220_s28, %s999_s30 }
   0x5   : > { %p1007_p10 = scmp.lt.s32.totalorder %s220_s28, %s220_s28  ;;  %p1008_p11 = scmp.lt.s32.totalorder %s999_s30, %s999_s30 }
   0x6   : > { %p983_p4 = pneg %p1081_p2 }
   0x7   : > { %p1009_p12 = por %p1008_p11, %p1007_p10 }
   0x8   : > { %p984_p5 = pnand %p987_p3, %p983_p4 }
   0xa   : > { %p1001_p7 = pneg %p984_p5 }
   0xc   : > { %p1002_p8 = pnand %p1001_p7, %p1000_p6 }
   0xe   : > { %p1003_p9 = pneg %p1002_p8 }
  0x10   : > { %p1010_p13 = pnand %p1009_p12, %p1003_p9 }
  0x12   : > { %1013 = shalt.err (!%p1010_p13)
}
  0x13   : > { %s1026_s8 = smov [#allocation3]   ;;  %260 = sbr.rel (%p1081_p2) target bundleno = 316 (0x13c), region = 48 }
  0x14   : > { %986 = dma.vmem_to_smem (!%p984_p5), %s220_s28, 16, %s1026_s8, [#allocation4]  }
  0x1a   : > { %1019 = dma.done.wait (%p987_p3), [#allocation4], 16  }
  0x1b   : > { %1021 = vsyncadd (%p987_p3), [#allocation4], 4294967280 }
  0x1c   : > { %266 = sfence }
  0x1d   : > { %v664_v0 = vld [vmem:[%s1372_s4] sm:$0xf]  ;;  %vm691_vm0 = vcmask 1043456   ;;  %p298_p0 = scmp.lt.s32.totalorder %s1074_s25, 1  ;;  %s1100_s11 = sld [smem:[#allocation3]]  ;;  %v419_v1 = vlaneseq  ;;  %vm367_vm1 = vcmask 31744  }
  0x1e   : > { %963 = vmatprep.subr.msk.mxu0 %vm691_vm0, %v664_v0  ;;  %977 = vmatprep.subr.msk.mxu1 %vm691_vm0, %v664_v0  ;;  %s1104_s12 = sld [smem:[#allocation3 + $0x1]]  ;;  %s1106_s13 = sld [smem:[#allocation3 + $0x2]]  ;;  %v1027_v2 = vmov 0.0   ;;  %vm370_vm2 = vcmask 24576   ;;  %v408_v4 = vld [vmem:[%s1371_s3] sm:$0x7] }
  0x1f   : > { %964 = vmatpush3.msk.msra.mxu0 %vm691_vm0, %v664_v0  ;;  %s1378_s25 = smov (!%p298_p0, %s1074_s25), 1  ;;  %368 = vst.msk [vmem:[#allocation2] sm:$0xff] %vm367_vm1, %v1027_v2  ;;  %369 = vst.msk [vmem:[#allocation2 + $0x8] sm:$0xff] %vm367_vm1, %v1027_v2  ;;  %978 = vmatpush3.msk.msra.mxu1 %vm691_vm0, %v664_v0  ;;  %v420_v3 = vshrl.u32 %v419_v1, 7  ;;  %v409_v49 = vld [vmem:[%s1371_s3 + $0x4] sm:$0x7] }
  0x20   : > { %372 = vst.msk [vmem:[#allocation2 + $0x18] sm:$0xff] %vm367_vm1, %v1027_v2  ;;  %373 = vst.msk [vmem:[#allocation2 + $0x20] sm:$0xff] %vm367_vm1, %v1027_v2  ;;  %s1144_s14 = sshll.u32 %s1378_s25, 6 }
  0x21   : > { %375 = vst.msk [vmem:[#allocation2 + $0x30] sm:$0xff] %vm367_vm1, %v1027_v2  ;;  %376 = vst.msk [vmem:[#allocation2 + $0x38] sm:$0xff] %vm367_vm1, %v1027_v2  ;;  %s1150_s17 = scalar_lea.vmem %s1369_s1, %s1144_s14  ;;  %s1156_s20 = scalar_lea.vmem %s1370_s2, %s1144_s14  ;;  %v1161_v5 = vsub.s32 0, %v420_v3  ;;  %v1163_v6 = vsub.s32 1, %v420_v3  ;;  %v1165_v7 = vsub.s32 2, %v420_v3 }
  0x22   : > { %378 = vst.msk [vmem:[#allocation2 + $0x48] sm:$0xff] %vm367_vm1, %v1027_v2  ;;  %379 = vst.msk [vmem:[#allocation2 + $0x50] sm:$0xff] %vm367_vm1, %v1027_v2  ;;  %v313_v8 = vld [vmem:[%s1150_s17] sm:$0xff]  ;;  %v314_v9 = vld [vmem:[%s1150_s17 + $0x8] sm:$0xff] }
  0x23   : > { %381 = vst.msk [vmem:[#allocation2 + $0x60] sm:$0xff] %vm367_vm1, %v1027_v2  ;;  %382 = vst.msk [vmem:[#allocation2 + $0x68] sm:$0xff] %vm367_vm1, %v1027_v2  ;;  %v322_v10 = vstv %s1100_s11  ;;  %v331_v11 = vld [vmem:[%s1156_s20] sm:$0xff]  ;;  %v332_v14 = vld [vmem:[%s1156_s20 + $0x8] sm:$0xff]  ;;  %v1174_v18 = vrot.slane %v408_v4, %v1161_v5  ;;  %v1177_v19 = vrot.slane %v408_v4, %v1163_v6  ;;  %v1183_v25 = vrot.slane %v408_v4, %v1165_v7  ;;  %s1347_s11 = scalar_lea.vmem %s1375_s7, %s1144_s14 }
  0x24   : > { %384 = vst.msk [vmem:[#allocation2 + $0x78] sm:$0xff] %vm367_vm1, %v1027_v2  ;;  %385 = vst.msk [vmem:[#allocation2 + $0x80] sm:$0xff] %vm367_vm1, %v1027_v2  ;;  %v323_v12 = vmul.f32 %v322_v10, %v313_v8  ;;  %v324_v13 = vmul.f32 %v322_v10, %v314_v9  ;;  %v340_v15 = vstv %s1104_s12  ;;  %v315_v20 = vld [vmem:[%s1150_s17 + $0x10] sm:$0xff]  ;;  %v358_v22 = vstv %s1106_s13  ;;  %v316_v26 = vld [vmem:[%s1150_s17 + $0x18] sm:$0xff] }
  0x25   : > { %387 = vst.msk [vmem:[#allocation2 + $0x90] sm:$0xff] %vm367_vm1, %v1027_v2  ;;  %388 = vst.msk [vmem:[#allocation2 + $0x98] sm:$0xff] %vm367_vm1, %v1027_v2  ;;  %v341_v16 = vmul.f32 %v340_v15, %v331_v11  ;;  %v342_v17 = vmul.f32 %v340_v15, %v332_v14  ;;  %v333_v21 = vld [vmem:[%s1156_s20 + $0x10] sm:$0xff]  ;;  %v317_v32 = vld [vmem:[%s1150_s17 + $0x20] sm:$0xff]  ;;  %v325_v40 = vmul.f32 %v322_v10, %v315_v20 }
  0x26   : > { %390 = vst.msk [vmem:[#allocation2 + $0xa8] sm:$0xff] %vm367_vm1, %v1027_v2  ;;  %391 = vst.msk [vmem:[#allocation2 + $0xb0] sm:$0xff] %vm367_vm1, %v1027_v2  ;;  %v411_v23 = vld [vmem:[#allocation2 + $0x7] sm:$0xff]  ;;  %v334_v34 = vld [vmem:[%s1156_s20 + $0x18] sm:$0xff]  ;;  %v343_v44 = vmul.f32 %v340_v15, %v333_v21  ;;  %v326_v45 = vmul.f32 %v322_v10, %v316_v26  ;;  %v327_v46 = vmul.f32 %v322_v10, %v317_v32 }
  0x27   : > { %393 = vst.msk [vmem:[#allocation2 + $0xc0] sm:$0xff] %vm367_vm1, %v1027_v2  ;;  %394 = vst.msk [vmem:[#allocation2 + $0xc8] sm:$0xff] %vm367_vm1, %v1027_v2  ;;  %v439_v24 = vld [vmem:[#allocation2 + $0x8] sm:$0xff]  ;;  %v349_v27 = vadd.f32 %v341_v16, %v323_v12  ;;  %v350_v28 = vadd.f32 %v342_v17, %v324_v13  ;;  %v423_v29 = vmul.f32 %v1174_v18, %v411_v23  ;;  %v335_v35 = vld [vmem:[%s1156_s20 + $0x20] sm:$0xff] }
  0x28   : > { %396 = vst.msk [vmem:[#allocation2 + $0xd8] sm:$0xff] %vm367_vm1, %v1027_v2  ;;  %397 = vst.msk [vmem:[#allocation2 + $0xe0] sm:$0xff] %vm367_vm1, %v1027_v2  ;;  %v451_v30 = vmul.f32 %v1177_v19, %v439_v24  ;;  %v318_v33 = vld [vmem:[%s1150_s17 + $0x28] sm:$0xff]  ;;  %v319_v41 = vld [vmem:[%s1150_s17 + $0x30] sm:$0xff]  ;;  %v344_v51 = vmul.f32 %v340_v15, %v334_v34  ;;  %v345_v52 = vmul.f32 %v340_v15, %v335_v35 }
  0x29   : > { %371 = vst.msk [vmem:[#allocation2 + $0x10] sm:$0x1] %vm370_vm2, %v1027_v2  ;;  %374 = vst.msk [vmem:[#allocation2 + $0x28] sm:$0x1] %vm370_vm2, %v1027_v2  ;;  %v336_v36 = vld [vmem:[%s1156_s20 + $0x28] sm:$0xff]  ;;  %v359_v37 = vmul.f32 %v358_v22, %v349_v27  ;;  %v360_v38 = vmul.f32 %v358_v22, %v350_v28  ;;  %v337_v42 = vld [vmem:[%s1156_s20 + $0x30] sm:$0xff]  ;;  %v328_v47 = vmul.f32 %v322_v10, %v318_v33 }
  0x2a   : > { %377 = vst.msk [vmem:[#allocation2 + $0x40] sm:$0x1] %vm370_vm2, %v1027_v2  ;;  %380 = vst.msk [vmem:[#allocation2 + $0x58] sm:$0x1] %vm370_vm2, %v1027_v2  ;;  %v320_v43 = vld [vmem:[%s1150_s17 + $0x38] sm:$0xff]  ;;  %v459_v50 = vadd.f32 %v451_v30, %v423_v29  ;;  %v346_v53 = vmul.f32 %v340_v15, %v336_v36  ;;  %v351_v54 = vadd.f32 %v343_v44, %v325_v40 }
  0x2b   : > { %383 = vst.msk [vmem:[#allocation2 + $0x70] sm:$0x1] %vm370_vm2, %v1027_v2  ;;  %386 = vst.msk [vmem:[#allocation2 + $0x88] sm:$0x1] %vm370_vm2, %v1027_v2  ;;  %v338_v48 = vld [vmem:[%s1156_s20 + $0x38] sm:$0xff]  ;;  %v329_v55 = vmul.f32 %v322_v10, %v319_v41  ;;  %v347_v56 = vmul.f32 %v340_v15, %v337_v42  ;;  %v330_v57 = vmul.f32 %v322_v10, %v320_v43 }
  0x2c   : > { %389 = vst.msk [vmem:[#allocation2 + $0xa0] sm:$0x1] %vm370_vm2, %v1027_v2  ;;  %392 = vst.msk [vmem:[#allocation2 + $0xb8] sm:$0x1] %vm370_vm2, %v1027_v2  ;;  %v352_v58 = vadd.f32 %v344_v51, %v326_v45  ;;  %v353_v59 = vadd.f32 %v345_v52, %v327_v46  ;;  %v354_v60 = vadd.f32 %v346_v53, %v328_v47 }
  0x2d   : > { %395 = vst.msk [vmem:[#allocation2 + $0xd0] sm:$0x1] %vm370_vm2, %v1027_v2  ;;  %398 = vst.msk [vmem:[#allocation2 + $0xe8] sm:$0x1] %vm370_vm2, %v1027_v2  ;;  %v348_v61 = vmul.f32 %v340_v15, %v338_v48  ;;  %v1204_v62 = vrot.slane %v409_v49, %v1161_v5  ;;  %v1207_v63 = vrot.slane %v409_v49, %v1163_v6  ;;  %v410_v2 = vld [vmem:[%s1371_s3 + $0x8] sm:$0x7] }
  0x2e   : > { %400 = vst.msk [vmem:[#allocation2 + $0x20] sm:$0xff] %vm367_vm1, %v359_v37  ;;  %401 = vst.msk [vmem:[#allocation2 + $0x38] sm:$0xff] %vm367_vm1, %v360_v38  ;;  %v361_v0 = vmul.f32 %v358_v22, %v351_v54  ;;  %v355_v1 = vadd.f32 %v347_v56, %v329_v55  ;;  %v362_v3 = vmul.f32 %v358_v22, %v352_v58 }
  0x2f   : > { %v363_v4 = vmul.f32 %v358_v22, %v353_v59  ;;  %v364_v8 = vmul.f32 %v358_v22, %v354_v60  ;;  %v356_v9 = vadd.f32 %v348_v61, %v330_v57  ;;  %v1214_v12 = vrot.slane %v409_v49, %v1165_v7 }
  0x30   : > { %v467_v31 = vld [vmem:[#allocation2 + $0x9] sm:$0xff]  ;;  %402 = vst.msk [vmem:[#allocation2 + $0x50] sm:$0xff] %vm367_vm1, %v361_v0  ;;  %v365_v10 = vmul.f32 %v358_v22, %v355_v1  ;;  %403 = vst.msk [vmem:[#allocation2 + $0x68] sm:$0xff] %vm367_vm1, %v362_v3  ;;  %v1220_v17 = vrot.slane %v410_v2, %v1161_v5  ;;  %v1223_v20 = vrot.slane %v410_v2, %v1163_v6 }
  0x31   : > { %v479_v39 = vmul.f32 %v1183_v25, %v467_v31  ;;  %404 = vst.msk [vmem:[#allocation2 + $0x80] sm:$0xff] %vm367_vm1, %v363_v4  ;;  %405 = vst.msk [vmem:[#allocation2 + $0x98] sm:$0xff] %vm367_vm1, %v364_v8  ;;  %v366_v13 = vmul.f32 %v358_v22, %v356_v9  ;;  %v1229_v26 = vrot.slane %v410_v2, %v1165_v7 }
  0x32   : > { %406 = vst.msk [vmem:[#allocation2 + $0xb0] sm:$0xff] %vm367_vm1, %v365_v10 }
  0x33   : > { %v487_v11 = vadd.f32 %v479_v39, %v459_v50  ;;  %407 = vst.msk [vmem:[#allocation2 + $0xc8] sm:$0xff] %vm367_vm1, %v366_v13 }
  0x35   : > { %v495_v14 = vld [vmem:[#allocation2 + $0x1f] sm:$0xff]  ;;  %v580_v24 = vld [vmem:[#allocation2 + $0x37] sm:$0xff] }
  0x36   : > { %v523_v15 = vld [vmem:[#allocation2 + $0x20] sm:$0xff]  ;;  %v507_v21 = vmul.f32 %v1204_v62, %v495_v14  ;;  %v424_v22 = vmul.f32 %v495_v14, %v1174_v18  ;;  %v608_v29 = vld [vmem:[#allocation2 + $0x38] sm:$0xff]  ;;  %v508_v32 = vmul.f32 %v580_v24, %v1204_v62  ;;  %v592_v7 = vmul.f32 %v1220_v17, %v580_v24 }
  0x37   : > { %v551_v16 = vld [vmem:[#allocation2 + $0x21] sm:$0xff]  ;;  %v535_v23 = vmul.f32 %v1207_v63, %v523_v15  ;;  %v452_v5 = vmul.f32 %v523_v15, %v1177_v19  ;;  %v636_v30 = vld [vmem:[#allocation2 + $0x39] sm:$0xff]  ;;  %v620_v34 = vmul.f32 %v1223_v20, %v608_v29  ;;  %v536_v37 = vmul.f32 %v608_v29, %v1207_v63  ;;  %v1246_v41 = vld [vmem:[#allocation2 + $0x69] sm:$0xff] }
  0x38   : > { %v515_v27 = vadd.f32 %v507_v21, %v487_v11  ;;  %v563_v6 = vmul.f32 %v1214_v12, %v551_v16  ;;  %v480_v28 = vmul.f32 %v551_v16, %v1183_v25  ;;  %v648_v35 = vmul.f32 %v1229_v26, %v636_v30  ;;  %v1242_v39 = vld [vmem:[#allocation2 + $0x67] sm:$0xff]  ;;  %v581_v44 = vld [vmem:[#allocation2 + $0x4f] sm:$0xff]  ;;  %v1255_v48 = vld [vmem:[#allocation2 + $0x7f] sm:$0xff] }
  0x39   : > { %v460_v31 = vadd.f32 %v452_v5, %v424_v22  ;;  %v564_v38 = vmul.f32 %v636_v30, %v1214_v12  ;;  %v1244_v40 = vld [vmem:[#allocation2 + $0x68] sm:$0xff]  ;;  %v425_v42 = vmul.f32 %v580_v24, %v1174_v18  ;;  %v427_v45 = vmul.f32 %v1174_v18, %v1242_v39  ;;  %v1257_v49 = vld [vmem:[#allocation2 + $0x80] sm:$0xff]  ;;  %v609_v52 = vld [vmem:[#allocation2 + $0x50] sm:$0xff] }
  0x3a   : > { %v543_v33 = vadd.f32 %v535_v23, %v515_v27  ;;  %v455_v46 = vmul.f32 %v1177_v19, %v1244_v40  ;;  %v483_v47 = vmul.f32 %v1183_v25, %v1246_v41  ;;  %v593_v51 = vmul.f32 %v1220_v17, %v581_v44  ;;  %v1260_v53 = vld [vmem:[#allocation2 + $0x81] sm:$0xff]  ;;  %v637_v58 = vld [vmem:[#allocation2 + $0x51] sm:$0xff]  ;;  %v640_v27 = vld [vmem:[#allocation2 + $0x99] sm:$0xff] }
  0x3b   : > { %v488_v36 = vadd.f32 %v480_v28, %v460_v31  ;;  %v453_v54 = vmul.f32 %v608_v29, %v1177_v19  ;;  %v481_v55 = vmul.f32 %v636_v30, %v1183_v25  ;;  %v621_v57 = vmul.f32 %v1223_v20, %v609_v52  ;;  %v584_v61 = vld [vmem:[#allocation2 + $0x97] sm:$0xff] }
  0x3c   : > { %v571_v43 = vadd.f32 %v563_v6, %v543_v33  ;;  %v463_v59 = vadd.f32 %v455_v46, %v427_v45  ;;  %v511_v60 = vmul.f32 %v1204_v62, %v1255_v48  ;;  %v649_v1 = vmul.f32 %v1229_v26, %v637_v58  ;;  %v612_v14 = vld [vmem:[#allocation2 + $0x98] sm:$0xff] }
  0x3d   : > { %v516_v50 = vadd.f32 %v508_v32, %v488_v36  ;;  %v428_v2 = vmul.f32 %v1255_v48, %v1174_v18  ;;  %v456_v3 = vmul.f32 %v1257_v49, %v1177_v19  ;;  %v539_v9 = vmul.f32 %v1207_v63, %v1257_v49 }
  0x3e   : > { %v600_v56 = vadd.f32 %v592_v7, %v571_v43  ;;  %v491_v8 = vadd.f32 %v483_v47, %v463_v59  ;;  %v484_v10 = vmul.f32 %v1260_v53, %v1183_v25  ;;  %v567_v13 = vmul.f32 %v1214_v12, %v1260_v53 }
  0x3f   : > { %v544_v0 = vadd.f32 %v536_v37, %v516_v50  ;;  %v464_v15 = vadd.f32 %v456_v3, %v428_v2  ;;  %v512_v16 = vmul.f32 %v584_v61, %v1204_v62  ;;  %v596_v24 = vmul.f32 %v1220_v17, %v584_v61  ;;  %v613_v50 = vld [vmem:[#allocation2 + $0xb0] sm:$0xff] }
  0x40   : > { %v628_v4 = vadd.f32 %v620_v34, %v600_v56  ;;  %v519_v23 = vadd.f32 %v511_v60, %v491_v8  ;;  %v624_v22 = vmul.f32 %v1223_v20, %v612_v14  ;;  %v540_v28 = vmul.f32 %v612_v14, %v1207_v63 }
  0x41   : > { %v572_v11 = vadd.f32 %v564_v38, %v544_v0  ;;  %v492_v6 = vadd.f32 %v484_v10, %v464_v15  ;;  %v461_v29 = vadd.f32 %v453_v54, %v425_v42  ;;  %v652_v31 = vmul.f32 %v1229_v26, %v640_v27  ;;  %v641_v0 = vld [vmem:[#allocation2 + $0xb1] sm:$0xff] }
  0x42   : > { %v656_v21 = vadd.f32 %v648_v35, %v628_v4  ;;  %v547_v30 = vadd.f32 %v539_v9, %v519_v23  ;;  %v568_v32 = vmul.f32 %v640_v27, %v1214_v12  ;;  %v509_v33 = vmul.f32 %v581_v44, %v1204_v62  ;;  %v585_v35 = vld [vmem:[#allocation2 + $0xaf] sm:$0xff] }
  0x43   : > { %v601_v5 = vadd.f32 %v593_v51, %v572_v11  ;;  %v520_v34 = vadd.f32 %v512_v16, %v492_v6  ;;  %v489_v36 = vadd.f32 %v481_v55, %v461_v29  ;;  %v537_v37 = vmul.f32 %v609_v52, %v1207_v63 }
  0x44   : > { %965 = vmatprep.mubr.msk.f32.mxu0 %vm367_vm1, %v656_v21  ;;  %v575_v38 = vadd.f32 %v567_v13, %v547_v30  ;;  %v597_v43 = vmul.f32 %v1220_v17, %v585_v35  ;;  %v565_v42 = vmul.f32 %v637_v58, %v1214_v12  ;;  %v426_v45 = vmul.f32 %v581_v44, %v1174_v18 }
  0x45   : > { %v629_v7 = vadd.f32 %v621_v57, %v601_v5  ;;  %v548_v47 = vadd.f32 %v540_v28, %v520_v34  ;;  %v517_v51 = vadd.f32 %v509_v33, %v489_v36  ;;  %v454_v54 = vmul.f32 %v609_v52, %v1177_v19  ;;  %v614_v34 = vld [vmem:[#allocation2 + $0xc8] sm:$0xff] }
  0x46   : > { %v604_v56 = vadd.f32 %v596_v24, %v575_v38  ;;  %v625_v57 = vmul.f32 %v1223_v20, %v613_v50  ;;  %v594_v55 = vmul.f32 %v1220_v17, %v1242_v39  ;;  %v482_v59 = vmul.f32 %v637_v58, %v1183_v25 }
  0x47   : > { %v657_v46 = vadd.f32 %v649_v1, %v629_v7  ;;  %v576_v60 = vadd.f32 %v568_v32, %v548_v47  ;;  %v545_v2 = vadd.f32 %v537_v37, %v517_v51  ;;  %v462_v44 = vadd.f32 %v454_v54, %v426_v45  ;;  %v587_v47 = vld [vmem:[#allocation2 + $0xdf] sm:$0xff] }
  0x48   : > { %v510_v1 = vmul.f32 %v1204_v62, %v1242_v39  ;;  %v632_v3 = vadd.f32 %v624_v22, %v604_v56  ;;  %v653_v52 = vmul.f32 %v1229_v26, %v641_v0  ;;  %v622_v4 = vmul.f32 %v1223_v20, %v1244_v40 }
  0x49   : > { %966 = vmatmul.mubr.msk.f32.vlgmr.msra.gmra.mrb[0].mxu0 %vm367_vm1, %v657_v46  ;;  %v538_v8 = vmul.f32 %v1207_v63, %v1244_v40  ;;  %v605_v9 = vadd.f32 %v597_v43, %v576_v60  ;;  %v573_v58 = vadd.f32 %v565_v42, %v545_v2  ;;  %v490_v10 = vadd.f32 %v482_v59, %v462_v44 }
  0x4a   : > { %v429_v11 = vmul.f32 %v584_v61, %v1174_v18  ;;  %v660_v13 = vadd.f32 %v652_v31, %v632_v3  ;;  %v650_v15 = vmul.f32 %v1229_v26, %v1246_v41  ;;  %v457_v39 = vmul.f32 %v612_v14, %v1177_v19 }
  0x4b   : > { %v485_v16 = vmul.f32 %v640_v27, %v1183_v25  ;;  %v633_v21 = vadd.f32 %v625_v57, %v605_v9  ;;  %v602_v23 = vadd.f32 %v594_v55, %v573_v58  ;;  %v518_v24 = vadd.f32 %v510_v1, %v490_v10  ;;  %v586_v27 = vld [vmem:[#allocation2 + $0xc7] sm:$0xff] }
  0x4c   : > { %v566_v22 = vmul.f32 %v1214_v12, %v1246_v41  ;;  %971 = vmatprep.mubr.msk.f32.mxu1 %vm367_vm1, %v660_v13  ;;  %v595_v40 = vmul.f32 %v1220_v17, %v1255_v48  ;;  %v465_v61 = vadd.f32 %v457_v39, %v429_v11  ;;  %v513_v5 = vmul.f32 %v585_v35, %v1204_v62  ;;  %v615_v57 = vld [vmem:[#allocation2 + $0xe0] sm:$0xff] }
  0x4d   : > { %v661_v6 = vadd.f32 %v653_v52, %v633_v21  ;;  %v630_v28 = vadd.f32 %v622_v4, %v602_v23  ;;  %v546_v29 = vadd.f32 %v538_v8, %v518_v24  ;;  %v541_v14 = vmul.f32 %v613_v50, %v1207_v63  ;;  %v948_v8 = vld [vmem:[%s1374_s6] ss:$0 sm:$0xff] }
  0x4e   : > { %v493_v30 = vadd.f32 %v485_v16, %v465_v61  ;;  %v430_v31 = vmul.f32 %v585_v35, %v1174_v18  ;;  %v458_v32 = vmul.f32 %v613_v50, %v1177_v19  ;;  %v486_v41 = vmul.f32 %v641_v0, %v1183_v25  ;;  %v642_v25 = vld [vmem:[#allocation2 + $0xc9] sm:$0xff] }
  0x4f   : > { %972 = vmatmul.mubr.msk.f32.vlgmr.msra.gmra.mrb[0].mxu1 %vm367_vm1, %v661_v6  ;;  %v658_v33 = vadd.f32 %v650_v15, %v630_v28  ;;  %v574_v48 = vadd.f32 %v566_v22, %v546_v29  ;;  %v623_v7 = vmul.f32 %v1223_v20, %v1257_v49  ;;  %v569_v37 = vmul.f32 %v641_v0, %v1214_v12  ;;  %v643_v0 = vld [vmem:[#allocation2 + $0xe1] sm:$0xff] }
  0x50   : > { %v521_v36 = vadd.f32 %v513_v5, %v493_v30  ;;  %v466_v38 = vadd.f32 %v458_v32, %v430_v31  ;;  %v514_v43 = vmul.f32 %v586_v27, %v1204_v62  ;;  %v651_v19 = vmul.f32 %v1229_v26, %v1260_v53 }
  0x51   : > { %968 = vmatprep.mubr.msk.f32.mxu0 %vm367_vm1, %v658_v33  ;;  %v603_v18 = vadd.f32 %v595_v40, %v574_v48  ;;  %v598_v42 = vmul.f32 %v1220_v17, %v586_v27  ;;  %v542_v49 = vmul.f32 %v614_v34, %v1207_v63  ;;  %v626_v51 = vmul.f32 %v1223_v20, %v614_v34 }
  0x52   : > { %v549_v35 = vadd.f32 %v541_v14, %v521_v36  ;;  %v494_v45 = vadd.f32 %v486_v41, %v466_v38  ;;  %v570_v62 = vmul.f32 %v642_v25, %v1214_v12  ;;  %v654_v53 = vmul.f32 %v1229_v26, %v642_v25 }
  0x53   : > { %v631_v46 = vadd.f32 %v623_v7, %v603_v18  ;;  %v599_v60 = vmul.f32 %v1220_v17, %v587_v47  ;;  %v627_v44 = vmul.f32 %v1223_v20, %v615_v57  ;;  %v655_v12 = vmul.f32 %v1229_v26, %v643_v0  ;;  %v947_v17 = vld [vmem:[%s1373_s5] ss:$0 sm:$0xff] }
  0x54   : > { %v577_v50 = vadd.f32 %v569_v37, %v549_v35  ;;  %v522_v54 = vadd.f32 %v514_v43, %v494_v45 }
  0x55   : > { %v659_v56 = vadd.f32 %v651_v19, %v631_v46 }
  0x56   : > { %v606_v55 = vadd.f32 %v598_v42, %v577_v50  ;;  %v550_v59 = vadd.f32 %v542_v49, %v522_v54 }
  0x57   : > { %969 = vmatmul.mubr.msk.f32.gmra.mrb[2].mxu0 %vm367_vm1, %v659_v56 }
  0x58   : > { %v634_v63 = vadd.f32 %v626_v51, %v606_v55  ;;  %v578_v2 = vadd.f32 %v570_v62, %v550_v59 }
  0x5a   : > { %v662_v1 = vadd.f32 %v654_v53, %v634_v63  ;;  %v607_v3 = vadd.f32 %v599_v60, %v578_v2 }
  0x5c   : > { %974 = vmatprep.mubr.msk.f32.mxu1 %vm367_vm1, %v662_v1  ;;  %v635_v52 = vadd.f32 %v627_v44, %v607_v3 }
  0x5e   : > { %v663_v4 = vadd.f32 %v655_v12, %v635_v52 }
  0x60   : > { %975 = vmatmul.mubr.msk.f32.gmra.mrb[2].mxu1 %vm367_vm1, %v663_v4 }
 0x11c   : > { %v967_v9 = vpop.f32.mrb[0].mxu0 }
 0x11d   : > { %v807_v20 = vmul.f32 %v967_v9, %v947_v17  ;;  %v761_v58 = vpop.f32.mrb[1].mxu0 }
 0x11e   : > { %v806_v10 = vmul.f32 %v947_v17, %v761_v58 }
 0x11f   : > { %v821_v11 = vadd.f32 %v948_v8, %v807_v20 }
 0x120   : > { %v820_v26 = vadd.f32 %v948_v8, %v806_v10 }
 0x121   : > { %v829_v13 = vmax.f32 %v821_v11, 0.0 }
 0x122   : > { %v828_v15 = vmax.f32 %v820_v26, 0.0  ;;  %v973_v39 = vpop.f32.mrb[0].mxu1 }
 0x123   : > { %837 = vst.msk [vmem:[%s1347_s11 + $0x8] sm:$0xff] %vm367_vm1, %v829_v13  ;;  %v811_v16 = vmul.f32 %v973_v39, %v947_v17  ;;  %v781_v21 = vpop.f32.mrb[1].mxu1 }
 0x124   : > { %836 = vst.msk [vmem:[%s1347_s11] sm:$0xff] %vm367_vm1, %v828_v15  ;;  %v810_v23 = vmul.f32 %v947_v17, %v781_v21 }
 0x125   : > { %v825_v24 = vadd.f32 %v948_v8, %v811_v16 }
 0x126   : > { %v824_v22 = vadd.f32 %v948_v8, %v810_v23 }
 0x127   : > { %v833_v40 = vmax.f32 %v825_v24, 0.0 }
 0x128   : > { %v832_v61 = vmax.f32 %v824_v22, 0.0 }
 0x129   : > { %841 = vst.msk [vmem:[%s1347_s11 + $0x28] sm:$0xff] %vm367_vm1, %v833_v40 }
 0x12a   : > { %840 = vst.msk [vmem:[%s1347_s11 + $0x20] sm:$0xff] %vm367_vm1, %v832_v61  ;;  %v970_v5 = vpop.f32.mrb[2].mxu0 }
 0x12b   : > { %v809_v6 = vmul.f32 %v970_v5, %v947_v17  ;;  %v771_v28 = vpop.f32.mrb[3].mxu0 }
 0x12c   : > { %v808_v29 = vmul.f32 %v947_v17, %v771_v28 }
 0x12d   : > { %v823_v14 = vadd.f32 %v948_v8, %v809_v6 }
 0x12e   : > { %v822_v27 = vadd.f32 %v948_v8, %v808_v29 }
 0x12f   : > { %v831_v30 = vmax.f32 %v823_v14, 0.0 }
 0x130   : > { %v830_v31 = vmax.f32 %v822_v27, 0.0 }
 0x131   : > { %839 = vst.msk [vmem:[%s1347_s11 + $0x18] sm:$0xff] %vm367_vm1, %v831_v30 }
 0x132   : > { %838 = vst.msk [vmem:[%s1347_s11 + $0x10] sm:$0xff] %vm367_vm1, %v830_v31 }
 0x133   : > { %v976_v32 = vpop.f32.mrb[2].mxu1 }
 0x134   : > { %v813_v41 = vmul.f32 %v976_v32, %v947_v17  ;;  %v791_v33 = vpop.f32.mrb[3].mxu1 }
 0x135   : > { %v812_v48 = vmul.f32 %v947_v17, %v791_v33 }
 0x136   : > { %v827_v7 = vadd.f32 %v948_v8, %v813_v41 }
 0x137   : > { %v826_v34 = vadd.f32 %v948_v8, %v812_v48 }
 0x138   : > { %v835_v36 = vmax.f32 %v827_v7, 0.0 }
 0x139   : > { %v834_v37 = vmax.f32 %v826_v34, 0.0 }
 0x13a   : > { %843 = vst.msk [vmem:[%s1347_s11 + $0x38] sm:$0xff] %vm367_vm1, %v835_v36 }
 0x13b   : > { %842 = vst.msk [vmem:[%s1347_s11 + $0x30] sm:$0xff] %vm367_vm1, %v834_v37 }
 0x13c PF: > { %s18_s24 = sadd.s32 1, %s1024_s24  }
 0x13d   : > { %p15_p1 = scmp.ge.s32.totalorder %s18_s24, 4  }
 0x13f   :  { %17 = sbr.rel (!%p15_p1) target bundleno = 1 (0x1), region = 88 }
 0x146   :  { %865 = vsyncpa [#allocation4], 1 }
 0x147   :  { %867 = vsyncpa [#allocation4 + $0x1], 1 }

// kernel: bifpn_forward.13
= control target key start
LH: loop header
LB: loop body
LE: loop exit
PB: predicated region body
PF: predicated region fallthrough
CT: control target
= control target key end

     0   :  { %13 = vsyncpa [#allocation4], 0  ;;  %s1162_s27 = smov 0   ;;  %s1519_s0 = inlined_call_operand.vmem [shape: f32[4], index: 0, kind: input, shape index: {}]   ;;  %s1520_s1 = inlined_call_operand.vmem [shape: f32[2,8,8,4], index: 1, kind: input, shape index: {}]   ;;  %s1521_s2 = inlined_call_operand.vmem [shape: f32[2,8,8,4], index: 2, kind: input, shape index: {}]   ;;  %s1522_s3 = inlined_call_operand.vmem [shape: f32[2,8,8,4], index: 3, kind: input, shape index: {}]   ;;  %s1523_s4 = inlined_call_operand.vmem [shape: f32[3,3,4], index: 4, kind: input, shape index: {}]   ;;  %s1524_s5 = inlined_call_operand.vmem [shape: f32[4,4], index: 5, kind: input, shape index: {}]   ;;  %s1525_s6 = inlined_call_operand.vmem [shape: f32[1,4], index: 6, kind: input, shape index: {}]   ;;  %s1526_s7 = inlined_call_operand.vmem [shape: f32[1,4], index: 7, kind: input, shape index: {}]   ;;  %s1527_s8 = inlined_call_operand.vmem [shape: f32[2,8,8,4], index: 8, kind: output, shape index: {}]  }
   0x1 LB: > { %s1168_s28 = sadd.s32 4294967295, %s1113_s27   ;;  %p1010_p0 = scmp.ge.s32.totalorder %s1113_s27, 1  ;;  %s1113_s27 = sphi %s1162_s27, %s19_s27  }
   0x2   : > { %p233_p1 = scmp.lt.s32.totalorder %s1113_s27, 3  ;;  %s246_s9 = sshll.u32 %s1519_s0, 4  ;;  %s247_s9 = int_to_ptr.vmem [resolvable:$true] %s246_s9 }
   0x3   : > { %p1076_p3 = scmp.eq.s32.totalorder %s1168_s28, 0  ;;  %s1088_s11 = scalar_lea.vmem %s247_s9, 16 }
   0x4   : > { %p1175_p2 = pnand %p1010_p0, %p233_p1  ;;  %p1089_p6 = scmp.ne.s32.totalorder %s247_s9, %s1088_s11 }
   0x5   : > { %p1096_p10 = scmp.lt.s32.totalorder %s247_s9, %s247_s9  ;;  %p1097_p11 = scmp.lt.s32.totalorder %s1088_s11, %s1088_s11 }
   0x6   : > { %p1072_p4 = pneg %p1175_p2 }
   0x7   : > { %p1098_p12 = por %p1097_p11, %p1096_p10 }
   0x8   : > { %p1073_p5 = pnand %p1076_p3, %p1072_p4 }
   0xa   : > { %p1090_p7 = pneg %p1073_p5 }
   0xc   : > { %p1091_p8 = pnand %p1090_p7, %p1089_p6 }
   0xe   : > { %p1092_p9 = pneg %p1091_p8 }
  0x10   : > { %p1099_p13 = pnand %p1098_p12, %p1092_p9 }
  0x12   : > { %1102 = shalt.err (!%p1099_p13)
}
  0x13   : > { %s1115_s12 = smov [#allocation3]   ;;  %295 = sbr.rel (%p1175_p2) target bundleno = 318 (0x13e), region = 52 }
  0x14   : > { %1075 = dma.vmem_to_smem (!%p1073_p5), %s247_s9, 16, %s1115_s12, [#allocation4]  }
  0x1a   : > { %1108 = dma.done.wait (%p1076_p3), [#allocation4], 16  }
  0x1b   : > { %1110 = vsyncadd (%p1076_p3), [#allocation4], 4294967280 }
  0x1c   : > { %301 = sfence }
  0x1d   : > { %v737_v0 = vld [vmem:[%s1524_s5] sm:$0xf]  ;;  %vm764_vm0 = vcmask 1043456   ;;  %p340_p0 = scmp.lt.s32.totalorder %s1168_s28, 1  ;;  %s1194_s15 = sld [smem:[#allocation3]]  ;;  %v492_v1 = vlaneseq  ;;  %vm440_vm1 = vcmask 31744  }
  0x1e   : > { %1052 = vmatprep.subr.msk.mxu0 %vm764_vm0, %v737_v0  ;;  %1066 = vmatprep.subr.msk.mxu1 %vm764_vm0, %v737_v0  ;;  %s1198_s16 = sld [smem:[#allocation3 + $0x1]]  ;;  %s1200_s17 = sld [smem:[#allocation3 + $0x2]]  ;;  %v1116_v2 = vmov 0.0   ;;  %vm443_vm2 = vcmask 24576   ;;  %v481_v4 = vld [vmem:[%s1523_s4] sm:$0x7] }
  0x1f   : > { %1053 = vmatpush3.msk.msra.mxu0 %vm764_vm0, %v737_v0  ;;  %s1530_s28 = smov (!%p340_p0, %s1168_s28), 1  ;;  %441 = vst.msk [vmem:[#allocation2] sm:$0xff] %vm440_vm1, %v1116_v2  ;;  %442 = vst.msk [vmem:[#allocation2 + $0x8] sm:$0xff] %vm440_vm1, %v1116_v2  ;;  %1067 = vmatpush3.msk.msra.mxu1 %vm764_vm0, %v737_v0  ;;  %s1227_s18 = sld [smem:[#allocation3 + $0x3]]  ;;  %v493_v3 = vshrl.u32 %v492_v1, 7 }
  0x20   : > { %445 = vst.msk [vmem:[#allocation2 + $0x18] sm:$0xff] %vm440_vm1, %v1116_v2  ;;  %446 = vst.msk [vmem:[#allocation2 + $0x20] sm:$0xff] %vm440_vm1, %v1116_v2  ;;  %s1240_s19 = sshll.u32 %s1530_s28, 6  ;;  %v482_v25 = vld [vmem:[%s1523_s4 + $0x4] sm:$0x7] }
  0x21   : > { %448 = vst.msk [vmem:[#allocation2 + $0x30] sm:$0xff] %vm440_vm1, %v1116_v2  ;;  %449 = vst.msk [vmem:[#allocation2 + $0x38] sm:$0xff] %vm440_vm1, %v1116_v2  ;;  %s1249_s24 = scalar_lea.vmem %s1520_s1, %s1240_s19  ;;  %s1255_s29 = scalar_lea.vmem %s1521_s2, %s1240_s19  ;;  %v1257_v5 = vsub.s32 0, %v493_v3  ;;  %v1259_v6 = vsub.s32 1, %v493_v3  ;;  %v1261_v7 = vsub.s32 2, %v493_v3 }
  0x22   : > { %451 = vst.msk [vmem:[#allocation2 + $0x48] sm:$0xff] %vm440_vm1, %v1116_v2  ;;  %452 = vst.msk [vmem:[#allocation2 + $0x50] sm:$0xff] %vm440_vm1, %v1116_v2  ;;  %s1267_s9 = scalar_lea.vmem %s1522_s3, %s1240_s19  ;;  %v360_v8 = vld [vmem:[%s1249_s24] sm:$0xff]  ;;  %v361_v9 = vld [vmem:[%s1249_s24 + $0x8] sm:$0xff]  ;;  %s1498_s21 = scalar_lea.vmem %s1527_s8, %s1240_s19 }
  0x23   : > { %454 = vst.msk [vmem:[#allocation2 + $0x60] sm:$0xff] %vm440_vm1, %v1116_v2  ;;  %455 = vst.msk [vmem:[#allocation2 + $0x68] sm:$0xff] %vm440_vm1, %v1116_v2  ;;  %v1272_v10 = vstv %s1194_s15  ;;  %v378_v11 = vld [vmem:[%s1255_s29] sm:$0xff]  ;;  %v379_v14 = vld [vmem:[%s1255_s29 + $0x8] sm:$0xff]  ;;  %v1284_v18 = vrot.slane %v481_v4, %v1257_v5  ;;  %v1292_v22 = vrot.slane %v481_v4, %v1259_v6  ;;  %v1300_v28 = vrot.slane %v481_v4, %v1261_v7 }
  0x24   : > { %457 = vst.msk [vmem:[#allocation2 + $0x78] sm:$0xff] %vm440_vm1, %v1116_v2  ;;  %458 = vst.msk [vmem:[#allocation2 + $0x80] sm:$0xff] %vm440_vm1, %v1116_v2  ;;  %v370_v12 = vmul.f32 %v1272_v10, %v360_v8  ;;  %v371_v13 = vmul.f32 %v1272_v10, %v361_v9  ;;  %v1279_v15 = vstv %s1198_s16  ;;  %v404_v16 = vld [vmem:[%s1267_s9] sm:$0xff]  ;;  %v405_v17 = vld [vmem:[%s1267_s9 + $0x8] sm:$0xff]  ;;  %v1289_v21 = vstv %s1200_s17 }
  0x25   : > { %460 = vst.msk [vmem:[#allocation2 + $0x90] sm:$0xff] %vm440_vm1, %v1116_v2  ;;  %461 = vst.msk [vmem:[#allocation2 + $0x98] sm:$0xff] %vm440_vm1, %v1116_v2  ;;  %v388_v19 = vmul.f32 %v1279_v15, %v378_v11  ;;  %v389_v20 = vmul.f32 %v1279_v15, %v379_v14  ;;  %v414_v23 = vmul.f32 %v1289_v21, %v404_v16  ;;  %v362_v34 = vld [vmem:[%s1249_s24 + $0x10] sm:$0xff]  ;;  %v1307_v36 = vstv %s1227_s18  ;;  %v363_v38 = vld [vmem:[%s1249_s24 + $0x18] sm:$0xff] }
  0x26   : > { %463 = vst.msk [vmem:[#allocation2 + $0xa8] sm:$0xff] %vm440_vm1, %v1116_v2  ;;  %464 = vst.msk [vmem:[#allocation2 + $0xb0] sm:$0xff] %vm440_vm1, %v1116_v2  ;;  %v415_v24 = vmul.f32 %v1289_v21, %v405_v17  ;;  %v484_v26 = vld [vmem:[#allocation2 + $0x7] sm:$0xff]  ;;  %v380_v35 = vld [vmem:[%s1255_s29 + $0x10] sm:$0xff]  ;;  %v1313_v42 = vrot.slane %v482_v25, %v1257_v5  ;;  %v1319_v46 = vrot.slane %v482_v25, %v1259_v6 }
  0x27   : > { %466 = vst.msk [vmem:[#allocation2 + $0xc0] sm:$0xff] %vm440_vm1, %v1116_v2  ;;  %467 = vst.msk [vmem:[#allocation2 + $0xc8] sm:$0xff] %vm440_vm1, %v1116_v2  ;;  %v512_v27 = vld [vmem:[#allocation2 + $0x8] sm:$0xff]  ;;  %v396_v29 = vadd.f32 %v388_v19, %v370_v12  ;;  %v397_v30 = vadd.f32 %v389_v20, %v371_v13  ;;  %v496_v31 = vmul.f32 %v1284_v18, %v484_v26  ;;  %v406_v37 = vld [vmem:[%s1267_s9 + $0x10] sm:$0xff] }
  0x28   : > { %469 = vst.msk [vmem:[#allocation2 + $0xd8] sm:$0xff] %vm440_vm1, %v1116_v2  ;;  %470 = vst.msk [vmem:[#allocation2 + $0xe0] sm:$0xff] %vm440_vm1, %v1116_v2  ;;  %v524_v32 = vmul.f32 %v1292_v22, %v512_v27  ;;  %v364_v43 = vld [vmem:[%s1249_s24 + $0x20] sm:$0xff]  ;;  %v365_v44 = vld [vmem:[%s1249_s24 + $0x28] sm:$0xff]  ;;  %v1322_v47 = vrot.slane %v482_v25, %v1261_v7  ;;  %v372_v48 = vmul.f32 %v1272_v10, %v362_v34 }
  0x29   : > { %444 = vst.msk [vmem:[#allocation2 + $0x10] sm:$0x1] %vm443_vm2, %v1116_v2  ;;  %447 = vst.msk [vmem:[#allocation2 + $0x28] sm:$0x1] %vm443_vm2, %v1116_v2  ;;  %v422_v39 = vadd.f32 %v414_v23, %v396_v29  ;;  %v423_v40 = vadd.f32 %v415_v24, %v397_v30  ;;  %v381_v45 = vld [vmem:[%s1255_s29 + $0x18] sm:$0xff]  ;;  %v390_v49 = vmul.f32 %v1279_v15, %v380_v35  ;;  %v382_v50 = vld [vmem:[%s1255_s29 + $0x20] sm:$0xff] }
  0x2a   : > { %450 = vst.msk [vmem:[#allocation2 + $0x40] sm:$0x1] %vm443_vm2, %v1116_v2  ;;  %453 = vst.msk [vmem:[#allocation2 + $0x58] sm:$0x1] %vm443_vm2, %v1116_v2  ;;  %v383_v51 = vld [vmem:[%s1255_s29 + $0x28] sm:$0xff]  ;;  %v407_v52 = vld [vmem:[%s1267_s9 + $0x18] sm:$0xff]  ;;  %v532_v55 = vadd.f32 %v524_v32, %v496_v31  ;;  %v416_v56 = vmul.f32 %v1289_v21, %v406_v37  ;;  %v373_v61 = vmul.f32 %v1272_v10, %v363_v38 }
  0x2b   : > { %456 = vst.msk [vmem:[#allocation2 + $0x70] sm:$0x1] %vm443_vm2, %v1116_v2  ;;  %459 = vst.msk [vmem:[#allocation2 + $0x88] sm:$0x1] %vm443_vm2, %v1116_v2  ;;  %v432_v53 = vmul.f32 %v1307_v36, %v422_v39  ;;  %v433_v54 = vmul.f32 %v1307_v36, %v423_v40  ;;  %v408_v57 = vld [vmem:[%s1267_s9 + $0x20] sm:$0xff]  ;;  %v409_v58 = vld [vmem:[%s1267_s9 + $0x28] sm:$0xff]  ;;  %v398_v60 = vadd.f32 %v390_v49, %v372_v48 }
  0x2c   : > { %462 = vst.msk [vmem:[#allocation2 + $0xa0] sm:$0x1] %vm443_vm2, %v1116_v2  ;;  %465 = vst.msk [vmem:[#allocation2 + $0xb8] sm:$0x1] %vm443_vm2, %v1116_v2  ;;  %v366_v59 = vld [vmem:[%s1249_s24 + $0x30] sm:$0xff]  ;;  %v374_v62 = vmul.f32 %v1272_v10, %v364_v43  ;;  %v375_v63 = vmul.f32 %v1272_v10, %v365_v44  ;;  %v391_v1 = vmul.f32 %v1279_v15, %v381_v45  ;;  %v367_v9 = vld [vmem:[%s1249_s24 + $0x38] sm:$0xff] }
  0x2d   : > { %468 = vst.msk [vmem:[#allocation2 + $0xd0] sm:$0x1] %vm443_vm2, %v1116_v2  ;;  %471 = vst.msk [vmem:[#allocation2 + $0xe8] sm:$0x1] %vm443_vm2, %v1116_v2  ;;  %v384_v0 = vld [vmem:[%s1255_s29 + $0x30] sm:$0xff]  ;;  %v392_v2 = vmul.f32 %v1279_v15, %v382_v50  ;;  %v393_v3 = vmul.f32 %v1279_v15, %v383_v51  ;;  %v417_v4 = vmul.f32 %v1289_v21, %v407_v52  ;;  %v385_v11 = vld [vmem:[%s1255_s29 + $0x38] sm:$0xff] }
  0x2e   : > { %473 = vst.msk [vmem:[#allocation2 + $0x20] sm:$0xff] %vm440_vm1, %v432_v53  ;;  %474 = vst.msk [vmem:[#allocation2 + $0x38] sm:$0xff] %vm440_vm1, %v433_v54  ;;  %v410_v8 = vld [vmem:[%s1267_s9 + $0x30] sm:$0xff]  ;;  %v424_v12 = vadd.f32 %v416_v56, %v398_v60  ;;  %v418_v13 = vmul.f32 %v1289_v21, %v408_v57  ;;  %v419_v14 = vmul.f32 %v1289_v21, %v409_v58  ;;  %v483_v17 = vld [vmem:[%s1523_s4 + $0x8] sm:$0x7] }
  0x2f   : > { %v376_v16 = vmul.f32 %v1272_v10, %v366_v59  ;;  %v399_v19 = vadd.f32 %v391_v1, %v373_v61  ;;  %v400_v20 = vadd.f32 %v392_v2, %v374_v62  ;;  %v401_v23 = vadd.f32 %v393_v3, %v375_v63  ;;  %v411_v25 = vld [vmem:[%s1267_s9 + $0x38] sm:$0xff] }
  0x30   : > { %v540_v33 = vld [vmem:[#allocation2 + $0x9] sm:$0xff]  ;;  %v394_v24 = vmul.f32 %v1279_v15, %v384_v0  ;;  %v434_v26 = vmul.f32 %v1307_v36, %v424_v12  ;;  %v420_v27 = vmul.f32 %v1289_v21, %v410_v8  ;;  %v377_v29 = vmul.f32 %v1272_v10, %v367_v9 }
  0x31   : > { %v552_v41 = vmul.f32 %v1300_v28, %v540_v33  ;;  %v395_v30 = vmul.f32 %v1279_v15, %v385_v11  ;;  %v425_v31 = vadd.f32 %v417_v4, %v399_v19  ;;  %v426_v32 = vadd.f32 %v418_v13, %v400_v20 }
  0x32   : > { %v427_v33 = vadd.f32 %v419_v14, %v401_v23  ;;  %v402_v34 = vadd.f32 %v394_v24, %v376_v16  ;;  %v1361_v35 = vrot.slane %v483_v17, %v1257_v5  ;;  %v1364_v37 = vrot.slane %v483_v17, %v1259_v6  ;;  %475 = vst.msk [vmem:[#allocation2 + $0x50] sm:$0xff] %vm440_vm1, %v434_v26 }
  0x33   : > { %v403_v38 = vadd.f32 %v395_v30, %v377_v29  ;;  %v421_v39 = vmul.f32 %v1289_v21, %v411_v25  ;;  %v560_v40 = vadd.f32 %v552_v41, %v532_v55  ;;  %v435_v10 = vmul.f32 %v1307_v36, %v425_v31 }
  0x34   : > { %v436_v15 = vmul.f32 %v1307_v36, %v426_v32  ;;  %v437_v43 = vmul.f32 %v1307_v36, %v427_v33  ;;  %v1372_v5 = vrot.slane %v483_v17, %v1261_v7  ;;  %v428_v6 = vadd.f32 %v420_v27, %v402_v34 }
  0x35   : > { %v568_v44 = vld [vmem:[#allocation2 + $0x1f] sm:$0xff]  ;;  %v653_v51 = vld [vmem:[#allocation2 + $0x37] sm:$0xff]  ;;  %476 = vst.msk [vmem:[#allocation2 + $0x68] sm:$0xff] %vm440_vm1, %v435_v10  ;;  %v429_v41 = vadd.f32 %v421_v39, %v403_v38 }
  0x36   : > { %v596_v45 = vld [vmem:[#allocation2 + $0x20] sm:$0xff]  ;;  %v580_v49 = vmul.f32 %v1313_v42, %v568_v44  ;;  %v497_v21 = vmul.f32 %v568_v44, %v1284_v18  ;;  %477 = vst.msk [vmem:[#allocation2 + $0x80] sm:$0xff] %vm440_vm1, %v436_v15  ;;  %478 = vst.msk [vmem:[#allocation2 + $0x98] sm:$0xff] %vm440_vm1, %v437_v43  ;;  %v681_v53 = vld [vmem:[#allocation2 + $0x38] sm:$0xff]  ;;  %v665_v55 = vmul.f32 %v1361_v35, %v653_v51 }
  0x37   : > { %v624_v48 = vld [vmem:[#allocation2 + $0x21] sm:$0xff]  ;;  %v608_v50 = vmul.f32 %v1319_v46, %v596_v45  ;;  %v525_v7 = vmul.f32 %v596_v45, %v1292_v22  ;;  %v693_v56 = vmul.f32 %v1364_v37, %v681_v53  ;;  %v709_v57 = vld [vmem:[#allocation2 + $0x39] sm:$0xff]  ;;  %v581_v60 = vmul.f32 %v653_v51, %v1313_v42 }
  0x38   : > { %v636_v52 = vmul.f32 %v1322_v47, %v624_v48  ;;  %v588_v54 = vadd.f32 %v580_v49, %v560_v40  ;;  %v553_v58 = vmul.f32 %v624_v48, %v1300_v28  ;;  %v438_v61 = vmul.f32 %v1307_v36, %v428_v6 }
  0x39   : > { %v533_v59 = vadd.f32 %v525_v7, %v497_v21  ;;  %v498_v62 = vmul.f32 %v653_v51, %v1284_v18  ;;  %v721_v0 = vmul.f32 %v1372_v5, %v709_v57  ;;  %v526_v1 = vmul.f32 %v681_v53, %v1292_v22  ;;  %v654_v9 = vld [vmem:[#allocation2 + $0x4f] sm:$0xff] }
  0x3a   : > { %v616_v63 = vadd.f32 %v608_v50, %v588_v54  ;;  %v439_v2 = vmul.f32 %v1307_v36, %v429_v41  ;;  %v609_v4 = vmul.f32 %v681_v53, %v1319_v46  ;;  %v637_v8 = vmul.f32 %v709_v57, %v1322_v47  ;;  %v682_v11 = vld [vmem:[#allocation2 + $0x50] sm:$0xff]  ;;  %479 = vst.msk [vmem:[#allocation2 + $0xb0] sm:$0xff] %vm440_vm1, %v438_v61 }
  0x3b   : > { %v561_v3 = vadd.f32 %v553_v58, %v533_v59  ;;  %v1393_v12 = vld [vmem:[#allocation2 + $0x51] sm:$0xff]  ;;  %v554_v13 = vmul.f32 %v709_v57, %v1300_v28  ;;  %v666_v16 = vmul.f32 %v1361_v35, %v654_v9  ;;  %v694_v17 = vmul.f32 %v1364_v37, %v682_v11 }
  0x3c   : > { %v644_v14 = vadd.f32 %v636_v52, %v616_v63  ;;  %v722_v36 = vmul.f32 %v1372_v5, %v1393_v12  ;;  %480 = vst.msk [vmem:[#allocation2 + $0xc8] sm:$0xff] %vm440_vm1, %v439_v2  ;;  %v488_v20 = vld [vmem:[#allocation2 + $0x67] sm:$0xff]  ;;  %v534_v25 = vadd.f32 %v526_v1, %v498_v62  ;;  %v582_v26 = vmul.f32 %v654_v9, %v1313_v42 }
  0x3d   : > { %v589_v19 = vadd.f32 %v581_v60, %v561_v3  ;;  %v1402_v23 = vld [vmem:[#allocation2 + $0x68] sm:$0xff]  ;;  %v610_v27 = vmul.f32 %v682_v11, %v1319_v46  ;;  %v500_v30 = vmul.f32 %v1284_v18, %v488_v20  ;;  %v1413_v33 = vld [vmem:[#allocation2 + $0x7f] sm:$0xff]  ;;  %v638_v40 = vmul.f32 %v1393_v12, %v1322_v47  ;;  %v657_v6 = vld [vmem:[#allocation2 + $0x97] sm:$0xff] }
  0x3e   : > { %v1404_v24 = vld [vmem:[#allocation2 + $0x69] sm:$0xff]  ;;  %v673_v29 = vadd.f32 %v665_v55, %v644_v14  ;;  %v528_v31 = vmul.f32 %v1292_v22, %v1402_v23  ;;  %v1415_v34 = vld [vmem:[#allocation2 + $0x80] sm:$0xff]  ;;  %v499_v10 = vmul.f32 %v654_v9, %v1284_v18  ;;  %v527_v15 = vmul.f32 %v682_v11, %v1292_v22  ;;  %v685_v7 = vld [vmem:[#allocation2 + $0x98] sm:$0xff] }
  0x3f   : > { %v556_v32 = vmul.f32 %v1300_v28, %v1404_v24  ;;  %v617_v38 = vadd.f32 %v609_v4, %v589_v19  ;;  %v1417_v39 = vld [vmem:[#allocation2 + $0x81] sm:$0xff]  ;;  %v584_v45 = vmul.f32 %v1313_v42, %v1413_v33  ;;  %v612_v48 = vmul.f32 %v1319_v46, %v1415_v34  ;;  %v713_v57 = vld [vmem:[#allocation2 + $0x99] sm:$0xff] }
  0x40   : > { %v701_v43 = vadd.f32 %v693_v56, %v673_v29  ;;  %v536_v44 = vadd.f32 %v528_v31, %v500_v30  ;;  %v640_v50 = vmul.f32 %v1322_v47, %v1417_v39  ;;  %v501_v51 = vmul.f32 %v1413_v33, %v1284_v18 }
  0x41   : > { %v645_v49 = vadd.f32 %v637_v8, %v617_v38  ;;  %v529_v21 = vmul.f32 %v1415_v34, %v1292_v22  ;;  %v669_v53 = vmul.f32 %v1361_v35, %v657_v6  ;;  %v557_v54 = vmul.f32 %v1417_v39, %v1300_v28  ;;  %v686_v4 = vld [vmem:[#allocation2 + $0xb0] sm:$0xff] }
  0x42   : > { %v729_v41 = vadd.f32 %v721_v0, %v701_v43  ;;  %v564_v52 = vadd.f32 %v556_v32, %v536_v44  ;;  %v697_v56 = vmul.f32 %v1364_v37, %v685_v7  ;;  %v585_v59 = vmul.f32 %v657_v6, %v1313_v42  ;;  %v658_v0 = vld [vmem:[#allocation2 + $0xaf] sm:$0xff] }
  0x43   : > { %v674_v55 = vadd.f32 %v666_v16, %v645_v49  ;;  %v537_v58 = vadd.f32 %v529_v21, %v501_v51  ;;  %v725_v61 = vmul.f32 %v1372_v5, %v713_v57  ;;  %v613_v62 = vmul.f32 %v685_v7, %v1319_v46  ;;  %v714_v8 = vld [vmem:[#allocation2 + $0xb1] sm:$0xff] }
  0x44   : > { %1054 = vmatprep.mubr.msk.f32.mxu0 %vm440_vm1, %v729_v41  ;;  %v592_v60 = vadd.f32 %v584_v45, %v564_v52  ;;  %v641_v63 = vmul.f32 %v713_v57, %v1322_v47  ;;  %v670_v3 = vmul.f32 %v1361_v35, %v658_v0  ;;  %v562_v9 = vadd.f32 %v554_v13, %v534_v25 }
  0x45   : > { %v702_v1 = vadd.f32 %v694_v17, %v674_v55  ;;  %v565_v2 = vadd.f32 %v557_v54, %v537_v58  ;;  %v698_v14 = vmul.f32 %v1364_v37, %v686_v4  ;;  %v726_v16 = vmul.f32 %v1372_v5, %v714_v8 }
  0x46   : > { %v620_v11 = vadd.f32 %v612_v48, %v592_v60  ;;  %v535_v19 = vadd.f32 %v527_v15, %v499_v10  ;;  %v590_v31 = vadd.f32 %v582_v26, %v562_v9  ;;  %v555_v32 = vmul.f32 %v1393_v12, %v1300_v28 }
  0x47   : > { %v730_v29 = vadd.f32 %v722_v36, %v702_v1  ;;  %v593_v30 = vadd.f32 %v585_v59, %v565_v2  ;;  %v667_v17 = vmul.f32 %v1361_v35, %v488_v20  ;;  %v695_v43 = vmul.f32 %v1364_v37, %v1402_v23  ;;  %v687_v2 = vld [vmem:[#allocation2 + $0xc8] sm:$0xff] }
  0x48   : > { %v648_v38 = vadd.f32 %v640_v50, %v620_v11  ;;  %v583_v13 = vmul.f32 %v1313_v42, %v488_v20  ;;  %v618_v44 = vadd.f32 %v610_v27, %v590_v31  ;;  %v563_v45 = vadd.f32 %v555_v32, %v535_v19  ;;  %v660_v19 = vld [vmem:[#allocation2 + $0xdf] sm:$0xff] }
  0x49   : > { %1055 = vmatmul.mubr.msk.f32.vlgmr.msra.gmra.mrb[0].mxu0 %vm440_vm1, %v730_v29  ;;  %v621_v25 = vadd.f32 %v613_v62, %v593_v30  ;;  %v611_v36 = vmul.f32 %v1319_v46, %v1402_v23  ;;  %v723_v12 = vmul.f32 %v1372_v5, %v1404_v24  ;;  %v639_v10 = vmul.f32 %v1322_v47, %v1404_v24  ;;  %v688_v32 = vld [vmem:[#allocation2 + $0xe0] sm:$0xff] }
  0x4a   : > { %v677_v26 = vadd.f32 %v669_v53, %v648_v38  ;;  %v502_v15 = vmul.f32 %v657_v6, %v1284_v18  ;;  %v646_v49 = vadd.f32 %v638_v40, %v618_v44  ;;  %v591_v20 = vadd.f32 %v583_v13, %v563_v45  ;;  %v716_v13 = vld [vmem:[#allocation2 + $0xe1] sm:$0xff] }
  0x4b   : > { %v649_v48 = vadd.f32 %v641_v63, %v621_v25  ;;  %v530_v50 = vmul.f32 %v685_v7, %v1292_v22  ;;  %v668_v27 = vmul.f32 %v1361_v35, %v1413_v33  ;;  %v558_v23 = vmul.f32 %v713_v57, %v1300_v28  ;;  %v659_v57 = vld [vmem:[#allocation2 + $0xc7] sm:$0xff] }
  0x4c   : > { %v705_v51 = vadd.f32 %v697_v56, %v677_v26  ;;  %v586_v21 = vmul.f32 %v658_v0, %v1313_v42  ;;  %v675_v52 = vadd.f32 %v667_v17, %v646_v49  ;;  %v619_v53 = vadd.f32 %v611_v36, %v591_v20 }
  0x4d   : > { %v678_v41 = vadd.f32 %v670_v3, %v649_v48  ;;  %v538_v54 = vadd.f32 %v530_v50, %v502_v15  ;;  %v696_v6 = vmul.f32 %v1364_v37, %v1415_v34  ;;  %v724_v40 = vmul.f32 %v1372_v5, %v1417_v39 }
  0x4e   : > { %v733_v24 = vadd.f32 %v725_v61, %v705_v51  ;;  %v614_v7 = vmul.f32 %v686_v4, %v1319_v46  ;;  %v703_v56 = vadd.f32 %v695_v43, %v675_v52  ;;  %v647_v33 = vadd.f32 %v639_v10, %v619_v53 }
  0x4f   : > { %v706_v55 = vadd.f32 %v698_v14, %v678_v41  ;;  %v566_v58 = vadd.f32 %v558_v23, %v538_v54  ;;  %v642_v59 = vmul.f32 %v714_v8, %v1322_v47  ;;  %v503_v60 = vmul.f32 %v658_v0, %v1284_v18  ;;  %v715_v0 = vld [vmem:[#allocation2 + $0xc9] sm:$0xff] }
  0x50   : > { %1060 = vmatprep.mubr.msk.f32.mxu1 %vm440_vm1, %v733_v24  ;;  %v531_v61 = vmul.f32 %v686_v4, %v1292_v22  ;;  %v559_v34 = vmul.f32 %v714_v8, %v1300_v28  ;;  %v731_v63 = vadd.f32 %v723_v12, %v703_v56  ;;  %v676_v39 = vadd.f32 %v668_v27, %v647_v33  ;;  %v1036_v12 = vld [vmem:[%s1526_s7] ss:$0 sm:$0xff] }
  0x51   : > { %v734_v62 = vadd.f32 %v726_v16, %v706_v55  ;;  %v594_v1 = vadd.f32 %v586_v21, %v566_v58  ;;  %v587_v9 = vmul.f32 %v659_v57, %v1313_v42  ;;  %v671_v18 = vmul.f32 %v1361_v35, %v659_v57 }
  0x52   : > { %v539_v3 = vadd.f32 %v531_v61, %v503_v60  ;;  %1057 = vmatprep.mubr.msk.f32.mxu0 %vm440_vm1, %v731_v63  ;;  %v704_v11 = vadd.f32 %v696_v6, %v676_v39  ;;  %v615_v28 = vmul.f32 %v687_v2, %v1319_v46  ;;  %v699_v16 = vmul.f32 %v1364_v37, %v687_v2 }
  0x53   : > { %1061 = vmatmul.mubr.msk.f32.vlgmr.msra.gmra.mrb[0].mxu1 %vm440_vm1, %v734_v62  ;;  %v622_v14 = vadd.f32 %v614_v7, %v594_v1  ;;  %v643_v42 = vmul.f32 %v715_v0, %v1322_v47  ;;  %v727_v31 = vmul.f32 %v1372_v5, %v715_v0  ;;  %v672_v17 = vmul.f32 %v1361_v35, %v660_v19  ;;  %v1035_v35 = vld [vmem:[%s1525_s6] ss:$0 sm:$0xff] }
  0x54   : > { %v567_v22 = vadd.f32 %v559_v34, %v539_v3  ;;  %v732_v4 = vadd.f32 %v724_v40, %v704_v11  ;;  %v700_v25 = vmul.f32 %v1364_v37, %v688_v32  ;;  %v728_v36 = vmul.f32 %v1372_v5, %v716_v13 }
  0x55   : > { %v650_v8 = vadd.f32 %v642_v59, %v622_v14 }
  0x56   : > { %v595_v29 = vadd.f32 %v587_v9, %v567_v22  ;;  %1058 = vmatmul.mubr.msk.f32.gmra.mrb[2].mxu0 %vm440_vm1, %v732_v4 }
  0x57   : > { %v679_v30 = vadd.f32 %v671_v18, %v650_v8 }
  0x58   : > { %v623_v38 = vadd.f32 %v615_v28, %v595_v29 }
  0x59   : > { %v707_v43 = vadd.f32 %v699_v16, %v679_v30 }
  0x5a   : > { %v651_v46 = vadd.f32 %v643_v42, %v623_v38 }
  0x5b   : > { %v735_v44 = vadd.f32 %v727_v31, %v707_v43 }
  0x5c   : > { %v680_v45 = vadd.f32 %v672_v17, %v651_v46 }
  0x5d   : > { %1063 = vmatprep.mubr.msk.f32.mxu1 %vm440_vm1, %v735_v44 }
  0x5e   : > { %v708_v47 = vadd.f32 %v700_v25, %v680_v45 }
  0x60   : > { %v736_v26 = vadd.f32 %v728_v36, %v708_v47 }
  0x62   : > { %1064 = vmatmul.mubr.msk.f32.gmra.mrb[2].mxu1 %vm440_vm1, %v736_v26 }
 0x11c   : > { %v1056_v10 = vpop.f32.mrb[0].mxu0 }
 0x11d   : > { %v880_v37 = vmul.f32 %v1056_v10, %v1035_v35  ;;  %v834_v15 = vpop.f32.mrb[1].mxu0 }
 0x11e   : > { %v879_v48 = vmul.f32 %v1035_v35, %v834_v15 }
 0x11f   : > { %v894_v49 = vadd.f32 %v1036_v12, %v880_v37 }
 0x120   : > { %v893_v5 = vadd.f32 %v1036_v12, %v879_v48 }
 0x121   : > { %v902_v20 = vmax.f32 %v894_v49, 0.0 }
 0x122   : > { %v901_v50 = vmax.f32 %v893_v5, 0.0 }
 0x123   : > { %910 = vst.msk [vmem:[%s1498_s21 + $0x8] sm:$0xff] %vm440_vm1, %v902_v20 }
 0x124   : > { %909 = vst.msk [vmem:[%s1498_s21] sm:$0xff] %vm440_vm1, %v901_v50 }
 0x126   : > { %v1062_v51 = vpop.f32.mrb[0].mxu1 }
 0x127   : > { %v884_v27 = vmul.f32 %v1062_v51, %v1035_v35  ;;  %v854_v23 = vpop.f32.mrb[1].mxu1 }
 0x128   : > { %v883_v21 = vmul.f32 %v1035_v35, %v854_v23 }
 0x129   : > { %v898_v41 = vadd.f32 %v1036_v12, %v884_v27  ;;  %v1059_v53 = vpop.f32.mrb[2].mxu0 }
 0x12a   : > { %v897_v52 = vadd.f32 %v1036_v12, %v883_v21  ;;  %v882_v24 = vmul.f32 %v1059_v53, %v1035_v35  ;;  %v844_v6 = vpop.f32.mrb[3].mxu0 }
 0x12b   : > { %v906_v54 = vmax.f32 %v898_v41, 0.0  ;;  %v881_v7 = vmul.f32 %v1035_v35, %v844_v6 }
 0x12c   : > { %v905_v40 = vmax.f32 %v897_v52, 0.0  ;;  %v896_v55 = vadd.f32 %v1036_v12, %v882_v24 }
 0x12d   : > { %914 = vst.msk [vmem:[%s1498_s21 + $0x28] sm:$0xff] %vm440_vm1, %v906_v54  ;;  %v895_v56 = vadd.f32 %v1036_v12, %v881_v7 }
 0x12e   : > { %913 = vst.msk [vmem:[%s1498_s21 + $0x20] sm:$0xff] %vm440_vm1, %v905_v40  ;;  %v904_v33 = vmax.f32 %v896_v55, 0.0 }
 0x12f   : > { %v903_v58 = vmax.f32 %v895_v56, 0.0 }
 0x130   : > { %912 = vst.msk [vmem:[%s1498_s21 + $0x18] sm:$0xff] %vm440_vm1, %v904_v33 }
 0x131   : > { %911 = vst.msk [vmem:[%s1498_s21 + $0x10] sm:$0xff] %vm440_vm1, %v903_v58 }
 0x135   : > { %v1065_v57 = vpop.f32.mrb[2].mxu1 }
 0x136   : > { %v886_v59 = vmul.f32 %v1065_v57, %v1035_v35  ;;  %v864_v60 = vpop.f32.mrb[3].mxu1 }
 0x137   : > { %v885_v61 = vmul.f32 %v1035_v35, %v864_v60 }
 0x138   : > { %v900_v34 = vadd.f32 %v1036_v12, %v886_v59 }
 0x139   : > { %v899_v62 = vadd.f32 %v1036_v12, %v885_v61 }
 0x13a   : > { %v908_v63 = vmax.f32 %v900_v34, 0.0 }
 0x13b   : > { %v907_v39 = vmax.f32 %v899_v62, 0.0 }
 0x13c   : > { %916 = vst.msk [vmem:[%s1498_s21 + $0x38] sm:$0xff] %vm440_vm1, %v908_v63 }
 0x13d   : > { %915 = vst.msk [vmem:[%s1498_s21 + $0x30] sm:$0xff] %vm440_vm1, %v907_v39 }
 0x13e PF: > { %s19_s27 = sadd.s32 1, %s1113_s27  }
 0x13f   : > { %p16_p1 = scmp.ge.s32.totalorder %s19_s27, 4  }
 0x141   :  { %18 = sbr.rel (!%p16_p1) target bundleno = 1 (0x1), region = 95 }
 0x148   :  { %938 = vsyncpa [#allocation4], 1 }
 0x149   :  { %940 = vsyncpa [#allocation4 + $0x1], 1 }

// kernel: bifpn_forward.14
= control target key start
LH: loop header
LB: loop body
LE: loop exit
PB: predicated region body
PF: predicated region fallthrough
CT: control target
= control target key end

     0   :  { %11 = vsyncpa [#allocation4], 0  ;;  %s1084_s21 = smov 0   ;;  %s1291_s0 = inlined_call_operand.vmem [shape: f32[2], index: 0, kind: input, shape index: {}]   ;;  %s1292_s1 = inlined_call_operand.vmem [shape: f32[2,8,8,4], index: 1, kind: input, shape index: {}]   ;;  %s1293_s2 = inlined_call_operand.vmem [shape: f32[3,3,4], index: 2, kind: input, shape index: {}]   ;;  %s1294_s3 = inlined_call_operand.vmem [shape: f32[4,4], index: 3, kind: input, shape index: {}]   ;;  %s1295_s4 = inlined_call_operand.vmem [shape: f32[1,4], index: 4, kind: input, shape index: {}]   ;;  %s1296_s5 = inlined_call_operand.vmem [shape: f32[1,4], index: 5, kind: input, shape index: {}]   ;;  %s1297_s6 = inlined_call_operand.vmem [shape: f32[2,4,4,4], index: 6, kind: output, shape index: {}]  }
   0x1 LB: > { %s1090_s22 = sadd.s32 4294967295, %s1044_s21   ;;  %p943_p0 = scmp.ge.s32.totalorder %s1044_s21, 1  ;;  %s1044_s21 = sphi %s1084_s21, %s17_s21  }
   0x2   : > { %p179_p1 = scmp.lt.s32.totalorder %s1044_s21, 3  ;;  %s192_s25 = sshll.u32 %s1291_s0, 4  ;;  %s193_s25 = int_to_ptr.vmem [resolvable:$true] %s192_s25 }
   0x3   : > { %p1006_p3 = scmp.eq.s32.totalorder %s1090_s22, 0  ;;  %s1019_s27 = scalar_lea.vmem %s193_s25, 16 }
   0x4   : > { %p1097_p2 = pnand %p943_p0, %p179_p1  ;;  %p1020_p6 = scmp.ne.s32.totalorder %s193_s25, %s1019_s27 }
   0x5   : > { %p1027_p10 = scmp.lt.s32.totalorder %s193_s25, %s193_s25  ;;  %p1028_p11 = scmp.lt.s32.totalorder %s1019_s27, %s1019_s27 }
   0x6   : > { %p1002_p4 = pneg %p1097_p2 }
   0x7   : > { %p1029_p12 = por %p1028_p11, %p1027_p10 }
   0x8   : > { %p1003_p5 = pnand %p1006_p3, %p1002_p4 }
   0xa   : > { %p1021_p7 = pneg %p1003_p5 }
   0xc   : > { %p1022_p8 = pnand %p1021_p7, %p1020_p6 }
   0xe   : > { %p1023_p9 = pneg %p1022_p8 }
  0x10   : > { %p1030_p13 = pnand %p1029_p12, %p1023_p9 }
  0x12   : > { %1033 = shalt.err (!%p1030_p13)
}
  0x13   : > { %s1046_s28 = smov [#allocation3]   ;;  %225 = sbr.rel (%p1097_p2) target bundleno = 296 (0x128), region = 44 }
  0x14   : > { %1005 = dma.vmem_to_smem (!%p1003_p5), %s193_s25, 16, %s1046_s28, [#allocation4]  }
  0x1a   : > { %1039 = dma.done.wait (%p1006_p3), [#allocation4], 16  }
  0x1b   : > { %1041 = vsyncadd (%p1006_p3), [#allocation4], 4294967280 }
  0x1c   : > { %231 = sfence }
  0x1d   : > { %v1115_v0 = vld [vmem:[%s1294_s3] sm:$0xf]  ;;  %vm525_vm0 = vcmask 1043456   ;;  %v1047_v1 = vmov 0.0   ;;  %p256_p0 = scmp.lt.s32.totalorder %s1090_s22, 1  ;;  %s1120_s7 = sld [smem:[#allocation3]]  ;;  %v346_v2 = vlaneseq }
  0x1e   : > { %978 = vmatprep.subr.mxu0 %v1047_v1  ;;  %983 = vmatprep.subr.mxu1 %v1047_v1  ;;  %vm294_vm1 = vcmask 31744   ;;  %vm1048_vm2 = vmmov 0   ;;  %s1126_s8 = sld [smem:[#allocation3 + $0x1]]  ;;  %v335_v4 = vld [vmem:[%s1293_s2] sm:$0x7]  ;;  %vm614_vm3 = vcmask 27648  }
  0x1f   : > { %979 = vmatpush3.msk.msra.mxu0 %vm525_vm0, %v1115_v0  ;;  %980 = vmatprep.mubr.msk.f32.mxu0 %vm1048_vm2, %v1047_v1  ;;  %295 = vst.msk [vmem:[#allocation2] sm:$0xff] %vm294_vm1, %v1047_v1  ;;  %296 = vst.msk [vmem:[#allocation2 + $0x8] sm:$0xff] %vm294_vm1, %v1047_v1  ;;  %s1300_s22 = smov (!%p256_p0, %s1090_s22), 1  ;;  %v347_v3 = vshrl.u32 %v346_v2, 7  ;;  %v336_v35 = vld [vmem:[%s1293_s2 + $0x4] sm:$0x7] }
  0x20   : > { %299 = vst.msk [vmem:[#allocation2 + $0x18] sm:$0xff] %vm294_vm1, %v1047_v1  ;;  %300 = vst.msk [vmem:[#allocation2 + $0x20] sm:$0xff] %vm294_vm1, %v1047_v1  ;;  %984 = vmatpush3.msk.msra.mxu1 %vm525_vm0, %v1115_v0  ;;  %985 = vmatprep.mubr.msk.f32.mxu1 %vm1048_vm2, %v1047_v1  ;;  %s968_s11 = sshll.u32 %s1300_s22, 6  ;;  %v337_v47 = vld [vmem:[%s1293_s2 + $0x8] sm:$0x7]  ;;  %s969_s25 = sshll.u32 %s1300_s22, 4 }
  0x21   : > { %302 = vst.msk [vmem:[#allocation2 + $0x30] sm:$0xff] %vm294_vm1, %v1047_v1  ;;  %303 = vst.msk [vmem:[#allocation2 + $0x38] sm:$0xff] %vm294_vm1, %v1047_v1  ;;  %988 = vmatprep.subr.mxu0 %v1047_v1  ;;  %993 = vmatprep.subr.mxu1 %v1047_v1  ;;  %v348_v5 = vsub.s32 0, %v347_v3  ;;  %v1179_v6 = vsub.s32 1, %v347_v3  ;;  %v1181_v7 = vsub.s32 2, %v347_v3  ;;  %s260_s14 = scalar_lea.vmem %s1292_s1, %s968_s11  ;;  %s265_s28 = scalar_lea.vmem %s1297_s6, %s969_s25 }
  0x22   : > { %305 = vst.msk [vmem:[#allocation2 + $0x48] sm:$0xff] %vm294_vm1, %v1047_v1  ;;  %306 = vst.msk [vmem:[#allocation2 + $0x50] sm:$0xff] %vm294_vm1, %v1047_v1  ;;  %v266_v8 = vld [vmem:[%s260_s14] sm:$0xff]  ;;  %v267_v9 = vld [vmem:[%s260_s14 + $0x8] sm:$0xff] }
  0x23   : > { %308 = vst.msk [vmem:[#allocation2 + $0x60] sm:$0xff] %vm294_vm1, %v1047_v1  ;;  %309 = vst.msk [vmem:[#allocation2 + $0x68] sm:$0xff] %vm294_vm1, %v1047_v1  ;;  %v275_v10 = vstv %s1120_s7  ;;  %v1187_v11 = vrot.slane %v335_v4, %v348_v5  ;;  %v1190_v12 = vrot.slane %v335_v4, %v1179_v6  ;;  %v268_v13 = vld [vmem:[%s260_s14 + $0x10] sm:$0xff]  ;;  %v269_v17 = vld [vmem:[%s260_s14 + $0x18] sm:$0xff]  ;;  %v1194_v22 = vrot.slane %v335_v4, %v1181_v7 }
  0x24   : > { %311 = vst.msk [vmem:[#allocation2 + $0x78] sm:$0xff] %vm294_vm1, %v1047_v1  ;;  %312 = vst.msk [vmem:[#allocation2 + $0x80] sm:$0xff] %vm294_vm1, %v1047_v1  ;;  %v276_v14 = vmul.f32 %v275_v10, %v266_v8  ;;  %v277_v15 = vmul.f32 %v275_v10, %v267_v9  ;;  %v285_v16 = vstv %s1126_s8  ;;  %v270_v18 = vld [vmem:[%s260_s14 + $0x20] sm:$0xff]  ;;  %v271_v19 = vld [vmem:[%s260_s14 + $0x28] sm:$0xff]  ;;  %v278_v30 = vmul.f32 %v275_v10, %v268_v13 }
  0x25   : > { %314 = vst.msk [vmem:[#allocation2 + $0x90] sm:$0xff] %vm294_vm1, %v1047_v1  ;;  %315 = vst.msk [vmem:[#allocation2 + $0x98] sm:$0xff] %vm294_vm1, %v1047_v1  ;;  %v272_v28 = vld [vmem:[%s260_s14 + $0x30] sm:$0xff]  ;;  %v273_v29 = vld [vmem:[%s260_s14 + $0x38] sm:$0xff]  ;;  %v279_v31 = vmul.f32 %v275_v10, %v269_v17  ;;  %v280_v32 = vmul.f32 %v275_v10, %v270_v18  ;;  %v281_v33 = vmul.f32 %v275_v10, %v271_v19 }
  0x26   : > { %317 = vst.msk [vmem:[#allocation2 + $0xa8] sm:$0xff] %vm294_vm1, %v1047_v1  ;;  %318 = vst.msk [vmem:[#allocation2 + $0xb0] sm:$0xff] %vm294_vm1, %v1047_v1  ;;  %v339_v20 = vld [vmem:[#allocation2 + $0x7] ss:$2 sm:$0xf]  ;;  %v286_v23 = vmul.f32 %v285_v16, %v276_v14  ;;  %v287_v24 = vmul.f32 %v285_v16, %v277_v15  ;;  %v282_v34 = vmul.f32 %v275_v10, %v272_v28 }
  0x27   : > { %320 = vst.msk [vmem:[#allocation2 + $0xc0] sm:$0xff] %vm294_vm1, %v1047_v1  ;;  %321 = vst.msk [vmem:[#allocation2 + $0xc8] sm:$0xff] %vm294_vm1, %v1047_v1  ;;  %v359_v21 = vld [vmem:[#allocation2 + $0x8] ss:$2 sm:$0xf]  ;;  %v350_v25 = vmul.f32 %v1187_v11, %v339_v20  ;;  %v288_v37 = vmul.f32 %v285_v16, %v278_v30  ;;  %v289_v38 = vmul.f32 %v285_v16, %v279_v31 }
  0x28   : > { %v370_v26 = vmul.f32 %v1190_v12, %v359_v21  ;;  %v379_v27 = vld [vmem:[#allocation2 + $0x9] ss:$2 sm:$0xf]  ;;  %327 = vst.msk [vmem:[#allocation2 + $0x20] sm:$0xff] %vm294_vm1, %v286_v23  ;;  %328 = vst.msk [vmem:[#allocation2 + $0x38] sm:$0xff] %vm294_vm1, %v287_v24  ;;  %v283_v39 = vmul.f32 %v275_v10, %v273_v29  ;;  %v290_v41 = vmul.f32 %v285_v16, %v280_v32 }
  0x29   : > { %v390_v36 = vmul.f32 %v1194_v22, %v379_v27  ;;  %v291_v42 = vmul.f32 %v285_v16, %v281_v33  ;;  %v292_v43 = vmul.f32 %v285_v16, %v282_v34  ;;  %329 = vst.msk [vmem:[#allocation2 + $0x50] sm:$0xff] %vm294_vm1, %v288_v37  ;;  %330 = vst.msk [vmem:[#allocation2 + $0x68] sm:$0xff] %vm294_vm1, %v289_v38 }
  0x2a   : > { %v374_v40 = vadd.f32 %v370_v26, %v350_v25  ;;  %v293_v44 = vmul.f32 %v285_v16, %v283_v39  ;;  %v1206_v45 = vrot.slane %v336_v35, %v348_v5  ;;  %v1209_v46 = vrot.slane %v336_v35, %v1179_v6  ;;  %331 = vst.msk [vmem:[#allocation2 + $0x80] sm:$0xff] %vm294_vm1, %v290_v41 }
  0x2b   : > { %332 = vst.msk [vmem:[#allocation2 + $0x98] sm:$0xff] %vm294_vm1, %v291_v42  ;;  %333 = vst.msk [vmem:[#allocation2 + $0xb0] sm:$0xff] %vm294_vm1, %v292_v43  ;;  %v1219_v49 = vrot.slane %v336_v35, %v1181_v7  ;;  %v1223_v55 = vrot.slane %v337_v47, %v348_v5  ;;  %v1227_v60 = vrot.slane %v337_v47, %v1179_v6 }
  0x2c   : > { %334 = vst.msk [vmem:[#allocation2 + $0xc8] sm:$0xff] %vm294_vm1, %v293_v44  ;;  %v394_v48 = vadd.f32 %v390_v36, %v374_v40  ;;  %v1233_v9 = vrot.slane %v337_v47, %v1181_v7 }
  0x2f   : > { %v399_v50 = vld [vmem:[#allocation2 + $0x1f] ss:$2 sm:$0xf]  ;;  %v419_v51 = vld [vmem:[#allocation2 + $0x20] ss:$2 sm:$0xf] }
  0x30   : > { %v410_v52 = vmul.f32 %v1206_v45, %v399_v50  ;;  %v430_v53 = vmul.f32 %v1209_v46, %v419_v51  ;;  %v439_v54 = vld [vmem:[#allocation2 + $0x21] ss:$2 sm:$0xf]  ;;  %v460_v56 = vld [vmem:[#allocation2 + $0x37] ss:$2 sm:$0xf] }
  0x31   : > { %v480_v57 = vld [vmem:[#allocation2 + $0x38] ss:$2 sm:$0xf]  ;;  %v450_v59 = vmul.f32 %v1219_v49, %v439_v54  ;;  %v341_v61 = vld [vmem:[#allocation2 + $0x37] ss:$2 sm:$0xf]  ;;  %v471_v5 = vmul.f32 %v1223_v55, %v460_v56 }
  0x32   : > { %v414_v58 = vadd.f32 %v410_v52, %v394_v48  ;;  %v361_v62 = vld [vmem:[#allocation2 + $0x38] ss:$2 sm:$0xf]  ;;  %v351_v63 = vmul.f32 %v1187_v11, %v341_v61  ;;  %v381_v3 = vld [vmem:[#allocation2 + $0x39] ss:$2 sm:$0xf]  ;;  %v491_v18 = vmul.f32 %v1227_v60, %v480_v57 }
  0x33   : > { %v371_v2 = vmul.f32 %v1190_v12, %v361_v62  ;;  %v401_v4 = vld [vmem:[#allocation2 + $0x4f] ss:$2 sm:$0xf]  ;;  %v391_v10 = vmul.f32 %v1194_v22, %v381_v3  ;;  %v421_v13 = vld [vmem:[#allocation2 + $0x50] ss:$2 sm:$0xf] }
  0x34   : > { %v434_v8 = vadd.f32 %v430_v53, %v414_v58  ;;  %v500_v14 = vld [vmem:[#allocation2 + $0x39] ss:$2 sm:$0xf]  ;;  %v411_v15 = vmul.f32 %v1206_v45, %v401_v4  ;;  %v441_v16 = vld [vmem:[#allocation2 + $0x51] ss:$2 sm:$0xf]  ;;  %v431_v23 = vmul.f32 %v1209_v46, %v421_v13 }
  0x35   : > { %v375_v6 = vadd.f32 %v371_v2, %v351_v63  ;;  %v462_v19 = vld [vmem:[#allocation2 + $0x67] ss:$2 sm:$0xf]  ;;  %v363_v7 = vld [vmem:[#allocation2 + $0x68] ss:$2 sm:$0xf]  ;;  %v511_v27 = vmul.f32 %v1233_v9, %v500_v14  ;;  %v451_v33 = vmul.f32 %v1219_v49, %v441_v16 }
  0x36   : > { %v454_v17 = vadd.f32 %v450_v59, %v434_v8  ;;  %v343_v20 = vld [vmem:[#allocation2 + $0x67] ss:$2 sm:$0xf]  ;;  %v372_v28 = vmul.f32 %v1190_v12, %v363_v7  ;;  %v403_v30 = vld [vmem:[#allocation2 + $0x7f] ss:$2 sm:$0xf]  ;;  %v472_v41 = vmul.f32 %v1223_v55, %v462_v19 }
  0x37   : > { %v395_v21 = vadd.f32 %v391_v10, %v375_v6  ;;  %v352_v24 = vmul.f32 %v1187_v11, %v343_v20  ;;  %v383_v25 = vld [vmem:[#allocation2 + $0x69] ss:$2 sm:$0xf]  ;;  %v423_v31 = vld [vmem:[#allocation2 + $0x80] ss:$2 sm:$0xf]  ;;  %v412_v38 = vmul.f32 %v1206_v45, %v403_v30 }
  0x38   : > { %v475_v26 = vadd.f32 %v471_v5, %v454_v17  ;;  %v392_v29 = vmul.f32 %v1194_v22, %v383_v25  ;;  %v482_v34 = vld [vmem:[#allocation2 + $0x68] ss:$2 sm:$0xf]  ;;  %v502_v36 = vld [vmem:[#allocation2 + $0x69] ss:$2 sm:$0xf]  ;;  %v432_v42 = vmul.f32 %v1209_v46, %v423_v31 }
  0x39   : > { %v415_v32 = vadd.f32 %v411_v15, %v395_v21  ;;  %v376_v37 = vadd.f32 %v372_v28, %v352_v24  ;;  %v443_v39 = vld [vmem:[#allocation2 + $0x81] ss:$2 sm:$0xf]  ;;  %v345_v43 = vld [vmem:[#allocation2 + $0x97] ss:$2 sm:$0xf]  ;;  %v492_v56 = vmul.f32 %v1227_v60, %v482_v34 }
  0x3a   : > { %v495_v35 = vadd.f32 %v491_v18, %v475_v26  ;;  %v365_v44 = vld [vmem:[#allocation2 + $0x98] ss:$2 sm:$0xf]  ;;  %v353_v50 = vmul.f32 %v1187_v11, %v345_v43  ;;  %v385_v52 = vld [vmem:[#allocation2 + $0x99] ss:$2 sm:$0xf]  ;;  %v452_v62 = vmul.f32 %v1219_v49, %v443_v39 }
  0x3b   : > { %v435_v40 = vadd.f32 %v431_v23, %v415_v32  ;;  %v396_v48 = vadd.f32 %v392_v29, %v376_v37  ;;  %v373_v51 = vmul.f32 %v1190_v12, %v365_v44  ;;  %v405_v53 = vld [vmem:[#allocation2 + $0xaf] ss:$2 sm:$0xf]  ;;  %v464_v57 = vld [vmem:[#allocation2 + $0x97] ss:$2 sm:$0xf]  ;;  %v393_v58 = vmul.f32 %v1194_v22, %v385_v52 }
  0x3c   : > { %v515_v47 = vadd.f32 %v511_v27, %v495_v35  ;;  %v425_v59 = vld [vmem:[#allocation2 + $0xb0] ss:$2 sm:$0xf]  ;;  %v413_v2 = vmul.f32 %v1206_v45, %v405_v53  ;;  %v512_v12 = vmul.f32 %v1233_v9, %v502_v36  ;;  %v484_v3 = vld [vmem:[#allocation2 + $0x98] ss:$2 sm:$0xf]  ;;  %v473_v8 = vmul.f32 %v1223_v55, %v464_v57 }
  0x3d   : > { %v455_v54 = vadd.f32 %v451_v33, %v435_v40  ;;  %v416_v61 = vadd.f32 %v412_v38, %v396_v48  ;;  %v377_v63 = vadd.f32 %v373_v51, %v353_v50  ;;  %v445_v22 = vld [vmem:[#allocation2 + $0xb1] ss:$2 sm:$0xf]  ;;  %v433_v10 = vmul.f32 %v1209_v46, %v425_v59  ;;  %v504_v14 = vld [vmem:[#allocation2 + $0x99] ss:$2 sm:$0xf] }
  0x3e   : > { %981 = vmatmul.mubr.msk.f32.vlgmr.msra.gmra.mrb[0].mxu0 %vm294_vm1, %v515_v47  ;;  %v466_v45 = vld [vmem:[#allocation2 + $0xc7] ss:$2 sm:$0xf]  ;;  %v493_v15 = vmul.f32 %v1227_v60, %v484_v3  ;;  %v453_v17 = vmul.f32 %v1219_v49, %v445_v22  ;;  %v486_v19 = vld [vmem:[#allocation2 + $0xc8] ss:$2 sm:$0xf]  ;;  %v513_v21 = vmul.f32 %v1233_v9, %v504_v14 }
  0x3f   : > { %v476_v11 = vadd.f32 %v472_v41, %v455_v54  ;;  %989 = vmatpush3.msk.msra.mxu0 %vm525_vm0, %v1115_v0  ;;  %990 = vmatprep.mubr.msk.f32.mxu0 %vm1048_vm2, %v1047_v1  ;;  %v436_v4 = vadd.f32 %v432_v42, %v416_v61  ;;  %v397_v5 = vadd.f32 %v393_v58, %v377_v63  ;;  %v506_v46 = vld [vmem:[#allocation2 + $0xc9] ss:$2 sm:$0xf] }
  0x40   : > { %v474_v24 = vmul.f32 %v1223_v55, %v466_v45  ;;  %v494_v25 = vmul.f32 %v1227_v60, %v486_v19  ;;  %v514_v28 = vmul.f32 %v1233_v9, %v506_v46 }
  0x41   : > { %v496_v13 = vadd.f32 %v492_v56, %v476_v11  ;;  %v456_v6 = vadd.f32 %v452_v62, %v436_v4  ;;  %v417_v16 = vadd.f32 %v413_v2, %v397_v5 }
  0x43   : > { %v516_v18 = vadd.f32 %v512_v12, %v496_v13  ;;  %v477_v20 = vadd.f32 %v473_v8, %v456_v6  ;;  %v437_v23 = vadd.f32 %v433_v10, %v417_v16 }
  0x45   : > { %986 = vmatmul.mubr.msk.f32.vlgmr.msra.gmra.mrb[0].mxu1 %vm294_vm1, %v516_v18  ;;  %v497_v7 = vadd.f32 %v493_v15, %v477_v20  ;;  %v457_v49 = vadd.f32 %v453_v17, %v437_v23 }
  0x46   : > { %994 = vmatpush3.msk.msra.mxu1 %vm525_vm0, %v1115_v0  ;;  %995 = vmatprep.mubr.msk.f32.mxu1 %vm1048_vm2, %v1047_v1  ;;  %v955_v0 = vld [vmem:[%s1295_s4] ss:$0 sm:$0xff] }
  0x47   : > { %v517_v26 = vadd.f32 %v513_v21, %v497_v7  ;;  %v478_v27 = vadd.f32 %v474_v24, %v457_v49  ;;  %v956_v1 = vld [vmem:[%s1296_s5] ss:$0 sm:$0xff] }
  0x49   : > { %991 = vmatmul.mubr.msk.f32.vlgmr.msra.gmra.mrb[2].mxu0 %vm294_vm1, %v517_v26  ;;  %v498_v55 = vadd.f32 %v494_v25, %v478_v27 }
  0x4b   : > { %v518_v29 = vadd.f32 %v514_v28, %v498_v55 }
  0x4d   : > { %996 = vmatmul.mubr.msk.f32.vlgmr.msra.gmra.mrb[2].mxu1 %vm294_vm1, %v518_v29 }
 0x111   : > { %v595_v30 = vpop.f32.mrb[0].mxu0 }
 0x112   : > { %v605_v60 = vmul.f32 %v955_v0, %v595_v30  ;;  %v982_v31 = vpop.f32.mrb[1].mxu0 }
 0x114   : > { %v612_v32 = vadd.f32 %v956_v1, %v605_v60 }
 0x116   : > { %v613_v9 = vmax.f32 %v612_v32, 0.0 }
 0x118   : > { %615 = vst.msk [vmem:[%s265_s28] sm:$0xf] %vm614_vm3, %v613_v9  ;;  %v685_v33 = vpop.f32.mrb[0].mxu1 }
 0x119   : > { %v689_v34 = vmul.f32 %v955_v0, %v685_v33  ;;  %v987_v35 = vpop.f32.mrb[1].mxu1 }
 0x11b   : > { %v690_v36 = vadd.f32 %v956_v1, %v689_v34 }
 0x11c   : > { %v763_v38 = vpop.f32.mrb[2].mxu0 }
 0x11d   : > { %v691_v37 = vmax.f32 %v690_v36, 0.0  ;;  %v767_v39 = vmul.f32 %v955_v0, %v763_v38  ;;  %v992_v40 = vpop.f32.mrb[3].mxu0 }
 0x11f   : > { %959 = vst.msk [vmem:[%s265_s28 + $0x4] sm:$0xf] %vm614_vm3, %v691_v37  ;;  %v768_v41 = vadd.f32 %v956_v1, %v767_v39 }
 0x120   : > { %v841_v42 = vpop.f32.mrb[2].mxu1 }
 0x121   : > { %v769_v43 = vmax.f32 %v768_v41, 0.0  ;;  %v845_v44 = vmul.f32 %v955_v0, %v841_v42  ;;  %v997_v47 = vpop.f32.mrb[3].mxu1 }
 0x123   : > { %962 = vst.msk [vmem:[%s265_s28 + $0x8] sm:$0xf] %vm614_vm3, %v769_v43  ;;  %v846_v48 = vadd.f32 %v956_v1, %v845_v44 }
 0x125   : > { %v847_v50 = vmax.f32 %v846_v48, 0.0 }
 0x127   : > { %965 = vst.msk [vmem:[%s265_s28 + $0xc] sm:$0xf] %vm614_vm3, %v847_v50 }
 0x128 PF: > { %s17_s21 = sadd.s32 1, %s1044_s21  }
 0x129   : > { %p14_p1 = scmp.ge.s32.totalorder %s17_s21, 4  }
 0x12b   :  { %16 = sbr.rel (!%p14_p1) target bundleno = 1 (0x1), region = 120 }
 0x132   :  { %871 = vsyncpa [#allocation4], 1 }
 0x133   :  { %873 = vsyncpa [#allocation4 + $0x1], 1 }

// kernel: bifpn_forward.12
= control target key start
LH: loop header
LB: loop body
LE: loop exit
PB: predicated region body
PF: predicated region fallthrough
CT: control target
= control target key end

     0   :  { %11 = vsyncpa [#allocation4], 0  ;;  %s1232_s21 = smov 0   ;;  %s1624_s0 = inlined_call_operand.vmem [shape: f32[2], index: 0, kind: input, shape index: {}]   ;;  %s1625_s1 = inlined_call_operand.vmem [shape: f32[2,16,16,4], index: 1, kind: input, shape index: {}]   ;;  %s1626_s2 = inlined_call_operand.vmem [shape: f32[3,3,4], index: 2, kind: input, shape index: {}]   ;;  %s1627_s3 = inlined_call_operand.vmem [shape: f32[4,4], index: 3, kind: input, shape index: {}]   ;;  %s1628_s4 = inlined_call_operand.vmem [shape: f32[1,4], index: 4, kind: input, shape index: {}]   ;;  %s1629_s5 = inlined_call_operand.vmem [shape: f32[1,4], index: 5, kind: input, shape index: {}]   ;;  %s1630_s6 = inlined_call_operand.vmem [shape: f32[2,8,8,4], index: 6, kind: output, shape index: {}]  }
   0x1 LB: > { %s1238_s22 = sadd.s32 4294967295, %s1193_s21   ;;  %p1098_p0 = scmp.ge.s32.totalorder %s1193_s21, 1  ;;  %s1193_s21 = sphi %s1232_s21, %s17_s21  }
   0x2   : > { %p179_p1 = scmp.lt.s32.totalorder %s1193_s21, 3  ;;  %s192_s25 = sshll.u32 %s1624_s0, 4  ;;  %s193_s25 = int_to_ptr.vmem [resolvable:$true] %s192_s25 }
   0x3   : > { %p1156_p3 = scmp.eq.s32.totalorder %s1238_s22, 0  ;;  %s1168_s27 = scalar_lea.vmem %s193_s25, 16 }
   0x4   : > { %p1245_p2 = pnand %p1098_p0, %p179_p1  ;;  %p1169_p6 = scmp.ne.s32.totalorder %s193_s25, %s1168_s27 }
   0x5   : > { %p1176_p10 = scmp.lt.s32.totalorder %s193_s25, %s193_s25  ;;  %p1177_p11 = scmp.lt.s32.totalorder %s1168_s27, %s1168_s27 }
   0x6   : > { %p1152_p4 = pneg %p1245_p2 }
   0x7   : > { %p1178_p12 = por %p1177_p11, %p1176_p10 }
   0x8   : > { %p1153_p5 = pnand %p1156_p3, %p1152_p4 }
   0xa   : > { %p1170_p7 = pneg %p1153_p5 }
   0xc   : > { %p1171_p8 = pnand %p1170_p7, %p1169_p6 }
   0xe   : > { %p1172_p9 = pneg %p1171_p8 }
  0x10   : > { %p1179_p13 = pnand %p1178_p12, %p1172_p9 }
  0x12   : > { %1182 = shalt.err (!%p1179_p13)
}
  0x13   : > { %s1195_s28 = smov [#allocation3]   ;;  %225 = sbr.rel (%p1245_p2) target bundleno = 346 (0x15a), region = 44 }
  0x14   : > { %1155 = dma.vmem_to_smem (!%p1153_p5), %s193_s25, 16, %s1195_s28, [#allocation4]  }
  0x1a   : > { %1188 = dma.done.wait (%p1156_p3), [#allocation4], 16  }
  0x1b   : > { %1190 = vsyncadd (%p1156_p3), [#allocation4], 4294967280 }
  0x1c   : > { %231 = sfence }
  0x1d   : > { %v1263_v0 = vld [vmem:[%s1627_s3] sm:$0xf]  ;;  %vm828_vm0 = vcmask 1043456   ;;  %p256_p0 = scmp.lt.s32.totalorder %s1238_s22, 1  ;;  %vm366_vm1 = vcmask 31744   ;;  %v492_v1 = vlaneseq  ;;  %s1270_s7 = sld [smem:[#allocation3]] }
  0x1e   : > { %1132 = vmatprep.subr.msk.mxu0 %vm828_vm0, %v1263_v0  ;;  %1146 = vmatprep.subr.msk.mxu1 %vm828_vm0, %v1263_v0  ;;  %s1272_s8 = sld [smem:[#allocation3 + $0x1]]  ;;  %v1196_v2 = vmov 0.0   ;;  %v473_v4 = vld [vmem:[%s1626_s2] sm:$0x7]  ;;  %v474_v5 = vld [vmem:[%s1626_s2 + $0x4] sm:$0x7] }
  0x1f   : > { %1133 = vmatpush3.msk.msra.mxu0 %vm828_vm0, %v1263_v0  ;;  %s1633_s22 = smov (!%p256_p0, %s1238_s22), 1  ;;  %367 = vst.msk [vmem:[#allocation2] sm:$0xff] %vm366_vm1, %v1196_v2  ;;  %368 = vst.msk [vmem:[#allocation2 + $0x8] sm:$0xff] %vm366_vm1, %v1196_v2  ;;  %v493_v3 = vshrl.u32 %v492_v1, 7  ;;  %1147 = vmatpush3.msk.msra.mxu1 %vm828_vm0, %v1263_v0  ;;  %v475_v9 = vld [vmem:[%s1626_s2 + $0x8] sm:$0x7] }
  0x20   : > { %369 = vst.msk [vmem:[#allocation2 + $0x10] sm:$0xff] %vm366_vm1, %v1196_v2  ;;  %372 = vst.msk [vmem:[#allocation2 + $0x20] sm:$0xff] %vm366_vm1, %v1196_v2  ;;  %s1121_s11 = sshll.u32 %s1633_s22, 8  ;;  %s1122_s25 = sshll.u32 %s1633_s22, 6 }
  0x21   : > { %373 = vst.msk [vmem:[#allocation2 + $0x28] sm:$0xff] %vm366_vm1, %v1196_v2  ;;  %374 = vst.msk [vmem:[#allocation2 + $0x30] sm:$0xff] %vm366_vm1, %v1196_v2  ;;  %v494_v6 = vsub.s32 0, %v493_v3  ;;  %v530_v7 = vsub.s32 1, %v493_v3  ;;  %v1339_v8 = vsub.s32 2, %v493_v3  ;;  %s1344_s16 = scalar_lea.vmem %s1625_s1, %s1121_s11  ;;  %s1603_s28 = scalar_lea.vmem %s1630_s6, %s1122_s25 }
  0x22   : > { %376 = vst.msk [vmem:[#allocation2 + $0x40] sm:$0xff] %vm366_vm1, %v1196_v2  ;;  %377 = vst.msk [vmem:[#allocation2 + $0x48] sm:$0xff] %vm366_vm1, %v1196_v2  ;;  %v266_v10 = vld [vmem:[%s1344_s16] sm:$0xff]  ;;  %v267_v11 = vld [vmem:[%s1344_s16 + $0x8] sm:$0xff] }
  0x23   : > { %378 = vst.msk [vmem:[#allocation2 + $0x50] sm:$0xff] %vm366_vm1, %v1196_v2  ;;  %380 = vst.msk [vmem:[#allocation2 + $0x60] sm:$0xff] %vm366_vm1, %v1196_v2  ;;  %v268_v12 = vld [vmem:[%s1344_s16 + $0x10] sm:$0xff]  ;;  %v1352_v13 = vrot.slane %v473_v4, %v494_v6  ;;  %v1354_v14 = vrot.slane %v473_v4, %v530_v7  ;;  %v1357_v15 = vrot.slane %v473_v4, %v1339_v8  ;;  %v269_v16 = vld [vmem:[%s1344_s16 + $0x18] sm:$0xff]  ;;  %v1361_v17 = vstv %s1270_s7 }
  0x24   : > { %381 = vst.msk [vmem:[#allocation2 + $0x68] sm:$0xff] %vm366_vm1, %v1196_v2  ;;  %382 = vst.msk [vmem:[#allocation2 + $0x70] sm:$0xff] %vm366_vm1, %v1196_v2  ;;  %v1364_v18 = vstv %s1272_s8  ;;  %v1366_v19 = vrot.slane %v474_v5, %v494_v6  ;;  %v1368_v20 = vrot.slane %v474_v5, %v530_v7  ;;  %v270_v21 = vld [vmem:[%s1344_s16 + $0x20] sm:$0xff]  ;;  %v300_v22 = vmul.f32 %v1361_v17, %v266_v10  ;;  %v271_v26 = vld [vmem:[%s1344_s16 + $0x28] sm:$0xff] }
  0x25   : > { %384 = vst.msk [vmem:[#allocation2 + $0x80] sm:$0xff] %vm366_vm1, %v1196_v2  ;;  %385 = vst.msk [vmem:[#allocation2 + $0x88] sm:$0xff] %vm366_vm1, %v1196_v2  ;;  %v301_v23 = vmul.f32 %v1361_v17, %v267_v11  ;;  %v302_v24 = vmul.f32 %v1361_v17, %v268_v12  ;;  %v303_v25 = vmul.f32 %v1361_v17, %v269_v16  ;;  %v272_v27 = vld [vmem:[%s1344_s16 + $0x30] sm:$0xff]  ;;  %v273_v28 = vld [vmem:[%s1344_s16 + $0x38] sm:$0xff] }
  0x26   : > { %386 = vst.msk [vmem:[#allocation2 + $0x90] sm:$0xff] %vm366_vm1, %v1196_v2  ;;  %388 = vst.msk [vmem:[#allocation2 + $0xa0] sm:$0xff] %vm366_vm1, %v1196_v2  ;;  %v1379_v32 = vrot.slane %v474_v5, %v1339_v8  ;;  %v1381_v33 = vrot.slane %v475_v9, %v494_v6  ;;  %v1383_v34 = vrot.slane %v475_v9, %v530_v7  ;;  %v280_v40 = vld [vmem:[%s1344_s16 + $0x70] sm:$0xff]  ;;  %v281_v41 = vld [vmem:[%s1344_s16 + $0x78] sm:$0xff] }
  0x27   : > { %389 = vst.msk [vmem:[#allocation2 + $0xa8] sm:$0xff] %vm366_vm1, %v1196_v2  ;;  %390 = vst.msk [vmem:[#allocation2 + $0xb0] sm:$0xff] %vm366_vm1, %v1196_v2  ;;  %v477_v29 = vld [vmem:[#allocation2 + $0x7] ss:$2 sm:$0xff]  ;;  %v513_v30 = vld [vmem:[#allocation2 + $0x8] ss:$2 sm:$0xff]  ;;  %v304_v35 = vmul.f32 %v1361_v17, %v270_v21  ;;  %v334_v36 = vmul.f32 %v1364_v18, %v300_v22  ;;  %v335_v37 = vmul.f32 %v1364_v18, %v301_v23 }
  0x28   : > { %392 = vst.msk [vmem:[#allocation2 + $0xc0] sm:$0xff] %vm366_vm1, %v1196_v2  ;;  %393 = vst.msk [vmem:[#allocation2 + $0xc8] sm:$0xff] %vm366_vm1, %v1196_v2  ;;  %v549_v31 = vld [vmem:[#allocation2 + $0x9] ss:$2 sm:$0xff]  ;;  %v336_v38 = vmul.f32 %v1364_v18, %v302_v24  ;;  %v337_v39 = vmul.f32 %v1364_v18, %v303_v25  ;;  %v282_v42 = vld [vmem:[%s1344_s16 + $0x80] sm:$0xff]  ;;  %v496_v43 = vmul.f32 %v1352_v13, %v477_v29 }
  0x29   : > { %394 = vst.msk [vmem:[#allocation2 + $0xd0] sm:$0xff] %vm366_vm1, %v1196_v2  ;;  %396 = vst.msk [vmem:[#allocation2 + $0xe0] sm:$0xff] %vm366_vm1, %v1196_v2  ;;  %v532_v44 = vmul.f32 %v1354_v14, %v513_v30  ;;  %v568_v45 = vmul.f32 %v1357_v15, %v549_v31  ;;  %v305_v46 = vmul.f32 %v1361_v17, %v271_v26  ;;  %v283_v47 = vld [vmem:[%s1344_s16 + $0x88] sm:$0xff]  ;;  %v284_v48 = vld [vmem:[%s1344_s16 + $0x90] sm:$0xff] }
  0x2a   : > { %397 = vst.msk [vmem:[#allocation2 + $0xe8] sm:$0xff] %vm366_vm1, %v1196_v2  ;;  %398 = vst.msk [vmem:[#allocation2 + $0xf0] sm:$0xff] %vm366_vm1, %v1196_v2  ;;  %v306_v49 = vmul.f32 %v1361_v17, %v272_v27  ;;  %v307_v50 = vmul.f32 %v1361_v17, %v273_v28  ;;  %v338_v51 = vmul.f32 %v1364_v18, %v304_v35  ;;  %v285_v52 = vld [vmem:[%s1344_s16 + $0x98] sm:$0xff]  ;;  %v286_v58 = vld [vmem:[%s1344_s16 + $0xa0] sm:$0xff] }
  0x2b   : > { %400 = vst.msk [vmem:[#allocation2 + $0x100] sm:$0xff] %vm366_vm1, %v1196_v2  ;;  %401 = vst.msk [vmem:[#allocation2 + $0x108] sm:$0xff] %vm366_vm1, %v1196_v2  ;;  %v314_v53 = vmul.f32 %v1361_v17, %v280_v40  ;;  %v540_v54 = vadd.f32 %v532_v44, %v496_v43  ;;  %v339_v55 = vmul.f32 %v1364_v18, %v305_v46  ;;  %v287_v63 = vld [vmem:[%s1344_s16 + $0xa8] sm:$0xff]  ;;  %v288_v0 = vld [vmem:[%s1344_s16 + $0xb0] sm:$0xff] }
  0x2c   : > { %402 = vst.msk [vmem:[#allocation2 + $0x110] sm:$0xff] %vm366_vm1, %v1196_v2  ;;  %404 = vst.msk [vmem:[#allocation2 + $0x120] sm:$0xff] %vm366_vm1, %v1196_v2  ;;  %v315_v56 = vmul.f32 %v1361_v17, %v281_v41  ;;  %v316_v57 = vmul.f32 %v1361_v17, %v282_v42  ;;  %v340_v59 = vmul.f32 %v1364_v18, %v306_v49  ;;  %v289_v1 = vld [vmem:[%s1344_s16 + $0xb8] sm:$0xff]  ;;  %v274_v6 = vld [vmem:[%s1344_s16 + $0x40] sm:$0xff] }
  0x2d   : > { %405 = vst.msk [vmem:[#allocation2 + $0x128] sm:$0xff] %vm366_vm1, %v1196_v2  ;;  %406 = vst.msk [vmem:[#allocation2 + $0x130] sm:$0xff] %vm366_vm1, %v1196_v2  ;;  %v341_v60 = vmul.f32 %v1364_v18, %v307_v50  ;;  %v317_v61 = vmul.f32 %v1361_v17, %v283_v47  ;;  %v318_v62 = vmul.f32 %v1361_v17, %v284_v48  ;;  %v275_v7 = vld [vmem:[%s1344_s16 + $0x48] sm:$0xff]  ;;  %v276_v12 = vld [vmem:[%s1344_s16 + $0x50] sm:$0xff] }
  0x2e   : > { %408 = vst.msk [vmem:[#allocation2 + $0x140] sm:$0xff] %vm366_vm1, %v1196_v2  ;;  %409 = vst.msk [vmem:[#allocation2 + $0x148] sm:$0xff] %vm366_vm1, %v1196_v2  ;;  %v319_v3 = vmul.f32 %v1361_v17, %v285_v52  ;;  %v348_v4 = vmul.f32 %v1364_v18, %v314_v53  ;;  %v349_v5 = vmul.f32 %v1364_v18, %v315_v56  ;;  %v277_v26 = vld [vmem:[%s1344_s16 + $0x58] sm:$0xff] }
  0x2f   : > { %410 = vst.msk [vmem:[#allocation2 + $0x150] sm:$0xff] %vm366_vm1, %v1196_v2  ;;  %412 = vst.msk [vmem:[#allocation2 + $0x160] sm:$0xff] %vm366_vm1, %v1196_v2  ;;  %v350_v10 = vmul.f32 %v1364_v18, %v316_v57  ;;  %v320_v11 = vmul.f32 %v1361_v17, %v286_v58  ;;  %v321_v21 = vmul.f32 %v1361_v17, %v287_v63 }
  0x30   : > { %413 = vst.msk [vmem:[#allocation2 + $0x168] sm:$0xff] %vm366_vm1, %v1196_v2  ;;  %414 = vst.msk [vmem:[#allocation2 + $0x170] sm:$0xff] %vm366_vm1, %v1196_v2  ;;  %v353_v16 = vmul.f32 %v1364_v18, %v319_v3  ;;  %v322_v22 = vmul.f32 %v1361_v17, %v288_v0  ;;  %v323_v23 = vmul.f32 %v1361_v17, %v289_v1 }
  0x31   : > { %416 = vst.msk [vmem:[#allocation2 + $0x180] sm:$0xff] %vm366_vm1, %v1196_v2  ;;  %417 = vst.msk [vmem:[#allocation2 + $0x188] sm:$0xff] %vm366_vm1, %v1196_v2  ;;  %v576_v24 = vadd.f32 %v568_v45, %v540_v54  ;;  %v354_v25 = vmul.f32 %v1364_v18, %v320_v11  ;;  %v308_v27 = vmul.f32 %v1361_v17, %v274_v6 }
  0x32   : > { %418 = vst.msk [vmem:[#allocation2 + $0x190] sm:$0xff] %vm366_vm1, %v1196_v2  ;;  %420 = vst.msk [vmem:[#allocation2 + $0x1a0] sm:$0xff] %vm366_vm1, %v1196_v2  ;;  %v309_v28 = vmul.f32 %v1361_v17, %v275_v7  ;;  %v355_v35 = vmul.f32 %v1364_v18, %v321_v21  ;;  %v1463_v49 = vmul.f32 %v1361_v17, %v277_v26 }
  0x33   : > { %421 = vst.msk [vmem:[#allocation2 + $0x1a8] sm:$0xff] %vm366_vm1, %v1196_v2  ;;  %422 = vst.msk [vmem:[#allocation2 + $0x1b0] sm:$0xff] %vm366_vm1, %v1196_v2  ;;  %v342_v44 = vmul.f32 %v1364_v18, %v308_v27 }
  0x34   : > { %424 = vst.msk [vmem:[#allocation2 + $0x1c0] sm:$0xff] %vm366_vm1, %v1196_v2  ;;  %425 = vst.msk [vmem:[#allocation2 + $0x1c8] sm:$0xff] %vm366_vm1, %v1196_v2  ;;  %v343_v50 = vmul.f32 %v1364_v18, %v309_v28 }
  0x35   : > { %426 = vst.msk [vmem:[#allocation2 + $0x1d0] sm:$0xff] %vm366_vm1, %v1196_v2  ;;  %428 = vst.msk [vmem:[#allocation2 + $0x1e0] sm:$0xff] %vm366_vm1, %v1196_v2 }
  0x36   : > { %429 = vst.msk [vmem:[#allocation2 + $0x1e8] sm:$0xff] %vm366_vm1, %v1196_v2  ;;  %430 = vst.msk [vmem:[#allocation2 + $0x1f0] sm:$0xff] %vm366_vm1, %v1196_v2 }
  0x37   : > { %432 = vst.msk [vmem:[#allocation2 + $0x200] sm:$0xff] %vm366_vm1, %v1196_v2  ;;  %433 = vst.msk [vmem:[#allocation2 + $0x208] sm:$0xff] %vm366_vm1, %v1196_v2 }
  0x38   : > { %434 = vst.msk [vmem:[#allocation2 + $0x210] sm:$0xff] %vm366_vm1, %v1196_v2  ;;  %441 = vst.msk [vmem:[#allocation2 + $0x28] sm:$0xff] %vm366_vm1, %v334_v36  ;;  %v1421_v2 = vrot.slane %v475_v9, %v1339_v8  ;;  %v351_v8 = vmul.f32 %v1364_v18, %v317_v61  ;;  %v352_v9 = vmul.f32 %v1364_v18, %v318_v62 }
  0x39   : > { %442 = vst.msk [vmem:[#allocation2 + $0x30] sm:$0xff] %vm366_vm1, %v335_v37  ;;  %443 = vst.msk [vmem:[#allocation2 + $0x48] sm:$0xff] %vm366_vm1, %v336_v38  ;;  %v356_v36 = vmul.f32 %v1364_v18, %v322_v22  ;;  %v357_v37 = vmul.f32 %v1364_v18, %v323_v23  ;;  %v310_v38 = vmul.f32 %v1361_v17, %v276_v12 }
  0x3a   : > { %444 = vst.msk [vmem:[#allocation2 + $0x50] sm:$0xff] %vm366_vm1, %v337_v39  ;;  %445 = vst.msk [vmem:[#allocation2 + $0x68] sm:$0xff] %vm366_vm1, %v338_v51 }
  0x3b   : > { %446 = vst.msk [vmem:[#allocation2 + $0x70] sm:$0xff] %vm366_vm1, %v339_v55  ;;  %447 = vst.msk [vmem:[#allocation2 + $0x88] sm:$0xff] %vm366_vm1, %v340_v59  ;;  %v344_v0 = vmul.f32 %v1364_v18, %v310_v38 }
  0x3c   : > { %448 = vst.msk [vmem:[#allocation2 + $0x90] sm:$0xff] %vm366_vm1, %v341_v60  ;;  %455 = vst.msk [vmem:[#allocation2 + $0x108] sm:$0xff] %vm366_vm1, %v348_v4 }
  0x3d   : > { %456 = vst.msk [vmem:[#allocation2 + $0x110] sm:$0xff] %vm366_vm1, %v349_v5  ;;  %457 = vst.msk [vmem:[#allocation2 + $0x128] sm:$0xff] %vm366_vm1, %v350_v10 }
  0x3e   : > { %458 = vst.msk [vmem:[#allocation2 + $0x130] sm:$0xff] %vm366_vm1, %v351_v8  ;;  %459 = vst.msk [vmem:[#allocation2 + $0x148] sm:$0xff] %vm366_vm1, %v352_v9 }
  0x3f   : > { %460 = vst.msk [vmem:[#allocation2 + $0x150] sm:$0xff] %vm366_vm1, %v353_v16  ;;  %461 = vst.msk [vmem:[#allocation2 + $0x168] sm:$0xff] %vm366_vm1, %v354_v25 }
  0x40   : > { %v585_v29 = vld [vmem:[#allocation2 + $0x27] ss:$2 sm:$0xff]  ;;  %v621_v30 = vld [vmem:[#allocation2 + $0x28] ss:$2 sm:$0xff]  ;;  %462 = vst.msk [vmem:[#allocation2 + $0x170] sm:$0xff] %vm366_vm1, %v355_v35  ;;  %463 = vst.msk [vmem:[#allocation2 + $0x188] sm:$0xff] %vm366_vm1, %v356_v36 }
  0x41   : > { %v657_v31 = vld [vmem:[#allocation2 + $0x29] ss:$2 sm:$0xff]  ;;  %v604_v39 = vmul.f32 %v1366_v19, %v585_v29  ;;  %v640_v40 = vmul.f32 %v1368_v20, %v621_v30  ;;  %v730_v42 = vld [vmem:[#allocation2 + $0x48] ss:$2 sm:$0xff]  ;;  %464 = vst.msk [vmem:[#allocation2 + $0x190] sm:$0xff] %vm366_vm1, %v357_v37  ;;  %449 = vst.msk [vmem:[#allocation2 + $0xa8] sm:$0xff] %vm366_vm1, %v342_v44 }
  0x42   : > { %v694_v41 = vld [vmem:[#allocation2 + $0x47] ss:$2 sm:$0xff]  ;;  %v676_v45 = vmul.f32 %v1379_v32, %v657_v31  ;;  %v515_v47 = vld [vmem:[#allocation2 + $0x48] ss:$2 sm:$0xff]  ;;  %v749_v59 = vmul.f32 %v1383_v34, %v730_v42  ;;  %450 = vst.msk [vmem:[#allocation2 + $0xb0] sm:$0xff] %vm366_vm1, %v343_v50  ;;  %451 = vst.msk [vmem:[#allocation2 + $0xc8] sm:$0xff] %vm366_vm1, %v344_v0 }
  0x43   : > { %v766_v43 = vld [vmem:[#allocation2 + $0x49] ss:$2 sm:$0xff]  ;;  %v612_v51 = vadd.f32 %v604_v39, %v576_v24  ;;  %v533_v53 = vmul.f32 %v1354_v14, %v515_v47  ;;  %v623_v56 = vld [vmem:[#allocation2 + $0x68] ss:$2 sm:$0xff]  ;;  %v713_v58 = vmul.f32 %v1381_v33, %v694_v41 }
  0x44   : > { %v479_v46 = vld [vmem:[#allocation2 + $0x47] ss:$2 sm:$0xff]  ;;  %v785_v60 = vmul.f32 %v1421_v2, %v766_v43  ;;  %v732_v62 = vld [vmem:[#allocation2 + $0x88] ss:$2 sm:$0xff]  ;;  %v641_v5 = vmul.f32 %v1368_v20, %v623_v56 }
  0x45   : > { %v551_v48 = vld [vmem:[#allocation2 + $0x49] ss:$2 sm:$0xff]  ;;  %v497_v52 = vmul.f32 %v1352_v13, %v479_v46  ;;  %v648_v1 = vadd.f32 %v640_v40, %v612_v51  ;;  %v521_v7 = vld [vmem:[#allocation2 + $0x108] ss:$2 sm:$0xff]  ;;  %v750_v26 = vmul.f32 %v1383_v34, %v732_v62 }
  0x46   : > { %v569_v54 = vmul.f32 %v1357_v15, %v551_v48  ;;  %v587_v55 = vld [vmem:[#allocation2 + $0x67] ss:$2 sm:$0xff]  ;;  %v536_v11 = vmul.f32 %v1354_v14, %v521_v7  ;;  %v629_v21 = vld [vmem:[#allocation2 + $0x128] ss:$2 sm:$0xff] }
  0x47   : > { %v659_v57 = vld [vmem:[#allocation2 + $0x69] ss:$2 sm:$0xff]  ;;  %v541_v3 = vadd.f32 %v533_v53, %v497_v52  ;;  %v605_v4 = vmul.f32 %v1366_v19, %v587_v55  ;;  %v684_v23 = vadd.f32 %v676_v45, %v648_v1  ;;  %v738_v28 = vld [vmem:[#allocation2 + $0x148] ss:$2 sm:$0xff]  ;;  %v644_v36 = vmul.f32 %v1368_v20, %v629_v21  ;;  %v278_v21 = vld [vmem:[%s1344_s16 + $0x60] sm:$0xff] }
  0x48   : > { %v696_v61 = vld [vmem:[#allocation2 + $0x87] ss:$2 sm:$0xff]  ;;  %v677_v8 = vmul.f32 %v1379_v32, %v659_v57  ;;  %v523_v38 = vld [vmem:[#allocation2 + $0x148] ss:$2 sm:$0xff] }
  0x49   : > { %v768_v63 = vld [vmem:[#allocation2 + $0x89] ss:$2 sm:$0xff]  ;;  %v577_v24 = vadd.f32 %v569_v54, %v541_v3  ;;  %v714_v25 = vmul.f32 %v1381_v33, %v696_v61  ;;  %v721_v40 = vadd.f32 %v713_v58, %v684_v23  ;;  %v631_v45 = vld [vmem:[#allocation2 + $0x168] ss:$2 sm:$0xff]  ;;  %v537_v48 = vmul.f32 %v1354_v14, %v523_v38 }
  0x4a   : > { %v485_v6 = vld [vmem:[#allocation2 + $0x107] ss:$2 sm:$0xff]  ;;  %v1485_v30 = vmul.f32 %v1421_v2, %v768_v63  ;;  %v753_v54 = vmul.f32 %v1383_v34, %v738_v28  ;;  %v517_v57 = vld [vmem:[#allocation2 + $0x88] ss:$2 sm:$0xff]  ;;  %v645_v63 = vmul.f32 %v1368_v20, %v631_v45 }
  0x4b   : > { %v557_v10 = vld [vmem:[#allocation2 + $0x109] ss:$2 sm:$0xff]  ;;  %v500_v9 = vmul.f32 %v1352_v13, %v485_v6  ;;  %v613_v41 = vadd.f32 %v605_v4, %v577_v24  ;;  %v757_v52 = vadd.f32 %v749_v59, %v721_v40  ;;  %v740_v1 = vld [vmem:[#allocation2 + $0x188] ss:$2 sm:$0xff]  ;;  %v345_v6 = vmul.f32 %v1364_v18, %v1463_v49 }
  0x4c   : > { %v572_v12 = vmul.f32 %v1357_v15, %v557_v10  ;;  %v593_v16 = vld [vmem:[#allocation2 + $0x127] ss:$2 sm:$0xff]  ;;  %v754_v23 = vmul.f32 %v1383_v34, %v740_v1  ;;  %v625_v24 = vld [vmem:[#allocation2 + $0xa8] ss:$2 sm:$0xff] }
  0x4d   : > { %v665_v22 = vld [vmem:[#allocation2 + $0x129] ss:$2 sm:$0xff]  ;;  %v544_v31 = vadd.f32 %v536_v11, %v500_v9  ;;  %v608_v35 = vmul.f32 %v1366_v19, %v593_v16  ;;  %v649_v53 = vadd.f32 %v641_v5, %v613_v41  ;;  %v793_v59 = vadd.f32 %v785_v60, %v757_v52  ;;  %452 = vst.msk [vmem:[#allocation2 + $0xd0] sm:$0xff] %vm366_vm1, %v345_v6 }
  0x4e   : > { %v702_v27 = vld [vmem:[#allocation2 + $0x147] ss:$2 sm:$0xff]  ;;  %v680_v42 = vmul.f32 %v1379_v32, %v665_v22  ;;  %v534_v16 = vmul.f32 %v1354_v14, %v517_v57 }
  0x4f   : > { %v774_v29 = vld [vmem:[#allocation2 + $0x149] ss:$2 sm:$0xff]  ;;  %v580_v46 = vadd.f32 %v572_v12, %v544_v31  ;;  %v717_v47 = vmul.f32 %v1381_v33, %v702_v27  ;;  %v685_v4 = vadd.f32 %v677_v8, %v649_v53  ;;  %1134 = vmatprep.mubr.msk.f32.mxu0 %vm366_vm1, %v793_v59 }
  0x50   : > { %v487_v37 = vld [vmem:[#allocation2 + $0x147] ss:$2 sm:$0xff]  ;;  %v1496_v55 = vmul.f32 %v1421_v2, %v774_v29 }
  0x51   : > { %v559_v39 = vld [vmem:[#allocation2 + $0x149] ss:$2 sm:$0xff]  ;;  %v501_v43 = vmul.f32 %v1352_v13, %v487_v37  ;;  %v616_v58 = vadd.f32 %v608_v35, %v580_v46  ;;  %v722_v60 = vadd.f32 %v714_v25, %v685_v4  ;;  %v312_v37 = vmul.f32 %v1361_v17, %v278_v21  ;;  %v293_v46 = vld [vmem:[%s1344_s16 + $0xd8] sm:$0xff] }
  0x52   : > { %v595_v44 = vld [vmem:[#allocation2 + $0x167] ss:$2 sm:$0xff]  ;;  %v573_v50 = vmul.f32 %v1357_v15, %v559_v39 }
  0x53   : > { %v667_v51 = vld [vmem:[#allocation2 + $0x169] ss:$2 sm:$0xff]  ;;  %v545_v61 = vadd.f32 %v537_v48, %v501_v43  ;;  %v609_v62 = vmul.f32 %v1366_v19, %v595_v44  ;;  %v652_v10 = vadd.f32 %v644_v36, %v616_v58  ;;  %v758_v36 = vadd.f32 %v750_v26, %v722_v60  ;;  %v290_v39 = vld [vmem:[%s1344_s16 + $0xc0] sm:$0xff] }
  0x54   : > { %v481_v56 = vld [vmem:[#allocation2 + $0x87] ss:$2 sm:$0xff]  ;;  %v681_v5 = vmul.f32 %v1379_v32, %v667_v51  ;;  %v346_v51 = vmul.f32 %v1364_v18, %v312_v37  ;;  %v734_v4 = vld [vmem:[#allocation2 + $0xc8] ss:$2 sm:$0xff] }
  0x55   : > { %v704_v0 = vld [vmem:[#allocation2 + $0x187] ss:$2 sm:$0xff]  ;;  %v581_v9 = vadd.f32 %v573_v50, %v545_v61  ;;  %v498_v12 = vmul.f32 %v1352_v13, %v481_v56  ;;  %v688_v27 = vadd.f32 %v680_v42, %v652_v10  ;;  %v642_v42 = vmul.f32 %v1368_v20, %v625_v24 }
  0x56   : > { %v553_v3 = vld [vmem:[#allocation2 + $0x89] ss:$2 sm:$0xff]  ;;  %v718_v8 = vmul.f32 %v1381_v33, %v704_v0  ;;  %v794_v50 = vadd.f32 %v1485_v30, %v758_v36  ;;  %453 = vst.msk [vmem:[#allocation2 + $0xe8] sm:$0xff] %vm366_vm1, %v346_v51  ;;  %v327_v61 = vmul.f32 %v1361_v17, %v293_v46  ;;  %v751_v10 = vmul.f32 %v1383_v34, %v734_v4 }
  0x57   : > { %v589_v7 = vld [vmem:[#allocation2 + $0xa7] ss:$2 sm:$0xff]  ;;  %v570_v49 = vmul.f32 %v1357_v15, %v553_v3  ;;  %v617_v28 = vadd.f32 %v609_v62, %v581_v9  ;;  %v542_v29 = vadd.f32 %v534_v16, %v498_v12  ;;  %v725_v41 = vadd.f32 %v717_v47, %v688_v27  ;;  %v519_v12 = vld [vmem:[#allocation2 + $0xc8] ss:$2 sm:$0xff] }
  0x58   : > { %v776_v11 = vld [vmem:[#allocation2 + $0x189] ss:$2 sm:$0xff]  ;;  %v606_v31 = vmul.f32 %v1366_v19, %v589_v7  ;;  %v324_v47 = vmul.f32 %v1361_v17, %v290_v39  ;;  %1135 = vmatmul.mubr.msk.f32.vlgmr.msra.gmra.mrb[0].mxu0 %vm366_vm1, %v794_v50 }
  0x59   : > { %v279_v22 = vld [vmem:[%s1344_s16 + $0x68] sm:$0xff]  ;;  %v790_v25 = vmul.f32 %v1421_v2, %v776_v11  ;;  %v653_v43 = vadd.f32 %v645_v63, %v617_v28  ;;  %v578_v44 = vadd.f32 %v570_v49, %v542_v29  ;;  %v292_v45 = vld [vmem:[%s1344_s16 + $0xd0] sm:$0xff]  ;;  %v761_v53 = vadd.f32 %v753_v54, %v725_v41  ;;  %v294_v49 = vld [vmem:[%s1344_s16 + $0xe0] sm:$0xff] }
  0x5a   : > { %v661_v35 = vld [vmem:[#allocation2 + $0xa9] ss:$2 sm:$0xff]  ;;  %v313_v38 = vmul.f32 %v1361_v17, %v279_v22  ;;  %v326_v30 = vmul.f32 %v1361_v17, %v292_v45  ;;  %v525_v63 = vld [vmem:[#allocation2 + $0x188] ss:$2 sm:$0xff]  ;;  %v358_v6 = vmul.f32 %v1364_v18, %v324_v47  ;;  %v328_v41 = vmul.f32 %v1361_v17, %v294_v49 }
  0x5b   : > { %v291_v40 = vld [vmem:[%s1344_s16 + $0xc8] sm:$0xff]  ;;  %v678_v26 = vmul.f32 %v1379_v32, %v661_v35  ;;  %v689_v56 = vadd.f32 %v681_v5, %v653_v43  ;;  %v614_v57 = vadd.f32 %v606_v31, %v578_v44  ;;  %v797_v0 = vadd.f32 %v1496_v55, %v761_v53  ;;  %v296_v27 = vld [vmem:[%s1344_s16 + $0xf0] sm:$0xff]  ;;  %v297_v35 = vld [vmem:[%s1344_s16 + $0xf8] sm:$0xff] }
  0x5c   : > { %v489_v48 = vld [vmem:[#allocation2 + $0x187] ss:$2 sm:$0xff]  ;;  %v347_v52 = vmul.f32 %v1364_v18, %v313_v38  ;;  %v325_v58 = vmul.f32 %v1361_v17, %v291_v40  ;;  %465 = vst.msk [vmem:[#allocation2 + $0x1a8] sm:$0xff] %vm366_vm1, %v358_v6  ;;  %v360_v29 = vmul.f32 %v1364_v18, %v326_v30  ;;  %v361_v31 = vmul.f32 %v1364_v18, %v327_v61  ;;  %v736_v61 = vld [vmem:[#allocation2 + $0x108] ss:$2 sm:$0xff] }
  0x5d   : > { %v502_v62 = vmul.f32 %v1352_v13, %v489_v48  ;;  %v561_v54 = vld [vmem:[#allocation2 + $0x189] ss:$2 sm:$0xff]  ;;  %v726_v1 = vadd.f32 %v718_v8, %v689_v56  ;;  %v650_v3 = vadd.f32 %v642_v42, %v614_v57  ;;  %1140 = vmatprep.mubr.msk.f32.mxu1 %vm366_vm1, %v797_v0  ;;  %v535_v8 = vmul.f32 %v1354_v14, %v519_v12 }
  0x5e   : > { %454 = vst.msk [vmem:[#allocation2 + $0xf0] sm:$0xff] %vm366_vm1, %v347_v52  ;;  %v698_v59 = vld [vmem:[#allocation2 + $0xc7] ss:$2 sm:$0xff]  ;;  %v359_v55 = vmul.f32 %v1364_v18, %v325_v58  ;;  %v574_v39 = vmul.f32 %v1357_v15, %v561_v54  ;;  %467 = vst.msk [vmem:[#allocation2 + $0x1c8] sm:$0xff] %vm366_vm1, %v360_v29  ;;  %v330_v44 = vmul.f32 %v1361_v17, %v296_v27 }
  0x5f   : > { %v770_v5 = vld [vmem:[#allocation2 + $0xc9] ss:$2 sm:$0xff]  ;;  %v715_v7 = vmul.f32 %v1381_v33, %v698_v59  ;;  %v762_v21 = vadd.f32 %v754_v23, %v726_v1  ;;  %v686_v22 = vadd.f32 %v678_v26, %v650_v3  ;;  %v538_v23 = vmul.f32 %v1354_v14, %v525_v63  ;;  %468 = vst.msk [vmem:[#allocation2 + $0x1d0] sm:$0xff] %vm366_vm1, %v361_v31 }
  0x60   : > { %v787_v9 = vmul.f32 %v1421_v2, %v770_v5  ;;  %v483_v11 = vld [vmem:[#allocation2 + $0xc7] ss:$2 sm:$0xff]  ;;  %466 = vst.msk [vmem:[#allocation2 + $0x1b0] sm:$0xff] %vm366_vm1, %v359_v55  ;;  %v331_v50 = vmul.f32 %v1361_v17, %v297_v35  ;;  %v362_v56 = vmul.f32 %v1364_v18, %v328_v41  ;;  %v364_v47 = vmul.f32 %v1364_v18, %v330_v44 }
  0x61   : > { %v555_v16 = vld [vmem:[#allocation2 + $0xc9] ss:$2 sm:$0xff]  ;;  %v499_v60 = vmul.f32 %v1352_v13, %v483_v11  ;;  %v798_v36 = vadd.f32 %v790_v25, %v762_v21  ;;  %v723_v37 = vadd.f32 %v715_v7, %v686_v22  ;;  %v546_v40 = vadd.f32 %v538_v23, %v502_v62 }
  0x62   : > { %v295_v24 = vld [vmem:[%s1344_s16 + $0xe8] sm:$0xff]  ;;  %v571_v28 = vmul.f32 %v1357_v15, %v555_v16  ;;  %v365_v63 = vmul.f32 %v1364_v18, %v331_v50  ;;  %469 = vst.msk [vmem:[#allocation2 + $0x1e8] sm:$0xff] %vm366_vm1, %v362_v56  ;;  %471 = vst.msk [vmem:[#allocation2 + $0x208] sm:$0xff] %vm366_vm1, %v364_v47  ;;  %v752_v7 = vmul.f32 %v1383_v34, %v736_v61  ;;  %v1117_v56 = vld [vmem:[%s1628_s4] ss:$0 sm:$0xff] }
  0x63   : > { %v543_v38 = vadd.f32 %v535_v8, %v499_v60  ;;  %v329_v43 = vmul.f32 %v1361_v17, %v295_v24  ;;  %1141 = vmatmul.mubr.msk.f32.vlgmr.msra.gmra.mrb[0].mxu1 %vm366_vm1, %v798_v36  ;;  %v759_v42 = vadd.f32 %v751_v10, %v723_v37  ;;  %v700_v53 = vld [vmem:[#allocation2 + $0x107] ss:$2 sm:$0xff]  ;;  %v582_v62 = vadd.f32 %v574_v39, %v546_v40 }
  0x64   : > { %v716_v3 = vmul.f32 %v1381_v33, %v700_v53  ;;  %472 = vst.msk [vmem:[#allocation2 + $0x210] sm:$0xff] %vm366_vm1, %v365_v63 }
  0x65   : > { %v579_v45 = vadd.f32 %v571_v28, %v543_v38  ;;  %v591_v25 = vld [vmem:[#allocation2 + $0xe7] ss:$2 sm:$0xff]  ;;  %v627_v46 = vld [vmem:[#allocation2 + $0xe8] ss:$2 sm:$0xff]  ;;  %v795_v52 = vadd.f32 %v787_v9, %v759_v42  ;;  %v363_v57 = vmul.f32 %v1364_v18, %v329_v43 }
  0x66   : > { %v663_v48 = vld [vmem:[#allocation2 + $0xe9] ss:$2 sm:$0xff]  ;;  %v607_v26 = vmul.f32 %v1366_v19, %v591_v25  ;;  %v643_v51 = vmul.f32 %v1368_v20, %v627_v46  ;;  %v527_v12 = vld [vmem:[#allocation2 + $0x1c8] ss:$2 sm:$0xff] }
  0x67   : > { %v679_v30 = vmul.f32 %v1379_v32, %v663_v48  ;;  %1137 = vmatprep.mubr.msk.f32.mxu0 %vm366_vm1, %v795_v52  ;;  %v597_v17 = vld [vmem:[#allocation2 + $0x1a7] ss:$2 sm:$0xff]  ;;  %v633_v54 = vld [vmem:[#allocation2 + $0x1a8] ss:$2 sm:$0xff]  ;;  %470 = vst.msk [vmem:[#allocation2 + $0x1f0] sm:$0xff] %vm366_vm1, %v363_v57  ;;  %v539_v22 = vmul.f32 %v1354_v14, %v527_v12 }
  0x68   : > { %v615_v58 = vadd.f32 %v607_v26, %v579_v45  ;;  %v669_v0 = vld [vmem:[#allocation2 + $0x1a9] ss:$2 sm:$0xff]  ;;  %v610_v59 = vmul.f32 %v1366_v19, %v597_v17  ;;  %v646_v4 = vmul.f32 %v1368_v20, %v633_v54  ;;  %v742_v55 = vld [vmem:[#allocation2 + $0x1c8] ss:$2 sm:$0xff] }
  0x69   : > { %v772_v18 = vld [vmem:[#allocation2 + $0x109] ss:$2 sm:$0xff]  ;;  %v682_v9 = vmul.f32 %v1379_v32, %v669_v0  ;;  %v755_v35 = vmul.f32 %v1383_v34, %v742_v55 }
  0x6a   : > { %v651_v1 = vadd.f32 %v643_v51, %v615_v58  ;;  %v706_v5 = vld [vmem:[#allocation2 + $0x1c7] ss:$2 sm:$0xff]  ;;  %v618_v10 = vadd.f32 %v610_v59, %v582_v62  ;;  %v788_v49 = vmul.f32 %v1421_v2, %v772_v18 }
  0x6b   : > { %v491_v11 = vld [vmem:[#allocation2 + $0x1c7] ss:$2 sm:$0xff]  ;;  %v719_v27 = vmul.f32 %v1381_v33, %v706_v5  ;;  %v744_v25 = vld [vmem:[#allocation2 + $0x208] ss:$2 sm:$0xff] }
  0x6c   : > { %v687_v6 = vadd.f32 %v679_v30, %v651_v1  ;;  %v563_v16 = vld [vmem:[#allocation2 + $0x1c9] ss:$2 sm:$0xff]  ;;  %v503_v21 = vmul.f32 %v1352_v13, %v491_v11  ;;  %v654_v24 = vadd.f32 %v646_v4, %v618_v10 }
  0x6d   : > { %v575_v60 = vmul.f32 %v1357_v15, %v563_v16  ;;  %v778_v28 = vld [vmem:[#allocation2 + $0x1c9] ss:$2 sm:$0xff] }
  0x6e   : > { %v724_v8 = vadd.f32 %v716_v3, %v687_v6  ;;  %v547_v29 = vadd.f32 %v539_v22, %v503_v21  ;;  %v690_v23 = vadd.f32 %v682_v9, %v654_v24  ;;  %v599_v36 = vld [vmem:[#allocation2 + $0x1e7] ss:$2 sm:$0xff]  ;;  %v635_v37 = vld [vmem:[#allocation2 + $0x1e8] ss:$2 sm:$0xff]  ;;  %v791_v41 = vmul.f32 %v1421_v2, %v778_v28 }
  0x6f   : > { %v671_v38 = vld [vmem:[#allocation2 + $0x1e9] ss:$2 sm:$0xff]  ;;  %v611_v14 = vmul.f32 %v1366_v19, %v599_v36  ;;  %v647_v15 = vmul.f32 %v1368_v20, %v635_v37  ;;  %v756_v20 = vmul.f32 %v1383_v34, %v744_v25 }
  0x70   : > { %v760_v31 = vadd.f32 %v752_v7, %v724_v8  ;;  %v583_v13 = vadd.f32 %v575_v60, %v547_v29  ;;  %v727_v40 = vadd.f32 %v719_v27, %v690_v23  ;;  %v708_v43 = vld [vmem:[#allocation2 + $0x207] ss:$2 sm:$0xff]  ;;  %v683_v42 = vmul.f32 %v1379_v32, %v671_v38 }
  0x71   : > { %v720_v48 = vmul.f32 %v1381_v33, %v708_v43  ;;  %v780_v19 = vld [vmem:[#allocation2 + $0x209] ss:$2 sm:$0xff]  ;;  %v1118_v33 = vld [vmem:[%s1629_s5] ss:$0 sm:$0xff] }
  0x72   : > { %v796_v39 = vadd.f32 %v788_v49, %v760_v31  ;;  %v619_v44 = vadd.f32 %v611_v14, %v583_v13  ;;  %v763_v45 = vadd.f32 %v755_v35, %v727_v40  ;;  %v792_v52 = vmul.f32 %v1421_v2, %v780_v19 }
  0x74   : > { %1138 = vmatmul.mubr.msk.f32.gmra.mrb[2].mxu0 %vm366_vm1, %v796_v39  ;;  %v655_v46 = vadd.f32 %v647_v15, %v619_v44  ;;  %v799_v50 = vadd.f32 %v791_v41, %v763_v45 }
  0x76   : > { %v691_v26 = vadd.f32 %v683_v42, %v655_v46  ;;  %1143 = vmatprep.mubr.msk.f32.mxu1 %vm366_vm1, %v799_v50 }
  0x78   : > { %v728_v51 = vadd.f32 %v720_v48, %v691_v26 }
  0x7a   : > { %v764_v53 = vadd.f32 %v756_v20, %v728_v51 }
  0x7c   : > { %v800_v32 = vadd.f32 %v792_v52, %v764_v53 }
  0x7e   : > { %1144 = vmatmul.mubr.msk.f32.gmra.mrb[2].mxu1 %vm366_vm1, %v800_v32 }
 0x12b   : > { %v1136_v57 = vpop.f32.mrb[0].mxu0 }
 0x12c   : > { %v944_v34 = vmul.f32 %v1136_v57, %v1117_v56  ;;  %v898_v47 = vpop.f32.mrb[1].mxu0 }
 0x12d   : > { %v943_v58 = vmul.f32 %v1117_v56, %v898_v47 }
 0x12e   : > { %v958_v30 = vadd.f32 %v1118_v33, %v944_v34 }
 0x12f   : > { %v957_v2 = vadd.f32 %v1118_v33, %v943_v58 }
 0x130   : > { %v966_v61 = vmax.f32 %v958_v30, 0.0 }
 0x131   : > { %v965_v62 = vmax.f32 %v957_v2, 0.0 }
 0x132   : > { %974 = vst.msk [vmem:[%s1603_s28 + $0x8] sm:$0xff] %vm366_vm1, %v966_v61 }
 0x133   : > { %973 = vst.msk [vmem:[%s1603_s28] sm:$0xff] %vm366_vm1, %v965_v62 }
 0x136   : > { %v1142_v63 = vpop.f32.mrb[0].mxu1 }
 0x137   : > { %v948_v17 = vmul.f32 %v1142_v63, %v1117_v56  ;;  %v918_v54 = vpop.f32.mrb[1].mxu1 }
 0x138   : > { %v947_v0 = vmul.f32 %v1117_v56, %v918_v54 }
 0x139   : > { %v962_v1 = vadd.f32 %v1118_v33, %v948_v17 }
 0x13a   : > { %v961_v3 = vadd.f32 %v1118_v33, %v947_v0 }
 0x13b   : > { %v970_v59 = vmax.f32 %v962_v1, 0.0 }
 0x13c   : > { %v969_v4 = vmax.f32 %v961_v3, 0.0 }
 0x13d   : > { %978 = vst.msk [vmem:[%s1603_s28 + $0x28] sm:$0xff] %vm366_vm1, %v970_v59 }
 0x13e   : > { %977 = vst.msk [vmem:[%s1603_s28 + $0x20] sm:$0xff] %vm366_vm1, %v969_v4 }
 0x147   : > { %v1139_v18 = vpop.f32.mrb[2].mxu0 }
 0x148   : > { %v946_v5 = vmul.f32 %v1139_v18, %v1117_v56  ;;  %v908_v6 = vpop.f32.mrb[3].mxu0 }
 0x149   : > { %v945_v7 = vmul.f32 %v1117_v56, %v908_v6 }
 0x14a   : > { %v960_v10 = vadd.f32 %v1118_v33, %v946_v5 }
 0x14b   : > { %v959_v9 = vadd.f32 %v1118_v33, %v945_v7 }
 0x14c   : > { %v968_v11 = vmax.f32 %v960_v10, 0.0 }
 0x14d   : > { %v967_v12 = vmax.f32 %v959_v9, 0.0 }
 0x14e   : > { %976 = vst.msk [vmem:[%s1603_s28 + $0x18] sm:$0xff] %vm366_vm1, %v968_v11 }
 0x14f   : > { %975 = vst.msk [vmem:[%s1603_s28 + $0x10] sm:$0xff] %vm366_vm1, %v967_v12 }
 0x151   : > { %v1145_v16 = vpop.f32.mrb[2].mxu1 }
 0x152   : > { %v950_v55 = vmul.f32 %v1145_v16, %v1117_v56  ;;  %v928_v21 = vpop.f32.mrb[3].mxu1 }
 0x153   : > { %v949_v22 = vmul.f32 %v1117_v56, %v928_v21 }
 0x154   : > { %v964_v60 = vadd.f32 %v1118_v33, %v950_v55 }
 0x155   : > { %v963_v8 = vadd.f32 %v1118_v33, %v949_v22 }
 0x156   : > { %v972_v49 = vmax.f32 %v964_v60, 0.0 }
 0x157   : > { %v971_v24 = vmax.f32 %v963_v8, 0.0 }
 0x158   : > { %980 = vst.msk [vmem:[%s1603_s28 + $0x38] sm:$0xff] %vm366_vm1, %v972_v49 }
 0x159   : > { %979 = vst.msk [vmem:[%s1603_s28 + $0x30] sm:$0xff] %vm366_vm1, %v971_v24 }
 0x15a PF: > { %s17_s21 = sadd.s32 1, %s1193_s21  }
 0x15b   : > { %p14_p1 = scmp.ge.s32.totalorder %s17_s21, 4  }
 0x15d   :  { %16 = sbr.rel (!%p14_p1) target bundleno = 1 (0x1), region = 153 }
 0x164   :  { %1002 = vsyncpa [#allocation4], 1 }
 0x165   :  { %1004 = vsyncpa [#allocation4 + $0x1], 1 }

// kernel: bifpn_forward.11
= control target key start
LH: loop header
LB: loop body
LE: loop exit
PB: predicated region body
PF: predicated region fallthrough
CT: control target
= control target key end

     0   :  { %12 = vsyncpa [#allocation4], 0  ;;  %s2298_s24 = smov 0   ;;  %s3644_s0 = inlined_call_operand.vmem [shape: f32[3], index: 0, kind: input, shape index: {}]   ;;  %s3645_s1 = inlined_call_operand.vmem [shape: f32[2,16,16,4], index: 1, kind: input, shape index: {}]   ;;  %s3646_s2 = inlined_call_operand.vmem [shape: f32[2,16,16,4], index: 2, kind: input, shape index: {}]   ;;  %s3647_s3 = inlined_call_operand.vmem [shape: f32[3,3,4], index: 3, kind: input, shape index: {}]   ;;  %s3648_s4 = inlined_call_operand.vmem [shape: f32[4,4], index: 4, kind: input, shape index: {}]   ;;  %s3649_s5 = inlined_call_operand.vmem [shape: f32[1,4], index: 5, kind: input, shape index: {}]   ;;  %s3650_s6 = inlined_call_operand.vmem [shape: f32[1,4], index: 6, kind: input, shape index: {}]   ;;  %s3651_s7 = inlined_call_operand.vmem [shape: f32[2,16,16,4], index: 7, kind: output, shape index: {}]  }
   0x1 LB: > { %s2304_s25 = sadd.s32 4294967295, %s2254_s24   ;;  %p2071_p0 = scmp.ge.s32.totalorder %s2254_s24, 1  ;;  %s2254_s24 = sphi %s2298_s24, %s18_s24  }
   0x2   : > { %p206_p1 = scmp.lt.s32.totalorder %s2254_s24, 3  ;;  %s219_s28 = sshll.u32 %s3644_s0, 4  ;;  %s220_s28 = int_to_ptr.vmem [resolvable:$true] %s219_s28 }
   0x3   : > { %p2217_p3 = scmp.eq.s32.totalorder %s2304_s25, 0  ;;  %s2229_s30 = scalar_lea.vmem %s220_s28, 16 }
   0x4   : > { %p2311_p2 = pnand %p2071_p0, %p206_p1  ;;  %p2230_p6 = scmp.ne.s32.totalorder %s220_s28, %s2229_s30 }
   0x5   : > { %p2237_p10 = scmp.lt.s32.totalorder %s220_s28, %s220_s28  ;;  %p2238_p11 = scmp.lt.s32.totalorder %s2229_s30, %s2229_s30 }
   0x6   : > { %p2213_p4 = pneg %p2311_p2 }
   0x7   : > { %p2239_p12 = por %p2238_p11, %p2237_p10 }
   0x8   : > { %p2214_p5 = pnand %p2217_p3, %p2213_p4 }
   0xa   : > { %p2231_p7 = pneg %p2214_p5 }
   0xc   : > { %p2232_p8 = pnand %p2231_p7, %p2230_p6 }
   0xe   : > { %p2233_p9 = pneg %p2232_p8 }
  0x10   : > { %p2240_p13 = pnand %p2239_p12, %p2233_p9 }
  0x12   : > { %2243 = shalt.err (!%p2240_p13)
}
  0x13   : > { %s2256_s8 = smov [#allocation3]   ;;  %260 = sbr.rel (%p2311_p2) target bundleno = 460 (0x1cc), region = 48 }
  0x14   : > { %2216 = dma.vmem_to_smem (!%p2214_p5), %s220_s28, 16, %s2256_s8, [#allocation4]  }
  0x1a   : > { %2249 = dma.done.wait (%p2217_p3), [#allocation4], 16  }
  0x1b   : > { %2251 = vsyncadd (%p2217_p3), [#allocation4], 4294967280 }
  0x1c   : > { %266 = sfence }
  0x1d   : > { %v2329_v0 = vld [vmem:[%s3648_s4] sm:$0xf]  ;;  %vm1621_vm0 = vcmask 1043456   ;;  %p298_p0 = scmp.lt.s32.totalorder %s2304_s25, 1  ;;  %s2332_s11 = sld [smem:[#allocation3]]  ;;  %v653_v1 = vlaneseq  ;;  %vm511_vm1 = vcmask 31744  }
  0x1e   : > { %2157 = vmatprep.subr.msk.mxu0 %vm1621_vm0, %v2329_v0  ;;  %2207 = vmatprep.subr.msk.mxu1 %vm1621_vm0, %v2329_v0  ;;  %s2338_s12 = sld [smem:[#allocation3 + $0x1]]  ;;  %s2340_s13 = sld [smem:[#allocation3 + $0x2]]  ;;  %v2257_v2 = vmov 0.0   ;;  %v618_v4 = vld [vmem:[%s3647_s3] sm:$0x7]  ;;  %vm515_vm2 = vcmask 24576  }
  0x1f   : > { %2158 = vmatpush3.msk.msra.mxu0 %vm1621_vm0, %v2329_v0  ;;  %s3686_s25 = smov (!%p298_p0, %s2304_s25), 1  ;;  %512 = vst.msk [vmem:[#allocation2] sm:$0xff] %vm511_vm1, %v2257_v2  ;;  %513 = vst.msk [vmem:[#allocation2 + $0x8] sm:$0xff] %vm511_vm1, %v2257_v2  ;;  %v654_v3 = vshrl.u32 %v653_v1, 7  ;;  %2208 = vmatpush3.msk.msra.mxu1 %vm1621_vm0, %v2329_v0  ;;  %v619_v8 = vld [vmem:[%s3647_s3 + $0x4] sm:$0x7] }
  0x20   : > { %514 = vst.msk [vmem:[#allocation2 + $0x10] sm:$0xff] %vm511_vm1, %v2257_v2  ;;  %517 = vst.msk [vmem:[#allocation2 + $0x20] sm:$0xff] %vm511_vm1, %v2257_v2  ;;  %s2461_s16 = sshll.u32 %s3686_s25, 8  ;;  %v620_v29 = vld [vmem:[%s3647_s3 + $0x8] sm:$0x7] }
  0x21   : > { %518 = vst.msk [vmem:[#allocation2 + $0x28] sm:$0xff] %vm511_vm1, %v2257_v2  ;;  %519 = vst.msk [vmem:[#allocation2 + $0x30] sm:$0xff] %vm511_vm1, %v2257_v2  ;;  %v2463_v5 = vsub.s32 0, %v654_v3  ;;  %v2465_v6 = vsub.s32 1, %v654_v3  ;;  %v2467_v7 = vsub.s32 2, %v654_v3  ;;  %s2509_s19 = scalar_lea.vmem %s3645_s1, %s2461_s16  ;;  %s2518_s25 = scalar_lea.vmem %s3646_s2, %s2461_s16 }
  0x22   : > { %521 = vst.msk [vmem:[#allocation2 + $0x40] sm:$0xff] %vm511_vm1, %v2257_v2  ;;  %522 = vst.msk [vmem:[#allocation2 + $0x48] sm:$0xff] %vm511_vm1, %v2257_v2  ;;  %v313_v9 = vld [vmem:[%s2509_s19] sm:$0xff]  ;;  %v314_v10 = vld [vmem:[%s2509_s19 + $0x8] sm:$0xff] }
  0x23   : > { %523 = vst.msk [vmem:[#allocation2 + $0x50] sm:$0xff] %vm511_vm1, %v2257_v2  ;;  %525 = vst.msk [vmem:[#allocation2 + $0x60] sm:$0xff] %vm511_vm1, %v2257_v2  ;;  %v315_v11 = vld [vmem:[%s2509_s19 + $0x10] sm:$0xff]  ;;  %v2524_v12 = vstv %s2332_s11  ;;  %v2527_v13 = vrot.slane %v618_v4, %v2463_v5  ;;  %v2530_v14 = vrot.slane %v618_v4, %v2465_v6  ;;  %v2533_v15 = vrot.slane %v618_v4, %v2467_v7  ;;  %v316_v16 = vld [vmem:[%s2509_s19 + $0x18] sm:$0xff]  ;;  %s3514_s11 = scalar_lea.vmem %s3651_s7, %s2461_s16 }
  0x24   : > { %526 = vst.msk [vmem:[#allocation2 + $0x68] sm:$0xff] %vm511_vm1, %v2257_v2  ;;  %527 = vst.msk [vmem:[#allocation2 + $0x70] sm:$0xff] %vm511_vm1, %v2257_v2  ;;  %v347_v17 = vmul.f32 %v2524_v12, %v313_v9  ;;  %v348_v18 = vmul.f32 %v2524_v12, %v314_v10  ;;  %v349_v19 = vmul.f32 %v2524_v12, %v315_v11  ;;  %v379_v20 = vld [vmem:[%s2518_s25] sm:$0xff]  ;;  %v380_v21 = vld [vmem:[%s2518_s25 + $0x8] sm:$0xff]  ;;  %v2542_v22 = vstv %s2338_s12 }
  0x25   : > { %529 = vst.msk [vmem:[#allocation2 + $0x80] sm:$0xff] %vm511_vm1, %v2257_v2  ;;  %530 = vst.msk [vmem:[#allocation2 + $0x88] sm:$0xff] %vm511_vm1, %v2257_v2  ;;  %v350_v23 = vmul.f32 %v2524_v12, %v316_v16  ;;  %v381_v24 = vld [vmem:[%s2518_s25 + $0x10] sm:$0xff]  ;;  %v382_v25 = vld [vmem:[%s2518_s25 + $0x18] sm:$0xff]  ;;  %v413_v26 = vmul.f32 %v2542_v22, %v379_v20  ;;  %v414_v27 = vmul.f32 %v2542_v22, %v380_v21  ;;  %v2550_v28 = vstv %s2340_s13 }
  0x26   : > { %531 = vst.msk [vmem:[#allocation2 + $0x90] sm:$0xff] %vm511_vm1, %v2257_v2  ;;  %533 = vst.msk [vmem:[#allocation2 + $0xa0] sm:$0xff] %vm511_vm1, %v2257_v2  ;;  %v415_v30 = vmul.f32 %v2542_v22, %v381_v24  ;;  %v416_v31 = vmul.f32 %v2542_v22, %v382_v25  ;;  %v621_v32 = vld [vmem:[#allocation2 + $0x7] sm:$0xff]  ;;  %v2558_v35 = vrot.slane %v619_v8, %v2463_v5  ;;  %v327_v42 = vld [vmem:[%s2509_s19 + $0x70] sm:$0xff] }
  0x27   : > { %534 = vst.msk [vmem:[#allocation2 + $0xa8] sm:$0xff] %vm511_vm1, %v2257_v2  ;;  %535 = vst.msk [vmem:[#allocation2 + $0xb0] sm:$0xff] %vm511_vm1, %v2257_v2  ;;  %v721_v33 = vld [vmem:[#allocation2 + $0x8] sm:$0xff]  ;;  %v2561_v36 = vrot.slane %v619_v8, %v2465_v6  ;;  %v445_v37 = vadd.f32 %v413_v26, %v347_v17  ;;  %v446_v38 = vadd.f32 %v414_v27, %v348_v18  ;;  %v722_v47 = vld [vmem:[#allocation2 + $0x10] sm:$0xff] }
  0x28   : > { %537 = vst.msk [vmem:[#allocation2 + $0xc0] sm:$0xff] %vm511_vm1, %v2257_v2  ;;  %538 = vst.msk [vmem:[#allocation2 + $0xc8] sm:$0xff] %vm511_vm1, %v2257_v2  ;;  %v821_v34 = vld [vmem:[#allocation2 + $0x9] sm:$0xff]  ;;  %v657_v39 = vmul.f32 %v2527_v13, %v621_v32  ;;  %v757_v40 = vmul.f32 %v2530_v14, %v721_v33  ;;  %v447_v43 = vadd.f32 %v415_v30, %v349_v19  ;;  %v328_v49 = vld [vmem:[%s2509_s19 + $0x78] sm:$0xff] }
  0x29   : > { %539 = vst.msk [vmem:[#allocation2 + $0xd0] sm:$0xff] %vm511_vm1, %v2257_v2  ;;  %541 = vst.msk [vmem:[#allocation2 + $0xe0] sm:$0xff] %vm511_vm1, %v2257_v2  ;;  %v622_v41 = vld [vmem:[#allocation2 + $0xf] sm:$0xff]  ;;  %v448_v44 = vadd.f32 %v416_v31, %v350_v23  ;;  %v857_v45 = vmul.f32 %v2533_v15, %v821_v34  ;;  %v2568_v46 = vrot.slane %v619_v8, %v2467_v7  ;;  %v329_v54 = vld [vmem:[%s2509_s19 + $0x80] sm:$0xff] }
  0x2a   : > { %542 = vst.msk [vmem:[#allocation2 + $0xe8] sm:$0xff] %vm511_vm1, %v2257_v2  ;;  %543 = vst.msk [vmem:[#allocation2 + $0xf0] sm:$0xff] %vm511_vm1, %v2257_v2  ;;  %v479_v50 = vmul.f32 %v2550_v28, %v445_v37  ;;  %v480_v51 = vmul.f32 %v2550_v28, %v446_v38  ;;  %v789_v52 = vadd.f32 %v757_v40, %v657_v39  ;;  %v330_v55 = vld [vmem:[%s2509_s19 + $0x88] sm:$0xff]  ;;  %v331_v56 = vld [vmem:[%s2509_s19 + $0x90] sm:$0xff] }
  0x2b   : > { %545 = vst.msk [vmem:[#allocation2 + $0x100] sm:$0xff] %vm511_vm1, %v2257_v2  ;;  %546 = vst.msk [vmem:[#allocation2 + $0x108] sm:$0xff] %vm511_vm1, %v2257_v2  ;;  %v2574_v53 = vrot.slane %v620_v29, %v2463_v5  ;;  %v481_v57 = vmul.f32 %v2550_v28, %v447_v43  ;;  %v482_v58 = vmul.f32 %v2550_v28, %v448_v44  ;;  %v332_v61 = vld [vmem:[%s2509_s19 + $0x98] sm:$0xff]  ;;  %v393_v62 = vld [vmem:[%s2518_s25 + $0x70] sm:$0xff] }
  0x2c   : > { %547 = vst.msk [vmem:[#allocation2 + $0x110] sm:$0xff] %vm511_vm1, %v2257_v2  ;;  %549 = vst.msk [vmem:[#allocation2 + $0x120] sm:$0xff] %vm511_vm1, %v2257_v2  ;;  %v2582_v59 = vrot.slane %v620_v29, %v2465_v6  ;;  %v2585_v60 = vrot.slane %v620_v29, %v2467_v7  ;;  %v394_v63 = vld [vmem:[%s2518_s25 + $0x78] sm:$0xff]  ;;  %v2592_v0 = vadd.f32 %v857_v45, %v789_v52  ;;  %v395_v4 = vld [vmem:[%s2518_s25 + $0x80] sm:$0xff] }
  0x2d   : > { %550 = vst.msk [vmem:[#allocation2 + $0x128] sm:$0xff] %vm511_vm1, %v2257_v2  ;;  %551 = vst.msk [vmem:[#allocation2 + $0x130] sm:$0xff] %vm511_vm1, %v2257_v2  ;;  %v658_v1 = vmul.f32 %v2527_v13, %v622_v41  ;;  %v396_v5 = vld [vmem:[%s2518_s25 + $0x88] sm:$0xff]  ;;  %v397_v6 = vld [vmem:[%s2518_s25 + $0x90] sm:$0xff]  ;;  %v361_v7 = vmul.f32 %v2524_v12, %v327_v42  ;;  %v362_v8 = vmul.f32 %v2524_v12, %v328_v49 }
  0x2e   : > { %553 = vst.msk [vmem:[#allocation2 + $0x140] sm:$0xff] %vm511_vm1, %v2257_v2  ;;  %554 = vst.msk [vmem:[#allocation2 + $0x148] sm:$0xff] %vm511_vm1, %v2257_v2  ;;  %v363_v9 = vmul.f32 %v2524_v12, %v329_v54  ;;  %v364_v10 = vmul.f32 %v2524_v12, %v330_v55  ;;  %v398_v11 = vld [vmem:[%s2518_s25 + $0x98] sm:$0xff]  ;;  %v317_v16 = vld [vmem:[%s2509_s19 + $0x20] sm:$0xff]  ;;  %v365_v18 = vmul.f32 %v2524_v12, %v331_v56 }
  0x2f   : > { %555 = vst.msk [vmem:[#allocation2 + $0x150] sm:$0xff] %vm511_vm1, %v2257_v2  ;;  %557 = vst.msk [vmem:[#allocation2 + $0x160] sm:$0xff] %vm511_vm1, %v2257_v2  ;;  %v366_v19 = vmul.f32 %v2524_v12, %v332_v61  ;;  %v427_v20 = vmul.f32 %v2542_v22, %v393_v62  ;;  %v428_v21 = vmul.f32 %v2542_v22, %v394_v63  ;;  %v318_v26 = vld [vmem:[%s2509_s19 + $0x28] sm:$0xff]  ;;  %v383_v27 = vld [vmem:[%s2518_s25 + $0x20] sm:$0xff] }
  0x30   : > { %558 = vst.msk [vmem:[#allocation2 + $0x168] sm:$0xff] %vm511_vm1, %v2257_v2  ;;  %559 = vst.msk [vmem:[#allocation2 + $0x170] sm:$0xff] %vm511_vm1, %v2257_v2  ;;  %v429_v23 = vmul.f32 %v2542_v22, %v395_v4  ;;  %v430_v24 = vmul.f32 %v2542_v22, %v396_v5  ;;  %v431_v25 = vmul.f32 %v2542_v22, %v397_v6  ;;  %v384_v42 = vld [vmem:[%s2518_s25 + $0x28] sm:$0xff] }
  0x31   : > { %561 = vst.msk [vmem:[#allocation2 + $0x180] sm:$0xff] %vm511_vm1, %v2257_v2  ;;  %562 = vst.msk [vmem:[#allocation2 + $0x188] sm:$0xff] %vm511_vm1, %v2257_v2  ;;  %v432_v30 = vmul.f32 %v2542_v22, %v398_v11  ;;  %v459_v31 = vadd.f32 %v427_v20, %v361_v7  ;;  %v351_v32 = vmul.f32 %v2524_v12, %v317_v16 }
  0x32   : > { %563 = vst.msk [vmem:[#allocation2 + $0x190] sm:$0xff] %vm511_vm1, %v2257_v2  ;;  %565 = vst.msk [vmem:[#allocation2 + $0x1a0] sm:$0xff] %vm511_vm1, %v2257_v2  ;;  %v460_v33 = vadd.f32 %v428_v21, %v362_v8  ;;  %v461_v34 = vadd.f32 %v429_v23, %v363_v9  ;;  %v462_v37 = vadd.f32 %v430_v24, %v364_v10 }
  0x33   : > { %566 = vst.msk [vmem:[#allocation2 + $0x1a8] sm:$0xff] %vm511_vm1, %v2257_v2  ;;  %567 = vst.msk [vmem:[#allocation2 + $0x1b0] sm:$0xff] %vm511_vm1, %v2257_v2  ;;  %v463_v38 = vadd.f32 %v431_v25, %v365_v18  ;;  %v464_v39 = vadd.f32 %v432_v30, %v366_v19  ;;  %v493_v40 = vmul.f32 %v2550_v28, %v459_v31 }
  0x34   : > { %569 = vst.msk [vmem:[#allocation2 + $0x1c0] sm:$0xff] %vm511_vm1, %v2257_v2  ;;  %570 = vst.msk [vmem:[#allocation2 + $0x1c8] sm:$0xff] %vm511_vm1, %v2257_v2  ;;  %v352_v41 = vmul.f32 %v2524_v12, %v318_v26  ;;  %v417_v43 = vmul.f32 %v2542_v22, %v383_v27  ;;  %v495_v49 = vmul.f32 %v2550_v28, %v461_v34 }
  0x35   : > { %571 = vst.msk [vmem:[#allocation2 + $0x1d0] sm:$0xff] %vm511_vm1, %v2257_v2  ;;  %573 = vst.msk [vmem:[#allocation2 + $0x1e0] sm:$0xff] %vm511_vm1, %v2257_v2  ;;  %v498_v61 = vmul.f32 %v2550_v28, %v464_v39  ;;  %v418_v5 = vmul.f32 %v2542_v22, %v384_v42 }
  0x36   : > { %574 = vst.msk [vmem:[#allocation2 + $0x1e8] sm:$0xff] %vm511_vm1, %v2257_v2  ;;  %575 = vst.msk [vmem:[#allocation2 + $0x1f0] sm:$0xff] %vm511_vm1, %v2257_v2  ;;  %v449_v19 = vadd.f32 %v417_v43, %v351_v32 }
  0x37   : > { %577 = vst.msk [vmem:[#allocation2 + $0x200] sm:$0xff] %vm511_vm1, %v2257_v2  ;;  %578 = vst.msk [vmem:[#allocation2 + $0x208] sm:$0xff] %vm511_vm1, %v2257_v2  ;;  %v450_v23 = vadd.f32 %v418_v5, %v352_v41 }
  0x38   : > { %579 = vst.msk [vmem:[#allocation2 + $0x210] sm:$0xff] %vm511_vm1, %v2257_v2  ;;  %581 = vst.msk [vmem:[#allocation2 + $0x220] sm:$0xff] %vm511_vm1, %v2257_v2  ;;  %v483_v25 = vmul.f32 %v2550_v28, %v449_v19 }
  0x39   : > { %582 = vst.msk [vmem:[#allocation2 + $0x228] sm:$0xff] %vm511_vm1, %v2257_v2  ;;  %583 = vst.msk [vmem:[#allocation2 + $0x230] sm:$0xff] %vm511_vm1, %v2257_v2  ;;  %v484_v34 = vmul.f32 %v2550_v28, %v450_v23 }
  0x3a   : > { %516 = vst.msk [vmem:[#allocation2 + $0x18] sm:$0x1] %vm515_vm2, %v2257_v2  ;;  %520 = vst.msk [vmem:[#allocation2 + $0x38] sm:$0x1] %vm515_vm2, %v2257_v2 }
  0x3b   : > { %524 = vst.msk [vmem:[#allocation2 + $0x58] sm:$0x1] %vm515_vm2, %v2257_v2  ;;  %528 = vst.msk [vmem:[#allocation2 + $0x78] sm:$0x1] %vm515_vm2, %v2257_v2 }
  0x3c   : > { %532 = vst.msk [vmem:[#allocation2 + $0x98] sm:$0x1] %vm515_vm2, %v2257_v2  ;;  %536 = vst.msk [vmem:[#allocation2 + $0xb8] sm:$0x1] %vm515_vm2, %v2257_v2 }
  0x3d   : > { %540 = vst.msk [vmem:[#allocation2 + $0xd8] sm:$0x1] %vm515_vm2, %v2257_v2  ;;  %544 = vst.msk [vmem:[#allocation2 + $0xf8] sm:$0x1] %vm515_vm2, %v2257_v2 }
  0x3e   : > { %548 = vst.msk [vmem:[#allocation2 + $0x118] sm:$0x1] %vm515_vm2, %v2257_v2  ;;  %552 = vst.msk [vmem:[#allocation2 + $0x138] sm:$0x1] %vm515_vm2, %v2257_v2 }
  0x3f   : > { %556 = vst.msk [vmem:[#allocation2 + $0x158] sm:$0x1] %vm515_vm2, %v2257_v2  ;;  %560 = vst.msk [vmem:[#allocation2 + $0x178] sm:$0x1] %vm515_vm2, %v2257_v2 }
  0x40   : > { %564 = vst.msk [vmem:[#allocation2 + $0x198] sm:$0x1] %vm515_vm2, %v2257_v2  ;;  %568 = vst.msk [vmem:[#allocation2 + $0x1b8] sm:$0x1] %vm515_vm2, %v2257_v2 }
  0x41   : > { %572 = vst.msk [vmem:[#allocation2 + $0x1d8] sm:$0x1] %vm515_vm2, %v2257_v2  ;;  %576 = vst.msk [vmem:[#allocation2 + $0x1f8] sm:$0x1] %vm515_vm2, %v2257_v2  ;;  %v822_v48 = vld [vmem:[#allocation2 + $0x11] sm:$0xff] }
  0x42   : > { %580 = vst.msk [vmem:[#allocation2 + $0x218] sm:$0x1] %vm515_vm2, %v2257_v2  ;;  %584 = vst.msk [vmem:[#allocation2 + $0x238] sm:$0x1] %vm515_vm2, %v2257_v2  ;;  %v758_v2 = vmul.f32 %v2530_v14, %v722_v47  ;;  %v858_v3 = vmul.f32 %v2533_v15, %v822_v48  ;;  %v494_v48 = vmul.f32 %v2550_v28, %v460_v33 }
  0x43   : > { %586 = vst.msk [vmem:[#allocation2 + $0x28] sm:$0xff] %vm511_vm1, %v479_v50  ;;  %587 = vst.msk [vmem:[#allocation2 + $0x30] sm:$0xff] %vm511_vm1, %v480_v51  ;;  %v496_v50 = vmul.f32 %v2550_v28, %v462_v37  ;;  %v497_v51 = vmul.f32 %v2550_v28, %v463_v38 }
  0x44   : > { %588 = vst.msk [vmem:[#allocation2 + $0x48] sm:$0xff] %vm511_vm1, %v481_v57  ;;  %589 = vst.msk [vmem:[#allocation2 + $0x50] sm:$0xff] %vm511_vm1, %v482_v58  ;;  %v790_v17 = vadd.f32 %v758_v2, %v658_v1 }
  0x45   : > { %600 = vst.msk [vmem:[#allocation2 + $0x108] sm:$0xff] %vm511_vm1, %v493_v40  ;;  %601 = vst.msk [vmem:[#allocation2 + $0x110] sm:$0xff] %vm511_vm1, %v494_v48 }
  0x46   : > { %v890_v29 = vadd.f32 %v858_v3, %v790_v17  ;;  %602 = vst.msk [vmem:[#allocation2 + $0x128] sm:$0xff] %vm511_vm1, %v495_v49  ;;  %603 = vst.msk [vmem:[#allocation2 + $0x130] sm:$0xff] %vm511_vm1, %v496_v50 }
  0x47   : > { %604 = vst.msk [vmem:[#allocation2 + $0x148] sm:$0xff] %vm511_vm1, %v497_v51  ;;  %605 = vst.msk [vmem:[#allocation2 + $0x150] sm:$0xff] %vm511_vm1, %v498_v61 }
  0x48   : > { %590 = vst.msk [vmem:[#allocation2 + $0x68] sm:$0xff] %vm511_vm1, %v483_v25  ;;  %591 = vst.msk [vmem:[#allocation2 + $0x70] sm:$0xff] %vm511_vm1, %v484_v34 }
  0x4a   : > { %v921_v44 = vld [vmem:[#allocation2 + $0x27] sm:$0xff]  ;;  %v922_v2 = vld [vmem:[#allocation2 + $0x2f] sm:$0xff] }
  0x4b   : > { %v1021_v45 = vld [vmem:[#allocation2 + $0x28] sm:$0xff]  ;;  %v957_v52 = vmul.f32 %v2558_v35, %v921_v44  ;;  %v1022_v3 = vld [vmem:[#allocation2 + $0x30] sm:$0xff]  ;;  %v958_v7 = vmul.f32 %v2558_v35, %v922_v2  ;;  %v659_v24 = vmul.f32 %v921_v44, %v2527_v13  ;;  %v660_v40 = vmul.f32 %v922_v2, %v2527_v13 }
  0x4c   : > { %v1121_v47 = vld [vmem:[#allocation2 + $0x29] sm:$0xff]  ;;  %v1057_v54 = vmul.f32 %v2561_v36, %v1021_v45  ;;  %v2646_v4 = vld [vmem:[#allocation2 + $0x31] sm:$0xff]  ;;  %v1058_v8 = vmul.f32 %v2561_v36, %v1022_v3  ;;  %v759_v26 = vmul.f32 %v1021_v45, %v2530_v14  ;;  %v760_v41 = vmul.f32 %v1022_v3, %v2530_v14 }
  0x4d   : > { %v1157_v55 = vmul.f32 %v2568_v46, %v1121_v47  ;;  %v2630_v56 = vld [vmem:[#allocation2 + $0x47] sm:$0xff]  ;;  %v989_v6 = vadd.f32 %v957_v52, %v2592_v0  ;;  %v1158_v9 = vmul.f32 %v2568_v46, %v2646_v4  ;;  %v2658_v10 = vld [vmem:[#allocation2 + $0x4f] sm:$0xff]  ;;  %v990_v21 = vadd.f32 %v958_v7, %v890_v29 }
  0x4e   : > { %v2632_v57 = vld [vmem:[#allocation2 + $0x48] sm:$0xff]  ;;  %v1258_v62 = vmul.f32 %v2574_v53, %v2630_v56  ;;  %3667 = vst [vmem:[#allocation6_spill] sm:$0xff] %v2658_v10  ;;  %v2660_v11 = vld [vmem:[#allocation2 + $0x50] sm:$0xff]  ;;  %v1259_v17 = vmul.f32 %v2574_v53, %v2658_v10  ;;  %v859_v27 = vmul.f32 %v1121_v47, %v2533_v15  ;;  %v959_v30 = vmul.f32 %v2630_v56, %v2558_v35 }
  0x4f   : > { %v2634_v58 = vld [vmem:[#allocation2 + $0x49] sm:$0xff]  ;;  %v1358_v63 = vmul.f32 %v2582_v59, %v2632_v57  ;;  %3668 = vst [vmem:[#allocation7_spill] sm:$0xff] %v2660_v11  ;;  %v2662_v16 = vld [vmem:[#allocation2 + $0x51] sm:$0xff]  ;;  %v1359_v0 = vmul.f32 %v2582_v59, %v2660_v11  ;;  %v1089_v20 = vadd.f32 %v1057_v54, %v989_v6  ;;  %v1090_v33 = vadd.f32 %v1058_v8, %v990_v21 }
  0x50   : > { %v2644_v1 = vmul.f32 %v2585_v60, %v2634_v58  ;;  %3669 = vst [vmem:[#allocation8_spill] sm:$0xff] %v2662_v16  ;;  %v1459_v18 = vmul.f32 %v2585_v60, %v2662_v16  ;;  %v2680_v32 = vmul.f32 %v2632_v57, %v2561_v36  ;;  %v637_v29 = vld [vmem:[#allocation2 + $0x107] sm:$0xff]  ;;  %v791_v38 = vadd.f32 %v759_v26, %v659_v24  ;;  %v638_v8 = vld [vmem:[#allocation2 + $0x10f] sm:$0xff] }
  0x51   : > { %v1189_v31 = vadd.f32 %v1157_v55, %v1089_v20  ;;  %v737_v37 = vld [vmem:[#allocation2 + $0x108] sm:$0xff]  ;;  %v2685_v39 = vmul.f32 %v2634_v58, %v2568_v46  ;;  %v1190_v43 = vadd.f32 %v1158_v9, %v1090_v33  ;;  %v673_v44 = vmul.f32 %v2527_v13, %v637_v29  ;;  %v738_v9 = vld [vmem:[#allocation2 + $0x110] sm:$0xff] }
  0x52   : > { %v773_v45 = vmul.f32 %v2530_v14, %v737_v37  ;;  %v837_v47 = vld [vmem:[#allocation2 + $0x109] sm:$0xff]  ;;  %v2726_v33 = vld [vmem:[#allocation2 + $0x131] sm:$0xff] }
  0x53   : > { %v1290_v42 = vadd.f32 %v1258_v62, %v1189_v31  ;;  %v2691_v48 = vld [vmem:[#allocation2 + $0x127] sm:$0xff]  ;;  %v873_v50 = vmul.f32 %v2533_v15, %v837_v47  ;;  %v891_v62 = vadd.f32 %v859_v27, %v791_v38  ;;  %v1291_v3 = vadd.f32 %v1259_v17, %v1190_v43  ;;  %v838_v17 = vld [vmem:[#allocation2 + $0x111] sm:$0xff] }
  0x54   : > { %v2693_v49 = vld [vmem:[#allocation2 + $0x128] sm:$0xff]  ;;  %v973_v51 = vmul.f32 %v2558_v35, %v2691_v48  ;;  %v805_v5 = vadd.f32 %v773_v45, %v673_v44  ;;  %v774_v27 = vmul.f32 %v2530_v14, %v738_v9  ;;  %v2724_v31 = vld [vmem:[#allocation2 + $0x130] sm:$0xff]  ;;  %v874_v34 = vmul.f32 %v2533_v15, %v838_v17 }
  0x55   : > { %v1073_v52 = vmul.f32 %v2561_v36, %v2693_v49  ;;  %v2701_v54 = vld [vmem:[#allocation2 + $0x129] sm:$0xff]  ;;  %v1390_v2 = vadd.f32 %v1358_v63, %v1290_v42  ;;  %v674_v63 = vmul.f32 %v2527_v13, %v638_v8  ;;  %v1391_v25 = vadd.f32 %v1359_v0, %v1291_v3  ;;  %v2742_v47 = vld [vmem:[#allocation2 + $0x151] sm:$0xff] }
  0x56   : > { %v2703_v55 = vld [vmem:[#allocation2 + $0x147] sm:$0xff]  ;;  %v1173_v6 = vmul.f32 %v2568_v46, %v2701_v54  ;;  %v2720_v23 = vld [vmem:[#allocation2 + $0x12f] sm:$0xff]  ;;  %v905_v26 = vadd.f32 %v873_v50, %v805_v5  ;;  %v1074_v37 = vmul.f32 %v2561_v36, %v2724_v31  ;;  %v1174_v38 = vmul.f32 %v2568_v46, %v2726_v33 }
  0x57   : > { %v2705_v61 = vld [vmem:[#allocation2 + $0x148] sm:$0xff]  ;;  %v1274_v19 = vmul.f32 %v2574_v53, %v2703_v55  ;;  %v1490_v24 = vadd.f32 %v2644_v1, %v1390_v2  ;;  %v974_v29 = vmul.f32 %v2558_v35, %v2720_v23  ;;  %v1491_v0 = vadd.f32 %v1459_v18, %v1391_v25  ;;  %v2740_v45 = vld [vmem:[#allocation2 + $0x150] sm:$0xff] }
  0x58   : > { %v2709_v7 = vld [vmem:[#allocation2 + $0x149] sm:$0xff]  ;;  %v1374_v20 = vmul.f32 %v2582_v59, %v2705_v61  ;;  %v1005_v42 = vadd.f32 %v973_v51, %v905_v26  ;;  %v806_v43 = vadd.f32 %v774_v27, %v674_v63  ;;  %v1375_v2 = vmul.f32 %v2582_v59, %v2740_v45  ;;  %v333_v27 = vld [vmem:[%s2509_s19 + $0xa0] sm:$0xff] }
  0x59   : > { %v2717_v21 = vmul.f32 %v2585_v60, %v2709_v7  ;;  %v2735_v1 = vld [vmem:[#allocation2 + $0x14f] sm:$0xff]  ;;  %2159 = vmatprep.mubr.msk.f32.mxu0 %vm511_vm1, %v1490_v24  ;;  %v2744_v50 = vld [vmem:[#allocation2 + $0x67] sm:$0xff]  ;;  %v2750_v3 = vmul.f32 %v2585_v60, %v2742_v47  ;;  %v991_v18 = vadd.f32 %v959_v30, %v891_v62  ;;  %v792_v62 = vadd.f32 %v760_v41, %v660_v40 }
  0x5a   : > { %v1275_v44 = vmul.f32 %v2574_v53, %v2735_v1  ;;  %3670 = vst [vmem:[#allocation9_spill] sm:$0xff] %v2744_v50  ;;  %v1260_v51 = vmul.f32 %v2574_v53, %v2744_v50  ;;  %v2754_v5 = vld [vmem:[#allocation2 + $0x68] sm:$0xff]  ;;  %2160 = vmatmul.mubr.msk.f32.vlgmr.msra.gmra.mrb[0].mxu0 %vm511_vm1, %v1491_v0  ;;  %v1105_v9 = vadd.f32 %v1073_v52, %v1005_v42  ;;  %v399_v40 = vld [vmem:[%s2518_s25 + $0xa0] sm:$0xff] }
  0x5b   : > { %3671 = vst [vmem:[#allocation10_spill] sm:$0xff] %v2754_v5  ;;  %v2756_v8 = vld [vmem:[#allocation2 + $0x69] sm:$0xff]  ;;  %v906_v63 = vadd.f32 %v874_v34, %v806_v43  ;;  %v1360_v17 = vmul.f32 %v2582_v59, %v2754_v5  ;;  %v1091_v30 = vadd.f32 %v2680_v32, %v991_v18  ;;  %v860_v25 = vmul.f32 %v2646_v4, %v2533_v15 }
  0x5c   : > { %3672 = vst [vmem:[#allocation11_spill] sm:$0xff] %v2756_v8  ;;  %v1460_v24 = vmul.f32 %v2585_v60, %v2756_v8  ;;  %v960_v26 = vmul.f32 %v2658_v10, %v2558_v35  ;;  %v334_v52 = vld [vmem:[%s2509_s19 + $0xa8] sm:$0xff]  ;;  %v1205_v0 = vadd.f32 %v1173_v6, %v1105_v9  ;;  %v1060_v42 = vmul.f32 %v2660_v11, %v2561_v36  ;;  %v2776_v32 = vld [vmem:[#allocation2 + $0x70] sm:$0xff] }
  0x5d   : > { %v1006_v34 = vadd.f32 %v974_v29, %v906_v63  ;;  %v1160_v43 = vmul.f32 %v2662_v16, %v2568_v46  ;;  %v2774_v8 = vld [vmem:[#allocation2 + $0x6f] sm:$0xff]  ;;  %3674 = vst [vmem:[#allocation13_spill] sm:$0xff] %v2776_v32  ;;  %v1191_v4 = vadd.f32 %v2685_v39, %v1091_v30  ;;  %v892_v41 = vadd.f32 %v860_v25, %v792_v62 }
  0x5e   : > { %3673 = vst [vmem:[#allocation12_spill] sm:$0xff] %v2774_v8  ;;  %v1261_v18 = vmul.f32 %v2574_v53, %v2774_v8  ;;  %v1361_v6 = vmul.f32 %v2582_v59, %v2776_v32  ;;  %v2784_v29 = vld [vmem:[#allocation2 + $0x71] sm:$0xff]  ;;  %v400_v9 = vld [vmem:[%s2518_s25 + $0xa8] sm:$0xff]  ;;  %v1306_v63 = vadd.f32 %v1274_v19, %v1205_v0  ;;  %v367_v10 = vmul.f32 %v2524_v12, %v333_v27 }
  0x5f   : > { %v1106_v11 = vadd.f32 %v1074_v37, %v1006_v34  ;;  %v1461_v16 = vmul.f32 %v2585_v60, %v2784_v29  ;;  %v1292_v5 = vadd.f32 %v1260_v51, %v1191_v4  ;;  %v992_v50 = vadd.f32 %v960_v26, %v892_v41  ;;  %v386_v4 = vld [vmem:[%s2518_s25 + $0x38] sm:$0xff] }
  0x60   : > { %v368_v39 = vmul.f32 %v2524_v12, %v334_v52  ;;  %v433_v30 = vmul.f32 %v2542_v22, %v399_v40  ;;  %v1406_v62 = vadd.f32 %v1374_v20, %v1306_v63  ;;  %v434_v32 = vmul.f32 %v2542_v22, %v400_v9 }
  0x61   : > { %v1206_v25 = vadd.f32 %v1174_v38, %v1106_v11  ;;  %v675_v8 = vmul.f32 %v2691_v48, %v2527_v13  ;;  %v1392_v19 = vadd.f32 %v1360_v17, %v1292_v5  ;;  %v1092_v37 = vadd.f32 %v1060_v42, %v992_v50  ;;  %v320_v17 = vld [vmem:[%s2509_s19 + $0x38] sm:$0xff] }
  0x62   : > { %v465_v0 = vadd.f32 %v433_v30, %v367_v10  ;;  %v775_v34 = vmul.f32 %v2693_v49, %v2530_v14  ;;  %v1506_v51 = vadd.f32 %v2717_v21, %v1406_v62  ;;  %v466_v27 = vadd.f32 %v434_v32, %v368_v39 }
  0x63   : > { %v1307_v26 = vadd.f32 %v1275_v44, %v1206_v25  ;;  %v875_v52 = vmul.f32 %v2701_v54, %v2533_v15  ;;  %v1492_v11 = vadd.f32 %v1460_v24, %v1392_v19  ;;  %v1192_v20 = vadd.f32 %v1160_v43, %v1092_v37  ;;  %v385_v24 = vld [vmem:[%s2518_s25 + $0x30] sm:$0xff] }
  0x64   : > { %v499_v48 = vmul.f32 %v2550_v28, %v465_v0  ;;  %v807_v38 = vadd.f32 %v775_v34, %v675_v8  ;;  %2183 = vmatprep.mubr.msk.f32.mxu1 %vm511_vm1, %v1506_v51  ;;  %v500_v49 = vmul.f32 %v2550_v28, %v466_v27  ;;  %v975_v21 = vmul.f32 %v2703_v55, %v2558_v35  ;;  %v319_v8 = vld [vmem:[%s2509_s19 + $0x30] sm:$0xff]  ;;  %v3676_v27 = vld [vmem:[#allocation10_spill] sm:$0xff] }
  0x65   : > { %v1407_v10 = vadd.f32 %v1375_v2, %v1307_v26  ;;  %v1075_v54 = vmul.f32 %v2705_v61, %v2561_v36  ;;  %2162 = vmatprep.mubr.msk.f32.mxu0 %vm511_vm1, %v1492_v11  ;;  %v1293_v44 = vadd.f32 %v1261_v18, %v1192_v20  ;;  %v1175_v5 = vmul.f32 %v2709_v7, %v2568_v46 }
  0x66   : > { %606 = vst.msk [vmem:[#allocation2 + $0x168] sm:$0xff] %vm511_vm1, %v499_v48  ;;  %v907_v50 = vadd.f32 %v875_v52, %v807_v38  ;;  %v676_v2 = vmul.f32 %v2720_v23, %v2527_v13  ;;  %607 = vst.msk [vmem:[#allocation2 + $0x170] sm:$0xff] %vm511_vm1, %v500_v49  ;;  %v776_v43 = vmul.f32 %v2724_v31, %v2530_v14 }
  0x67   : > { %v1507_v42 = vadd.f32 %v2750_v3, %v1407_v10  ;;  %v876_v32 = vmul.f32 %v2726_v33, %v2533_v15  ;;  %v976_v40 = vmul.f32 %v2735_v1, %v2558_v35  ;;  %v1393_v41 = vadd.f32 %v1361_v6, %v1293_v44 }
  0x68   : > { %v1007_v18 = vadd.f32 %v975_v21, %v907_v50  ;;  %v1076_v23 = vmul.f32 %v2740_v45, %v2561_v36  ;;  %v1176_v3 = vmul.f32 %v2742_v47, %v2568_v46  ;;  %v808_v9 = vadd.f32 %v776_v43, %v676_v2 }
  0x69   : > { %2184 = vmatmul.mubr.msk.f32.vlgmr.msra.gmra.mrb[0].mxu1 %vm511_vm1, %v1507_v42  ;;  %v353_v31 = vmul.f32 %v2524_v12, %v319_v8  ;;  %v354_v63 = vmul.f32 %v2524_v12, %v320_v17  ;;  %v419_v33 = vmul.f32 %v2542_v22, %v385_v24  ;;  %v1493_v39 = vadd.f32 %v1461_v16, %v1393_v41  ;;  %v3675_v16 = vld [vmem:[#allocation9_spill] sm:$0xff]  ;;  %v3679_v41 = vld [vmem:[#allocation7_spill] sm:$0xff] }
  0x6a   : > { %v1107_v30 = vadd.f32 %v1075_v54, %v1007_v18  ;;  %v420_v6 = vmul.f32 %v2542_v22, %v386_v4  ;;  %v661_v62 = vmul.f32 %v2630_v56, %v2527_v13  ;;  %v908_v25 = vadd.f32 %v876_v32, %v808_v9  ;;  %v336_v9 = vld [vmem:[%s2509_s19 + $0xb8] sm:$0xff] }
  0x6b   : > { %v451_v19 = vadd.f32 %v419_v33, %v353_v31  ;;  %v761_v37 = vmul.f32 %v2632_v57, %v2530_v14  ;;  %v861_v0 = vmul.f32 %v2634_v58, %v2533_v15  ;;  %2163 = vmatmul.mubr.msk.f32.gmra.mrb[2].mxu0 %vm511_vm1, %v1493_v39  ;;  %v961_v26 = vmul.f32 %v3675_v16, %v2558_v35  ;;  %v3677_v58 = vld [vmem:[#allocation11_spill] sm:$0xff]  ;;  %v401_v31 = vld [vmem:[%s2518_s25 + $0xb0] sm:$0xff] }
  0x6c   : > { %v1207_v34 = vadd.f32 %v1175_v5, %v1107_v30  ;;  %v452_v51 = vadd.f32 %v420_v6, %v354_v63  ;;  %v1061_v52 = vmul.f32 %v3676_v27, %v2561_v36  ;;  %v1008_v20 = vadd.f32 %v976_v40, %v908_v25  ;;  %v3678_v5 = vld [vmem:[#allocation6_spill] sm:$0xff]  ;;  %v3680_v33 = vld [vmem:[#allocation8_spill] sm:$0xff] }
  0x6d   : > { %v2845_v11 = vld [vmem:[#allocation2 + $0x167] sm:$0xff]  ;;  %v485_v57 = vmul.f32 %v2550_v28, %v451_v19  ;;  %v793_v48 = vadd.f32 %v761_v37, %v661_v62  ;;  %v1161_v38 = vmul.f32 %v3677_v58, %v2568_v46  ;;  %v2858_v54 = vld [vmem:[#allocation2 + $0x16f] sm:$0xff]  ;;  %v662_v2 = vmul.f32 %v3678_v5, %v2527_v13  ;;  %v3682_v62 = vld [vmem:[#allocation13_spill] sm:$0xff] }
  0x6e   : > { %v2847_v56 = vld [vmem:[#allocation2 + $0x168] sm:$0xff]  ;;  %v1276_v10 = vmul.f32 %v2574_v53, %v2845_v11  ;;  %v2860_v44 = vld [vmem:[#allocation2 + $0x170] sm:$0xff]  ;;  %v486_v50 = vmul.f32 %v2550_v28, %v452_v51  ;;  %v1108_v17 = vadd.f32 %v1076_v23, %v1008_v20  ;;  %v1277_v24 = vmul.f32 %v2574_v53, %v2858_v54  ;;  %v402_v19 = vld [vmem:[%s2518_s25 + $0xb8] sm:$0xff] }
  0x6f   : > { %v1376_v49 = vmul.f32 %v2582_v59, %v2847_v56  ;;  %v2856_v21 = vld [vmem:[#allocation2 + $0x169] sm:$0xff]  ;;  %v1377_v42 = vmul.f32 %v2582_v59, %v2860_v44  ;;  %v2871_v43 = vld [vmem:[#allocation2 + $0x171] sm:$0xff]  ;;  %592 = vst.msk [vmem:[#allocation2 + $0x88] sm:$0xff] %vm511_vm1, %v485_v57  ;;  %v893_v4 = vadd.f32 %v861_v0, %v793_v48  ;;  %v762_v18 = vmul.f32 %v3679_v41, %v2530_v14 }
  0x70   : > { %v1476_v8 = vmul.f32 %v2585_v60, %v2856_v21  ;;  %v1308_v32 = vadd.f32 %v1276_v10, %v1207_v34  ;;  %v1477_v40 = vmul.f32 %v2585_v60, %v2871_v43  ;;  %593 = vst.msk [vmem:[#allocation2 + $0x90] sm:$0xff] %vm511_vm1, %v486_v50  ;;  %v335_v23 = vld [vmem:[%s2509_s19 + $0xb0] sm:$0xff]  ;;  %v1208_v63 = vadd.f32 %v1176_v3, %v1108_v17 }
  0x71   : > { %v862_v39 = vmul.f32 %v3680_v33, %v2533_v15  ;;  %v3681_v30 = vld [vmem:[#allocation12_spill] sm:$0xff]  ;;  %v1062_v25 = vmul.f32 %v3682_v62, %v2561_v36  ;;  %v993_v34 = vadd.f32 %v961_v26, %v893_v4  ;;  %v794_v0 = vadd.f32 %v762_v18, %v662_v2 }
  0x72   : > { %v962_v6 = vmul.f32 %v3681_v30, %v2558_v35  ;;  %v1408_v37 = vadd.f32 %v1376_v49, %v1308_v32  ;;  %v1162_v51 = vmul.f32 %v2784_v29, %v2568_v46  ;;  %v1309_v20 = vadd.f32 %v1277_v24, %v1208_v63 }
  0x73   : > { %v369_v57 = vmul.f32 %v2524_v12, %v335_v23  ;;  %v370_v3 = vmul.f32 %v2524_v12, %v336_v9  ;;  %v435_v48 = vmul.f32 %v2542_v22, %v401_v31  ;;  %v1093_v50 = vadd.f32 %v1061_v52, %v993_v34 }
  0x74   : > { %v1508_v10 = vadd.f32 %v1476_v8, %v1408_v37  ;;  %v894_v5 = vadd.f32 %v862_v39, %v794_v0  ;;  %v436_v17 = vmul.f32 %v2542_v22, %v402_v19  ;;  %v1409_v41 = vadd.f32 %v1377_v42, %v1309_v20 }
  0x75   : > { %v467_v33 = vadd.f32 %v435_v48, %v369_v57  ;;  %v677_v26 = vmul.f32 %v2703_v55, %v2527_v13  ;;  %v777_v49 = vmul.f32 %v2705_v61, %v2530_v14  ;;  %v1193_v2 = vadd.f32 %v1161_v38, %v1093_v50  ;;  %v321_v50 = vld [vmem:[%s2509_s19 + $0x40] sm:$0xff] }
  0x76   : > { %2186 = vmatprep.mubr.msk.f32.mxu1 %vm511_vm1, %v1508_v10  ;;  %v2900_v24 = vld [vmem:[#allocation2 + $0x87] sm:$0xff]  ;;  %v994_v8 = vadd.f32 %v962_v6, %v894_v5  ;;  %v468_v52 = vadd.f32 %v436_v17, %v370_v3  ;;  %v877_v4 = vmul.f32 %v2709_v7, %v2533_v15  ;;  %v1509_v42 = vadd.f32 %v1477_v40, %v1409_v41 }
  0x77   : > { %v2902_v32 = vld [vmem:[#allocation2 + $0x88] sm:$0xff]  ;;  %v1262_v18 = vmul.f32 %v2574_v53, %v2900_v24  ;;  %v2914_v38 = vld [vmem:[#allocation2 + $0x90] sm:$0xff]  ;;  %v501_v9 = vmul.f32 %v2550_v28, %v467_v33  ;;  %v977_v0 = vmul.f32 %v2845_v11, %v2558_v35  ;;  %v1077_v20 = vmul.f32 %v2847_v56, %v2561_v36  ;;  %v387_v17 = vld [vmem:[%s2518_s25 + $0x40] sm:$0xff] }
  0x78   : > { %v1362_v55 = vmul.f32 %v2582_v59, %v2902_v32  ;;  %v2910_v61 = vld [vmem:[#allocation2 + $0x89] sm:$0xff]  ;;  %v1094_v63 = vadd.f32 %v1062_v25, %v994_v8  ;;  %v1363_v40 = vmul.f32 %v2582_v59, %v2914_v38  ;;  %v2923_v39 = vld [vmem:[#allocation2 + $0x91] sm:$0xff]  ;;  %2187 = vmatmul.mubr.msk.f32.gmra.mrb[2].mxu1 %vm511_vm1, %v1509_v42  ;;  %v502_v37 = vmul.f32 %v2550_v28, %v468_v52 }
  0x79   : > { %v2912_v23 = vld [vmem:[#allocation2 + $0x8f] sm:$0xff]  ;;  %v1462_v31 = vmul.f32 %v2585_v60, %v2910_v61  ;;  %v1294_v6 = vadd.f32 %v1262_v18, %v1193_v2  ;;  %v1463_v19 = vmul.f32 %v2585_v60, %v2923_v39  ;;  %608 = vst.msk [vmem:[#allocation2 + $0x188] sm:$0xff] %vm511_vm1, %v501_v9  ;;  %v809_v25 = vadd.f32 %v777_v49, %v677_v26 }
  0x7a   : > { %v1263_v7 = vmul.f32 %v2574_v53, %v2912_v23  ;;  %v1194_v34 = vadd.f32 %v1162_v51, %v1094_v63  ;;  %v1177_v57 = vmul.f32 %v2856_v21, %v2568_v46  ;;  %609 = vst.msk [vmem:[#allocation2 + $0x190] sm:$0xff] %vm511_vm1, %v502_v37  ;;  %v678_v10 = vmul.f32 %v2735_v1, %v2527_v13  ;;  %v322_v5 = vld [vmem:[%s2509_s19 + $0x48] sm:$0xff] }
  0x7b   : > { %v1394_v3 = vadd.f32 %v1362_v55, %v1294_v6  ;;  %v909_v48 = vadd.f32 %v877_v4, %v809_v25  ;;  %v778_v51 = vmul.f32 %v2740_v45, %v2530_v14  ;;  %v878_v33 = vmul.f32 %v2742_v47, %v2533_v15  ;;  %v388_v2 = vld [vmem:[%s2518_s25 + $0x48] sm:$0xff] }
  0x7c   : > { %v1295_v41 = vadd.f32 %v1263_v7, %v1194_v34  ;;  %v978_v26 = vmul.f32 %v2858_v54, %v2558_v35  ;;  %v1078_v49 = vmul.f32 %v2860_v44, %v2561_v36  ;;  %v1178_v45 = vmul.f32 %v2871_v43, %v2568_v46 }
  0x7d   : > { %v1494_v8 = vadd.f32 %v1462_v31, %v1394_v3  ;;  %v1009_v52 = vadd.f32 %v977_v0, %v909_v48  ;;  %v810_v1 = vadd.f32 %v778_v51, %v678_v10  ;;  %v355_v42 = vmul.f32 %v2524_v12, %v321_v50 }
  0x7e   : > { %v1395_v4 = vadd.f32 %v1363_v40, %v1295_v41  ;;  %v356_v18 = vmul.f32 %v2524_v12, %v322_v5  ;;  %v421_v47 = vmul.f32 %v2542_v22, %v387_v17  ;;  %v422_v63 = vmul.f32 %v2542_v22, %v388_v2 }
  0x7f   : > { %2165 = vmatprep.mubr.msk.f32.mxu0 %vm511_vm1, %v1494_v8  ;;  %v1109_v55 = vadd.f32 %v1077_v20, %v1009_v52  ;;  %v910_v9 = vadd.f32 %v878_v33, %v810_v1  ;;  %v663_v31 = vmul.f32 %v3675_v16, %v2527_v13  ;;  %v763_v25 = vmul.f32 %v3676_v27, %v2530_v14 }
  0x80   : > { %v1495_v7 = vadd.f32 %v1463_v19, %v1395_v4  ;;  %v2960_v6 = vld [vmem:[#allocation2 + $0x187] sm:$0xff]  ;;  %v453_v40 = vadd.f32 %v421_v47, %v355_v42  ;;  %v863_v34 = vmul.f32 %v3677_v58, %v2533_v15  ;;  %v454_v10 = vadd.f32 %v422_v63, %v356_v18 }
  0x81   : > { %v2962_v37 = vld [vmem:[#allocation2 + $0x188] sm:$0xff]  ;;  %v1209_v0 = vadd.f32 %v1177_v57, %v1109_v55  ;;  %v1278_v20 = vmul.f32 %v2574_v53, %v2960_v6  ;;  %v1010_v16 = vadd.f32 %v978_v26, %v910_v9  ;;  %v795_v51 = vadd.f32 %v763_v25, %v663_v31  ;;  %v2984_v41 = vld [vmem:[#allocation2 + $0x190] sm:$0xff]  ;;  %v337_v18 = vld [vmem:[%s2509_s19 + $0xc0] sm:$0xff] }
  0x82   : > { %v1378_v3 = vmul.f32 %v2582_v59, %v2962_v37  ;;  %2166 = vmatmul.mubr.msk.f32.gmra.mrb[4].mxu0 %vm511_vm1, %v1495_v7  ;;  %v2973_v19 = vld [vmem:[#allocation2 + $0x189] sm:$0xff]  ;;  %v487_v27 = vmul.f32 %v2550_v28, %v453_v40  ;;  %v963_v58 = vmul.f32 %v2900_v24, %v2558_v35  ;;  %v2986_v33 = vld [vmem:[#allocation2 + $0x191] sm:$0xff]  ;;  %v1379_v26 = vmul.f32 %v2582_v59, %v2984_v41  ;;  %v403_v31 = vld [vmem:[%s2518_s25 + $0xc0] sm:$0xff] }
  0x83   : > { %v2975_v48 = vld [vmem:[#allocation2 + $0x18f] sm:$0xff]  ;;  %v1310_v57 = vadd.f32 %v1278_v20, %v1209_v0  ;;  %v1478_v50 = vmul.f32 %v2585_v60, %v2973_v19  ;;  %v1110_v5 = vadd.f32 %v1078_v49, %v1010_v16  ;;  %v1479_v2 = vmul.f32 %v2585_v60, %v2986_v33 }
  0x84   : > { %v1279_v17 = vmul.f32 %v2574_v53, %v2975_v48  ;;  %v488_v8 = vmul.f32 %v2550_v28, %v454_v10  ;;  %594 = vst.msk [vmem:[#allocation2 + $0xa8] sm:$0xff] %vm511_vm1, %v487_v27  ;;  %v895_v49 = vadd.f32 %v863_v34, %v795_v51  ;;  %v1063_v4 = vmul.f32 %v2902_v32, %v2561_v36  ;;  %v404_v7 = vld [vmem:[%s2518_s25 + $0xc8] sm:$0xff] }
  0x85   : > { %v1410_v52 = vadd.f32 %v1378_v3, %v1310_v57  ;;  %v1210_v1 = vadd.f32 %v1178_v45, %v1110_v5  ;;  %v1163_v42 = vmul.f32 %v2910_v61, %v2568_v46  ;;  %v664_v55 = vmul.f32 %v3681_v30, %v2527_v13  ;;  %v338_v45 = vld [vmem:[%s2509_s19 + $0xc8] sm:$0xff] }
  0x86   : > { %595 = vst.msk [vmem:[#allocation2 + $0xb0] sm:$0xff] %vm511_vm1, %v488_v8  ;;  %v995_v47 = vadd.f32 %v963_v58, %v895_v49  ;;  %v764_v9 = vmul.f32 %v3682_v62, %v2530_v14  ;;  %v864_v63 = vmul.f32 %v2784_v29, %v2533_v15  ;;  %v964_v34 = vmul.f32 %v2912_v23, %v2558_v35 }
  0x87   : > { %v1510_v40 = vadd.f32 %v1478_v50, %v1410_v52  ;;  %v1311_v25 = vadd.f32 %v1279_v17, %v1210_v1  ;;  %v1064_v0 = vmul.f32 %v2914_v38, %v2561_v36  ;;  %v1164_v30 = vmul.f32 %v2923_v39, %v2568_v46 }
  0x88   : > { %v1095_v20 = vadd.f32 %v1063_v4, %v995_v47  ;;  %v796_v3 = vadd.f32 %v764_v9, %v664_v55  ;;  %v371_v62 = vmul.f32 %v2524_v12, %v337_v18  ;;  %v372_v16 = vmul.f32 %v2524_v12, %v338_v45 }
  0x89   : > { %2189 = vmatprep.mubr.msk.f32.mxu1 %vm511_vm1, %v1510_v40  ;;  %v1411_v29 = vadd.f32 %v1379_v26, %v1311_v25  ;;  %v437_v10 = vmul.f32 %v2542_v22, %v403_v31  ;;  %v438_v27 = vmul.f32 %v2542_v22, %v404_v7  ;;  %v679_v57 = vmul.f32 %v2845_v11, %v2527_v13 }
  0x8a   : > { %v1195_v51 = vadd.f32 %v1163_v42, %v1095_v20  ;;  %v896_v58 = vadd.f32 %v864_v63, %v796_v3  ;;  %v779_v50 = vmul.f32 %v2847_v56, %v2530_v14  ;;  %v879_v52 = vmul.f32 %v2856_v21, %v2533_v15 }
  0x8b   : > { %v1511_v5 = vadd.f32 %v1479_v2, %v1411_v29  ;;  %v3024_v17 = vld [vmem:[#allocation2 + $0xa7] sm:$0xff]  ;;  %v469_v26 = vadd.f32 %v437_v10, %v371_v62  ;;  %v470_v49 = vadd.f32 %v438_v27, %v372_v16  ;;  %v979_v21 = vmul.f32 %v2960_v6, %v2558_v35  ;;  %v323_v10 = vld [vmem:[%s2509_s19 + $0x50] sm:$0xff]  ;;  %v324_v27 = vld [vmem:[%s2509_s19 + $0x58] sm:$0xff] }
  0x8c   : > { %v3026_v8 = vld [vmem:[#allocation2 + $0xa8] sm:$0xff]  ;;  %v1264_v1 = vmul.f32 %v2574_v53, %v3024_v17  ;;  %v996_v11 = vadd.f32 %v964_v34, %v896_v58  ;;  %v811_v42 = vadd.f32 %v779_v50, %v679_v57  ;;  %v1079_v55 = vmul.f32 %v2962_v37, %v2561_v36 }
  0x8d   : > { %v1364_v4 = vmul.f32 %v2582_v59, %v3026_v8  ;;  %2190 = vmatmul.mubr.msk.f32.gmra.mrb[4].mxu1 %vm511_vm1, %v1511_v5  ;;  %v3035_v56 = vld [vmem:[#allocation2 + $0xa9] sm:$0xff]  ;;  %v503_v18 = vmul.f32 %v2550_v28, %v469_v26  ;;  %v504_v47 = vmul.f32 %v2550_v28, %v470_v49  ;;  %v3051_v40 = vld [vmem:[#allocation2 + $0xb1] sm:$0xff]  ;;  %v1179_v20 = vmul.f32 %v2973_v19, %v2568_v46 }
  0x8e   : > { %v3037_v2 = vld [vmem:[#allocation2 + $0xaf] sm:$0xff]  ;;  %v1296_v9 = vadd.f32 %v1264_v1, %v1195_v51  ;;  %v1464_v63 = vmul.f32 %v2585_v60, %v3035_v56  ;;  %v1096_v45 = vadd.f32 %v1064_v0, %v996_v11  ;;  %v1465_v34 = vmul.f32 %v2585_v60, %v3051_v40 }
  0x8f   : > { %v1265_v31 = vmul.f32 %v2574_v53, %v3037_v2  ;;  %v3049_v7 = vld [vmem:[#allocation2 + $0xb0] sm:$0xff]  ;;  %610 = vst.msk [vmem:[#allocation2 + $0x1a8] sm:$0xff] %vm511_vm1, %v503_v18  ;;  %611 = vst.msk [vmem:[#allocation2 + $0x1b0] sm:$0xff] %vm511_vm1, %v504_v47  ;;  %v911_v0 = vadd.f32 %v879_v52, %v811_v42  ;;  %v680_v29 = vmul.f32 %v2858_v54, %v2527_v13 }
  0x90   : > { %v1365_v25 = vmul.f32 %v2582_v59, %v3049_v7  ;;  %v1396_v3 = vadd.f32 %v1364_v4, %v1296_v9  ;;  %v1196_v62 = vadd.f32 %v1164_v30, %v1096_v45  ;;  %v780_v16 = vmul.f32 %v2860_v44, %v2530_v14  ;;  %v389_v51 = vld [vmem:[%s2518_s25 + $0x50] sm:$0xff]  ;;  %v390_v30 = vld [vmem:[%s2518_s25 + $0x58] sm:$0xff] }
  0x91   : > { %v1011_v58 = vadd.f32 %v979_v21, %v911_v0  ;;  %v880_v57 = vmul.f32 %v2871_v43, %v2533_v15  ;;  %v980_v50 = vmul.f32 %v2975_v48, %v2558_v35  ;;  %v1080_v5 = vmul.f32 %v2984_v41, %v2561_v36 }
  0x92   : > { %v1496_v26 = vadd.f32 %v1464_v63, %v1396_v3  ;;  %v1297_v49 = vadd.f32 %v1265_v31, %v1196_v62  ;;  %v812_v54 = vadd.f32 %v780_v16, %v680_v29  ;;  %v1180_v44 = vmul.f32 %v2986_v33, %v2568_v46 }
  0x93   : > { %v1111_v52 = vadd.f32 %v1079_v55, %v1011_v58  ;;  %v357_v1 = vmul.f32 %v2524_v12, %v323_v10  ;;  %v358_v4 = vmul.f32 %v2524_v12, %v324_v27  ;;  %v423_v43 = vmul.f32 %v2542_v22, %v389_v51 }
  0x94   : > { %2168 = vmatprep.mubr.msk.f32.mxu0 %vm511_vm1, %v1496_v26  ;;  %v1397_v11 = vadd.f32 %v1365_v25, %v1297_v49  ;;  %v912_v42 = vadd.f32 %v880_v57, %v812_v54  ;;  %v424_v18 = vmul.f32 %v2542_v22, %v390_v30  ;;  %v665_v47 = vmul.f32 %v2900_v24, %v2527_v13 }
  0x95   : > { %v1211_v21 = vadd.f32 %v1179_v20, %v1111_v52  ;;  %v455_v9 = vadd.f32 %v423_v43, %v357_v1  ;;  %v765_v55 = vmul.f32 %v2902_v32, %v2530_v14  ;;  %v865_v63 = vmul.f32 %v2910_v61, %v2533_v15  ;;  %v340_v43 = vld [vmem:[%s2509_s19 + $0xd8] sm:$0xff] }
  0x96   : > { %v1497_v45 = vadd.f32 %v1465_v34, %v1397_v11  ;;  %v3088_v31 = vld [vmem:[#allocation2 + $0x1a7] sm:$0xff]  ;;  %v1012_v3 = vadd.f32 %v980_v50, %v912_v42  ;;  %v456_v62 = vadd.f32 %v424_v18, %v358_v4  ;;  %v965_v24 = vmul.f32 %v3024_v17, %v2558_v35  ;;  %v3102_v34 = vld [vmem:[#allocation2 + $0x1af] sm:$0xff] }
  0x97   : > { %v3090_v0 = vld [vmem:[#allocation2 + $0x1a8] sm:$0xff]  ;;  %v1280_v20 = vmul.f32 %v2574_v53, %v3088_v31  ;;  %v3104_v29 = vld [vmem:[#allocation2 + $0x1b0] sm:$0xff]  ;;  %v489_v10 = vmul.f32 %v2550_v28, %v455_v9  ;;  %v1281_v51 = vmul.f32 %v2574_v53, %v3102_v34  ;;  %v797_v26 = vadd.f32 %v765_v55, %v665_v47 }
  0x98   : > { %v3092_v25 = vld [vmem:[#allocation2 + $0x1a9] sm:$0xff]  ;;  %v1380_v32 = vmul.f32 %v2582_v59, %v3090_v0  ;;  %v3106_v16 = vld [vmem:[#allocation2 + $0x1b1] sm:$0xff]  ;;  %2169 = vmatmul.mubr.msk.f32.gmra.mrb[6].mxu0 %vm511_vm1, %v1497_v45  ;;  %v1112_v27 = vadd.f32 %v1080_v5, %v1012_v3  ;;  %v1381_v58 = vmul.f32 %v2582_v59, %v3104_v29  ;;  %v490_v30 = vmul.f32 %v2550_v28, %v456_v62 }
  0x99   : > { %v1480_v61 = vmul.f32 %v2585_v60, %v3092_v25  ;;  %v1481_v57 = vmul.f32 %v2585_v60, %v3106_v16  ;;  %v1312_v50 = vadd.f32 %v1280_v20, %v1211_v21  ;;  %596 = vst.msk [vmem:[#allocation2 + $0xc8] sm:$0xff] %vm511_vm1, %v489_v10  ;;  %v1065_v5 = vmul.f32 %v3026_v8, %v2561_v36  ;;  %v339_v4 = vld [vmem:[%s2509_s19 + $0xd0] sm:$0xff]  ;;  %v406_v21 = vld [vmem:[%s2518_s25 + $0xd8] sm:$0xff] }
  0x9a   : > { %v1212_v49 = vadd.f32 %v1180_v44, %v1112_v27  ;;  %v1165_v54 = vmul.f32 %v3035_v56, %v2568_v46  ;;  %v666_v52 = vmul.f32 %v2912_v23, %v2527_v13  ;;  %v766_v1 = vmul.f32 %v2914_v38, %v2530_v14  ;;  %597 = vst.msk [vmem:[#allocation2 + $0xd0] sm:$0xff] %vm511_vm1, %v490_v30  ;;  %v405_v47 = vld [vmem:[%s2518_s25 + $0xd0] sm:$0xff] }
  0x9b   : > { %v1412_v11 = vadd.f32 %v1380_v32, %v1312_v50  ;;  %v897_v42 = vadd.f32 %v865_v63, %v797_v26  ;;  %v866_v18 = vmul.f32 %v2923_v39, %v2533_v15  ;;  %v966_v44 = vmul.f32 %v3037_v2, %v2558_v35 }
  0x9c   : > { %v1313_v9 = vadd.f32 %v1281_v51, %v1212_v49  ;;  %v798_v55 = vadd.f32 %v766_v1, %v666_v52  ;;  %v1066_v23 = vmul.f32 %v3049_v7, %v2561_v36  ;;  %v1166_v38 = vmul.f32 %v3051_v40, %v2568_v46 }
  0x9d   : > { %v1512_v45 = vadd.f32 %v1480_v61, %v1412_v11  ;;  %v997_v3 = vadd.f32 %v965_v24, %v897_v42  ;;  %v373_v63 = vmul.f32 %v2524_v12, %v339_v4  ;;  %v374_v62 = vmul.f32 %v2524_v12, %v340_v43 }
  0x9e   : > { %v1413_v39 = vadd.f32 %v1381_v58, %v1313_v9  ;;  %v898_v20 = vadd.f32 %v866_v18, %v798_v55  ;;  %v439_v32 = vmul.f32 %v2542_v22, %v405_v47  ;;  %v440_v10 = vmul.f32 %v2542_v22, %v406_v21 }
  0x9f   : > { %2192 = vmatprep.mubr.msk.f32.mxu1 %vm511_vm1, %v1512_v45  ;;  %v1097_v27 = vadd.f32 %v1065_v5, %v997_v3  ;;  %v681_v51 = vmul.f32 %v2960_v6, %v2527_v13  ;;  %v781_v61 = vmul.f32 %v2962_v37, %v2530_v14  ;;  %v881_v24 = vmul.f32 %v2973_v19, %v2533_v15 }
  0xa0   : > { %v1513_v50 = vadd.f32 %v1481_v57, %v1413_v39  ;;  %v3150_v30 = vld [vmem:[#allocation2 + $0xc7] sm:$0xff]  ;;  %v998_v26 = vadd.f32 %v966_v44, %v898_v20  ;;  %v471_v49 = vadd.f32 %v439_v32, %v373_v63  ;;  %v472_v52 = vadd.f32 %v440_v10, %v374_v62 }
  0xa1   : > { %v3152_v58 = vld [vmem:[#allocation2 + $0xc8] sm:$0xff]  ;;  %v1197_v1 = vadd.f32 %v1165_v54, %v1097_v27  ;;  %v1266_v5 = vmul.f32 %v2574_v53, %v3150_v30  ;;  %v813_v4 = vadd.f32 %v781_v61, %v681_v51  ;;  %v981_v54 = vmul.f32 %v3088_v31, %v2558_v35  ;;  %v3171_v47 = vld [vmem:[#allocation2 + $0xd0] sm:$0xff]  ;;  %v325_v39 = vld [vmem:[%s2509_s19 + $0x60] sm:$0xff] }
  0xa2   : > { %v1366_v6 = vmul.f32 %v2582_v59, %v3152_v58  ;;  %2193 = vmatmul.mubr.msk.f32.gmra.mrb[6].mxu1 %vm511_vm1, %v1513_v50  ;;  %v3159_v37 = vld [vmem:[#allocation2 + $0xc9] sm:$0xff]  ;;  %v1098_v19 = vadd.f32 %v1066_v23, %v998_v26  ;;  %v505_v43 = vmul.f32 %v2550_v28, %v471_v49  ;;  %v506_v11 = vmul.f32 %v2550_v28, %v472_v52  ;;  %v3175_v55 = vld [vmem:[#allocation2 + $0xd1] sm:$0xff]  ;;  %v391_v61 = vld [vmem:[%s2518_s25 + $0x60] sm:$0xff] }
  0xa3   : > { %v3161_v57 = vld [vmem:[#allocation2 + $0xcf] sm:$0xff]  ;;  %v1298_v42 = vadd.f32 %v1266_v5, %v1197_v1  ;;  %v1466_v18 = vmul.f32 %v2585_v60, %v3159_v37  ;;  %v1367_v9 = vmul.f32 %v2582_v59, %v3171_v47  ;;  %v913_v23 = vadd.f32 %v881_v24, %v813_v4 }
  0xa4   : > { %v1267_v44 = vmul.f32 %v2574_v53, %v3161_v57  ;;  %v1198_v21 = vadd.f32 %v1166_v38, %v1098_v19  ;;  %612 = vst.msk [vmem:[#allocation2 + $0x1c8] sm:$0xff] %vm511_vm1, %v505_v43  ;;  %613 = vst.msk [vmem:[#allocation2 + $0x1d0] sm:$0xff] %vm511_vm1, %v506_v11  ;;  %v1081_v45 = vmul.f32 %v3090_v0, %v2561_v36  ;;  %v326_v20 = vld [vmem:[%s2509_s19 + $0x68] sm:$0xff] }
  0xa5   : > { %v1398_v3 = vadd.f32 %v1366_v6, %v1298_v42  ;;  %v1467_v63 = vmul.f32 %v2585_v60, %v3175_v55  ;;  %v682_v38 = vmul.f32 %v2975_v48, %v2527_v13  ;;  %v782_v62 = vmul.f32 %v2984_v41, %v2530_v14  ;;  %v392_v24 = vld [vmem:[%s2518_s25 + $0x68] sm:$0xff] }
  0xa6   : > { %v1299_v32 = vadd.f32 %v1267_v44, %v1198_v21  ;;  %v1013_v10 = vadd.f32 %v981_v54, %v913_v23  ;;  %v1181_v27 = vmul.f32 %v3092_v25, %v2568_v46  ;;  %v882_v51 = vmul.f32 %v2986_v33, %v2533_v15 }
  0xa7   : > { %v1498_v50 = vadd.f32 %v1466_v18, %v1398_v3  ;;  %v814_v26 = vadd.f32 %v782_v62, %v682_v38  ;;  %v982_v48 = vmul.f32 %v3102_v34, %v2558_v35  ;;  %v1082_v41 = vmul.f32 %v3104_v29, %v2561_v36 }
  0xa8   : > { %v1399_v49 = vadd.f32 %v1367_v9, %v1299_v32  ;;  %v1113_v52 = vadd.f32 %v1081_v45, %v1013_v10  ;;  %v359_v1 = vmul.f32 %v2524_v12, %v325_v39  ;;  %v360_v5 = vmul.f32 %v2524_v12, %v326_v20 }
  0xa9   : > { %2171 = vmatprep.mubr.msk.f32.mxu0 %vm511_vm1, %v1498_v50  ;;  %v914_v6 = vadd.f32 %v882_v51, %v814_v26  ;;  %v425_v33 = vmul.f32 %v2542_v22, %v391_v61  ;;  %v426_v4 = vmul.f32 %v2542_v22, %v392_v24  ;;  %v667_v19 = vmul.f32 %v3024_v17, %v2527_v13 }
  0xaa   : > { %v1499_v43 = vadd.f32 %v1467_v63, %v1399_v49  ;;  %v1213_v11 = vadd.f32 %v1181_v27, %v1113_v52  ;;  %v767_v54 = vmul.f32 %v3026_v8, %v2530_v14  ;;  %v867_v42 = vmul.f32 %v3035_v56, %v2533_v15  ;;  %v342_v49 = vld [vmem:[%s2509_s19 + $0xe8] sm:$0xff] }
  0xab   : > { %v3210_v18 = vld [vmem:[#allocation2 + $0x1c7] sm:$0xff]  ;;  %v1014_v21 = vadd.f32 %v982_v48, %v914_v6  ;;  %v1182_v9 = vmul.f32 %v3106_v16, %v2568_v46  ;;  %v457_v23 = vadd.f32 %v425_v33, %v359_v1  ;;  %v458_v45 = vadd.f32 %v426_v4, %v360_v5  ;;  %v3223_v56 = vld [vmem:[#allocation2 + $0x1cf] sm:$0xff] }
  0xac   : > { %v3212_v44 = vld [vmem:[#allocation2 + $0x1c8] sm:$0xff]  ;;  %2172 = vmatmul.mubr.msk.f32.gmra.mrb[8].mxu0 %vm511_vm1, %v1499_v43  ;;  %v1282_v17 = vmul.f32 %v2574_v53, %v3210_v18  ;;  %v799_v63 = vadd.f32 %v767_v54, %v667_v19  ;;  %v967_v38 = vmul.f32 %v3150_v30, %v2558_v35  ;;  %v1283_v20 = vmul.f32 %v2574_v53, %v3223_v56  ;;  %v3231_v10 = vld [vmem:[#allocation2 + $0x1d0] sm:$0xff]  ;;  %v407_v4 = vld [vmem:[%s2518_s25 + $0xe0] sm:$0xff] }
  0xad   : > { %v1382_v8 = vmul.f32 %v2582_v59, %v3212_v44  ;;  %v3221_v3 = vld [vmem:[#allocation2 + $0x1c9] sm:$0xff]  ;;  %v1114_v39 = vadd.f32 %v1082_v41, %v1014_v21  ;;  %v491_v27 = vmul.f32 %v2550_v28, %v457_v23  ;;  %v492_v51 = vmul.f32 %v2550_v28, %v458_v45  ;;  %v341_v41 = vld [vmem:[%s2509_s19 + $0xe0] sm:$0xff]  ;;  %v3243_v1 = vld [vmem:[#allocation2 + $0x1d1] sm:$0xff] }
  0xae   : > { %v1482_v62 = vmul.f32 %v2585_v60, %v3221_v3  ;;  %v1314_v32 = vadd.f32 %v1282_v17, %v1213_v11  ;;  %v899_v61 = vadd.f32 %v867_v42, %v799_v63  ;;  %v1383_v50 = vmul.f32 %v2582_v59, %v3231_v10  ;;  %v408_v19 = vld [vmem:[%s2518_s25 + $0xe8] sm:$0xff] }
  0xaf   : > { %v1214_v24 = vadd.f32 %v1182_v9, %v1114_v39  ;;  %v1067_v26 = vmul.f32 %v3152_v58, %v2561_v36  ;;  %v668_v48 = vmul.f32 %v3037_v2, %v2527_v13  ;;  %598 = vst.msk [vmem:[#allocation2 + $0xe8] sm:$0xff] %vm511_vm1, %v491_v27  ;;  %599 = vst.msk [vmem:[#allocation2 + $0xf0] sm:$0xff] %vm511_vm1, %v492_v51 }
  0xb0   : > { %v1414_v52 = vadd.f32 %v1382_v8, %v1314_v32  ;;  %v999_v5 = vadd.f32 %v967_v38, %v899_v61  ;;  %v768_v6 = vmul.f32 %v3049_v7, %v2530_v14  ;;  %v868_v33 = vmul.f32 %v3051_v40, %v2533_v15 }
  0xb1   : > { %v1315_v43 = vadd.f32 %v1283_v20, %v1214_v24  ;;  %v1483_v2 = vmul.f32 %v2585_v60, %v3243_v1  ;;  %v1167_v11 = vmul.f32 %v3159_v37, %v2568_v46  ;;  %v968_v54 = vmul.f32 %v3161_v57, %v2558_v35 }
  0xb2   : > { %v1514_v42 = vadd.f32 %v1482_v62, %v1414_v52  ;;  %v1099_v21 = vadd.f32 %v1067_v26, %v999_v5  ;;  %v800_v9 = vadd.f32 %v768_v6, %v668_v48  ;;  %v375_v7 = vmul.f32 %v2524_v12, %v341_v41 }
  0xb3   : > { %v1415_v23 = vadd.f32 %v1383_v50, %v1315_v43  ;;  %v376_v40 = vmul.f32 %v2524_v12, %v342_v49  ;;  %v441_v45 = vmul.f32 %v2542_v22, %v407_v4  ;;  %v442_v17 = vmul.f32 %v2542_v22, %v408_v19 }
  0xb4   : > { %2195 = vmatprep.mubr.msk.f32.mxu1 %vm511_vm1, %v1514_v42  ;;  %v900_v8 = vadd.f32 %v868_v33, %v800_v9  ;;  %v1068_v63 = vmul.f32 %v3171_v47, %v2561_v36  ;;  %v683_v38 = vmul.f32 %v3088_v31, %v2527_v13  ;;  %v783_v62 = vmul.f32 %v3090_v0, %v2530_v14 }
  0xb5   : > { %v1515_v39 = vadd.f32 %v1483_v2, %v1415_v23  ;;  %v473_v20 = vadd.f32 %v441_v45, %v375_v7  ;;  %v474_v32 = vadd.f32 %v442_v17, %v376_v40  ;;  %v883_v27 = vmul.f32 %v3092_v25, %v2533_v15 }
  0xb6   : > { %v1199_v51 = vadd.f32 %v1167_v11, %v1099_v21  ;;  %v1000_v61 = vadd.f32 %v968_v54, %v900_v8  ;;  %v1168_v24 = vmul.f32 %v3175_v55, %v2568_v46  ;;  %v815_v50 = vadd.f32 %v783_v62, %v683_v38  ;;  %v3275_v26 = vld [vmem:[#allocation2 + $0xe7] sm:$0xff]  ;;  %v3291_v33 = vld [vmem:[#allocation2 + $0xef] sm:$0xff] }
  0xb7   : > { %2196 = vmatmul.mubr.msk.f32.gmra.mrb[8].mxu1 %vm511_vm1, %v1515_v39  ;;  %v3277_v31 = vld [vmem:[#allocation2 + $0xe8] sm:$0xff]  ;;  %v507_v0 = vmul.f32 %v2550_v28, %v473_v20  ;;  %v508_v48 = vmul.f32 %v2550_v28, %v474_v32  ;;  %v983_v41 = vmul.f32 %v3210_v18, %v2558_v35  ;;  %v1083_v25 = vmul.f32 %v3212_v44, %v2561_v36  ;;  %v3293_v4 = vld [vmem:[#allocation2 + $0xf0] sm:$0xff] }
  0xb8   : > { %v1268_v49 = vmul.f32 %v2574_v53, %v3275_v26  ;;  %v1368_v52 = vmul.f32 %v2582_v59, %v3277_v31  ;;  %v3289_v5 = vld [vmem:[#allocation2 + $0xe9] sm:$0xff]  ;;  %v1100_v6 = vadd.f32 %v1068_v63, %v1000_v61  ;;  %v684_v19 = vmul.f32 %v3102_v34, %v2527_v13  ;;  %v3305_v9 = vld [vmem:[#allocation2 + $0xf1] sm:$0xff] }
  0xb9   : > { %v1468_v43 = vmul.f32 %v2585_v60, %v3289_v5  ;;  %v1269_v2 = vmul.f32 %v2574_v53, %v3291_v33  ;;  %v1369_v11 = vmul.f32 %v2582_v59, %v3293_v4  ;;  %614 = vst.msk [vmem:[#allocation2 + $0x1e8] sm:$0xff] %vm511_vm1, %v507_v0  ;;  %615 = vst.msk [vmem:[#allocation2 + $0x1f0] sm:$0xff] %vm511_vm1, %v508_v48  ;;  %v3331_v48 = vld [vmem:[#allocation2 + $0x107] sm:$0xff] }
  0xba   : > { %v915_v54 = vadd.f32 %v883_v27, %v815_v50  ;;  %v1300_v42 = vadd.f32 %v1268_v49, %v1199_v51  ;;  %v1200_v21 = vadd.f32 %v1168_v24, %v1100_v6  ;;  %3683 = vst [vmem:[#allocation9_spill] sm:$0xff] %v3305_v9  ;;  %v784_v34 = vmul.f32 %v3104_v29, %v2530_v14  ;;  %v3342_v6 = vld [vmem:[#allocation2 + $0x108] sm:$0xff] }
  0xbb   : > { %v884_v7 = vmul.f32 %v3106_v16, %v2533_v15  ;;  %v1469_v23 = vmul.f32 %v2585_v60, %v3305_v9  ;;  %v1183_v45 = vmul.f32 %v3221_v3, %v2568_v46  ;;  %v984_v17 = vmul.f32 %v3223_v56, %v2558_v35 }
  0xbc   : > { %v1015_v40 = vadd.f32 %v983_v41, %v915_v54  ;;  %v1400_v8 = vadd.f32 %v1368_v52, %v1300_v42  ;;  %v1301_v63 = vadd.f32 %v1269_v2, %v1200_v21  ;;  %v816_v38 = vadd.f32 %v784_v34, %v684_v19  ;;  %v3354_v21 = vld [vmem:[#allocation2 + $0x109] sm:$0xff] }
  0xbd   : > { %v669_v62 = vmul.f32 %v3150_v30, %v2527_v13  ;;  %v1084_v16 = vmul.f32 %v3231_v10, %v2561_v36  ;;  %v769_v39 = vmul.f32 %v3152_v58, %v2530_v14  ;;  %v869_v20 = vmul.f32 %v3159_v37, %v2533_v15 }
  0xbe   : > { %v1115_v29 = vadd.f32 %v1083_v25, %v1015_v40  ;;  %v1500_v32 = vadd.f32 %v1468_v43, %v1400_v8  ;;  %v1401_v27 = vadd.f32 %v1369_v11, %v1301_v63  ;;  %v916_v51 = vadd.f32 %v884_v7, %v816_v38 }
  0xbf   : > { %v1184_v61 = vmul.f32 %v3243_v1, %v2568_v46  ;;  %v801_v50 = vadd.f32 %v769_v39, %v669_v62  ;;  %v969_v30 = vmul.f32 %v3275_v26, %v2558_v35  ;;  %v1069_v0 = vmul.f32 %v3277_v31, %v2561_v36 }
  0xc0   : > { %v1215_v24 = vadd.f32 %v1183_v45, %v1115_v29  ;;  %2174 = vmatprep.mubr.msk.f32.mxu0 %vm511_vm1, %v1500_v32  ;;  %v1501_v58 = vadd.f32 %v1469_v23, %v1401_v27  ;;  %v3334_v37 = vld [vmem:[#allocation2 + $0x1e7] sm:$0xff]  ;;  %v1016_v25 = vadd.f32 %v984_v17, %v916_v51  ;;  %v1169_v49 = vmul.f32 %v3289_v5, %v2568_v46  ;;  %v3350_v11 = vld [vmem:[#allocation2 + $0x1ef] sm:$0xff] }
  0xc1   : > { %v3336_v41 = vld [vmem:[#allocation2 + $0x1e8] sm:$0xff]  ;;  %v1270_v52 = vmul.f32 %v2574_v53, %v3331_v48  ;;  %v1284_v19 = vmul.f32 %v2574_v53, %v3334_v37  ;;  %v901_v54 = vadd.f32 %v869_v20, %v801_v50  ;;  %v1370_v42 = vmul.f32 %v2582_v59, %v3342_v6  ;;  %v3363_v17 = vld [vmem:[#allocation2 + $0x1f0] sm:$0xff] }
  0xc2   : > { %v1384_v43 = vmul.f32 %v2582_v59, %v3336_v41  ;;  %v3348_v2 = vld [vmem:[#allocation2 + $0x1e9] sm:$0xff]  ;;  %2175 = vmatmul.mubr.msk.f32.gmra.mrb[10].mxu0 %vm511_vm1, %v1501_v58  ;;  %v1116_v7 = vadd.f32 %v1084_v16, %v1016_v25  ;;  %v1285_v23 = vmul.f32 %v2574_v53, %v3350_v11  ;;  %v1470_v40 = vmul.f32 %v2585_v60, %v3354_v21  ;;  %v3365_v8 = vld [vmem:[#allocation2 + $0x1f1] sm:$0xff] }
  0xc3   : > { %v1484_v34 = vmul.f32 %v2585_v60, %v3348_v2  ;;  %v1316_v45 = vadd.f32 %v1284_v19, %v1215_v24  ;;  %v1001_v63 = vadd.f32 %v969_v30, %v901_v54  ;;  %v670_v38 = vmul.f32 %v3161_v57, %v2527_v13  ;;  %v3377_v32 = vld [vmem:[#allocation2 + $0x10f] sm:$0xff]  ;;  %v410_v30 = vld [vmem:[%s2518_s25 + $0xf8] sm:$0xff] }
  0xc4   : > { %v770_v62 = vmul.f32 %v3171_v47, %v2530_v14  ;;  %v1216_v29 = vadd.f32 %v1184_v61, %v1116_v7  ;;  %v1385_v16 = vmul.f32 %v2582_v59, %v3363_v17  ;;  %v1485_v39 = vmul.f32 %v2585_v60, %v3365_v8  ;;  %v343_v27 = vld [vmem:[%s2509_s19 + $0xf0] sm:$0xff]  ;;  %v344_v47 = vld [vmem:[%s2509_s19 + $0xf8] sm:$0xff] }
  0xc5   : > { %v870_v20 = vmul.f32 %v3175_v55, %v2533_v15  ;;  %v1416_v51 = vadd.f32 %v1384_v43, %v1316_v45  ;;  %v1101_v24 = vadd.f32 %v1069_v0, %v1001_v63  ;;  %v970_v57 = vmul.f32 %v3291_v33, %v2558_v35  ;;  %v409_v61 = vld [vmem:[%s2518_s25 + $0xf0] sm:$0xff] }
  0xc6   : > { %v802_v50 = vadd.f32 %v770_v62, %v670_v38  ;;  %v1317_v58 = vadd.f32 %v1285_v23, %v1216_v29  ;;  %v1070_v25 = vmul.f32 %v3293_v4, %v2561_v36  ;;  %v1170_v19 = vmul.f32 %v3305_v9, %v2568_v46 }
  0xc7   : > { %v1271_v55 = vmul.f32 %v2574_v53, %v3377_v32  ;;  %v1516_v54 = vadd.f32 %v1484_v34, %v1416_v51  ;;  %v1201_v43 = vadd.f32 %v1169_v49, %v1101_v24  ;;  %v377_v7 = vmul.f32 %v2524_v12, %v343_v27  ;;  %v1335_v24 = vld [vmem:[#allocation2 + $0x110] sm:$0xff] }
  0xc8   : > { %v902_v0 = vadd.f32 %v870_v20, %v802_v50  ;;  %v1417_v45 = vadd.f32 %v1385_v16, %v1317_v58  ;;  %v378_v63 = vmul.f32 %v2524_v12, %v344_v47  ;;  %v443_v38 = vmul.f32 %v2542_v22, %v409_v61 }
  0xc9   : > { %v444_v23 = vmul.f32 %v2542_v22, %v410_v30  ;;  %2198 = vmatprep.mubr.msk.f32.mxu1 %vm511_vm1, %v1516_v54  ;;  %v1302_v62 = vadd.f32 %v1270_v52, %v1201_v43  ;;  %v685_v9 = vmul.f32 %v3210_v18, %v2527_v13  ;;  %v785_v49 = vmul.f32 %v3212_v44, %v2530_v14 }
  0xca   : > { %v1002_v29 = vadd.f32 %v970_v57, %v902_v0  ;;  %v1517_v34 = vadd.f32 %v1485_v39, %v1417_v45  ;;  %v475_v20 = vadd.f32 %v443_v38, %v377_v7  ;;  %v885_v12 = vmul.f32 %v3221_v3, %v2533_v15  ;;  %v1336_v38 = vld [vmem:[#allocation2 + $0x128] sm:$0xff] }
  0xcb   : > { %v476_v27 = vadd.f32 %v444_v23, %v378_v63  ;;  %v1402_v16 = vadd.f32 %v1370_v42, %v1302_v62  ;;  %v817_v22 = vadd.f32 %v785_v49, %v685_v9  ;;  %v985_v52 = vmul.f32 %v3334_v37, %v2558_v35  ;;  %v3410_v42 = vld [vmem:[#allocation2 + $0x111] sm:$0xff]  ;;  %v1236_v63 = vld [vmem:[#allocation2 + $0x127] sm:$0xff] }
  0xcc   : > { %v1102_v51 = vadd.f32 %v1070_v25, %v1002_v29  ;;  %2199 = vmatmul.mubr.msk.f32.gmra.mrb[10].mxu1 %vm511_vm1, %v1517_v34  ;;  %v1371_v18 = vmul.f32 %v2582_v59, %v1335_v24  ;;  %v509_v50 = vmul.f32 %v2550_v28, %v475_v20  ;;  %v1085_v39 = vmul.f32 %v3336_v41, %v2561_v36 }
  0xcd   : > { %v510_v44 = vmul.f32 %v2550_v28, %v476_v27  ;;  %v1502_v57 = vadd.f32 %v1470_v40, %v1402_v16  ;;  %v917_v47 = vadd.f32 %v885_v12, %v817_v22  ;;  %v686_v9 = vmul.f32 %v3223_v56, %v2527_v13 }
  0xce   : > { %v1202_v3 = vadd.f32 %v1170_v19, %v1102_v51  ;;  %v1471_v61 = vmul.f32 %v2585_v60, %v3410_v42  ;;  %616 = vst.msk [vmem:[#allocation2 + $0x208] sm:$0xff] %vm511_vm1, %v509_v50  ;;  %v786_v28 = vmul.f32 %v3231_v10, %v2530_v14  ;;  %v886_v40 = vmul.f32 %v3243_v1, %v2533_v15 }
  0xcf   : > { %617 = vst.msk [vmem:[#allocation2 + $0x210] sm:$0xff] %vm511_vm1, %v510_v44  ;;  %2177 = vmatprep.mubr.msk.f32.mxu0 %vm511_vm1, %v1502_v57  ;;  %v1017_v58 = vadd.f32 %v985_v52, %v917_v47  ;;  %v1185_v56 = vmul.f32 %v3348_v2, %v2568_v46  ;;  %v671_v25 = vmul.f32 %v3275_v26, %v2527_v13 }
  0xd0   : > { %v1303_v30 = vadd.f32 %v1271_v55, %v1202_v3  ;;  %v818_v19 = vadd.f32 %v786_v28, %v686_v9  ;;  %v986_v54 = vmul.f32 %v3350_v11, %v2558_v35  ;;  %v771_v10 = vmul.f32 %v3277_v31, %v2530_v14 }
  0xd1   : > { %v871_v1 = vmul.f32 %v3289_v5, %v2533_v15  ;;  %v1117_v0 = vadd.f32 %v1085_v39, %v1017_v58  ;;  %v1086_v7 = vmul.f32 %v3363_v17, %v2561_v36  ;;  %v1186_v45 = vmul.f32 %v3365_v8, %v2568_v46 }
  0xd2   : > { %v1403_v43 = vadd.f32 %v1371_v18, %v1303_v30  ;;  %v918_v55 = vadd.f32 %v886_v40, %v818_v19  ;;  %v803_v26 = vadd.f32 %v771_v10, %v671_v25  ;;  %v971_v31 = vmul.f32 %v3331_v48, %v2558_v35  ;;  %v1436_v30 = vld [vmem:[#allocation2 + $0x129] sm:$0xff] }
  0xd3   : > { %v1217_v62 = vadd.f32 %v1185_v56, %v1117_v0  ;;  %v1071_v5 = vmul.f32 %v3342_v6, %v2561_v36  ;;  %v672_v34 = vmul.f32 %v3291_v33, %v2527_v13  ;;  %v772_v20 = vmul.f32 %v3293_v4, %v2530_v14  ;;  %v3684_v6 = vld [vmem:[#allocation9_spill] sm:$0xff] }
  0xd4   : > { %v1503_v23 = vadd.f32 %v1471_v61, %v1403_v43  ;;  %v1018_v29 = vadd.f32 %v986_v54, %v918_v55  ;;  %v903_v49 = vadd.f32 %v871_v1, %v803_v26  ;;  %v1171_v16 = vmul.f32 %v3354_v21, %v2568_v46 }
  0xd5   : > { %v1250_v27 = vld [vmem:[#allocation2 + $0x207] sm:$0xff]  ;;  %v1272_v48 = vmul.f32 %v2574_v53, %v1236_v63  ;;  %v1372_v51 = vmul.f32 %v2582_v59, %v1336_v38  ;;  %v872_v22 = vmul.f32 %v3684_v6, %v2533_v15  ;;  %v972_v44 = vmul.f32 %v3377_v32, %v2558_v35 }
  0xd6   : > { %2178 = vmatmul.mubr.msk.f32.gmra.mrb[12].mxu0 %vm511_vm1, %v1503_v23  ;;  %v1350_v12 = vld [vmem:[#allocation2 + $0x208] sm:$0xff]  ;;  %v1286_v52 = vmul.f32 %v2574_v53, %v1250_v27  ;;  %v1118_v4 = vadd.f32 %v1086_v7, %v1018_v29  ;;  %v1351_v57 = vld [vmem:[#allocation2 + $0x210] sm:$0xff]  ;;  %v1003_v3 = vadd.f32 %v971_v31, %v903_v49  ;;  %v1072_v47 = vmul.f32 %v1335_v24, %v2561_v36 }
  0xd7   : > { %v1386_v33 = vmul.f32 %v2582_v59, %v1350_v12  ;;  %v1450_v18 = vld [vmem:[#allocation2 + $0x209] sm:$0xff]  ;;  %v1387_v28 = vmul.f32 %v2582_v59, %v1351_v57  ;;  %v1451_v40 = vld [vmem:[#allocation2 + $0x211] sm:$0xff]  ;;  %v804_v58 = vadd.f32 %v772_v20, %v672_v34  ;;  %v687_v32 = vmul.f32 %v3334_v37, %v2527_v13 }
  0xd8   : > { %v1251_v50 = vld [vmem:[#allocation2 + $0x20f] sm:$0xff]  ;;  %v1486_v39 = vmul.f32 %v2585_v60, %v1450_v18  ;;  %v1318_v9 = vadd.f32 %v1286_v52, %v1217_v62  ;;  %v1218_v61 = vadd.f32 %v1186_v45, %v1118_v4  ;;  %v1487_v56 = vmul.f32 %v2585_v60, %v1451_v40 }
  0xd9   : > { %v1287_v21 = vmul.f32 %v2574_v53, %v1251_v50  ;;  %v1103_v25 = vadd.f32 %v1071_v5, %v1003_v3  ;;  %v787_v19 = vmul.f32 %v3336_v41, %v2530_v14  ;;  %v904_v1 = vadd.f32 %v872_v22, %v804_v58  ;;  %v1237_v24 = vld [vmem:[#allocation2 + $0x12f] sm:$0xff] }
  0xda   : > { %v1418_v54 = vadd.f32 %v1386_v33, %v1318_v9  ;;  %v887_v43 = vmul.f32 %v3348_v2, %v2533_v15  ;;  %v1472_v55 = vmul.f32 %v2585_v60, %v1436_v30  ;;  %v987_v45 = vmul.f32 %v1250_v27, %v2558_v35  ;;  %v1337_v62 = vld [vmem:[#allocation2 + $0x130] sm:$0xff]  ;;  %v1252_v2 = vld [vmem:[#allocation2 + $0x227] sm:$0xff] }
  0xdb   : > { %v1319_v10 = vadd.f32 %v1287_v21, %v1218_v61  ;;  %v1203_v0 = vadd.f32 %v1171_v16, %v1103_v25  ;;  %v819_v7 = vadd.f32 %v787_v19, %v687_v32  ;;  %v1004_v38 = vadd.f32 %v972_v44, %v904_v1  ;;  %v1437_v16 = vld [vmem:[#allocation2 + $0x131] sm:$0xff]  ;;  %v1352_v33 = vld [vmem:[#allocation2 + $0x228] sm:$0xff] }
  0xdc   : > { %v1518_v26 = vadd.f32 %v1486_v39, %v1418_v54  ;;  %v1172_v37 = vmul.f32 %v3410_v42, %v2568_v46  ;;  %v1273_v23 = vmul.f32 %v2574_v53, %v1237_v24  ;;  %v1087_v5 = vmul.f32 %v1350_v12, %v2561_v36  ;;  %v1253_v3 = vld [vmem:[#allocation2 + $0x22f] sm:$0xff] }
  0xdd   : > { %v1419_v63 = vadd.f32 %v1387_v28, %v1319_v10  ;;  %v1304_v41 = vadd.f32 %v1272_v48, %v1203_v0  ;;  %v919_v31 = vadd.f32 %v887_v43, %v819_v7  ;;  %v1104_v49 = vadd.f32 %v1072_v47, %v1004_v38  ;;  %v1353_v28 = vld [vmem:[#allocation2 + $0x230] sm:$0xff]  ;;  %v3505_v10 = vld [vmem:[%s3650_s6] ss:$0 sm:$0xff] }
  0xde   : > { %2201 = vmatprep.mubr.msk.f32.mxu1 %vm511_vm1, %v1518_v26  ;;  %v1187_v34 = vmul.f32 %v1450_v18, %v2568_v46  ;;  %v688_v20 = vmul.f32 %v3350_v11, %v2527_v13  ;;  %v788_v48 = vmul.f32 %v3363_v17, %v2530_v14  ;;  %v888_v6 = vmul.f32 %v3365_v8, %v2533_v15  ;;  %v1452_v14 = vld [vmem:[#allocation2 + $0x229] sm:$0xff]  ;;  %v1453_v25 = vld [vmem:[#allocation2 + $0x231] sm:$0xff] }
  0xdf   : > { %v1519_v29 = vadd.f32 %v1487_v56, %v1419_v63  ;;  %v1404_v27 = vadd.f32 %v1372_v51, %v1304_v41  ;;  %v1019_v42 = vadd.f32 %v987_v45, %v919_v31  ;;  %v1204_v12 = vadd.f32 %v1172_v37, %v1104_v49 }
  0xe0   : > { %v1373_v22 = vmul.f32 %v2582_v59, %v1337_v62  ;;  %v1288_v52 = vmul.f32 %v2574_v53, %v1252_v2  ;;  %v820_v13 = vadd.f32 %v788_v48, %v688_v20  ;;  %v988_v11 = vmul.f32 %v1251_v50, %v2558_v35 }
  0xe1   : > { %2202 = vmatmul.mubr.msk.f32.gmra.mrb[12].mxu1 %vm511_vm1, %v1519_v29  ;;  %v1504_v18 = vadd.f32 %v1472_v55, %v1404_v27  ;;  %v1119_v4 = vadd.f32 %v1087_v5, %v1019_v42  ;;  %v1305_v51 = vadd.f32 %v1273_v23, %v1204_v12  ;;  %v1473_v44 = vmul.f32 %v2585_v60, %v1437_v16 }
  0xe2   : > { %v1388_v17 = vmul.f32 %v2582_v59, %v1352_v33  ;;  %v920_v8 = vadd.f32 %v888_v6, %v820_v13  ;;  %v1088_v39 = vmul.f32 %v1351_v57, %v2561_v36  ;;  %v1488_v9 = vmul.f32 %v2585_v60, %v1452_v14 }
  0xe3   : > { %2180 = vmatprep.mubr.msk.f32.mxu0 %vm511_vm1, %v1504_v18  ;;  %v1219_v15 = vadd.f32 %v1187_v34, %v1119_v4  ;;  %v1405_v21 = vadd.f32 %v1373_v22, %v1305_v51  ;;  %v1188_v35 = vmul.f32 %v1451_v40, %v2568_v46  ;;  %v1289_v56 = vmul.f32 %v2574_v53, %v1253_v3  ;;  %v3500_v53 = vld [vmem:[%s3649_s5] ss:$0 sm:$0xff] }
  0xe4   : > { %v1020_v61 = vadd.f32 %v988_v11, %v920_v8  ;;  %v1389_v57 = vmul.f32 %v2582_v59, %v1353_v28  ;;  %v1489_v54 = vmul.f32 %v2585_v60, %v1453_v25 }
  0xe5   : > { %v1320_v47 = vadd.f32 %v1288_v52, %v1219_v15  ;;  %v1505_v50 = vadd.f32 %v1473_v44, %v1405_v21 }
  0xe6   : > { %v1120_v58 = vadd.f32 %v1088_v39, %v1020_v61 }
  0xe7   : > { %v1420_v30 = vadd.f32 %v1388_v17, %v1320_v47  ;;  %2181 = vmatmul.mubr.msk.f32.gmra.mrb[14].mxu0 %vm511_vm1, %v1505_v50 }
  0xe8   : > { %v1220_v36 = vadd.f32 %v1188_v35, %v1120_v58 }
  0xe9   : > { %v1520_v32 = vadd.f32 %v1488_v9, %v1420_v30 }
  0xea   : > { %v1321_v19 = vadd.f32 %v1289_v56, %v1220_v36 }
  0xeb   : > { %2204 = vmatprep.mubr.msk.f32.mxu1 %vm511_vm1, %v1520_v32 }
  0xec   : > { %v1421_v46 = vadd.f32 %v1389_v57, %v1321_v19 }
  0xee   : > { %v1521_v40 = vadd.f32 %v1489_v54, %v1421_v46 }
  0xf0   : > { %2205 = vmatmul.mubr.msk.f32.gmra.mrb[14].mxu1 %vm511_vm1, %v1521_v40 }
 0x12d   : > { %v2161_v59 = vpop.f32.mrb[0].mxu0 }
 0x12e   : > { %v1857_v1 = vmul.f32 %v2161_v59, %v3500_v53  ;;  %v1691_v24 = vpop.f32.mrb[1].mxu0 }
 0x12f   : > { %v1856_v60 = vmul.f32 %v3500_v53, %v1691_v24 }
 0x130   : > { %v1895_v43 = vadd.f32 %v3505_v10, %v1857_v1 }
 0x131   : > { %v1894_v0 = vadd.f32 %v3505_v10, %v1856_v60 }
 0x132   : > { %v1927_v55 = vmax.f32 %v1895_v43, 0.0 }
 0x133   : > { %v1926_v7 = vmax.f32 %v1894_v0, 0.0 }
 0x134   : > { %1959 = vst.msk [vmem:[%s3514_s11 + $0x8] sm:$0xff] %vm511_vm1, %v1927_v55 }
 0x135   : > { %1958 = vst.msk [vmem:[%s3514_s11] sm:$0xff] %vm511_vm1, %v1926_v7 }
 0x13c   : > { %v2185_v45 = vpop.f32.mrb[0].mxu1 }
 0x13d   : > { %v1873_v26 = vmul.f32 %v2185_v45, %v3500_v53  ;;  %v1771_v63 = vpop.f32.mrb[1].mxu1 }
 0x13e   : > { %v1872_v38 = vmul.f32 %v3500_v53, %v1771_v63  ;;  %v2164_v41 = vpop.f32.mrb[2].mxu0 }
 0x13f   : > { %v1911_v37 = vadd.f32 %v3505_v10, %v1873_v26  ;;  %v1859_v62 = vmul.f32 %v2164_v41, %v3500_v53  ;;  %v1701_v31 = vpop.f32.mrb[3].mxu0 }
 0x140   : > { %v1910_v23 = vadd.f32 %v3505_v10, %v1872_v38  ;;  %v1858_v2 = vmul.f32 %v3500_v53, %v1701_v31 }
 0x141   : > { %v1943_v5 = vmax.f32 %v1911_v37, 0.0  ;;  %v1897_v49 = vadd.f32 %v3505_v10, %v1859_v62 }
 0x142   : > { %v1942_v29 = vmax.f32 %v1910_v23, 0.0  ;;  %v1896_v34 = vadd.f32 %v3505_v10, %v1858_v2 }
 0x143   : > { %1975 = vst.msk [vmem:[%s3514_s11 + $0x88] sm:$0xff] %vm511_vm1, %v1943_v5  ;;  %v1929_v20 = vmax.f32 %v1897_v49, 0.0 }
 0x144   : > { %1974 = vst.msk [vmem:[%s3514_s11 + $0x80] sm:$0xff] %vm511_vm1, %v1942_v29  ;;  %v1928_v27 = vmax.f32 %v1896_v34, 0.0 }
 0x145   : > { %1961 = vst.msk [vmem:[%s3514_s11 + $0x18] sm:$0xff] %vm511_vm1, %v1929_v20 }
 0x146   : > { %1960 = vst.msk [vmem:[%s3514_s11 + $0x10] sm:$0xff] %vm511_vm1, %v1928_v27 }
 0x14b   : > { %v2188_v16 = vpop.f32.mrb[2].mxu1 }
 0x14c   : > { %v1875_v42 = vmul.f32 %v2188_v16, %v3500_v53  ;;  %v1781_v48 = vpop.f32.mrb[3].mxu1 }
 0x14d   : > { %v1874_v6 = vmul.f32 %v3500_v53, %v1781_v48 }
 0x14e   : > { %v1913_v12 = vadd.f32 %v3505_v10, %v1875_v42 }
 0x14f   : > { %v1912_v22 = vadd.f32 %v3505_v10, %v1874_v6 }
 0x150   : > { %v1945_v52 = vmax.f32 %v1913_v12, 0.0 }
 0x151   : > { %v1944_v33 = vmax.f32 %v1912_v22, 0.0 }
 0x152   : > { %1977 = vst.msk [vmem:[%s3514_s11 + $0x98] sm:$0xff] %vm511_vm1, %v1945_v52 }
 0x153   : > { %1976 = vst.msk [vmem:[%s3514_s11 + $0x90] sm:$0xff] %vm511_vm1, %v1944_v33 }
 0x155   : > { %v2167_v18 = vpop.f32.mrb[4].mxu0 }
 0x156   : > { %v1861_v4 = vmul.f32 %v2167_v18, %v3500_v53  ;;  %v1711_v13 = vpop.f32.mrb[5].mxu0 }
 0x157   : > { %v1860_v11 = vmul.f32 %v3500_v53, %v1711_v13 }
 0x158   : > { %v1899_v51 = vadd.f32 %v3505_v10, %v1861_v4 }
 0x159   : > { %v1898_v44 = vadd.f32 %v3505_v10, %v1860_v11 }
 0x15a   : > { %v1931_v14 = vmax.f32 %v1899_v51, 0.0 }
 0x15b   : > { %v1930_v15 = vmax.f32 %v1898_v44, 0.0 }
 0x15c   : > { %1963 = vst.msk [vmem:[%s3514_s11 + $0x28] sm:$0xff] %vm511_vm1, %v1931_v14 }
 0x15d   : > { %1962 = vst.msk [vmem:[%s3514_s11 + $0x20] sm:$0xff] %vm511_vm1, %v1930_v15 }
 0x160   : > { %v2191_v17 = vpop.f32.mrb[4].mxu1 }
 0x161   : > { %v1877_v8 = vmul.f32 %v2191_v17, %v3500_v53  ;;  %v1791_v39 = vpop.f32.mrb[5].mxu1 }
 0x162   : > { %v1876_v21 = vmul.f32 %v3500_v53, %v1791_v39 }
 0x163   : > { %v1915_v3 = vadd.f32 %v3505_v10, %v1877_v8 }
 0x164   : > { %v1914_v47 = vadd.f32 %v3505_v10, %v1876_v21 }
 0x165   : > { %v1947_v9 = vmax.f32 %v1915_v3, 0.0 }
 0x166   : > { %v1946_v61 = vmax.f32 %v1914_v47, 0.0 }
 0x167   : > { %1979 = vst.msk [vmem:[%s3514_s11 + $0xa8] sm:$0xff] %vm511_vm1, %v1947_v9 }
 0x168   : > { %1978 = vst.msk [vmem:[%s3514_s11 + $0xa0] sm:$0xff] %vm511_vm1, %v1946_v61 }
 0x16b   : > { %v2170_v35 = vpop.f32.mrb[6].mxu0 }
 0x16c   : > { %v1863_v50 = vmul.f32 %v2170_v35, %v3500_v53  ;;  %v1721_v28 = vpop.f32.mrb[7].mxu0 }
 0x16d   : > { %v1862_v30 = vmul.f32 %v3500_v53, %v1721_v28 }
 0x16e   : > { %v1901_v58 = vadd.f32 %v3505_v10, %v1863_v50 }
 0x16f   : > { %v1900_v56 = vadd.f32 %v3505_v10, %v1862_v30 }
 0x170   : > { %v1933_v25 = vmax.f32 %v1901_v58, 0.0 }
 0x171   : > { %v1932_v32 = vmax.f32 %v1900_v56, 0.0 }
 0x172   : > { %1965 = vst.msk [vmem:[%s3514_s11 + $0x38] sm:$0xff] %vm511_vm1, %v1933_v25 }
 0x173   : > { %1964 = vst.msk [vmem:[%s3514_s11 + $0x30] sm:$0xff] %vm511_vm1, %v1932_v32 }
 0x175   : > { %v2194_v36 = vpop.f32.mrb[6].mxu1 }
 0x176   : > { %v1879_v57 = vmul.f32 %v2194_v36, %v3500_v53  ;;  %v1801_v19 = vpop.f32.mrb[7].mxu1 }
 0x177   : > { %v1878_v54 = vmul.f32 %v3500_v53, %v1801_v19 }
 0x178   : > { %v1917_v46 = vadd.f32 %v3505_v10, %v1879_v57 }
 0x179   : > { %v1916_v40 = vadd.f32 %v3505_v10, %v1878_v54 }
 0x17a   : > { %v1949_v59 = vmax.f32 %v1917_v46, 0.0 }
 0x17b   : > { %v1948_v1 = vmax.f32 %v1916_v40, 0.0 }
 0x17c   : > { %1981 = vst.msk [vmem:[%s3514_s11 + $0xb8] sm:$0xff] %vm511_vm1, %v1949_v59 }
 0x17d   : > { %1980 = vst.msk [vmem:[%s3514_s11 + $0xb0] sm:$0xff] %vm511_vm1, %v1948_v1 }
 0x17f   : > { %v2173_v24 = vpop.f32.mrb[8].mxu0 }
 0x180   : > { %v1865_v60 = vmul.f32 %v2173_v24, %v3500_v53  ;;  %v1731_v43 = vpop.f32.mrb[9].mxu0 }
 0x181   : > { %v1864_v0 = vmul.f32 %v3500_v53, %v1731_v43 }
 0x182   : > { %v1903_v55 = vadd.f32 %v3505_v10, %v1865_v60 }
 0x183   : > { %v1902_v7 = vadd.f32 %v3505_v10, %v1864_v0 }
 0x184   : > { %v1935_v45 = vmax.f32 %v1903_v55, 0.0 }
 0x185   : > { %v1934_v26 = vmax.f32 %v1902_v7, 0.0 }
 0x186   : > { %1967 = vst.msk [vmem:[%s3514_s11 + $0x48] sm:$0xff] %vm511_vm1, %v1935_v45 }
 0x187   : > { %1966 = vst.msk [vmem:[%s3514_s11 + $0x40] sm:$0xff] %vm511_vm1, %v1934_v26 }
 0x18a   : > { %v2197_v63 = vpop.f32.mrb[8].mxu1 }
 0x18b   : > { %v1881_v38 = vmul.f32 %v2197_v63, %v3500_v53  ;;  %v1811_v37 = vpop.f32.mrb[9].mxu1 }
 0x18c   : > { %v1880_v41 = vmul.f32 %v3500_v53, %v1811_v37 }
 0x18d   : > { %v1919_v23 = vadd.f32 %v3505_v10, %v1881_v38 }
 0x18e   : > { %v1918_v62 = vadd.f32 %v3505_v10, %v1880_v41 }
 0x18f   : > { %v1951_v31 = vmax.f32 %v1919_v23, 0.0 }
 0x190   : > { %v1950_v5 = vmax.f32 %v1918_v62, 0.0 }
 0x191   : > { %1983 = vst.msk [vmem:[%s3514_s11 + $0xc8] sm:$0xff] %vm511_vm1, %v1951_v31 }
 0x192   : > { %1982 = vst.msk [vmem:[%s3514_s11 + $0xc0] sm:$0xff] %vm511_vm1, %v1950_v5 }
 0x195   : > { %v2176_v2 = vpop.f32.mrb[10].mxu0 }
 0x196   : > { %v1867_v29 = vmul.f32 %v2176_v2, %v3500_v53  ;;  %v1741_v49 = vpop.f32.mrb[11].mxu0 }
 0x197   : > { %v1866_v34 = vmul.f32 %v3500_v53, %v1741_v49 }
 0x198   : > { %v1905_v20 = vadd.f32 %v3505_v10, %v1867_v29 }
 0x199   : > { %v1904_v27 = vadd.f32 %v3505_v10, %v1866_v34 }
 0x19a   : > { %v1937_v16 = vmax.f32 %v1905_v20, 0.0 }
 0x19b   : > { %v1936_v42 = vmax.f32 %v1904_v27, 0.0 }
 0x19c   : > { %1969 = vst.msk [vmem:[%s3514_s11 + $0x58] sm:$0xff] %vm511_vm1, %v1937_v16 }
 0x19d   : > { %1968 = vst.msk [vmem:[%s3514_s11 + $0x50] sm:$0xff] %vm511_vm1, %v1936_v42 }
 0x19f   : > { %v2200_v48 = vpop.f32.mrb[10].mxu1 }
 0x1a0   : > { %v1883_v6 = vmul.f32 %v2200_v48, %v3500_v53  ;;  %v1821_v12 = vpop.f32.mrb[11].mxu1 }
 0x1a1   : > { %v1882_v22 = vmul.f32 %v3500_v53, %v1821_v12 }
 0x1a2   : > { %v1921_v52 = vadd.f32 %v3505_v10, %v1883_v6 }
 0x1a3   : > { %v1920_v33 = vadd.f32 %v3505_v10, %v1882_v22 }
 0x1a4   : > { %v1953_v18 = vmax.f32 %v1921_v52, 0.0 }
 0x1a5   : > { %v1952_v4 = vmax.f32 %v1920_v33, 0.0 }
 0x1a6   : > { %1985 = vst.msk [vmem:[%s3514_s11 + $0xd8] sm:$0xff] %vm511_vm1, %v1953_v18 }
 0x1a7   : > { %1984 = vst.msk [vmem:[%s3514_s11 + $0xd0] sm:$0xff] %vm511_vm1, %v1952_v4 }
 0x1a9   : > { %v2179_v13 = vpop.f32.mrb[12].mxu0 }
 0x1aa   : > { %v1869_v11 = vmul.f32 %v2179_v13, %v3500_v53  ;;  %v1751_v51 = vpop.f32.mrb[13].mxu0 }
 0x1ab   : > { %v1868_v44 = vmul.f32 %v3500_v53, %v1751_v51 }
 0x1ac   : > { %v1907_v14 = vadd.f32 %v3505_v10, %v1869_v11 }
 0x1ad   : > { %v1906_v15 = vadd.f32 %v3505_v10, %v1868_v44 }
 0x1ae   : > { %v1939_v17 = vmax.f32 %v1907_v14, 0.0 }
 0x1af   : > { %v1938_v8 = vmax.f32 %v1906_v15, 0.0 }
 0x1b0   : > { %1971 = vst.msk [vmem:[%s3514_s11 + $0x68] sm:$0xff] %vm511_vm1, %v1939_v17 }
 0x1b1   : > { %1970 = vst.msk [vmem:[%s3514_s11 + $0x60] sm:$0xff] %vm511_vm1, %v1938_v8 }
 0x1b4   : > { %v2203_v39 = vpop.f32.mrb[12].mxu1 }
 0x1b5   : > { %v1885_v21 = vmul.f32 %v2203_v39, %v3500_v53  ;;  %v1831_v3 = vpop.f32.mrb[13].mxu1 }
 0x1b6   : > { %v1884_v47 = vmul.f32 %v3500_v53, %v1831_v3 }
 0x1b7   : > { %v1923_v9 = vadd.f32 %v3505_v10, %v1885_v21 }
 0x1b8   : > { %v1922_v61 = vadd.f32 %v3505_v10, %v1884_v47 }
 0x1b9   : > { %v1955_v35 = vmax.f32 %v1923_v9, 0.0 }
 0x1ba   : > { %v1954_v50 = vmax.f32 %v1922_v61, 0.0  ;;  %v2182_v28 = vpop.f32.mrb[14].mxu0 }
 0x1bb   : > { %1987 = vst.msk [vmem:[%s3514_s11 + $0xe8] sm:$0xff] %vm511_vm1, %v1955_v35  ;;  %v1871_v30 = vmul.f32 %v2182_v28, %v3500_v53  ;;  %v1761_v58 = vpop.f32.mrb[15].mxu0 }
 0x1bc   : > { %1986 = vst.msk [vmem:[%s3514_s11 + $0xe0] sm:$0xff] %vm511_vm1, %v1954_v50  ;;  %v1870_v56 = vmul.f32 %v3500_v53, %v1761_v58 }
 0x1bd   : > { %v1909_v25 = vadd.f32 %v3505_v10, %v1871_v30 }
 0x1be   : > { %v1908_v32 = vadd.f32 %v3505_v10, %v1870_v56 }
 0x1bf   : > { %v1941_v36 = vmax.f32 %v1909_v25, 0.0 }
 0x1c0   : > { %v1940_v57 = vmax.f32 %v1908_v32, 0.0 }
 0x1c1   : > { %1973 = vst.msk [vmem:[%s3514_s11 + $0x78] sm:$0xff] %vm511_vm1, %v1941_v36 }
 0x1c2   : > { %1972 = vst.msk [vmem:[%s3514_s11 + $0x70] sm:$0xff] %vm511_vm1, %v1940_v57 }
 0x1c3   : > { %v2206_v19 = vpop.f32.mrb[14].mxu1 }
 0x1c4   : > { %v1887_v54 = vmul.f32 %v2206_v19, %v3500_v53  ;;  %v1841_v46 = vpop.f32.mrb[15].mxu1 }
 0x1c5   : > { %v1886_v40 = vmul.f32 %v3500_v53, %v1841_v46 }
 0x1c6   : > { %v1925_v59 = vadd.f32 %v3505_v10, %v1887_v54 }
 0x1c7   : > { %v1924_v1 = vadd.f32 %v3505_v10, %v1886_v40 }
 0x1c8   : > { %v1957_v24 = vmax.f32 %v1925_v59, 0.0 }
 0x1c9   : > { %v1956_v60 = vmax.f32 %v1924_v1, 0.0 }
 0x1ca   : > { %1989 = vst.msk [vmem:[%s3514_s11 + $0xf8] sm:$0xff] %vm511_vm1, %v1957_v24 }
 0x1cb   : > { %1988 = vst.msk [vmem:[%s3514_s11 + $0xf0] sm:$0xff] %vm511_vm1, %v1956_v60 }
 0x1cc PF: > { %s18_s24 = sadd.s32 1, %s2254_s24  }
 0x1cd   : > { %p15_p1 = scmp.ge.s32.totalorder %s18_s24, 4  }
 0x1cf   :  { %17 = sbr.rel (!%p15_p1) target bundleno = 1 (0x1), region = 88 }
 0x1d6   :  { %2011 = vsyncpa [#allocation4], 1 }
 0x1d7   :  { %2013 = vsyncpa [#allocation4 + $0x1], 1 }

// kernel: bifpn_forward.15
= control target key start
LH: loop header
LB: loop body
LE: loop exit
PB: predicated region body
PF: predicated region fallthrough
CT: control target
= control target key end

     0   :  { %13 = vsyncpa [#allocation4], 0  ;;  %s1154_s27 = smov 0   ;;  %s1367_s0 = inlined_call_operand.vmem [shape: f32[4], index: 0, kind: input, shape index: {}]   ;;  %s1368_s1 = inlined_call_operand.vmem [shape: f32[2,4,4,4], index: 1, kind: input, shape index: {}]   ;;  %s1369_s2 = inlined_call_operand.vmem [shape: f32[2,4,4,4], index: 2, kind: input, shape index: {}]   ;;  %s1370_s3 = inlined_call_operand.vmem [shape: f32[2,4,4,4], index: 3, kind: input, shape index: {}]   ;;  %s1371_s4 = inlined_call_operand.vmem [shape: f32[3,3,4], index: 4, kind: input, shape index: {}]   ;;  %s1372_s5 = inlined_call_operand.vmem [shape: f32[4,4], index: 5, kind: input, shape index: {}]   ;;  %s1373_s6 = inlined_call_operand.vmem [shape: f32[1,4], index: 6, kind: input, shape index: {}]   ;;  %s1374_s7 = inlined_call_operand.vmem [shape: f32[1,4], index: 7, kind: input, shape index: {}]   ;;  %s1375_s8 = inlined_call_operand.vmem [shape: f32[2,4,4,4], index: 8, kind: output, shape index: {}]  }
   0x1 LB: > { %s1160_s28 = sadd.s32 4294967295, %s1104_s27   ;;  %p995_p0 = scmp.ge.s32.totalorder %s1104_s27, 1  ;;  %s1104_s27 = sphi %s1154_s27, %s19_s27  }
   0x2   : > { %p233_p1 = scmp.lt.s32.totalorder %s1104_s27, 3  ;;  %s246_s9 = sshll.u32 %s1367_s0, 4  ;;  %s247_s9 = int_to_ptr.vmem [resolvable:$true] %s246_s9 }
   0x3   : > { %p1066_p3 = scmp.eq.s32.totalorder %s1160_s28, 0  ;;  %s1079_s11 = scalar_lea.vmem %s247_s9, 16 }
   0x4   : > { %p1167_p2 = pnand %p995_p0, %p233_p1  ;;  %p1080_p6 = scmp.ne.s32.totalorder %s247_s9, %s1079_s11 }
   0x5   : > { %p1087_p10 = scmp.lt.s32.totalorder %s247_s9, %s247_s9  ;;  %p1088_p11 = scmp.lt.s32.totalorder %s1079_s11, %s1079_s11 }
   0x6   : > { %p1062_p4 = pneg %p1167_p2 }
   0x7   : > { %p1089_p12 = por %p1088_p11, %p1087_p10 }
   0x8   : > { %p1063_p5 = pnand %p1066_p3, %p1062_p4 }
   0xa   : > { %p1081_p7 = pneg %p1063_p5 }
   0xc   : > { %p1082_p8 = pnand %p1081_p7, %p1080_p6 }
   0xe   : > { %p1083_p9 = pneg %p1082_p8 }
  0x10   : > { %p1090_p13 = pnand %p1089_p12, %p1083_p9 }
  0x12   : > { %1093 = shalt.err (!%p1090_p13)
}
  0x13   : > { %s1106_s12 = smov [#allocation3]   ;;  %295 = sbr.rel (%p1167_p2) target bundleno = 302 (0x12e), region = 52 }
  0x14   : > { %1065 = dma.vmem_to_smem (!%p1063_p5), %s247_s9, 16, %s1106_s12, [#allocation4]  }
  0x1a   : > { %1099 = dma.done.wait (%p1066_p3), [#allocation4], 16  }
  0x1b   : > { %1101 = vsyncadd (%p1066_p3), [#allocation4], 4294967280 }
  0x1c   : > { %301 = sfence }
  0x1d   : > { %v1185_v0 = vld [vmem:[%s1372_s5] sm:$0xf]  ;;  %vm578_vm0 = vcmask 1043456   ;;  %p340_p0 = scmp.lt.s32.totalorder %s1160_s28, 1  ;;  %v431_v1 = vlaneseq  ;;  %v1107_v2 = vmov 0.0   ;;  %s1190_s15 = sld [smem:[#allocation3]] }
  0x1e   : > { %1038 = vmatprep.subr.mxu0 %v1107_v2  ;;  %1043 = vmatprep.subr.mxu1 %v1107_v2  ;;  %s1192_s16 = sld [smem:[#allocation3 + $0x1]]  ;;  %vm404_vm1 = vcmask 31744   ;;  %vm406_vm2 = vcmask 28672   ;;  %vm1108_vm3 = vmmov 0   ;;  %s1009_s17 = sld [smem:[#allocation3 + $0x2]]  ;;  %vm419_vm4 = vcmask 27648  }
  0x1f   : > { %1039 = vmatpush3.msk.msra.mxu0 %vm578_vm0, %v1185_v0  ;;  %1040 = vmatprep.mubr.msk.f32.mxu0 %vm1108_vm3, %v1107_v2  ;;  %s1378_s28 = smov (!%p340_p0, %s1160_s28), 1  ;;  %405 = vst.msk [vmem:[#allocation2] sm:$0xff] %vm404_vm1, %v1107_v2  ;;  %408 = vst.msk [vmem:[#allocation2 + $0x10] sm:$0xff] %vm404_vm1, %v1107_v2  ;;  %s1225_s18 = sld [smem:[#allocation3 + $0x3]]  ;;  %v432_v3 = vshrl.u32 %v431_v1, 7 }
  0x20   : > { %407 = vst.msk [vmem:[#allocation2 + $0x8] sm:$0x1f] %vm406_vm2, %v1107_v2  ;;  %409 = vst.msk [vmem:[#allocation2 + $0x18] sm:$0x1f] %vm406_vm2, %v1107_v2  ;;  %1044 = vmatpush3.msk.msra.mxu1 %vm578_vm0, %v1185_v0  ;;  %1045 = vmatprep.mubr.msk.f32.mxu1 %vm1108_vm3, %v1107_v2  ;;  %s1229_s19 = sshll.u32 %s1378_s28, 4 }
  0x21   : > { %410 = vst.msk [vmem:[#allocation2 + $0x20] sm:$0xff] %vm404_vm1, %v1107_v2  ;;  %414 = vst.msk [vmem:[#allocation2 + $0x40] sm:$0xff] %vm404_vm1, %v1107_v2  ;;  %1048 = vmatprep.subr.mxu0 %v1107_v2  ;;  %1053 = vmatprep.subr.mxu1 %v1107_v2  ;;  %s1237_s22 = scalar_lea.vmem %s1368_s1, %s1229_s19  ;;  %s1243_s25 = scalar_lea.vmem %s1369_s2, %s1229_s19  ;;  %v424_v4 = vld [vmem:[%s1371_s4] sm:$0x7]  ;;  %v433_v12 = vsub.s32 0, %v432_v3  ;;  %v1261_v13 = vsub.s32 1, %v432_v3 }
  0x22   : > { %411 = vst.msk [vmem:[#allocation2 + $0x28] sm:$0x1f] %vm406_vm2, %v1107_v2  ;;  %413 = vst.msk [vmem:[#allocation2 + $0x38] sm:$0x1f] %vm406_vm2, %v1107_v2  ;;  %s1252_s9 = scalar_lea.vmem %s1370_s3, %s1229_s19  ;;  %v360_v5 = vld [vmem:[%s1237_s22] sm:$0xf]  ;;  %s359_s21 = scalar_lea.vmem %s1375_s8, %s1229_s19 }
  0x23   : > { %416 = vst.msk [vmem:[#allocation2 + $0x50] sm:$0xff] %vm404_vm1, %v1107_v2  ;;  %412 = vst.msk [vmem:[#allocation2 + $0x30] sm:$0xff] %vm404_vm1, %v1107_v2  ;;  %v361_v6 = vld [vmem:[%s1237_s22 + $0x4] sm:$0xf]  ;;  %v370_v7 = vld [vmem:[%s1243_s25] sm:$0xf]  ;;  %v365_v8 = vstv %s1190_s15  ;;  %v1264_v20 = vrot.slane %v424_v4, %v433_v12  ;;  %v1267_v21 = vrot.slane %v424_v4, %v1261_v13 }
  0x24   : > { %415 = vst.msk [vmem:[#allocation2 + $0x48] sm:$0x1f] %vm406_vm2, %v1107_v2  ;;  %417 = vst.msk [vmem:[#allocation2 + $0x58] sm:$0x1f] %vm406_vm2, %v1107_v2  ;;  %v371_v9 = vld [vmem:[%s1243_s25 + $0x4] sm:$0xf]  ;;  %v375_v10 = vstv %s1192_s16  ;;  %v366_v14 = vmul.f32 %v365_v8, %v360_v5  ;;  %v367_v15 = vmul.f32 %v365_v8, %v361_v6  ;;  %v389_v19 = vstv %s1009_s17 }
  0x25   : > { %v384_v11 = vld [vmem:[%s1252_s9] sm:$0xf]  ;;  %v376_v16 = vmul.f32 %v375_v10, %v370_v7  ;;  %v377_v17 = vmul.f32 %v375_v10, %v371_v9  ;;  %v385_v18 = vld [vmem:[%s1252_s9 + $0x4] sm:$0xf]  ;;  %v399_v28 = vstv %s1225_s18  ;;  %v465_v29 = vsub.s32 2, %v432_v3 }
  0x26   : > { %v390_v24 = vmul.f32 %v389_v19, %v384_v11  ;;  %v391_v25 = vmul.f32 %v389_v19, %v385_v18  ;;  %v362_v30 = vld [vmem:[%s1237_s22 + $0x8] sm:$0xf]  ;;  %v363_v35 = vld [vmem:[%s1237_s22 + $0xc] sm:$0xf]  ;;  %v425_v50 = vld [vmem:[%s1371_s4 + $0x4] sm:$0x7] }
  0x27   : > { %v380_v22 = vadd.f32 %v376_v16, %v366_v14  ;;  %v381_v23 = vadd.f32 %v377_v17, %v367_v15  ;;  %v427_v26 = vld [vmem:[#allocation2 + $0x7] sm:$0xf]  ;;  %v373_v38 = vld [vmem:[%s1243_s25 + $0xc] sm:$0xf]  ;;  %v1278_v42 = vrot.slane %v424_v4, %v465_v29  ;;  %v368_v43 = vmul.f32 %v365_v8, %v362_v30 }
  0x28   : > { %v443_v27 = vld [vmem:[#allocation2 + $0x8] sm:$0xf]  ;;  %v435_v36 = vmul.f32 %v1264_v20, %v427_v26  ;;  %v387_v39 = vld [vmem:[%s1252_s9 + $0xc] sm:$0xf]  ;;  %v369_v47 = vmul.f32 %v365_v8, %v363_v35  ;;  %v379_v48 = vmul.f32 %v375_v10, %v373_v38  ;;  %v1289_v57 = vrot.slane %v425_v50, %v433_v12 }
  0x29   : > { %v394_v31 = vadd.f32 %v390_v24, %v380_v22  ;;  %v395_v32 = vadd.f32 %v391_v25, %v381_v23  ;;  %v372_v33 = vld [vmem:[%s1243_s25 + $0x8] sm:$0xf]  ;;  %v451_v37 = vmul.f32 %v1267_v21, %v443_v27  ;;  %v393_v49 = vmul.f32 %v389_v19, %v387_v39 }
  0x2a   : > { %v386_v34 = vld [vmem:[%s1252_s9 + $0x8] sm:$0xf]  ;;  %v378_v45 = vmul.f32 %v375_v10, %v372_v33  ;;  %v383_v54 = vadd.f32 %v379_v48, %v369_v47  ;;  %v1292_v58 = vrot.slane %v425_v50, %v1261_v13  ;;  %v1294_v60 = vrot.slane %v425_v50, %v465_v29 }
  0x2b   : > { %v400_v40 = vmul.f32 %v399_v28, %v394_v31  ;;  %v401_v41 = vmul.f32 %v399_v28, %v395_v32  ;;  %v459_v44 = vld [vmem:[#allocation2 + $0x9] sm:$0xf]  ;;  %v392_v46 = vmul.f32 %v389_v19, %v386_v34  ;;  %v455_v52 = vadd.f32 %v451_v37, %v435_v36 }
  0x2c   : > { %v382_v51 = vadd.f32 %v378_v45, %v368_v43  ;;  %v467_v53 = vmul.f32 %v1278_v42, %v459_v44  ;;  %v426_v56 = vld [vmem:[%s1371_s4 + $0x8] sm:$0x7]  ;;  %v397_v59 = vadd.f32 %v393_v49, %v383_v54 }
  0x2d   : > { %420 = vst.msk [vmem:[#allocation2 + $0x18] sm:$0xf] %vm419_vm4, %v400_v40  ;;  %421 = vst.msk [vmem:[#allocation2 + $0x28] sm:$0xf] %vm419_vm4, %v401_v41  ;;  %v1296_v5 = vrot.slane %v426_v56, %v433_v12  ;;  %v1304_v10 = vrot.slane %v426_v56, %v1261_v13  ;;  %v1310_v25 = vrot.slane %v426_v56, %v465_v29 }
  0x2e   : > { %v396_v55 = vadd.f32 %v392_v46, %v382_v51  ;;  %v471_v62 = vadd.f32 %v467_v53, %v455_v52  ;;  %v403_v63 = vmul.f32 %v399_v28, %v397_v59 }
  0x30   : > { %v402_v61 = vmul.f32 %v399_v28, %v396_v55  ;;  %423 = vst.msk [vmem:[#allocation2 + $0x48] sm:$0xf] %vm419_vm4, %v403_v63 }
  0x32   : > { %422 = vst.msk [vmem:[#allocation2 + $0x38] sm:$0xf] %vm419_vm4, %v402_v61 }
  0x34   : > { %v475_v1 = vld [vmem:[#allocation2 + $0x17] sm:$0xf]  ;;  %v524_v8 = vld [vmem:[#allocation2 + $0x27] sm:$0xf] }
  0x35   : > { %v491_v3 = vld [vmem:[#allocation2 + $0x18] sm:$0xf]  ;;  %v483_v6 = vmul.f32 %v1289_v57, %v475_v1  ;;  %v540_v12 = vld [vmem:[#allocation2 + $0x28] sm:$0xf]  ;;  %v532_v24 = vmul.f32 %v1296_v5, %v524_v8 }
  0x36   : > { %v507_v4 = vld [vmem:[#allocation2 + $0x19] sm:$0xf]  ;;  %v499_v7 = vmul.f32 %v1292_v58, %v491_v3  ;;  %v476_v22 = vld [vmem:[#allocation2 + $0x27] sm:$0xf]  ;;  %v548_v36 = vmul.f32 %v1304_v10, %v540_v12 }
  0x37   : > { %v515_v9 = vmul.f32 %v1294_v60, %v507_v4  ;;  %v428_v11 = vld [vmem:[#allocation2 + $0x17] sm:$0xf]  ;;  %v487_v16 = vadd.f32 %v483_v6, %v471_v62  ;;  %v492_v23 = vld [vmem:[#allocation2 + $0x28] sm:$0xf]  ;;  %v484_v13 = vmul.f32 %v1289_v57, %v476_v22 }
  0x38   : > { %v444_v14 = vld [vmem:[#allocation2 + $0x18] sm:$0xf]  ;;  %v436_v17 = vmul.f32 %v1264_v20, %v428_v11  ;;  %v429_v26 = vld [vmem:[#allocation2 + $0x27] sm:$0xf]  ;;  %v500_v39 = vmul.f32 %v1292_v58, %v492_v23 }
  0x39   : > { %v460_v15 = vld [vmem:[#allocation2 + $0x19] sm:$0xf]  ;;  %v452_v18 = vmul.f32 %v1267_v21, %v444_v14  ;;  %v445_v27 = vld [vmem:[#allocation2 + $0x28] sm:$0xf]  ;;  %v503_v30 = vadd.f32 %v499_v7, %v487_v16  ;;  %v437_v34 = vmul.f32 %v1264_v20, %v429_v26 }
  0x3a   : > { %v468_v19 = vmul.f32 %v1278_v42, %v460_v15  ;;  %v461_v28 = vld [vmem:[#allocation2 + $0x29] sm:$0xf]  ;;  %v453_v35 = vmul.f32 %v1267_v21, %v445_v27  ;;  %v525_v40 = vld [vmem:[#allocation2 + $0x37] sm:$0xf] }
  0x3b   : > { %v556_v31 = vld [vmem:[#allocation2 + $0x29] sm:$0xf]  ;;  %v456_v32 = vadd.f32 %v452_v18, %v436_v17  ;;  %v469_v37 = vmul.f32 %v1278_v42, %v461_v28  ;;  %v519_v38 = vadd.f32 %v515_v9, %v503_v30  ;;  %v477_v45 = vld [vmem:[#allocation2 + $0x37] sm:$0xf]  ;;  %v533_v54 = vmul.f32 %v1296_v5, %v525_v40 }
  0x3c   : > { %v508_v33 = vld [vmem:[#allocation2 + $0x29] sm:$0xf]  ;;  %v457_v41 = vadd.f32 %v453_v35, %v437_v34  ;;  %v564_v43 = vmul.f32 %v1310_v25, %v556_v31  ;;  %v493_v46 = vld [vmem:[#allocation2 + $0x38] sm:$0xf]  ;;  %v485_v52 = vmul.f32 %v1289_v57, %v477_v45 }
  0x3d   : > { %v472_v29 = vadd.f32 %v468_v19, %v456_v32  ;;  %v516_v44 = vmul.f32 %v1294_v60, %v508_v33  ;;  %v509_v47 = vld [vmem:[#allocation2 + $0x39] sm:$0xf]  ;;  %v536_v48 = vadd.f32 %v532_v24, %v519_v38  ;;  %v526_v53 = vld [vmem:[#allocation2 + $0x47] sm:$0xf]  ;;  %v501_v55 = vmul.f32 %v1292_v58, %v493_v46 }
  0x3e   : > { %v541_v50 = vld [vmem:[#allocation2 + $0x38] sm:$0xf]  ;;  %v473_v51 = vadd.f32 %v469_v37, %v457_v41  ;;  %v517_v3 = vmul.f32 %v1294_v60, %v509_v47  ;;  %v478_v4 = vld [vmem:[#allocation2 + $0x47] sm:$0xf]  ;;  %v534_v17 = vmul.f32 %v1296_v5, %v526_v53 }
  0x3f   : > { %v488_v49 = vadd.f32 %v484_v13, %v472_v29  ;;  %v430_v56 = vld [vmem:[#allocation2 + $0x37] sm:$0xf]  ;;  %v552_v62 = vadd.f32 %v548_v36, %v536_v48  ;;  %v549_v6 = vmul.f32 %v1304_v10, %v541_v50  ;;  %v542_v8 = vld [vmem:[#allocation2 + $0x48] sm:$0xf]  ;;  %v486_v23 = vmul.f32 %v1289_v57, %v478_v4 }
  0x40   : > { %v446_v59 = vld [vmem:[#allocation2 + $0x38] sm:$0xf]  ;;  %v489_v1 = vadd.f32 %v485_v52, %v473_v51  ;;  %v438_v9 = vmul.f32 %v1264_v20, %v430_v56  ;;  %v494_v18 = vld [vmem:[#allocation2 + $0x48] sm:$0xf] }
  0x41   : > { %v462_v61 = vld [vmem:[#allocation2 + $0x39] sm:$0xf]  ;;  %v504_v63 = vadd.f32 %v500_v39, %v488_v49  ;;  %v454_v11 = vmul.f32 %v1267_v21, %v446_v59  ;;  %v568_v15 = vadd.f32 %v564_v43, %v552_v62  ;;  %v558_v19 = vld [vmem:[#allocation2 + $0x49] sm:$0xf]  ;;  %v550_v21 = vmul.f32 %v1304_v10, %v542_v8 }
  0x42   : > { %v557_v7 = vld [vmem:[#allocation2 + $0x39] sm:$0xf]  ;;  %v470_v14 = vmul.f32 %v1278_v42, %v462_v61  ;;  %v505_v12 = vadd.f32 %v501_v55, %v489_v1  ;;  %v510_v26 = vld [vmem:[#allocation2 + $0x49] sm:$0xf]  ;;  %v502_v27 = vmul.f32 %v1292_v58, %v494_v18  ;;  %v566_v30 = vmul.f32 %v1310_v25, %v558_v19 }
  0x43   : > { %v520_v16 = vadd.f32 %v516_v44, %v504_v63  ;;  %v458_v22 = vadd.f32 %v454_v11, %v438_v9  ;;  %1041 = vmatmul.mubr.msk.f32.vlgmr.msra.gmra.mrb[0].mxu0 %vm404_vm1, %v568_v15  ;;  %v565_v13 = vmul.f32 %v1310_v25, %v557_v7  ;;  %v527_v31 = vld [vmem:[#allocation2 + $0x57] sm:$0xf]  ;;  %v518_v33 = vmul.f32 %v1294_v60, %v510_v26 }
  0x44   : > { %v521_v20 = vadd.f32 %v517_v3, %v505_v12  ;;  %1049 = vmatpush3.msk.msra.mxu0 %vm578_vm0, %v1185_v0  ;;  %1050 = vmatprep.mubr.msk.f32.mxu0 %vm1108_vm3, %v1107_v2  ;;  %v543_v36 = vld [vmem:[#allocation2 + $0x58] sm:$0xf]  ;;  %v535_v38 = vmul.f32 %v1296_v5, %v527_v31 }
  0x45   : > { %v537_v24 = vadd.f32 %v533_v54, %v520_v16  ;;  %v474_v42 = vadd.f32 %v470_v14, %v458_v22  ;;  %v559_v39 = vld [vmem:[#allocation2 + $0x59] sm:$0xf]  ;;  %v551_v60 = vmul.f32 %v1304_v10, %v543_v36 }
  0x46   : > { %v538_v57 = vadd.f32 %v534_v17, %v521_v20  ;;  %v567_v41 = vmul.f32 %v1310_v25, %v559_v39 }
  0x47   : > { %v553_v28 = vadd.f32 %v549_v6, %v537_v24  ;;  %v490_v32 = vadd.f32 %v486_v23, %v474_v42 }
  0x48   : > { %v554_v35 = vadd.f32 %v550_v21, %v538_v57 }
  0x49   : > { %v569_v34 = vadd.f32 %v565_v13, %v553_v28  ;;  %v506_v37 = vadd.f32 %v502_v27, %v490_v32 }
  0x4a   : > { %v570_v29 = vadd.f32 %v566_v30, %v554_v35 }
  0x4b   : > { %1046 = vmatmul.mubr.msk.f32.vlgmr.msra.gmra.mrb[0].mxu1 %vm404_vm1, %v569_v34  ;;  %v522_v58 = vadd.f32 %v518_v33, %v506_v37 }
  0x4c   : > { %1054 = vmatpush3.msk.msra.mxu1 %vm578_vm0, %v1185_v0  ;;  %1055 = vmatprep.mubr.msk.f32.mxu1 %vm1108_vm3, %v1107_v2  ;;  %v1013_v0 = vld [vmem:[%s1373_s6] ss:$0 sm:$0xff] }
  0x4d   : > { %1051 = vmatmul.mubr.msk.f32.vlgmr.msra.gmra.mrb[2].mxu0 %vm404_vm1, %v570_v29  ;;  %v539_v40 = vadd.f32 %v535_v38, %v522_v58  ;;  %v1014_v2 = vld [vmem:[%s1374_s7] ss:$0 sm:$0xff] }
  0x4f   : > { %v555_v5 = vadd.f32 %v551_v60, %v539_v40 }
  0x51   : > { %v571_v43 = vadd.f32 %v567_v41, %v555_v5 }
  0x53   : > { %1056 = vmatmul.mubr.msk.f32.vlgmr.msra.gmra.mrb[2].mxu1 %vm404_vm1, %v571_v43 }
 0x116   : > { %v648_v44 = vpop.f32.mrb[0].mxu0 }
 0x117   : > { %v658_v45 = vmul.f32 %v1013_v0, %v648_v44  ;;  %v1042_v10 = vpop.f32.mrb[1].mxu0 }
 0x119   : > { %v665_v46 = vadd.f32 %v1014_v2, %v658_v45 }
 0x11b   : > { %v666_v25 = vmax.f32 %v665_v46, 0.0 }
 0x11d   : > { %667 = vst.msk [vmem:[%s359_s21] sm:$0xf] %vm419_vm4, %v666_v25 }
 0x11e   : > { %v737_v47 = vpop.f32.mrb[0].mxu1 }
 0x11f   : > { %v741_v48 = vmul.f32 %v1013_v0, %v737_v47  ;;  %v1047_v49 = vpop.f32.mrb[1].mxu1 }
 0x120   : > { %v815_v50 = vpop.f32.mrb[2].mxu0 }
 0x121   : > { %v742_v51 = vadd.f32 %v1014_v2, %v741_v48  ;;  %v819_v52 = vmul.f32 %v1013_v0, %v815_v50  ;;  %v1052_v53 = vpop.f32.mrb[3].mxu0 }
 0x123   : > { %v743_v54 = vmax.f32 %v742_v51, 0.0  ;;  %v820_v55 = vadd.f32 %v1014_v2, %v819_v52 }
 0x125   : > { %1017 = vst.msk [vmem:[%s359_s21 + $0x4] sm:$0xf] %vm419_vm4, %v743_v54  ;;  %v821_v56 = vmax.f32 %v820_v55, 0.0 }
 0x126   : > { %v893_v59 = vpop.f32.mrb[2].mxu1 }
 0x127   : > { %1020 = vst.msk [vmem:[%s359_s21 + $0x8] sm:$0xf] %vm419_vm4, %v821_v56  ;;  %v897_v61 = vmul.f32 %v1013_v0, %v893_v59  ;;  %v1057_v62 = vpop.f32.mrb[3].mxu1 }
 0x129   : > { %v898_v63 = vadd.f32 %v1014_v2, %v897_v61 }
 0x12b   : > { %v899_v1 = vmax.f32 %v898_v63, 0.0 }
 0x12d   : > { %1023 = vst.msk [vmem:[%s359_s21 + $0xc] sm:$0xf] %vm419_vm4, %v899_v1 }
 0x12e PF: > { %s19_s27 = sadd.s32 1, %s1104_s27  }
 0x12f   : > { %p16_p1 = scmp.ge.s32.totalorder %s19_s27, 4  }
 0x131   :  { %18 = sbr.rel (!%p16_p1) target bundleno = 1 (0x1), region = 98 }
 0x138   :  { %923 = vsyncpa [#allocation4], 1 }
 0x139   :  { %925 = vsyncpa [#allocation4 + $0x1], 1 }

// kernel: bifpn_forward.16
= control target key start
LH: loop header
LB: loop body
LE: loop exit
PB: predicated region body
PF: predicated region fallthrough
CT: control target
= control target key end

     0   :  { %11 = vsyncpa [#allocation4], 0  ;;  %s791_s21 = smov 0   ;;  %s867_s0 = inlined_call_operand.vmem [shape: f32[2], index: 0, kind: input, shape index: {}]   ;;  %s868_s1 = inlined_call_operand.vmem [shape: f32[2,4,4,4], index: 1, kind: input, shape index: {}]   ;;  %s869_s2 = inlined_call_operand.vmem [shape: f32[3,3,4], index: 2, kind: input, shape index: {}]   ;;  %s870_s3 = inlined_call_operand.vmem [shape: f32[4,4], index: 3, kind: input, shape index: {}]   ;;  %s871_s4 = inlined_call_operand.vmem [shape: f32[1,4], index: 4, kind: input, shape index: {}]   ;;  %s872_s5 = inlined_call_operand.vmem [shape: f32[1,4], index: 5, kind: input, shape index: {}]   ;;  %s873_s6 = inlined_call_operand.vmem [shape: f32[2,2,2,4], index: 6, kind: output, shape index: {}]  }
   0x1 LB: > { %s797_s22 = sadd.s32 4294967295, %s751_s21   ;;  %p670_p0 = scmp.ge.s32.totalorder %s751_s21, 1  ;;  %s751_s21 = sphi %s791_s21, %s17_s21  }
   0x2   : > { %p179_p1 = scmp.lt.s32.totalorder %s751_s21, 3  ;;  %s192_s25 = sshll.u32 %s867_s0, 4  ;;  %s193_s25 = int_to_ptr.vmem [resolvable:$true] %s192_s25 }
   0x3   : > { %p713_p3 = scmp.eq.s32.totalorder %s797_s22, 0  ;;  %s726_s27 = scalar_lea.vmem %s193_s25, 16 }
   0x4   : > { %p804_p2 = pnand %p670_p0, %p179_p1  ;;  %p727_p6 = scmp.ne.s32.totalorder %s193_s25, %s726_s27 }
   0x5   : > { %p734_p10 = scmp.lt.s32.totalorder %s193_s25, %s193_s25  ;;  %p735_p11 = scmp.lt.s32.totalorder %s726_s27, %s726_s27 }
   0x6   : > { %p709_p4 = pneg %p804_p2 }
   0x7   : > { %p736_p12 = por %p735_p11, %p734_p10 }
   0x8   : > { %p710_p5 = pnand %p713_p3, %p709_p4 }
   0xa   : > { %p728_p7 = pneg %p710_p5 }
   0xc   : > { %p729_p8 = pnand %p728_p7, %p727_p6 }
   0xe   : > { %p730_p9 = pneg %p729_p8 }
  0x10   : > { %p737_p13 = pnand %p736_p12, %p730_p9 }
  0x12   : > { %740 = shalt.err (!%p737_p13)
}
  0x13   : > { %s753_s28 = smov [#allocation3]   ;;  %225 = sbr.rel (%p804_p2) target bundleno = 289 (0x121), region = 44 }
  0x14   : > { %712 = dma.vmem_to_smem (!%p710_p5), %s193_s25, 16, %s753_s28, [#allocation4]  }
  0x1a   : > { %746 = dma.done.wait (%p713_p3), [#allocation4], 16  }
  0x1b   : > { %748 = vsyncadd (%p713_p3), [#allocation4], 4294967280 }
  0x1c   : > { %231 = sfence }
  0x1d   : > { %v414_v0 = vld [vmem:[%s870_s3] sm:$0xf]  ;;  %vm420_vm0 = vcmask 1043456   ;;  %p256_p0 = scmp.lt.s32.totalorder %s797_s22, 1  ;;  %v309_v1 = vlaneseq  ;;  %v754_v2 = vmov 0.0   ;;  %vm755_vm1 = vmmov 0  }
  0x1e   : > { %695 = vmatprep.subr.mxu0 %v754_v2  ;;  %697 = vmatprep.mubr.msk.f32.mxu0 %vm755_vm1, %v754_v2  ;;  %s270_s7 = sld [smem:[#allocation3]]  ;;  %s679_s8 = sld [smem:[#allocation3 + $0x1]]  ;;  %vm282_vm2 = vcmask 31744   ;;  %vm284_vm3 = vcmask 28672   ;;  %v302_v4 = vld [vmem:[%s869_s2] sm:$0x7] }
  0x1f   : > { %696 = vmatpush3.msk.msra.mxu0 %vm420_vm0, %v414_v0  ;;  %700 = vmatprep.subr.mxu1 %v754_v2  ;;  %s876_s22 = smov (!%p256_p0, %s797_s22), 1  ;;  %283 = vst.msk [vmem:[#allocation2] sm:$0xff] %vm282_vm2, %v754_v2  ;;  %286 = vst.msk [vmem:[#allocation2 + $0x10] sm:$0xff] %vm282_vm2, %v754_v2  ;;  %v310_v3 = vshrl.u32 %v309_v1, 7  ;;  %vm297_vm4 = vcmask 27648   ;;  %vm509_vm5 = vcmask 25600  }
  0x20   : > { %285 = vst.msk [vmem:[#allocation2 + $0x8] sm:$0x1f] %vm284_vm3, %v754_v2  ;;  %287 = vst.msk [vmem:[#allocation2 + $0x18] sm:$0x1f] %vm284_vm3, %v754_v2  ;;  %701 = vmatpush3.msk.msra.mxu1 %vm420_vm0, %v414_v0  ;;  %702 = vmatprep.mubr.msk.f32.mxu1 %vm755_vm1, %v754_v2  ;;  %s689_s9 = sshll.u32 %s876_s22, 4  ;;  %s690_s25 = sshll.u32 %s876_s22, 2 }
  0x21   : > { %288 = vst.msk [vmem:[#allocation2 + $0x20] sm:$0xff] %vm282_vm2, %v754_v2  ;;  %290 = vst.msk [vmem:[#allocation2 + $0x30] sm:$0xff] %vm282_vm2, %v754_v2  ;;  %s260_s14 = scalar_lea.vmem %s868_s1, %s689_s9  ;;  %v311_v5 = vsub.s32 0, %v310_v3  ;;  %v323_v6 = vsub.s32 1, %v310_v3  ;;  %v335_v7 = vsub.s32 2, %v310_v3  ;;  %s265_s28 = scalar_lea.vmem %s873_s6, %s690_s25 }
  0x22   : > { %289 = vst.msk [vmem:[#allocation2 + $0x28] sm:$0x1f] %vm284_vm3, %v754_v2  ;;  %291 = vst.msk [vmem:[#allocation2 + $0x38] sm:$0x1f] %vm284_vm3, %v754_v2  ;;  %v266_v8 = vld [vmem:[%s260_s14] sm:$0xf] }
  0x23   : > { %292 = vst.msk [vmem:[#allocation2 + $0x40] sm:$0xff] %vm282_vm2, %v754_v2  ;;  %v267_v9 = vld [vmem:[%s260_s14 + $0x4] sm:$0xf]  ;;  %v312_v12 = vrot.slane %v302_v4, %v311_v5  ;;  %v324_v13 = vrot.slane %v302_v4, %v323_v6  ;;  %v268_v16 = vld [vmem:[%s260_s14 + $0x8] sm:$0xf]  ;;  %v336_v20 = vrot.slane %v302_v4, %v335_v7 }
  0x24   : > { %293 = vst.msk [vmem:[#allocation2 + $0x48] sm:$0x1f] %vm284_vm3, %v754_v2  ;;  %v271_v10 = vstv %s270_s7  ;;  %v277_v11 = vstv %s679_s8  ;;  %v269_v17 = vld [vmem:[%s260_s14 + $0xc] sm:$0xf]  ;;  %v303_v28 = vld [vmem:[%s869_s2 + $0x4] sm:$0x7] }
  0x25   : > { %v272_v14 = vmul.f32 %v271_v10, %v266_v8  ;;  %v273_v15 = vmul.f32 %v271_v10, %v267_v9  ;;  %v274_v26 = vmul.f32 %v271_v10, %v268_v16  ;;  %v275_v27 = vmul.f32 %v271_v10, %v269_v17  ;;  %v304_v35 = vld [vmem:[%s869_s2 + $0x8] sm:$0x7] }
  0x26   : > { %v348_v33 = vrot.slane %v303_v28, %v311_v5  ;;  %v360_v34 = vrot.slane %v303_v28, %v323_v6  ;;  %v372_v37 = vrot.slane %v303_v28, %v335_v7  ;;  %v385_v43 = vrot.slane %v304_v35, %v311_v5 }
  0x27   : > { %v306_v18 = vld [vmem:[#allocation2 + $0x7] ss:$2 sm:$0x3]  ;;  %v318_v19 = vld [vmem:[#allocation2 + $0x8] ss:$2 sm:$0x3]  ;;  %v278_v21 = vmul.f32 %v277_v11, %v272_v14  ;;  %v279_v22 = vmul.f32 %v277_v11, %v273_v15  ;;  %v280_v29 = vmul.f32 %v277_v11, %v274_v26  ;;  %v281_v30 = vmul.f32 %v277_v11, %v275_v27 }
  0x28   : > { %v313_v23 = vmul.f32 %v312_v12, %v306_v18  ;;  %v325_v24 = vmul.f32 %v324_v13, %v318_v19  ;;  %v330_v25 = vld [vmem:[#allocation2 + $0x9] ss:$2 sm:$0x3]  ;;  %v397_v48 = vrot.slane %v304_v35, %v323_v6  ;;  %v409_v57 = vrot.slane %v304_v35, %v335_v7 }
  0x29   : > { %298 = vst.msk [vmem:[#allocation2 + $0x18] sm:$0xf] %vm297_vm4, %v278_v21  ;;  %299 = vst.msk [vmem:[#allocation2 + $0x28] sm:$0xf] %vm297_vm4, %v279_v22  ;;  %v337_v32 = vmul.f32 %v336_v20, %v330_v25  ;;  %v682_v21 = vld [vmem:[%s871_s4] ss:$0 sm:$0xff] }
  0x2a   : > { %v327_v31 = vadd.f32 %v325_v24, %v313_v23  ;;  %300 = vst.msk [vmem:[#allocation2 + $0x38] sm:$0xf] %vm297_vm4, %v280_v29  ;;  %301 = vst.msk [vmem:[#allocation2 + $0x48] sm:$0xf] %vm297_vm4, %v281_v30  ;;  %v683_v22 = vld [vmem:[%s872_s5] ss:$0 sm:$0xff] }
  0x2c   : > { %v339_v36 = vadd.f32 %v337_v32, %v327_v31 }
  0x30   : > { %v342_v38 = vld [vmem:[#allocation2 + $0x17] ss:$2 sm:$0x3]  ;;  %v354_v39 = vld [vmem:[#allocation2 + $0x18] ss:$2 sm:$0x3] }
  0x31   : > { %v349_v40 = vmul.f32 %v348_v33, %v342_v38  ;;  %v361_v41 = vmul.f32 %v360_v34, %v354_v39  ;;  %v366_v42 = vld [vmem:[#allocation2 + $0x19] ss:$2 sm:$0x3]  ;;  %v379_v44 = vld [vmem:[#allocation2 + $0x27] ss:$2 sm:$0x3] }
  0x32   : > { %v391_v45 = vld [vmem:[#allocation2 + $0x28] ss:$2 sm:$0x3]  ;;  %v373_v47 = vmul.f32 %v372_v37, %v366_v42  ;;  %v308_v49 = vld [vmem:[#allocation2 + $0x27] ss:$2 sm:$0x3]  ;;  %v386_v56 = vmul.f32 %v385_v43, %v379_v44 }
  0x33   : > { %v351_v46 = vadd.f32 %v349_v40, %v339_v36  ;;  %v320_v50 = vld [vmem:[#allocation2 + $0x28] ss:$2 sm:$0x3]  ;;  %v314_v51 = vmul.f32 %v312_v12, %v308_v49  ;;  %v332_v53 = vld [vmem:[#allocation2 + $0x29] ss:$2 sm:$0x3]  ;;  %v398_v0 = vmul.f32 %v397_v48, %v391_v45 }
  0x34   : > { %v326_v52 = vmul.f32 %v324_v13, %v320_v50  ;;  %v344_v54 = vld [vmem:[#allocation2 + $0x37] ss:$2 sm:$0x3]  ;;  %v338_v58 = vmul.f32 %v336_v20, %v332_v53  ;;  %v356_v59 = vld [vmem:[#allocation2 + $0x38] ss:$2 sm:$0x3] }
  0x35   : > { %v363_v55 = vadd.f32 %v361_v41, %v351_v46  ;;  %v403_v60 = vld [vmem:[#allocation2 + $0x29] ss:$2 sm:$0x3]  ;;  %v350_v62 = vmul.f32 %v348_v33, %v344_v54  ;;  %v368_v1 = vld [vmem:[#allocation2 + $0x39] ss:$2 sm:$0x3]  ;;  %v362_v3 = vmul.f32 %v360_v34, %v356_v59 }
  0x36   : > { %v328_v61 = vadd.f32 %v326_v52, %v314_v51  ;;  %v410_v5 = vmul.f32 %v409_v57, %v403_v60  ;;  %v381_v6 = vld [vmem:[#allocation2 + $0x47] ss:$2 sm:$0x3]  ;;  %v374_v9 = vmul.f32 %v372_v37, %v368_v1  ;;  %v393_v11 = vld [vmem:[#allocation2 + $0x48] ss:$2 sm:$0x3] }
  0x37   : > { %v375_v63 = vadd.f32 %v373_v47, %v363_v55  ;;  %v387_v7 = vmul.f32 %v385_v43, %v381_v6  ;;  %v405_v14 = vld [vmem:[#allocation2 + $0x49] ss:$2 sm:$0x3]  ;;  %v399_v16 = vmul.f32 %v397_v48, %v393_v11 }
  0x38   : > { %v340_v2 = vadd.f32 %v338_v58, %v328_v61  ;;  %v411_v18 = vmul.f32 %v409_v57, %v405_v14 }
  0x39   : > { %v388_v4 = vadd.f32 %v386_v56, %v375_v63 }
  0x3a   : > { %v352_v8 = vadd.f32 %v350_v62, %v340_v2 }
  0x3b   : > { %v400_v10 = vadd.f32 %v398_v0, %v388_v4 }
  0x3c   : > { %v364_v12 = vadd.f32 %v362_v3, %v352_v8 }
  0x3d   : > { %v412_v13 = vadd.f32 %v410_v5, %v400_v10 }
  0x3e   : > { %v376_v15 = vadd.f32 %v374_v9, %v364_v12 }
  0x3f   : > { %698 = vmatmul.mubr.msk.f32.vlgmr.msra.gmra.mrb[0].mxu0 %vm282_vm2, %v412_v13 }
  0x40   : > { %v389_v17 = vadd.f32 %v387_v7, %v376_v15 }
  0x42   : > { %v401_v19 = vadd.f32 %v399_v16, %v389_v17 }
  0x44   : > { %v413_v20 = vadd.f32 %v411_v18, %v401_v19 }
  0x46   : > { %703 = vmatmul.mubr.msk.f32.vlgmr.msra.gmra.mrb[0].mxu1 %vm282_vm2, %v413_v20 }
 0x112   : > { %v490_v23 = vpop.f32.mrb[0].mxu0 }
 0x113   : > { %v500_v24 = vmul.f32 %v682_v21, %v490_v23  ;;  %v699_v25 = vpop.f32.mrb[1].mxu0 }
 0x115   : > { %v507_v26 = vadd.f32 %v683_v22, %v500_v24 }
 0x117   : > { %v508_v27 = vmax.f32 %v507_v26, 0.0 }
 0x119   : > { %510 = vst.msk [vmem:[%s265_s28] sm:$0x3] %vm509_vm5, %v508_v27  ;;  %v580_v28 = vpop.f32.mrb[0].mxu1 }
 0x11a   : > { %v584_v29 = vmul.f32 %v682_v21, %v580_v28  ;;  %v704_v30 = vpop.f32.mrb[1].mxu1 }
 0x11c   : > { %v585_v31 = vadd.f32 %v683_v22, %v584_v29 }
 0x11e   : > { %v586_v32 = vmax.f32 %v585_v31, 0.0 }
 0x120   : > { %686 = vst.msk [vmem:[%s265_s28 + $0x2] sm:$0x3] %vm509_vm5, %v586_v32 }
 0x121 PF: > { %s17_s21 = sadd.s32 1, %s751_s21  }
 0x122   : > { %p14_p1 = scmp.ge.s32.totalorder %s17_s21, 4  }
 0x124   :  { %16 = sbr.rel (!%p14_p1) target bundleno = 1 (0x1), region = 100 }
 0x12b   :  { %610 = vsyncpa [#allocation4], 1 }
 0x12c   :  { %612 = vsyncpa [#allocation4 + $0x1], 1 }

// kernel: bifpn_forward.17
= control target key start
LH: loop header
LB: loop body
LE: loop exit
PB: predicated region body
PF: predicated region fallthrough
CT: control target
= control target key end

     0   :  { %12 = vsyncpa [#allocation5], 0  ;;  %s1101_s0 = inlined_call_operand.vmem [shape: f32[3], index: 0, kind: input, shape index: {}]   ;;  %s1102_s1 = inlined_call_operand.vmem [shape: f32[2,2,2,4], index: 1, kind: input, shape index: {}]   ;;  %s1103_s2 = inlined_call_operand.vmem [shape: f32[2,2,2,4], index: 2, kind: input, shape index: {}]   ;;  %s1104_s3 = inlined_call_operand.vmem [shape: f32[3,3,4], index: 3, kind: input, shape index: {}]   ;;  %s1105_s4 = inlined_call_operand.vmem [shape: f32[4,4], index: 4, kind: input, shape index: {}]   ;;  %s1106_s5 = inlined_call_operand.vmem [shape: f32[1,4], index: 5, kind: input, shape index: {}]   ;;  %s1107_s6 = inlined_call_operand.vmem [shape: f32[1,4], index: 6, kind: input, shape index: {}]   ;;  %s1108_s7 = inlined_call_operand.hbm [shape: f32[2,2,2,4], index: 7, kind: output, shape index: {}]  }
   0x1   :  { %13 = vsyncpa [#allocation4], 0 }
   0x2   :  { %15 = vsyncpa [#allocation4 + $0x1], 0  ;;  %s936_s24 = smov 0   ;;  %s938_s25 = smov 0  }
   0x3   :  { %s940_s26 = smov 0   ;;  %s942_s27 = smov 0  }
   0x4 LB: > { %s957_s28 = sadd.s32 4294967295, %s888_s27   ;;  %s711_s29 = sadd.s32 4294967294, %s888_s27   ;;  %s888_s27 = sphi %s942_s27, %s1115_s27   ;;  %s884_s26 = sphi %s940_s26, %s1114_s26   ;;  %s880_s25 = sphi %s938_s25, %s1113_s25   ;;  %s876_s24 = sphi %s936_s24, %s1112_s24  }
   0x5   : > { %s961_s30 = sadd.s32 1, %s888_s27   ;;  %s185_s8 = sadd.s32 1, %s884_s26 }
   0x6   : > { %s182_s9 = ssub.s32 %s888_s27, %s961_s30  ;;  %p195_p0 = scmp.ne.s32.totalorder %s884_s26, %s880_s25 }
   0x7   : > { %p183_p1 = scmp.eq.s32.totalorder %s182_s9, 0  ;;  %p196_p2 = scmp.eq.s32.totalorder %s957_s28, 1 }
   0x8   : > { %p201_p3 = scmp.ne.s32.totalorder %s880_s25, %s876_s24  ;;  %p202_p4 = scmp.eq.s32.totalorder %s711_s29, 1 }
   0x9   : > { %s972_s10 = scalar_select %p183_p1, %s884_s26, %s185_s8  }
   0xa   : > { %p974_p5 = por %p196_p2, %p195_p0  ;;  %p978_p6 = por %p202_p4, %p201_p3 }
   0xb   : > { %p712_p7 = scmp.ge.s32.totalorder %s888_s27, 1  ;;  %p209_p8 = scmp.lt.s32.totalorder %s888_s27, 3 }
   0xc   : > { %p767_p9 = scmp.eq.s32.totalorder %s957_s28, 0  ;;  %s222_s16 = sshll.u32 %s1101_s0, 4  ;;  %s223_s16 = int_to_ptr.vmem [resolvable:$true] %s222_s16 }
   0xd   : > { %p985_p10 = pnand %p712_p7, %p209_p8  ;;  %s807_s17 = scalar_lea.vmem %s223_s16, 16 }
   0xe   : > { %p808_p13 = scmp.ne.s32.totalorder %s223_s16, %s807_s17  ;;  %p815_p3 = scmp.lt.s32.totalorder %s223_s16, %s223_s16 }
   0xf   : > { %p759_p11 = pneg %p985_p10  ;;  %p816_p4 = scmp.lt.s32.totalorder %s807_s17, %s807_s17 }
  0x11   : > { %p760_p12 = pnand %p767_p9, %p759_p11  ;;  %p817_p7 = por %p816_p4, %p815_p3 }
  0x13   : > { %p809_p0 = pneg %p760_p12 }
  0x15   : > { %p810_p1 = pnand %p809_p0, %p808_p13 }
  0x17   : > { %p811_p2 = pneg %p810_p1 }
  0x19   : > { %p818_p8 = pnand %p817_p7, %p811_p2 }
  0x1b   : > { %821 = shalt.err (!%p818_p8)
}
  0x1c   : > { %s890_s18 = smov [#allocation3]   ;;  %263 = sbr.rel (%p985_p10) target bundleno = 314 (0x13a), region = 48 }
  0x1d   : > { %762 = dma.vmem_to_smem (!%p760_p12), %s223_s16, 16, %s890_s18, [#allocation5]  }
  0x23   : > { %867 = dma.done.wait (%p767_p9), [#allocation5], 16  }
  0x24   : > { %869 = vsyncadd (%p767_p9), [#allocation5], 4294967280 }
  0x25   : > { %269 = sfence }
  0x26   : > { %v437_v0 = vld [vmem:[%s1105_s4] sm:$0xf]  ;;  %vm443_vm0 = vcmask 1043456   ;;  %p301_p11 = scmp.lt.s32.totalorder %s957_s28, 1  ;;  %v348_v1 = vlaneseq  ;;  %v891_v2 = vmov 0.0   ;;  %vm892_vm1 = vmmov 0  }
  0x27   : > { %743 = vmatprep.subr.mxu0 %v891_v2  ;;  %745 = vmatprep.mubr.msk.f32.mxu0 %vm892_vm1, %v891_v2  ;;  %s1007_s21 = sld [smem:[#allocation3]]  ;;  %s1009_s22 = sld [smem:[#allocation3 + $0x1]]  ;;  %vm329_vm2 = vcmask 31744   ;;  %vm331_vm3 = vcmask 26624   ;;  %v343_v4 = vld [vmem:[%s1104_s3] sm:$0x7] }
  0x28   : > { %744 = vmatpush3.msk.msra.mxu0 %vm443_vm0, %v437_v0  ;;  %748 = vmatprep.subr.mxu1 %v891_v2  ;;  %s302_s23 = scalar_select %p301_p11, %s957_s28, 1  ;;  %330 = vst.msk [vmem:[#allocation2] sm:$0xff] %vm329_vm2, %v891_v2  ;;  %333 = vst.msk [vmem:[#allocation2 + $0x10] sm:$0xff] %vm329_vm2, %v891_v2  ;;  %v349_v3 = vshrl.u32 %v348_v1, 7  ;;  %vm340_vm4 = vcmask 25600  }
  0x29   : > { %332 = vst.msk [vmem:[#allocation2 + $0x8] sm:$0x7] %vm331_vm3, %v891_v2  ;;  %334 = vst.msk [vmem:[#allocation2 + $0x18] sm:$0x7] %vm331_vm3, %v891_v2  ;;  %s1017_s29 = sld [smem:[#allocation3 + $0x2]]  ;;  %749 = vmatpush3.msk.msra.mxu1 %vm443_vm0, %v437_v0  ;;  %750 = vmatprep.mubr.msk.f32.mxu1 %vm892_vm1, %v891_v2  ;;  %s738_s17 = sshll.u32 %s957_s28, 6 }
  0x2a   : > { %335 = vst.msk [vmem:[#allocation2 + $0x20] sm:$0xff] %vm329_vm2, %v891_v2  ;;  %337 = vst.msk [vmem:[#allocation2 + $0x30] sm:$0xff] %vm329_vm2, %v891_v2  ;;  %s736_s8 = sshll.u32 %s302_s23, 2  ;;  %v350_v5 = vsub.s32 0, %v349_v3  ;;  %v360_v6 = vsub.s32 1, %v349_v3  ;;  %v370_v7 = vsub.s32 2, %v349_v3 }
  0x2b   : > { %336 = vst.msk [vmem:[#allocation2 + $0x28] sm:$0x7] %vm331_vm3, %v891_v2  ;;  %338 = vst.msk [vmem:[#allocation2 + $0x38] sm:$0x7] %vm331_vm3, %v891_v2  ;;  %s305_s16 = scalar_lea.vmem %s1102_s1, %s736_s8  ;;  %s310_s19 = scalar_lea.vmem %s1103_s2, %s736_s8  ;;  %v344_v31 = vld [vmem:[%s1104_s3 + $0x4] sm:$0x7] }
  0x2c   : > { %v311_v8 = vld [vmem:[%s305_s16] sm:$0x3]  ;;  %v312_v9 = vld [vmem:[%s305_s16 + $0x2] sm:$0x3]  ;;  %v351_v14 = vrot.slane %v343_v4, %v350_v5  ;;  %v361_v15 = vrot.slane %v343_v4, %v360_v6  ;;  %v371_v25 = vrot.slane %v343_v4, %v370_v7  ;;  %v381_v34 = vrot.slane %v344_v31, %v350_v5  ;;  %v345_v36 = vld [vmem:[%s1104_s3 + $0x8] sm:$0x7] }
  0x2d   : > { %v317_v10 = vld [vmem:[%s310_s19] sm:$0x3]  ;;  %v314_v11 = vstv %s1007_s21  ;;  %v318_v12 = vld [vmem:[%s310_s19 + $0x2] sm:$0x3]  ;;  %v320_v13 = vstv %s1009_s22  ;;  %v391_v35 = vrot.slane %v344_v31, %v360_v6  ;;  %v401_v37 = vrot.slane %v344_v31, %v370_v7  ;;  %s1055_s21 = scalar_lea.hbm %s1108_s7, %s738_s17  ;;  %s893_s28 = smov [#allocation6]  }
  0x2e   : > { %v315_v16 = vmul.f32 %v314_v11, %v311_v8  ;;  %v316_v17 = vmul.f32 %v314_v11, %v312_v9  ;;  %v321_v18 = vmul.f32 %v320_v13, %v317_v10  ;;  %v322_v19 = vmul.f32 %v320_v13, %v318_v12  ;;  %s826_s8 = sshll.u32 %s893_s28, 4  ;;  %s827_s8 = int_to_ptr.vmem [resolvable:$false] %s826_s8 }
  0x2f   : > { %v326_v20 = vstv %s1017_s29  ;;  %v412_v45 = vrot.slane %v345_v36, %v350_v5  ;;  %v422_v47 = vrot.slane %v345_v36, %v360_v6  ;;  %v432_v57 = vrot.slane %v345_v36, %v370_v7  ;;  %s298_s29 = sand.u32 1, %s880_s25   ;;  %s828_s9 = scalar_lea.vmem %s827_s8, 128 }
  0x30   : > { %v346_v21 = vld [vmem:[#allocation2 + $0x7] sm:$0x3]  ;;  %v323_v23 = vadd.f32 %v321_v18, %v315_v16  ;;  %v324_v24 = vadd.f32 %v322_v19, %v316_v17  ;;  %v366_v30 = vld [vmem:[#allocation2 + $0x9] sm:$0x3]  ;;  %s717_s15 = sshll.u32 %s298_s29, 2  ;;  %s1060_s22 = scalar_lea.sflag [#allocation4], %s298_s29 }
  0x31   : > { %v356_v22 = vld [vmem:[#allocation2 + $0x8] sm:$0x3]  ;;  %v352_v28 = vmul.f32 %v351_v14, %v346_v21  ;;  %v372_v33 = vmul.f32 %v371_v25, %v366_v30  ;;  %s300_s16 = scalar_lea.vmem [#allocation6], %s717_s15 }
  0x32   : > { %v327_v26 = vmul.f32 %v326_v20, %v323_v23  ;;  %v328_v27 = vmul.f32 %v326_v20, %v324_v24  ;;  %v362_v29 = vmul.f32 %v361_v15, %v356_v22  ;;  %v408_v5 = vld [vmem:[#allocation2 + $0x37] sm:$0x3]  ;;  %v726_v22 = vld [vmem:[%s1106_s5] ss:$0 sm:$0xff]  ;;  %s625_s18 = sshll.u32 %s300_s16, 4  ;;  %s1057_s18 = int_to_ptr.vmem [resolvable:$true] %s625_s18 }
  0x33   : > { %v418_v11 = vld [vmem:[#allocation2 + $0x38] sm:$0x3]  ;;  %v414_v13 = vmul.f32 %v412_v45, %v408_v5  ;;  %v727_v23 = vld [vmem:[%s1107_s6] ss:$0 sm:$0xff]  ;;  %s822_s23 = scalar_lea.vmem %s1057_s18, 64  ;;  %p829_p13 = scmp.lt.s32.totalorder %s1057_s18, %s827_s8 }
  0x34   : > { %341 = vst.msk [vmem:[#allocation2 + $0x18] sm:$0x3] %vm340_vm4, %v327_v26  ;;  %342 = vst.msk [vmem:[#allocation2 + $0x28] sm:$0x3] %vm340_vm4, %v328_v27  ;;  %v364_v32 = vadd.f32 %v362_v29, %v352_v28  ;;  %v424_v17 = vmul.f32 %v422_v47, %v418_v11  ;;  %p823_p9 = scmp.ne.s32.totalorder %s1057_s18, %s822_s23  ;;  %p830_p0 = scmp.lt.s32.totalorder %s828_s9, %s822_s23 }
  0x36   : > { %v374_v38 = vadd.f32 %v372_v33, %v364_v32  ;;  %p824_p10 = pnand %p823_p9, %p974_p5  ;;  %p831_p1 = por %p830_p0, %p829_p13 }
  0x38   : > { %p825_p12 = pneg %p824_p10 }
  0x3a   : > { %p832_p2 = pnand %p831_p1, %p825_p12 }
  0x3b   : > { %v376_v39 = vld [vmem:[#allocation2 + $0x17] sm:$0x3]  ;;  %v396_v41 = vld [vmem:[#allocation2 + $0x19] sm:$0x3]  ;;  %v407_v44 = vld [vmem:[#allocation2 + $0x27] sm:$0x3] }
  0x3c   : > { %v386_v40 = vld [vmem:[#allocation2 + $0x18] sm:$0x3]  ;;  %v382_v42 = vmul.f32 %v381_v34, %v376_v39  ;;  %v402_v46 = vmul.f32 %v401_v37, %v396_v41  ;;  %v377_v55 = vld [vmem:[#allocation2 + $0x27] sm:$0x3]  ;;  %v413_v60 = vmul.f32 %v412_v45, %v407_v44  ;;  %v427_v63 = vld [vmem:[#allocation2 + $0x29] sm:$0x3] }
  0x3d   : > { %v392_v43 = vmul.f32 %v391_v35, %v386_v40  ;;  %v347_v48 = vld [vmem:[#allocation2 + $0x17] sm:$0x3]  ;;  %v367_v50 = vld [vmem:[#allocation2 + $0x19] sm:$0x3]  ;;  %v417_v56 = vld [vmem:[#allocation2 + $0x28] sm:$0x3]  ;;  %v383_v62 = vmul.f32 %v381_v34, %v377_v55  ;;  %v433_v8 = vmul.f32 %v432_v57, %v427_v63 }
  0x3e   : > { %v357_v49 = vld [vmem:[#allocation2 + $0x18] sm:$0x3]  ;;  %v384_v51 = vadd.f32 %v382_v42, %v374_v38  ;;  %v353_v52 = vmul.f32 %v351_v14, %v347_v48  ;;  %v373_v54 = vmul.f32 %v371_v25, %v367_v50  ;;  %v387_v58 = vld [vmem:[#allocation2 + $0x28] sm:$0x3]  ;;  %v423_v2 = vmul.f32 %v422_v47, %v417_v56 }
  0x3f   : > { %v363_v53 = vmul.f32 %v361_v15, %v357_v49  ;;  %v397_v0 = vld [vmem:[#allocation2 + $0x29] sm:$0x3]  ;;  %v393_v4 = vmul.f32 %v391_v35, %v387_v58  ;;  %v428_v14 = vld [vmem:[#allocation2 + $0x39] sm:$0x3] }
  0x40   : > { %v394_v59 = vadd.f32 %v392_v43, %v384_v51  ;;  %v403_v10 = vmul.f32 %v401_v37, %v397_v0  ;;  %v434_v19 = vmul.f32 %v432_v57, %v428_v14 }
  0x41   : > { %v365_v61 = vadd.f32 %v363_v53, %v353_v52 }
  0x42   : > { %v404_v1 = vadd.f32 %v402_v46, %v394_v59 }
  0x43   : > { %v375_v3 = vadd.f32 %v373_v54, %v365_v61 }
  0x44   : > { %v415_v6 = vadd.f32 %v413_v60, %v404_v1 }
  0x45   : > { %v385_v9 = vadd.f32 %v383_v62, %v375_v3 }
  0x46   : > { %v425_v12 = vadd.f32 %v423_v2, %v415_v6 }
  0x47   : > { %v395_v7 = vadd.f32 %v393_v4, %v385_v9 }
  0x48   : > { %v435_v15 = vadd.f32 %v433_v8, %v425_v12 }
  0x49   : > { %v405_v16 = vadd.f32 %v403_v10, %v395_v7 }
  0x4a   : > { %746 = vmatmul.mubr.msk.f32.vlgmr.msra.gmra.mrb[0].mxu0 %vm329_vm2, %v435_v15 }
  0x4b   : > { %v416_v18 = vadd.f32 %v414_v13, %v405_v16 }
  0x4d   : > { %v426_v20 = vadd.f32 %v424_v17, %v416_v18 }
  0x4f   : > { %v436_v21 = vadd.f32 %v434_v19, %v426_v20 }
  0x51   : > { %751 = vmatmul.mubr.msk.f32.vlgmr.msra.gmra.mrb[0].mxu1 %vm329_vm2, %v436_v21 }
 0x11d   : > { %v513_v24 = vpop.f32.mrb[0].mxu0 }
 0x11e   : > { %v523_v25 = vmul.f32 %v726_v22, %v513_v24  ;;  %v747_v26 = vpop.f32.mrb[1].mxu0 }
 0x120   : > { %v530_v27 = vadd.f32 %v727_v23, %v523_v25 }
 0x122   : > { %v531_v28 = vmax.f32 %v530_v27, 0.0 }
 0x124   : > { %v602_v29 = vpop.f32.mrb[0].mxu1  ;;  %532 = vst.msk [vmem:[%s300_s16] sm:$0x3] %vm340_vm4, %v531_v28 }
 0x125   : > { %v606_v30 = vmul.f32 %v726_v22, %v602_v29  ;;  %v752_v31 = vpop.f32.mrb[1].mxu1 }
 0x127   : > { %v607_v32 = vadd.f32 %v727_v23, %v606_v30 }
 0x129   : > { %v608_v33 = vmax.f32 %v607_v32, 0.0 }
 0x12b   : > { %730 = vst.msk [vmem:[%s300_s16 + $0x2] sm:$0x3] %vm340_vm4, %v608_v33 }
 0x12c   : > { %835 = shalt.err (!%p832_p2)
}
 0x12d   : > { %s836_s29 = scalar_lea.hbm %s1055_s21, 64  ;;  %s840_s15 = scalar_lea.hbm %s1108_s7, 128 }
 0x12e   : > { %p837_p3 = scmp.ne.s32.totalorder %s1055_s21, %s836_s29  ;;  %p841_p8 = scmp.lt.u32.totalorder %s1055_s21, %s1108_s7 }
 0x12f   : > { %p842_p11 = scmp.lt.u32.totalorder %s840_s15, %s836_s29  ;;  %p844_p10 = scmp.lt.u32.totalorder %s836_s29, %s1055_s21 }
 0x130   : > { %p838_p4 = pnand %p837_p3, %p974_p5 }
 0x131   : > { %p843_p9 = por %p842_p11, %p841_p8 }
 0x132   : > { %p839_p7 = pneg %p838_p4 }
 0x133   : > { %p845_p12 = por %p844_p10, %p843_p9 }
 0x135   : > { %p846_p13 = pnand %p845_p12, %p839_p7 }
 0x137   : > { %849 = shalt.err (!%p846_p13)
}
 0x138   : > { %s894_s19 = smov 32   ;;  %s895_s20 = smov 2  }
 0x139   : > { %757 = dma.vmem_to_hbm [thread:$0]  (%p974_p5), %s1057_s18, 64, %s1055_s21, %s1060_s22, %s894_s19, %s894_s19, %s895_s20  }
 0x13a PF: > { %p769_p0 = scmp.ge.s32.totalorder %s888_s27, 2  ;;  %s640_s23 = sand.u32 1, %s876_s24  }
 0x13b   : > { %s641_s28 = scalar_lea.sflag [#allocation4], %s640_s23 }
 0x13c   : > { %p764_p1 = pnand %p769_p0, %p978_p6 }
 0x13e   : > { %871 = dma.done.wait (!%p764_p1), %s641_s28, 64  }
 0x13f   : > { %873 = vsyncadd (!%p764_p1), %s641_s28, 4294967232  ;;  %p18_p2 = scmp.ge.s32.totalorder %s961_s30, 4   ;;  %s1112_s24 = smov %s880_s25 }
 0x140   : > { %s1113_s25 = smov %s884_s26  ;;  %s1114_s26 = smov %s972_s10 }
 0x141   : > { %s1115_s27 = smov %s961_s30  ;;  %20 = sbr.rel (!%p18_p2) target bundleno = 4 (0x4), region = 94 }
 0x148   :  { %646 = vsyncpa [#allocation4], 1 }
 0x149   :  { %648 = vsyncpa [#allocation4 + $0x1], 1 }
 0x14a   :  { %649 = vsyncpa [#allocation5], 1 }
 0x14b   :  { %651 = vsyncpa [#allocation5 + $0x1], 1 }

</bundles_post_ra>
